<compile_context>
chip_gen: v6e
topology: v6e:2x2x1
jax: 0.10.0
libtpu: 0.0.40
codegen_flags: <defaults>
</compile_context>

<pallas_src>
import functools
import math

import jax
import jax.numpy as jnp
from jax import lax
from jax.experimental import pallas as pl
from jax.experimental.pallas import tpu as pltpu


_MAXC = 128  # every packed leaf is padded to exactly one lane tile of columns


# ----------------------------------------------------------------------------
# Fused encoder kernel
# ----------------------------------------------------------------------------

def _encoder_kernel(slots, p_ref, x_ref, out_ref):
    """Single grid step = full encoder forward for ALL batch elements.

    slots  : pytree (same structure as params) whose leaves are static
             (row_offset, rows, cols) tuples into the packed parameter buffer.
    p_ref  : (total_rows, 128) packed f32 parameters, VMEM-resident.
    x_ref  : (B, traj_dim, horizon) input (already channel-first).
    out_ref: (B, 2*latent_dim, compressed_horizon) fused [mu; logvar] output.
    """

    def ld(slot):
        off, r, c = slot
        return p_ref[off:off + r, 0:c]                    # static slice -> (r, c)

    # -- building blocks ------------------------------------------------------

    def conv1x1(x, w, b):
        return jnp.dot(w, x, preferred_element_type=jnp.float32) + b

    def conv_gn_mish(x, pc):
        """Conv1d(same pad, K accumulating taps) -> GroupNorm -> Mish."""
        c_in, L = x.shape
        K = len(pc["wk"])
        pad = K // 2
        zpad = jnp.zeros((c_in, pad), jnp.float32)
        xp = jnp.concatenate([zpad, x, zpad], axis=1)      # (C_in, L + 2*pad)
        # K-tap accumulation (pure MXU chain; accumulates in MRB on v7x).
        y = jnp.dot(ld(pc["wk"][0]), xp[:, 0:L], preferred_element_type=jnp.float32)
        for k in range(1, K):
            y = y + jnp.dot(ld(pc["wk"][k]), xp[:, k:k + L],
                            preferred_element_type=jnp.float32)
        y = y + ld(pc["b"])

        # GroupNorm: one (C,C)@(C,2) matmul on stacked [E[y], E[y^2]] stats.
        ey = jnp.mean(y, axis=1, keepdims=True)
        ey2 = jnp.mean(y * y, axis=1, keepdims=True)
        grp = jnp.dot(ld(pc["agrp"]), jnp.concatenate([ey, ey2], axis=1),
                      preferred_element_type=jnp.float32)  # (C_out, 2)
        mean_g = grp[:, 0:1]
        var_g = jnp.maximum(grp[:, 1:2] - mean_g * mean_g, 0.0)
        z = (y - mean_g) * lax.rsqrt(var_g + 1e-5) * ld(pc["gamma"]) + ld(pc["beta"])
        # Mish = z * tanh(softplus(z))
        return z * jnp.tanh(jax.nn.softplus(z))

    def resnet_block(x, pr):
        h = conv_gn_mish(x, pr["conv1"])
        h = conv_gn_mish(h, pr["conv2"])
        if "res" in pr:
            xr = conv1x1(x, ld(pr["res"]["w"]), ld(pr["res"]["b"]))
        else:
            xr = x
        return h + xr

    def lin_attn_residual(x, pa, heads):
        """Residual(PreNorm(C, LinearAttention(C, heads, dim_head)))."""
        C, L = x.shape
        g = ld(pa["g"])
        bln = ld(pa["b"])
        mean = jnp.mean(x, axis=0, keepdims=True)
        var = jnp.mean((x - mean) ** 2, axis=0, keepdims=True)
        xn = (x - mean) * lax.rsqrt(var + 1e-5) * g + bln

        w_qk = ld(pa["w_qk"])                              # (C, 2*HD) transposed
        w_v = ld(pa["w_v"])                                # (C, HD)   transposed
        hd = w_v.shape[1]
        dim_head = hd // heads
        scale = float(dim_head) ** -0.5

        # Two independent MXU pushes (contract on channel axis 0 of both).
        qk = lax.dot_general(w_qk, xn, (((0,), (0,)), ((), ())),
                             preferred_element_type=jnp.float32)      # (2*HD, L)
        v = lax.dot_general(w_v, xn, (((0,), (0,)), ((), ())),
                            preferred_element_type=jnp.float32)       # (HD, L)
        q = qk[0:hd, :] * scale
        k = qk[hd:2 * hd, :]

        # softmax over length (row-wise, head independent)
        k = k - jnp.max(k, axis=1, keepdims=True)
        ke = jnp.exp(k)
        ksm = ke / jnp.sum(ke, axis=1, keepdims=True)

        # Full-width context + block-diagonal head mask == per-head attention.
        ctx = lax.dot_general(ksm, v, (((1,), (1,)), ((), ())),
                              preferred_element_type=jnp.float32)     # (HD, HD)
        ctx = ctx * ld(pa["hmask"])
        out = lax.dot_general(ctx, q, (((0,), (0,)), ((), ())),
                              preferred_element_type=jnp.float32)     # (HD, L)

        y = jnp.dot(ld(pa["w_out"]), out,
                    preferred_element_type=jnp.float32) + ld(pa["b_out"])
        return y + x                                       # Residual

    def downsample(x, pd):
        """Conv1d(k=3, stride=2, pad=1): K-tap full conv + stride-2 selection matmul."""
        C, L = x.shape
        K = len(pd["wk"])
        pad = K // 2
        zpad = jnp.zeros((C, pad), jnp.float32)
        xp = jnp.concatenate([zpad, x, zpad], axis=1)
        y = jnp.dot(ld(pd["wk"][0]), xp[:, 0:L], preferred_element_type=jnp.float32)
        for k in range(1, K):
            y = y + jnp.dot(ld(pd["wk"][k]), xp[:, k:k + L],
                            preferred_element_type=jnp.float32)
        y = y + ld(pd["b"])
        ssel_slot = pd["ssel"]
        assert ssel_slot[1] == L and ssel_slot[2] == L // 2, "horizon mismatch"
        return jnp.dot(y, ld(pd["ssel"]), preferred_element_type=jnp.float32)

    # -- forward pass: static loop over batch (independent chains interleave) --

    B = x_ref.shape[0]
    for b in range(B):
        h = x_ref[b]                                       # (traj_dim, horizon)
        h = lin_attn_residual(h, slots["init_attn"], heads=4)
        h = conv_gn_mish(h, slots["init_conv"])

        for d in slots["downs"]:
            h = resnet_block(h, d["res1"])
            h = lin_attn_residual(h, d["attn"], heads=4)
            h = resnet_block(h, d["res2"])
            h = downsample(h, d["down"])

        h = resnet_block(h, slots["final"])
        # Fused to_mu / to_logvar: one matmul, one store.
        out_ref[b] = conv1x1(h, ld(slots["head"]["w"]), ld(slots["head"]["b"]))


def encoder1d_forward(packed, x, *, slot_tree, latent_dim, n_down):
    """x: (B, horizon, traj_dim) -> (mu, logvar): (B, compressed_horizon, latent_dim)."""
    x = x.astype(jnp.float32)
    B, H, T = x.shape
    Lc = H // (2 ** n_down)
    xc = jnp.transpose(x, (0, 2, 1))                       # b h t -> b t h (in XLA)
    kernel = functools.partial(_encoder_kernel, slot_tree)
    fused = pl.pallas_call(
        kernel,
        out_shape=jax.ShapeDtypeStruct((B, 2 * latent_dim, Lc), jnp.float32),
        grid=(1,),
        in_specs=[
            pl.BlockSpec(packed.shape, lambda i: (0, 0)),          # packed weights
            pl.BlockSpec((B, T, H), lambda i: (0, 0, 0)),          # full batch
        ],
        out_specs=pl.BlockSpec((B, 2 * latent_dim, Lc), lambda i: (0, 0, 0)),
        compiler_params=pltpu.CompilerParams(
            dimension_semantics=("arbitrary",),
            vmem_limit_bytes=4 * 1024 * 1024),
    )(packed, xc)
    mu = jnp.transpose(fused[:, :latent_dim, :], (0, 2, 1))        # b l h -> b h l
    logvar = jnp.transpose(fused[:, latent_dim:, :], (0, 2, 1))
    return mu, logvar


# ----------------------------------------------------------------------------
# Parameter construction (deterministic, synthetic) -- already in kernel layout
# ----------------------------------------------------------------------------

def _group_avg_matrix(c_out, n_groups=8):
    assert c_out % n_groups == 0
    cpg = c_out // n_groups
    gid = jnp.arange(c_out) // cpg
    return (gid[:, None] == gid[None, :]).astype(jnp.float32) / float(cpg)


def _head_mask(heads, dim_head):
    hid = jnp.arange(heads * dim_head) // dim_head
    return (hid[:, None] == hid[None, :]).astype(jnp.float32)       # (HD, HD)


def _stride2_select(L):
    n = jnp.arange(L)[:, None]
    o = jnp.arange(L // 2)[None, :]
    return (n == 2 * o).astype(jnp.float32)                          # (L, L//2)


def _conv_w(key, c_out, c_in, k):
    return jax.random.normal(key, (c_out, c_in, k), jnp.float32) / math.sqrt(c_in * k)


def _conv_norm_params(key, c_in, c_out, k, n_groups=8):
    kw, kb = jax.random.split(key)
    w = _conv_w(kw, c_out, c_in, k)                        # torch layout (C_out, C_in, K)
    return {
        "wk": [w[:, :, t] for t in range(k)],              # per-tap (C_out, C_in) slots
        "b": (0.01 * jax.random.normal(kb, (c_out,), jnp.float32)).reshape(c_out, 1),
        "gamma": jnp.ones((c_out, 1), jnp.float32),
        "beta": jnp.zeros((c_out, 1), jnp.float32),
        "agrp": _group_avg_matrix(c_out, n_groups),
    }


def _resnet_params(key, c_in, c_out, k=5):
    k1, k2, k3 = jax.random.split(key, 3)
    p = {"conv1": _conv_norm_params(k1, c_in, c_out, k),
         "conv2": _conv_norm_params(k2, c_out, c_out, k)}
    if c_in != c_out:
        p["res"] = {"w": _conv_w(k3, c_out, c_in, 1).reshape(c_out, c_in),
                    "b": jnp.zeros((c_out, 1), jnp.float32)}
    return p


def _attn_params(key, dim, heads, dim_head):
    kq, ko, kb = jax.random.split(key, 3)
    hd = heads * dim_head
    w_qkv = jax.random.normal(kq, (3 * hd, dim), jnp.float32) / math.sqrt(dim)
    return {
        "g": jnp.ones((dim, 1), jnp.float32),
        "b": jnp.zeros((dim, 1), jnp.float32),
        # store transposed (channel-contracting axis first) and split q|k / v so
        # every leaf fits in a single 128-lane tile
        "w_qk": jnp.transpose(w_qkv[0:2 * hd, :]),         # (dim, 2*HD)
        "w_v": jnp.transpose(w_qkv[2 * hd:, :]),           # (dim, HD)
        "w_out": jax.random.normal(ko, (dim, hd), jnp.float32) / math.sqrt(hd),
        "b_out": (0.01 * jax.random.normal(kb, (dim,), jnp.float32)).reshape(dim, 1),
        "hmask": _head_mask(heads, dim_head),
    }


def _down_params(key, c, L):
    w = _conv_w(key, c, c, 3)
    return {"wk": [w[:, :, t] for t in range(3)],
            "b": jnp.zeros((c, 1), jnp.float32),
            "ssel": _stride2_select(L)}


def init_encoder_params(key, *, traj_dim, features, channel_mults, latent_dim, horizon):
    assert channel_mults[0] == 1
    dims = [features * m for m in channel_mults]
    keys = jax.random.split(key, 6 + 4 * (len(dims) - 1))
    ki = iter(keys)
    params = {
        "init_attn": _attn_params(next(ki), traj_dim, heads=4, dim_head=16),
        "init_conv": _conv_norm_params(next(ki), traj_dim, features, 5),
        "downs": [],
    }
    L = horizon
    for idx in range(len(dims) - 1):
        c_in, c_out = dims[idx], dims[idx + 1]
        assert L % 2 == 0, "Downsample1d requires an even length"
        params["downs"].append({
            "res1": _resnet_params(next(ki), c_in, c_out),
            "attn": _attn_params(next(ki), c_out, heads=4, dim_head=8),
            "res2": _resnet_params(next(ki), c_out, c_out),
            "down": _down_params(next(ki), c_out, L),
        })
        L //= 2
    f = dims[-1]
    params["final"] = _resnet_params(next(ki), f, f)
    # Fused to_mu / to_logvar head: stacked weights and biases.
    km, kl = next(ki), next(ki)
    w_mu = _conv_w(km, latent_dim, f, 1).reshape(latent_dim, f)
    w_lv = _conv_w(kl, latent_dim, f, 1).reshape(latent_dim, f)
    params["head"] = {"w": jnp.concatenate([w_mu, w_lv], axis=0),       # (2*latent, f)
                      "b": jnp.zeros((2 * latent_dim, 1), jnp.float32)}
    return params


def pack_params(params):
    """Pack every 2-D param into one (total_rows, 128) lane-dense f32 buffer.

    Returns (packed_array, slot_tree) where slot_tree mirrors `params` but each
    leaf is a static (row_offset, rows, cols) tuple (rows 8-aligned, columns
    padded to exactly one 128-lane tile so slices never cross a lane tile).
    """
    leaves, treedef = jax.tree_util.tree_flatten(params)
    blocks, slots, off = [], [], 0
    for a in leaves:
        assert a.ndim == 2 and a.shape[1] <= _MAXC, a.shape
        r, c = int(a.shape[0]), int(a.shape[1])
        rp = ((r + 7) // 8) * 8
        slots.append((off, r, c))
        blocks.append(jnp.pad(a.astype(jnp.float32), ((0, rp - r), (0, _MAXC - c))))
        off += rp
    packed = jnp.concatenate(blocks, axis=0)
    slot_tree = jax.tree_util.tree_unflatten(treedef, slots)
    return packed, slot_tree


# ----------------------------------------------------------------------------
# Main
# ----------------------------------------------------------------------------

if __name__ == "__main__":
    # VAE_EncoderArgs (small, synthetic): traj_dim=4, features=8,
    # channel_mults=(1, 2), latent_dim=4; batch=2, horizon=16.
    traj_dim, features, channel_mults, latent_dim = 4, 8, (1, 2), 4
    B, horizon = 2, 16
    n_down = len(channel_mults) - 1

    key = jax.random.PRNGKey(0)
    kp, kx = jax.random.split(key)
    params = init_encoder_params(kp, traj_dim=traj_dim, features=features,
                                 channel_mults=channel_mults, latent_dim=latent_dim,
                                 horizon=horizon)
    packed, slot_tree = pack_params(params)
    x = jax.random.normal(kx, (B, horizon, traj_dim), jnp.float32)

    fwd = jax.jit(functools.partial(encoder1d_forward, slot_tree=slot_tree,
                                    latent_dim=latent_dim, n_down=n_down))
    mu, logvar = fwd(packed, x)
    jax.block_until_ready((mu, logvar))

    expected = (B, horizon // (2 ** n_down), latent_dim)
    assert mu.shape == expected, (mu.shape, expected)
    assert logvar.shape == expected, (logvar.shape, expected)
    assert bool(jnp.all(jnp.isfinite(mu))) and bool(jnp.all(jnp.isfinite(logvar)))
    print("KERNEL_OK")
</pallas_src>

<mosaic_0001>
module attributes {stable_mosaic.version = 11 : i64} {
  func.func @_encoder_kernel(%arg0: i32, %arg1: memref<1304x128xf32, #tpu.memory_space<vmem>>, %arg2: memref<2x4x16xf32, #tpu.memory_space<vmem>>, %arg3: memref<2x8x8xf32, #tpu.memory_space<vmem>>) attributes {dimension_semantics = [#tpu.dimension_semantics<arbitrary>], iteration_bounds = array<i64: 1>, scalar_prefetch = 0 : i64, scratch_operands = 0 : i64, tpu.core_type = #tpu.core_type<tc>, window_params = [{pipeline_mode = #tpu.pipeline_mode<synchronous>, transform_indices = @transform_0, window_bounds = array<i64: 1304, 128>}, {pipeline_mode = #tpu.pipeline_mode<synchronous>, transform_indices = @transform_1, window_bounds = array<i64: 2, 4, 16>}, {pipeline_mode = #tpu.pipeline_mode<synchronous>, transform_indices = @transform_2, window_bounds = array<i64: 2, 8, 8>}]} {
    %c0 = arith.constant 0 : index
    %c0_0 = arith.constant 0 : index
    %c0_1 = arith.constant 0 : index
    %0 = vector.load %arg2[%c0, %c0_0, %c0_1] : memref<2x4x16xf32, #tpu.memory_space<vmem>>, vector<1x4x16xf32>
    %1 = vector.shape_cast %0 : vector<1x4x16xf32> to vector<4x16xf32>
    %c1136 = arith.constant 1136 : index
    %c0_2 = arith.constant 0 : index
    %2 = vector.load %arg1[%c1136, %c0_2] : memref<1304x128xf32, #tpu.memory_space<vmem>>, vector<4x1xf32>
    %c1120 = arith.constant 1120 : index
    %c0_3 = arith.constant 0 : index
    %3 = vector.load %arg1[%c1120, %c0_3] : memref<1304x128xf32, #tpu.memory_space<vmem>>, vector<4x1xf32>
    %cst = arith.constant dense<0.000000e+00> : vector<16xf32>
    %4 = vector.multi_reduction <add>, %1, %cst [0] : vector<4x16xf32> to vector<16xf32>
    %5 = vector.shape_cast %4 : vector<16xf32> to vector<1x16xf32>
    %cst_4 = arith.constant 4.000000e+00 : f32
    %6 = vector.broadcast %cst_4 : f32 to vector<1x16xf32>
    %7 = arith.divf %5, %6 : vector<1x16xf32>
    %8 = vector.broadcast %7 : vector<1x16xf32> to vector<4x16xf32>
    %9 = arith.subf %1, %8 : vector<4x16xf32>
    %10 = arith.mulf %9, %9 : vector<4x16xf32>
    %cst_5 = arith.constant dense<0.000000e+00> : vector<16xf32>
    %11 = vector.multi_reduction <add>, %10, %cst_5 [0] : vector<4x16xf32> to vector<16xf32>
    %12 = vector.shape_cast %11 : vector<16xf32> to vector<1x16xf32>
    %cst_6 = arith.constant 4.000000e+00 : f32
    %13 = vector.broadcast %cst_6 : f32 to vector<1x16xf32>
    %14 = arith.divf %12, %13 : vector<1x16xf32>
    %15 = vector.broadcast %7 : vector<1x16xf32> to vector<4x16xf32>
    %16 = arith.subf %1, %15 : vector<4x16xf32>
    %cst_7 = arith.constant 9.99999974E-6 : f32
    %17 = vector.broadcast %cst_7 : f32 to vector<1x16xf32>
    %18 = arith.addf %14, %17 : vector<1x16xf32>
    %19 = math.rsqrt %18 : vector<1x16xf32>
    %20 = vector.broadcast %19 : vector<1x16xf32> to vector<4x16xf32>
    %21 = arith.mulf %16, %20 : vector<4x16xf32>
    %22 = vector.broadcast %2 : vector<4x1xf32> to vector<4x16xf32>
    %23 = arith.mulf %21, %22 : vector<4x16xf32>
    %24 = vector.broadcast %3 : vector<4x1xf32> to vector<4x16xf32>
    %25 = arith.addf %23, %24 : vector<4x16xf32>
    %c1216 = arith.constant 1216 : index
    %c0_8 = arith.constant 0 : index
    %26 = vector.load %arg1[%c1216, %c0_8] : memref<1304x128xf32, #tpu.memory_space<vmem>>, vector<4x128xf32>
    %c1224 = arith.constant 1224 : index
    %c0_9 = arith.constant 0 : index
    %27 = vector.load %arg1[%c1224, %c0_9] : memref<1304x128xf32, #tpu.memory_space<vmem>>, vector<4x64xf32>
    %cst_10 = arith.constant dense<0.000000e+00> : vector<128x16xf32>
    %28 = tpu.matmul %26, %25, %cst_10 {dimension_numbers = #tpu.dot_dimension_numbers<[0], [0], [1], [1], [0, 1, 1, 1], [], []>} : vector<4x128xf32>, vector<4x16xf32>, vector<128x16xf32> -> vector<128x16xf32>
    %cst_11 = arith.constant dense<0.000000e+00> : vector<64x16xf32>
    %29 = tpu.matmul %27, %25, %cst_11 {dimension_numbers = #tpu.dot_dimension_numbers<[0], [0], [1], [1], [0, 1, 1, 1], [], []>} : vector<4x64xf32>, vector<4x16xf32>, vector<64x16xf32> -> vector<64x16xf32>
    %30 = vector.extract_strided_slice %28 {offsets = [0, 0], sizes = [64, 16], strides = [1, 1]} : vector<128x16xf32> to vector<64x16xf32>
    %cst_12 = arith.constant 2.500000e-01 : f32
    %31 = vector.broadcast %cst_12 : f32 to vector<64x16xf32>
    %32 = arith.mulf %30, %31 : vector<64x16xf32>
    %33 = vector.extract_strided_slice %28 {offsets = [64, 0], sizes = [64, 16], strides = [1, 1]} : vector<128x16xf32> to vector<64x16xf32>
    %cst_13 = arith.constant dense<0xFF800000> : vector<64xf32>
    %34 = vector.multi_reduction <maximumf>, %33, %cst_13 [1] : vector<64x16xf32> to vector<64xf32>
    %35 = vector.shape_cast %34 : vector<64xf32> to vector<64x1xf32>
    %36 = vector.broadcast %35 : vector<64x1xf32> to vector<64x16xf32>
    %37 = arith.subf %33, %36 : vector<64x16xf32>
    %38 = math.exp %37 : vector<64x16xf32>
    %cst_14 = arith.constant dense<0.000000e+00> : vector<64xf32>
    %39 = vector.multi_reduction <add>, %38, %cst_14 [1] : vector<64x16xf32> to vector<64xf32>
    %40 = vector.shape_cast %39 : vector<64xf32> to vector<64x1xf32>
    %41 = vector.broadcast %40 : vector<64x1xf32> to vector<64x16xf32>
    %42 = arith.divf %38, %41 : vector<64x16xf32>
    %cst_15 = arith.constant dense<0.000000e+00> : vector<64x64xf32>
    %43 = tpu.matmul %42, %29, %cst_15 {dimension_numbers = #tpu.dot_dimension_numbers<[1], [1], [0], [0], [0, 0, 1, 0], [], []>} : vector<64x16xf32>, vector<64x16xf32>, vector<64x64xf32> -> vector<64x64xf32>
    %c1144 = arith.constant 1144 : index
    %c0_16 = arith.constant 0 : index
    %44 = vector.load %arg1[%c1144, %c0_16] : memref<1304x128xf32, #tpu.memory_space<vmem>>, vector<64x64xf32>
    %45 = arith.mulf %43, %44 : vector<64x64xf32>
    %cst_17 = arith.constant dense<0.000000e+00> : vector<64x16xf32>
    %46 = tpu.matmul %45, %32, %cst_17 {dimension_numbers = #tpu.dot_dimension_numbers<[0], [0], [1], [1], [0, 1, 1, 1], [], []>} : vector<64x64xf32>, vector<64x16xf32>, vector<64x16xf32> -> vector<64x16xf32>
    %c1208 = arith.constant 1208 : index
    %c0_18 = arith.constant 0 : index
    %47 = vector.load %arg1[%c1208, %c0_18] : memref<1304x128xf32, #tpu.memory_space<vmem>>, vector<4x64xf32>
    %cst_19 = arith.constant dense<0.000000e+00> : vector<4x16xf32>
    %48 = tpu.matmul %47, %46, %cst_19 {dimension_numbers = #tpu.dot_dimension_numbers<[1], [0], [0], [1], [0, 0, 1, 1], [], []>} : vector<4x64xf32>, vector<64x16xf32>, vector<4x16xf32> -> vector<4x16xf32>
    %c1128 = arith.constant 1128 : index
    %c0_20 = arith.constant 0 : index
    %49 = vector.load %arg1[%c1128, %c0_20] : memref<1304x128xf32, #tpu.memory_space<vmem>>, vector<4x1xf32>
    %50 = vector.broadcast %49 : vector<4x1xf32> to vector<4x16xf32>
    %51 = arith.addf %48, %50 : vector<4x16xf32>
    %52 = arith.addf %51, %1 : vector<4x16xf32>
    %cst_21 = arith.constant 0.000000e+00 : f32
    %53 = vector.broadcast %cst_21 : f32 to vector<4x2xf32>
    %54 = tpu.concatenate %53, %52, %53 in 1 : vector<4x2xf32>, vector<4x16xf32>, vector<4x2xf32> -> vector<4x20xf32>
    %c1264 = arith.constant 1264 : index
    %c0_22 = arith.constant 0 : index
    %55 = vector.load %arg1[%c1264, %c0_22] : memref<1304x128xf32, #tpu.memory_space<vmem>>, vector<8x4xf32>
    %56 = vector.extract_strided_slice %54 {offsets = [0, 0], sizes = [4, 16], strides = [1, 1]} : vector<4x20xf32> to vector<4x16xf32>
    %cst_23 = arith.constant dense<0.000000e+00> : vector<8x16xf32>
    %57 = tpu.matmul %55, %56, %cst_23 {dimension_numbers = #tpu.dot_dimension_numbers<[1], [0], [0], [1], [0, 0, 1, 1], [], []>} : vector<8x4xf32>, vector<4x16xf32>, vector<8x16xf32> -> vector<8x16xf32>
    %c1272 = arith.constant 1272 : index
    %c0_24 = arith.constant 0 : index
    %58 = vector.load %arg1[%c1272, %c0_24] : memref<1304x128xf32, #tpu.memory_space<vmem>>, vector<8x4xf32>
    %59 = vector.extract_strided_slice %54 {offsets = [0, 1], sizes = [4, 16], strides = [1, 1]} : vector<4x20xf32> to vector<4x16xf32>
    %cst_25 = arith.constant dense<0.000000e+00> : vector<8x16xf32>
    %60 = tpu.matmul %58, %59, %cst_25 {dimension_numbers = #tpu.dot_dimension_numbers<[1], [0], [0], [1], [0, 0, 1, 1], [], []>} : vector<8x4xf32>, vector<4x16xf32>, vector<8x16xf32> -> vector<8x16xf32>
    %61 = arith.addf %57, %60 : vector<8x16xf32>
    %c1280 = arith.constant 1280 : index
    %c0_26 = arith.constant 0 : index
    %62 = vector.load %arg1[%c1280, %c0_26] : memref<1304x128xf32, #tpu.memory_space<vmem>>, vector<8x4xf32>
    %63 = vector.extract_strided_slice %54 {offsets = [0, 2], sizes = [4, 16], strides = [1, 1]} : vector<4x20xf32> to vector<4x16xf32>
    %cst_27 = arith.constant dense<0.000000e+00> : vector<8x16xf32>
    %64 = tpu.matmul %62, %63, %cst_27 {dimension_numbers = #tpu.dot_dimension_numbers<[1], [0], [0], [1], [0, 0, 1, 1], [], []>} : vector<8x4xf32>, vector<4x16xf32>, vector<8x16xf32> -> vector<8x16xf32>
    %65 = arith.addf %61, %64 : vector<8x16xf32>
    %c1288 = arith.constant 1288 : index
    %c0_28 = arith.constant 0 : index
    %66 = vector.load %arg1[%c1288, %c0_28] : memref<1304x128xf32, #tpu.memory_space<vmem>>, vector<8x4xf32>
    %67 = vector.extract_strided_slice %54 {offsets = [0, 3], sizes = [4, 16], strides = [1, 1]} : vector<4x20xf32> to vector<4x16xf32>
    %cst_29 = arith.constant dense<0.000000e+00> : vector<8x16xf32>
    %68 = tpu.matmul %66, %67, %cst_29 {dimension_numbers = #tpu.dot_dimension_numbers<[1], [0], [0], [1], [0, 0, 1, 1], [], []>} : vector<8x4xf32>, vector<4x16xf32>, vector<8x16xf32> -> vector<8x16xf32>
    %69 = arith.addf %65, %68 : vector<8x16xf32>
    %c1296 = arith.constant 1296 : index
    %c0_30 = arith.constant 0 : index
    %70 = vector.load %arg1[%c1296, %c0_30] : memref<1304x128xf32, #tpu.memory_space<vmem>>, vector<8x4xf32>
    %71 = vector.extract_strided_slice %54 {offsets = [0, 4], sizes = [4, 16], strides = [1, 1]} : vector<4x20xf32> to vector<4x16xf32>
    %cst_31 = arith.constant dense<0.000000e+00> : vector<8x16xf32>
    %72 = tpu.matmul %70, %71, %cst_31 {dimension_numbers = #tpu.dot_dimension_numbers<[1], [0], [0], [1], [0, 0, 1, 1], [], []>} : vector<8x4xf32>, vector<4x16xf32>, vector<8x16xf32> -> vector<8x16xf32>
    %73 = arith.addf %69, %72 : vector<8x16xf32>
    %c1240 = arith.constant 1240 : index
    %c0_32 = arith.constant 0 : index
    %74 = vector.load %arg1[%c1240, %c0_32] : memref<1304x128xf32, #tpu.memory_space<vmem>>, vector<8x1xf32>
    %75 = vector.broadcast %74 : vector<8x1xf32> to vector<8x16xf32>
    %76 = arith.addf %73, %75 : vector<8x16xf32>
    %cst_33 = arith.constant dense<0.000000e+00> : vector<8xf32>
    %77 = vector.multi_reduction <add>, %76, %cst_33 [1] : vector<8x16xf32> to vector<8xf32>
    %78 = vector.shape_cast %77 : vector<8xf32> to vector<8x1xf32>
    %cst_34 = arith.constant 1.600000e+01 : f32
    %79 = vector.broadcast %cst_34 : f32 to vector<8x1xf32>
    %80 = arith.divf %78, %79 : vector<8x1xf32>
    %81 = arith.mulf %76, %76 : vector<8x16xf32>
    %cst_35 = arith.constant dense<0.000000e+00> : vector<8xf32>
    %82 = vector.multi_reduction <add>, %81, %cst_35 [1] : vector<8x16xf32> to vector<8xf32>
    %83 = vector.shape_cast %82 : vector<8xf32> to vector<8x1xf32>
    %cst_36 = arith.constant 1.600000e+01 : f32
    %84 = vector.broadcast %cst_36 : f32 to vector<8x1xf32>
    %85 = arith.divf %83, %84 : vector<8x1xf32>
    %c1232 = arith.constant 1232 : index
    %c0_37 = arith.constant 0 : index
    %86 = vector.load %arg1[%c1232, %c0_37] : memref<1304x128xf32, #tpu.memory_space<vmem>>, vector<8x8xf32>
    %87 = tpu.concatenate %80, %85 in 1 : vector<8x1xf32>, vector<8x1xf32> -> vector<8x2xf32>
    %cst_38 = arith.constant dense<0.000000e+00> : vector<8x2xf32>
    %88 = tpu.matmul %86, %87, %cst_38 {dimension_numbers = #tpu.dot_dimension_numbers<[1], [0], [0], [1], [0, 0, 1, 1], [], []>} : vector<8x8xf32>, vector<8x2xf32>, vector<8x2xf32> -> vector<8x2xf32>
    %89 = vector.extract_strided_slice %88 {offsets = [0, 0], sizes = [8, 1], strides = [1, 1]} : vector<8x2xf32> to vector<8x1xf32>
    %90 = vector.extract_strided_slice %88 {offsets = [0, 1], sizes = [8, 1], strides = [1, 1]} : vector<8x2xf32> to vector<8x1xf32>
    %91 = arith.mulf %89, %89 : vector<8x1xf32>
    %92 = arith.subf %90, %91 : vector<8x1xf32>
    %cst_39 = arith.constant 0.000000e+00 : f32
    %93 = vector.broadcast %cst_39 : f32 to vector<8x1xf32>
    %94 = arith.maximumf %92, %93 : vector<8x1xf32>
    %95 = vector.broadcast %89 : vector<8x1xf32> to vector<8x16xf32>
    %96 = arith.subf %76, %95 : vector<8x16xf32>
    %cst_40 = arith.constant 9.99999974E-6 : f32
    %97 = vector.broadcast %cst_40 : f32 to vector<8x1xf32>
    %98 = arith.addf %94, %97 : vector<8x1xf32>
    %99 = math.rsqrt %98 : vector<8x1xf32>
    %100 = vector.broadcast %99 : vector<8x1xf32> to vector<8x16xf32>
    %101 = arith.mulf %96, %100 : vector<8x16xf32>
    %c1256 = arith.constant 1256 : index
    %c0_41 = arith.constant 0 : index
    %102 = vector.load %arg1[%c1256, %c0_41] : memref<1304x128xf32, #tpu.memory_space<vmem>>, vector<8x1xf32>
    %103 = vector.broadcast %102 : vector<8x1xf32> to vector<8x16xf32>
    %104 = arith.mulf %101, %103 : vector<8x16xf32>
    %c1248 = arith.constant 1248 : index
    %c0_42 = arith.constant 0 : index
    %105 = vector.load %arg1[%c1248, %c0_42] : memref<1304x128xf32, #tpu.memory_space<vmem>>, vector<8x1xf32>
    %106 = vector.broadcast %105 : vector<8x1xf32> to vector<8x16xf32>
    %107 = arith.addf %104, %106 : vector<8x16xf32>
    %cst_43 = arith.constant 0.000000e+00 : f32
    %108 = vector.broadcast %cst_43 : f32 to vector<8x16xf32>
    %109 = arith.maximumf %107, %108 : vector<8x16xf32>
    %110 = vector.broadcast %cst_43 : f32 to vector<8x16xf32>
    %111 = arith.subf %107, %110 : vector<8x16xf32>
    %112 = arith.cmpf one, %111, %111 : vector<8x16xf32>
    %113 = vector.broadcast %cst_43 : f32 to vector<8x16xf32>
    %114 = arith.addf %107, %113 : vector<8x16xf32>
    %115 = math.absf %111 : vector<8x16xf32>
    %cst_44 = arith.constant 0.000000e+00 : f32
    %116 = vector.broadcast %cst_44 : f32 to vector<8x16xf32>
    %117 = arith.subf %116, %115 : vector<8x16xf32>
    %118 = math.exp %117 : vector<8x16xf32>
    %119 = math.log1p %118 : vector<8x16xf32>
    %120 = arith.addf %109, %119 : vector<8x16xf32>
    %121 = arith.select %112, %114, %120 : vector<8x16xi1>, vector<8x16xf32>
    %122 = math.tanh %121 : vector<8x16xf32>
    %123 = arith.mulf %107, %122 : vector<8x16xf32>
    %cst_45 = arith.constant 0.000000e+00 : f32
    %124 = vector.broadcast %cst_45 : f32 to vector<8x2xf32>
    %125 = tpu.concatenate %124, %123, %124 in 1 : vector<8x2xf32>, vector<8x16xf32>, vector<8x2xf32> -> vector<8x20xf32>
    %c272 = arith.constant 272 : index
    %c0_46 = arith.constant 0 : index
    %126 = vector.load %arg1[%c272, %c0_46] : memref<1304x128xf32, #tpu.memory_space<vmem>>, vector<16x8xf32>
    %127 = vector.extract_strided_slice %125 {offsets = [0, 0], sizes = [8, 16], strides = [1, 1]} : vector<8x20xf32> to vector<8x16xf32>
    %cst_47 = arith.constant dense<0.000000e+00> : vector<16x16xf32>
    %128 = tpu.matmul %126, %127, %cst_47 {dimension_numbers = #tpu.dot_dimension_numbers<[1], [0], [0], [1], [0, 0, 1, 1], [], []>} : vector<16x8xf32>, vector<8x16xf32>, vector<16x16xf32> -> vector<16x16xf32>
    %c288 = arith.constant 288 : index
    %c0_48 = arith.constant 0 : index
    %129 = vector.load %arg1[%c288, %c0_48] : memref<1304x128xf32, #tpu.memory_space<vmem>>, vector<16x8xf32>
    %130 = vector.extract_strided_slice %125 {offsets = [0, 1], sizes = [8, 16], strides = [1, 1]} : vector<8x20xf32> to vector<8x16xf32>
    %cst_49 = arith.constant dense<0.000000e+00> : vector<16x16xf32>
    %131 = tpu.matmul %129, %130, %cst_49 {dimension_numbers = #tpu.dot_dimension_numbers<[1], [0], [0], [1], [0, 0, 1, 1], [], []>} : vector<16x8xf32>, vector<8x16xf32>, vector<16x16xf32> -> vector<16x16xf32>
    %132 = arith.addf %128, %131 : vector<16x16xf32>
    %c304 = arith.constant 304 : index
    %c0_50 = arith.constant 0 : index
    %133 = vector.load %arg1[%c304, %c0_50] : memref<1304x128xf32, #tpu.memory_space<vmem>>, vector<16x8xf32>
    %134 = vector.extract_strided_slice %125 {offsets = [0, 2], sizes = [8, 16], strides = [1, 1]} : vector<8x20xf32> to vector<8x16xf32>
    %cst_51 = arith.constant dense<0.000000e+00> : vector<16x16xf32>
    %135 = tpu.matmul %133, %134, %cst_51 {dimension_numbers = #tpu.dot_dimension_numbers<[1], [0], [0], [1], [0, 0, 1, 1], [], []>} : vector<16x8xf32>, vector<8x16xf32>, vector<16x16xf32> -> vector<16x16xf32>
    %136 = arith.addf %132, %135 : vector<16x16xf32>
    %c320 = arith.constant 320 : index
    %c0_52 = arith.constant 0 : index
    %137 = vector.load %arg1[%c320, %c0_52] : memref<1304x128xf32, #tpu.memory_space<vmem>>, vector<16x8xf32>
    %138 = vector.extract_strided_slice %125 {offsets = [0, 3], sizes = [8, 16], strides = [1, 1]} : vector<8x20xf32> to vector<8x16xf32>
    %cst_53 = arith.constant dense<0.000000e+00> : vector<16x16xf32>
    %139 = tpu.matmul %137, %138, %cst_53 {dimension_numbers = #tpu.dot_dimension_numbers<[1], [0], [0], [1], [0, 0, 1, 1], [], []>} : vector<16x8xf32>, vector<8x16xf32>, vector<16x16xf32> -> vector<16x16xf32>
    %140 = arith.addf %136, %139 : vector<16x16xf32>
    %c336 = arith.constant 336 : index
    %c0_54 = arith.constant 0 : index
    %141 = vector.load %arg1[%c336, %c0_54] : memref<1304x128xf32, #tpu.memory_space<vmem>>, vector<16x8xf32>
    %142 = vector.extract_strided_slice %125 {offsets = [0, 4], sizes = [8, 16], strides = [1, 1]} : vector<8x20xf32> to vector<8x16xf32>
    %cst_55 = arith.constant dense<0.000000e+00> : vector<16x16xf32>
    %143 = tpu.matmul %141, %142, %cst_55 {dimension_numbers = #tpu.dot_dimension_numbers<[1], [0], [0], [1], [0, 0, 1, 1], [], []>} : vector<16x8xf32>, vector<8x16xf32>, vector<16x16xf32> -> vector<16x16xf32>
    %144 = arith.addf %140, %143 : vector<16x16xf32>
    %c224 = arith.constant 224 : index
    %c0_56 = arith.constant 0 : index
    %145 = vector.load %arg1[%c224, %c0_56] : memref<1304x128xf32, #tpu.memory_space<vmem>>, vector<16x1xf32>
    %146 = vector.broadcast %145 : vector<16x1xf32> to vector<16x16xf32>
    %147 = arith.addf %144, %146 : vector<16x16xf32>
    %cst_57 = arith.constant dense<0.000000e+00> : vector<16xf32>
    %148 = vector.multi_reduction <add>, %147, %cst_57 [1] : vector<16x16xf32> to vector<16xf32>
    %149 = vector.shape_cast %148 : vector<16xf32> to vector<16x1xf32>
    %cst_58 = arith.constant 1.600000e+01 : f32
    %150 = vector.broadcast %cst_58 : f32 to vector<16x1xf32>
    %151 = arith.divf %149, %150 : vector<16x1xf32>
    %152 = arith.mulf %147, %147 : vector<16x16xf32>
    %cst_59 = arith.constant dense<0.000000e+00> : vector<16xf32>
    %153 = vector.multi_reduction <add>, %152, %cst_59 [1] : vector<16x16xf32> to vector<16xf32>
    %154 = vector.shape_cast %153 : vector<16xf32> to vector<16x1xf32>
    %cst_60 = arith.constant 1.600000e+01 : f32
    %155 = vector.broadcast %cst_60 : f32 to vector<16x1xf32>
    %156 = arith.divf %154, %155 : vector<16x1xf32>
    %c208 = arith.constant 208 : index
    %c0_61 = arith.constant 0 : index
    %157 = vector.load %arg1[%c208, %c0_61] : memref<1304x128xf32, #tpu.memory_space<vmem>>, vector<16x16xf32>
    %158 = tpu.concatenate %151, %156 in 1 : vector<16x1xf32>, vector<16x1xf32> -> vector<16x2xf32>
    %cst_62 = arith.constant dense<0.000000e+00> : vector<16x2xf32>
    %159 = tpu.matmul %157, %158, %cst_62 {dimension_numbers = #tpu.dot_dimension_numbers<[1], [0], [0], [1], [0, 0, 1, 1], [], []>} : vector<16x16xf32>, vector<16x2xf32>, vector<16x2xf32> -> vector<16x2xf32>
    %160 = vector.extract_strided_slice %159 {offsets = [0, 0], sizes = [16, 1], strides = [1, 1]} : vector<16x2xf32> to vector<16x1xf32>
    %161 = vector.extract_strided_slice %159 {offsets = [0, 1], sizes = [16, 1], strides = [1, 1]} : vector<16x2xf32> to vector<16x1xf32>
    %162 = arith.mulf %160, %160 : vector<16x1xf32>
    %163 = arith.subf %161, %162 : vector<16x1xf32>
    %cst_63 = arith.constant 0.000000e+00 : f32
    %164 = vector.broadcast %cst_63 : f32 to vector<16x1xf32>
    %165 = arith.maximumf %163, %164 : vector<16x1xf32>
    %166 = vector.broadcast %160 : vector<16x1xf32> to vector<16x16xf32>
    %167 = arith.subf %147, %166 : vector<16x16xf32>
    %cst_64 = arith.constant 9.99999974E-6 : f32
    %168 = vector.broadcast %cst_64 : f32 to vector<16x1xf32>
    %169 = arith.addf %165, %168 : vector<16x1xf32>
    %170 = math.rsqrt %169 : vector<16x1xf32>
    %171 = vector.broadcast %170 : vector<16x1xf32> to vector<16x16xf32>
    %172 = arith.mulf %167, %171 : vector<16x16xf32>
    %c256 = arith.constant 256 : index
    %c0_65 = arith.constant 0 : index
    %173 = vector.load %arg1[%c256, %c0_65] : memref<1304x128xf32, #tpu.memory_space<vmem>>, vector<16x1xf32>
    %174 = vector.broadcast %173 : vector<16x1xf32> to vector<16x16xf32>
    %175 = arith.mulf %172, %174 : vector<16x16xf32>
    %c240 = arith.constant 240 : index
    %c0_66 = arith.constant 0 : index
    %176 = vector.load %arg1[%c240, %c0_66] : memref<1304x128xf32, #tpu.memory_space<vmem>>, vector<16x1xf32>
    %177 = vector.broadcast %176 : vector<16x1xf32> to vector<16x16xf32>
    %178 = arith.addf %175, %177 : vector<16x16xf32>
    %cst_67 = arith.constant 0.000000e+00 : f32
    %179 = vector.broadcast %cst_67 : f32 to vector<16x16xf32>
    %180 = arith.maximumf %178, %179 : vector<16x16xf32>
    %181 = vector.broadcast %cst_67 : f32 to vector<16x16xf32>
    %182 = arith.subf %178, %181 : vector<16x16xf32>
    %183 = arith.cmpf one, %182, %182 : vector<16x16xf32>
    %184 = vector.broadcast %cst_67 : f32 to vector<16x16xf32>
    %185 = arith.addf %178, %184 : vector<16x16xf32>
    %186 = math.absf %182 : vector<16x16xf32>
    %cst_68 = arith.constant 0.000000e+00 : f32
    %187 = vector.broadcast %cst_68 : f32 to vector<16x16xf32>
    %188 = arith.subf %187, %186 : vector<16x16xf32>
    %189 = math.exp %188 : vector<16x16xf32>
    %190 = math.log1p %189 : vector<16x16xf32>
    %191 = arith.addf %180, %190 : vector<16x16xf32>
    %192 = arith.select %183, %185, %191 : vector<16x16xi1>, vector<16x16xf32>
    %193 = math.tanh %192 : vector<16x16xf32>
    %194 = arith.mulf %178, %193 : vector<16x16xf32>
    %cst_69 = arith.constant 0.000000e+00 : f32
    %195 = vector.broadcast %cst_69 : f32 to vector<16x2xf32>
    %196 = tpu.concatenate %195, %194, %195 in 1 : vector<16x2xf32>, vector<16x16xf32>, vector<16x2xf32> -> vector<16x20xf32>
    %c416 = arith.constant 416 : index
    %c0_70 = arith.constant 0 : index
    %197 = vector.load %arg1[%c416, %c0_70] : memref<1304x128xf32, #tpu.memory_space<vmem>>, vector<16x16xf32>
    %198 = vector.extract_strided_slice %196 {offsets = [0, 0], sizes = [16, 16], strides = [1, 1]} : vector<16x20xf32> to vector<16x16xf32>
    %cst_71 = arith.constant dense<0.000000e+00> : vector<16x16xf32>
    %199 = tpu.matmul %197, %198, %cst_71 {dimension_numbers = #tpu.dot_dimension_numbers<[1], [0], [0], [1], [0, 0, 1, 1], [], []>} : vector<16x16xf32>, vector<16x16xf32>, vector<16x16xf32> -> vector<16x16xf32>
    %c432 = arith.constant 432 : index
    %c0_72 = arith.constant 0 : index
    %200 = vector.load %arg1[%c432, %c0_72] : memref<1304x128xf32, #tpu.memory_space<vmem>>, vector<16x16xf32>
    %201 = vector.extract_strided_slice %196 {offsets = [0, 1], sizes = [16, 16], strides = [1, 1]} : vector<16x20xf32> to vector<16x16xf32>
    %cst_73 = arith.constant dense<0.000000e+00> : vector<16x16xf32>
    %202 = tpu.matmul %200, %201, %cst_73 {dimension_numbers = #tpu.dot_dimension_numbers<[1], [0], [0], [1], [0, 0, 1, 1], [], []>} : vector<16x16xf32>, vector<16x16xf32>, vector<16x16xf32> -> vector<16x16xf32>
    %203 = arith.addf %199, %202 : vector<16x16xf32>
    %c448 = arith.constant 448 : index
    %c0_74 = arith.constant 0 : index
    %204 = vector.load %arg1[%c448, %c0_74] : memref<1304x128xf32, #tpu.memory_space<vmem>>, vector<16x16xf32>
    %205 = vector.extract_strided_slice %196 {offsets = [0, 2], sizes = [16, 16], strides = [1, 1]} : vector<16x20xf32> to vector<16x16xf32>
    %cst_75 = arith.constant dense<0.000000e+00> : vector<16x16xf32>
    %206 = tpu.matmul %204, %205, %cst_75 {dimension_numbers = #tpu.dot_dimension_numbers<[1], [0], [0], [1], [0, 0, 1, 1], [], []>} : vector<16x16xf32>, vector<16x16xf32>, vector<16x16xf32> -> vector<16x16xf32>
    %207 = arith.addf %203, %206 : vector<16x16xf32>
    %c464 = arith.constant 464 : index
    %c0_76 = arith.constant 0 : index
    %208 = vector.load %arg1[%c464, %c0_76] : memref<1304x128xf32, #tpu.memory_space<vmem>>, vector<16x16xf32>
    %209 = vector.extract_strided_slice %196 {offsets = [0, 3], sizes = [16, 16], strides = [1, 1]} : vector<16x20xf32> to vector<16x16xf32>
    %cst_77 = arith.constant dense<0.000000e+00> : vector<16x16xf32>
    %210 = tpu.matmul %208, %209, %cst_77 {dimension_numbers = #tpu.dot_dimension_numbers<[1], [0], [0], [1], [0, 0, 1, 1], [], []>} : vector<16x16xf32>, vector<16x16xf32>, vector<16x16xf32> -> vector<16x16xf32>
    %211 = arith.addf %207, %210 : vector<16x16xf32>
    %c480 = arith.constant 480 : index
    %c0_78 = arith.constant 0 : index
    %212 = vector.load %arg1[%c480, %c0_78] : memref<1304x128xf32, #tpu.memory_space<vmem>>, vector<16x16xf32>
    %213 = vector.extract_strided_slice %196 {offsets = [0, 4], sizes = [16, 16], strides = [1, 1]} : vector<16x20xf32> to vector<16x16xf32>
    %cst_79 = arith.constant dense<0.000000e+00> : vector<16x16xf32>
    %214 = tpu.matmul %212, %213, %cst_79 {dimension_numbers = #tpu.dot_dimension_numbers<[1], [0], [0], [1], [0, 0, 1, 1], [], []>} : vector<16x16xf32>, vector<16x16xf32>, vector<16x16xf32> -> vector<16x16xf32>
    %215 = arith.addf %211, %214 : vector<16x16xf32>
    %c368 = arith.constant 368 : index
    %c0_80 = arith.constant 0 : index
    %216 = vector.load %arg1[%c368, %c0_80] : memref<1304x128xf32, #tpu.memory_space<vmem>>, vector<16x1xf32>
    %217 = vector.broadcast %216 : vector<16x1xf32> to vector<16x16xf32>
    %218 = arith.addf %215, %217 : vector<16x16xf32>
    %cst_81 = arith.constant dense<0.000000e+00> : vector<16xf32>
    %219 = vector.multi_reduction <add>, %218, %cst_81 [1] : vector<16x16xf32> to vector<16xf32>
    %220 = vector.shape_cast %219 : vector<16xf32> to vector<16x1xf32>
    %cst_82 = arith.constant 1.600000e+01 : f32
    %221 = vector.broadcast %cst_82 : f32 to vector<16x1xf32>
    %222 = arith.divf %220, %221 : vector<16x1xf32>
    %223 = arith.mulf %218, %218 : vector<16x16xf32>
    %cst_83 = arith.constant dense<0.000000e+00> : vector<16xf32>
    %224 = vector.multi_reduction <add>, %223, %cst_83 [1] : vector<16x16xf32> to vector<16xf32>
    %225 = vector.shape_cast %224 : vector<16xf32> to vector<16x1xf32>
    %cst_84 = arith.constant 1.600000e+01 : f32
    %226 = vector.broadcast %cst_84 : f32 to vector<16x1xf32>
    %227 = arith.divf %225, %226 : vector<16x1xf32>
    %c352 = arith.constant 352 : index
    %c0_85 = arith.constant 0 : index
    %228 = vector.load %arg1[%c352, %c0_85] : memref<1304x128xf32, #tpu.memory_space<vmem>>, vector<16x16xf32>
    %229 = tpu.concatenate %222, %227 in 1 : vector<16x1xf32>, vector<16x1xf32> -> vector<16x2xf32>
    %cst_86 = arith.constant dense<0.000000e+00> : vector<16x2xf32>
    %230 = tpu.matmul %228, %229, %cst_86 {dimension_numbers = #tpu.dot_dimension_numbers<[1], [0], [0], [1], [0, 0, 1, 1], [], []>} : vector<16x16xf32>, vector<16x2xf32>, vector<16x2xf32> -> vector<16x2xf32>
    %231 = vector.extract_strided_slice %230 {offsets = [0, 0], sizes = [16, 1], strides = [1, 1]} : vector<16x2xf32> to vector<16x1xf32>
    %232 = vector.extract_strided_slice %230 {offsets = [0, 1], sizes = [16, 1], strides = [1, 1]} : vector<16x2xf32> to vector<16x1xf32>
    %233 = arith.mulf %231, %231 : vector<16x1xf32>
    %234 = arith.subf %232, %233 : vector<16x1xf32>
    %cst_87 = arith.constant 0.000000e+00 : f32
    %235 = vector.broadcast %cst_87 : f32 to vector<16x1xf32>
    %236 = arith.maximumf %234, %235 : vector<16x1xf32>
    %237 = vector.broadcast %231 : vector<16x1xf32> to vector<16x16xf32>
    %238 = arith.subf %218, %237 : vector<16x16xf32>
    %cst_88 = arith.constant 9.99999974E-6 : f32
    %239 = vector.broadcast %cst_88 : f32 to vector<16x1xf32>
    %240 = arith.addf %236, %239 : vector<16x1xf32>
    %241 = math.rsqrt %240 : vector<16x1xf32>
    %242 = vector.broadcast %241 : vector<16x1xf32> to vector<16x16xf32>
    %243 = arith.mulf %238, %242 : vector<16x16xf32>
    %c400 = arith.constant 400 : index
    %c0_89 = arith.constant 0 : index
    %244 = vector.load %arg1[%c400, %c0_89] : memref<1304x128xf32, #tpu.memory_space<vmem>>, vector<16x1xf32>
    %245 = vector.broadcast %244 : vector<16x1xf32> to vector<16x16xf32>
    %246 = arith.mulf %243, %245 : vector<16x16xf32>
    %c384 = arith.constant 384 : index
    %c0_90 = arith.constant 0 : index
    %247 = vector.load %arg1[%c384, %c0_90] : memref<1304x128xf32, #tpu.memory_space<vmem>>, vector<16x1xf32>
    %248 = vector.broadcast %247 : vector<16x1xf32> to vector<16x16xf32>
    %249 = arith.addf %246, %248 : vector<16x16xf32>
    %cst_91 = arith.constant 0.000000e+00 : f32
    %250 = vector.broadcast %cst_91 : f32 to vector<16x16xf32>
    %251 = arith.maximumf %249, %250 : vector<16x16xf32>
    %252 = vector.broadcast %cst_91 : f32 to vector<16x16xf32>
    %253 = arith.subf %249, %252 : vector<16x16xf32>
    %254 = arith.cmpf one, %253, %253 : vector<16x16xf32>
    %255 = vector.broadcast %cst_91 : f32 to vector<16x16xf32>
    %256 = arith.addf %249, %255 : vector<16x16xf32>
    %257 = math.absf %253 : vector<16x16xf32>
    %cst_92 = arith.constant 0.000000e+00 : f32
    %258 = vector.broadcast %cst_92 : f32 to vector<16x16xf32>
    %259 = arith.subf %258, %257 : vector<16x16xf32>
    %260 = math.exp %259 : vector<16x16xf32>
    %261 = math.log1p %260 : vector<16x16xf32>
    %262 = arith.addf %251, %261 : vector<16x16xf32>
    %263 = arith.select %254, %256, %262 : vector<16x16xi1>, vector<16x16xf32>
    %264 = math.tanh %263 : vector<16x16xf32>
    %265 = arith.mulf %249, %264 : vector<16x16xf32>
    %c512 = arith.constant 512 : index
    %c0_93 = arith.constant 0 : index
    %266 = vector.load %arg1[%c512, %c0_93] : memref<1304x128xf32, #tpu.memory_space<vmem>>, vector<16x8xf32>
    %c496 = arith.constant 496 : index
    %c0_94 = arith.constant 0 : index
    %267 = vector.load %arg1[%c496, %c0_94] : memref<1304x128xf32, #tpu.memory_space<vmem>>, vector<16x1xf32>
    %cst_95 = arith.constant dense<0.000000e+00> : vector<16x16xf32>
    %268 = tpu.matmul %266, %123, %cst_95 {dimension_numbers = #tpu.dot_dimension_numbers<[1], [0], [0], [1], [0, 0, 1, 1], [], []>} : vector<16x8xf32>, vector<8x16xf32>, vector<16x16xf32> -> vector<16x16xf32>
    %269 = vector.broadcast %267 : vector<16x1xf32> to vector<16x16xf32>
    %270 = arith.addf %268, %269 : vector<16x16xf32>
    %271 = arith.addf %265, %270 : vector<16x16xf32>
    %c32 = arith.constant 32 : index
    %c0_96 = arith.constant 0 : index
    %272 = vector.load %arg1[%c32, %c0_96] : memref<1304x128xf32, #tpu.memory_space<vmem>>, vector<16x1xf32>
    %c0_97 = arith.constant 0 : index
    %c0_98 = arith.constant 0 : index
    %273 = vector.load %arg1[%c0_97, %c0_98] : memref<1304x128xf32, #tpu.memory_space<vmem>>, vector<16x1xf32>
    %cst_99 = arith.constant dense<0.000000e+00> : vector<16xf32>
    %274 = vector.multi_reduction <add>, %271, %cst_99 [0] : vector<16x16xf32> to vector<16xf32>
    %275 = vector.shape_cast %274 : vector<16xf32> to vector<1x16xf32>
    %cst_100 = arith.constant 1.600000e+01 : f32
    %276 = vector.broadcast %cst_100 : f32 to vector<1x16xf32>
    %277 = arith.divf %275, %276 : vector<1x16xf32>
    %278 = vector.broadcast %277 : vector<1x16xf32> to vector<16x16xf32>
    %279 = arith.subf %271, %278 : vector<16x16xf32>
    %280 = arith.mulf %279, %279 : vector<16x16xf32>
    %cst_101 = arith.constant dense<0.000000e+00> : vector<16xf32>
    %281 = vector.multi_reduction <add>, %280, %cst_101 [0] : vector<16x16xf32> to vector<16xf32>
    %282 = vector.shape_cast %281 : vector<16xf32> to vector<1x16xf32>
    %cst_102 = arith.constant 1.600000e+01 : f32
    %283 = vector.broadcast %cst_102 : f32 to vector<1x16xf32>
    %284 = arith.divf %282, %283 : vector<1x16xf32>
    %285 = vector.broadcast %277 : vector<1x16xf32> to vector<16x16xf32>
    %286 = arith.subf %271, %285 : vector<16x16xf32>
    %cst_103 = arith.constant 9.99999974E-6 : f32
    %287 = vector.broadcast %cst_103 : f32 to vector<1x16xf32>
    %288 = arith.addf %284, %287 : vector<1x16xf32>
    %289 = math.rsqrt %288 : vector<1x16xf32>
    %290 = vector.broadcast %289 : vector<1x16xf32> to vector<16x16xf32>
    %291 = arith.mulf %286, %290 : vector<16x16xf32>
    %292 = vector.broadcast %272 : vector<16x1xf32> to vector<16x16xf32>
    %293 = arith.mulf %291, %292 : vector<16x16xf32>
    %294 = vector.broadcast %273 : vector<16x1xf32> to vector<16x16xf32>
    %295 = arith.addf %293, %294 : vector<16x16xf32>
    %c96 = arith.constant 96 : index
    %c0_104 = arith.constant 0 : index
    %296 = vector.load %arg1[%c96, %c0_104] : memref<1304x128xf32, #tpu.memory_space<vmem>>, vector<16x64xf32>
    %c112 = arith.constant 112 : index
    %c0_105 = arith.constant 0 : index
    %297 = vector.load %arg1[%c112, %c0_105] : memref<1304x128xf32, #tpu.memory_space<vmem>>, vector<16x32xf32>
    %cst_106 = arith.constant dense<0.000000e+00> : vector<64x16xf32>
    %298 = tpu.matmul %296, %295, %cst_106 {dimension_numbers = #tpu.dot_dimension_numbers<[0], [0], [1], [1], [0, 1, 1, 1], [], []>} : vector<16x64xf32>, vector<16x16xf32>, vector<64x16xf32> -> vector<64x16xf32>
    %cst_107 = arith.constant dense<0.000000e+00> : vector<32x16xf32>
    %299 = tpu.matmul %297, %295, %cst_107 {dimension_numbers = #tpu.dot_dimension_numbers<[0], [0], [1], [1], [0, 1, 1, 1], [], []>} : vector<16x32xf32>, vector<16x16xf32>, vector<32x16xf32> -> vector<32x16xf32>
    %300 = vector.extract_strided_slice %298 {offsets = [0, 0], sizes = [32, 16], strides = [1, 1]} : vector<64x16xf32> to vector<32x16xf32>
    %cst_108 = arith.constant 0.353553385 : f32
    %301 = vector.broadcast %cst_108 : f32 to vector<32x16xf32>
    %302 = arith.mulf %300, %301 : vector<32x16xf32>
    %303 = vector.extract_strided_slice %298 {offsets = [32, 0], sizes = [32, 16], strides = [1, 1]} : vector<64x16xf32> to vector<32x16xf32>
    %cst_109 = arith.constant dense<0xFF800000> : vector<32xf32>
    %304 = vector.multi_reduction <maximumf>, %303, %cst_109 [1] : vector<32x16xf32> to vector<32xf32>
    %305 = vector.shape_cast %304 : vector<32xf32> to vector<32x1xf32>
    %306 = vector.broadcast %305 : vector<32x1xf32> to vector<32x16xf32>
    %307 = arith.subf %303, %306 : vector<32x16xf32>
    %308 = math.exp %307 : vector<32x16xf32>
    %cst_110 = arith.constant dense<0.000000e+00> : vector<32xf32>
    %309 = vector.multi_reduction <add>, %308, %cst_110 [1] : vector<32x16xf32> to vector<32xf32>
    %310 = vector.shape_cast %309 : vector<32xf32> to vector<32x1xf32>
    %311 = vector.broadcast %310 : vector<32x1xf32> to vector<32x16xf32>
    %312 = arith.divf %308, %311 : vector<32x16xf32>
    %cst_111 = arith.constant dense<0.000000e+00> : vector<32x32xf32>
    %313 = tpu.matmul %312, %299, %cst_111 {dimension_numbers = #tpu.dot_dimension_numbers<[1], [1], [0], [0], [0, 0, 1, 0], [], []>} : vector<32x16xf32>, vector<32x16xf32>, vector<32x32xf32> -> vector<32x32xf32>
    %c48 = arith.constant 48 : index
    %c0_112 = arith.constant 0 : index
    %314 = vector.load %arg1[%c48, %c0_112] : memref<1304x128xf32, #tpu.memory_space<vmem>>, vector<32x32xf32>
    %315 = arith.mulf %313, %314 : vector<32x32xf32>
    %cst_113 = arith.constant dense<0.000000e+00> : vector<32x16xf32>
    %316 = tpu.matmul %315, %302, %cst_113 {dimension_numbers = #tpu.dot_dimension_numbers<[0], [0], [1], [1], [0, 1, 1, 1], [], []>} : vector<32x32xf32>, vector<32x16xf32>, vector<32x16xf32> -> vector<32x16xf32>
    %c80 = arith.constant 80 : index
    %c0_114 = arith.constant 0 : index
    %317 = vector.load %arg1[%c80, %c0_114] : memref<1304x128xf32, #tpu.memory_space<vmem>>, vector<16x32xf32>
    %cst_115 = arith.constant dense<0.000000e+00> : vector<16x16xf32>
    %318 = tpu.matmul %317, %316, %cst_115 {dimension_numbers = #tpu.dot_dimension_numbers<[1], [0], [0], [1], [0, 0, 1, 1], [], []>} : vector<16x32xf32>, vector<32x16xf32>, vector<16x16xf32> -> vector<16x16xf32>
    %c16 = arith.constant 16 : index
    %c0_116 = arith.constant 0 : index
    %319 = vector.load %arg1[%c16, %c0_116] : memref<1304x128xf32, #tpu.memory_space<vmem>>, vector<16x1xf32>
    %320 = vector.broadcast %319 : vector<16x1xf32> to vector<16x16xf32>
    %321 = arith.addf %318, %320 : vector<16x16xf32>
    %322 = arith.addf %321, %271 : vector<16x16xf32>
    %cst_117 = arith.constant 0.000000e+00 : f32
    %323 = vector.broadcast %cst_117 : f32 to vector<16x2xf32>
    %324 = tpu.concatenate %323, %322, %323 in 1 : vector<16x2xf32>, vector<16x16xf32>, vector<16x2xf32> -> vector<16x20xf32>
    %c592 = arith.constant 592 : index
    %c0_118 = arith.constant 0 : index
    %325 = vector.load %arg1[%c592, %c0_118] : memref<1304x128xf32, #tpu.memory_space<vmem>>, vector<16x16xf32>
    %326 = vector.extract_strided_slice %324 {offsets = [0, 0], sizes = [16, 16], strides = [1, 1]} : vector<16x20xf32> to vector<16x16xf32>
    %cst_119 = arith.constant dense<0.000000e+00> : vector<16x16xf32>
    %327 = tpu.matmul %325, %326, %cst_119 {dimension_numbers = #tpu.dot_dimension_numbers<[1], [0], [0], [1], [0, 0, 1, 1], [], []>} : vector<16x16xf32>, vector<16x16xf32>, vector<16x16xf32> -> vector<16x16xf32>
    %c608 = arith.constant 608 : index
    %c0_120 = arith.constant 0 : index
    %328 = vector.load %arg1[%c608, %c0_120] : memref<1304x128xf32, #tpu.memory_space<vmem>>, vector<16x16xf32>
    %329 = vector.extract_strided_slice %324 {offsets = [0, 1], sizes = [16, 16], strides = [1, 1]} : vector<16x20xf32> to vector<16x16xf32>
    %cst_121 = arith.constant dense<0.000000e+00> : vector<16x16xf32>
    %330 = tpu.matmul %328, %329, %cst_121 {dimension_numbers = #tpu.dot_dimension_numbers<[1], [0], [0], [1], [0, 0, 1, 1], [], []>} : vector<16x16xf32>, vector<16x16xf32>, vector<16x16xf32> -> vector<16x16xf32>
    %331 = arith.addf %327, %330 : vector<16x16xf32>
    %c624 = arith.constant 624 : index
    %c0_122 = arith.constant 0 : index
    %332 = vector.load %arg1[%c624, %c0_122] : memref<1304x128xf32, #tpu.memory_space<vmem>>, vector<16x16xf32>
    %333 = vector.extract_strided_slice %324 {offsets = [0, 2], sizes = [16, 16], strides = [1, 1]} : vector<16x20xf32> to vector<16x16xf32>
    %cst_123 = arith.constant dense<0.000000e+00> : vector<16x16xf32>
    %334 = tpu.matmul %332, %333, %cst_123 {dimension_numbers = #tpu.dot_dimension_numbers<[1], [0], [0], [1], [0, 0, 1, 1], [], []>} : vector<16x16xf32>, vector<16x16xf32>, vector<16x16xf32> -> vector<16x16xf32>
    %335 = arith.addf %331, %334 : vector<16x16xf32>
    %c640 = arith.constant 640 : index
    %c0_124 = arith.constant 0 : index
    %336 = vector.load %arg1[%c640, %c0_124] : memref<1304x128xf32, #tpu.memory_space<vmem>>, vector<16x16xf32>
    %337 = vector.extract_strided_slice %324 {offsets = [0, 3], sizes = [16, 16], strides = [1, 1]} : vector<16x20xf32> to vector<16x16xf32>
    %cst_125 = arith.constant dense<0.000000e+00> : vector<16x16xf32>
    %338 = tpu.matmul %336, %337, %cst_125 {dimension_numbers = #tpu.dot_dimension_numbers<[1], [0], [0], [1], [0, 0, 1, 1], [], []>} : vector<16x16xf32>, vector<16x16xf32>, vector<16x16xf32> -> vector<16x16xf32>
    %339 = arith.addf %335, %338 : vector<16x16xf32>
    %c656 = arith.constant 656 : index
    %c0_126 = arith.constant 0 : index
    %340 = vector.load %arg1[%c656, %c0_126] : memref<1304x128xf32, #tpu.memory_space<vmem>>, vector<16x16xf32>
    %341 = vector.extract_strided_slice %324 {offsets = [0, 4], sizes = [16, 16], strides = [1, 1]} : vector<16x20xf32> to vector<16x16xf32>
    %cst_127 = arith.constant dense<0.000000e+00> : vector<16x16xf32>
    %342 = tpu.matmul %340, %341, %cst_127 {dimension_numbers = #tpu.dot_dimension_numbers<[1], [0], [0], [1], [0, 0, 1, 1], [], []>} : vector<16x16xf32>, vector<16x16xf32>, vector<16x16xf32> -> vector<16x16xf32>
    %343 = arith.addf %339, %342 : vector<16x16xf32>
    %c544 = arith.constant 544 : index
    %c0_128 = arith.constant 0 : index
    %344 = vector.load %arg1[%c544, %c0_128] : memref<1304x128xf32, #tpu.memory_space<vmem>>, vector<16x1xf32>
    %345 = vector.broadcast %344 : vector<16x1xf32> to vector<16x16xf32>
    %346 = arith.addf %343, %345 : vector<16x16xf32>
    %cst_129 = arith.constant dense<0.000000e+00> : vector<16xf32>
    %347 = vector.multi_reduction <add>, %346, %cst_129 [1] : vector<16x16xf32> to vector<16xf32>
    %348 = vector.shape_cast %347 : vector<16xf32> to vector<16x1xf32>
    %cst_130 = arith.constant 1.600000e+01 : f32
    %349 = vector.broadcast %cst_130 : f32 to vector<16x1xf32>
    %350 = arith.divf %348, %349 : vector<16x1xf32>
    %351 = arith.mulf %346, %346 : vector<16x16xf32>
    %cst_131 = arith.constant dense<0.000000e+00> : vector<16xf32>
    %352 = vector.multi_reduction <add>, %351, %cst_131 [1] : vector<16x16xf32> to vector<16xf32>
    %353 = vector.shape_cast %352 : vector<16xf32> to vector<16x1xf32>
    %cst_132 = arith.constant 1.600000e+01 : f32
    %354 = vector.broadcast %cst_132 : f32 to vector<16x1xf32>
    %355 = arith.divf %353, %354 : vector<16x1xf32>
    %c528 = arith.constant 528 : index
    %c0_133 = arith.constant 0 : index
    %356 = vector.load %arg1[%c528, %c0_133] : memref<1304x128xf32, #tpu.memory_space<vmem>>, vector<16x16xf32>
    %357 = tpu.concatenate %350, %355 in 1 : vector<16x1xf32>, vector<16x1xf32> -> vector<16x2xf32>
    %cst_134 = arith.constant dense<0.000000e+00> : vector<16x2xf32>
    %358 = tpu.matmul %356, %357, %cst_134 {dimension_numbers = #tpu.dot_dimension_numbers<[1], [0], [0], [1], [0, 0, 1, 1], [], []>} : vector<16x16xf32>, vector<16x2xf32>, vector<16x2xf32> -> vector<16x2xf32>
    %359 = vector.extract_strided_slice %358 {offsets = [0, 0], sizes = [16, 1], strides = [1, 1]} : vector<16x2xf32> to vector<16x1xf32>
    %360 = vector.extract_strided_slice %358 {offsets = [0, 1], sizes = [16, 1], strides = [1, 1]} : vector<16x2xf32> to vector<16x1xf32>
    %361 = arith.mulf %359, %359 : vector<16x1xf32>
    %362 = arith.subf %360, %361 : vector<16x1xf32>
    %cst_135 = arith.constant 0.000000e+00 : f32
    %363 = vector.broadcast %cst_135 : f32 to vector<16x1xf32>
    %364 = arith.maximumf %362, %363 : vector<16x1xf32>
    %365 = vector.broadcast %359 : vector<16x1xf32> to vector<16x16xf32>
    %366 = arith.subf %346, %365 : vector<16x16xf32>
    %cst_136 = arith.constant 9.99999974E-6 : f32
    %367 = vector.broadcast %cst_136 : f32 to vector<16x1xf32>
    %368 = arith.addf %364, %367 : vector<16x1xf32>
    %369 = math.rsqrt %368 : vector<16x1xf32>
    %370 = vector.broadcast %369 : vector<16x1xf32> to vector<16x16xf32>
    %371 = arith.mulf %366, %370 : vector<16x16xf32>
    %c576 = arith.constant 576 : index
    %c0_137 = arith.constant 0 : index
    %372 = vector.load %arg1[%c576, %c0_137] : memref<1304x128xf32, #tpu.memory_space<vmem>>, vector<16x1xf32>
    %373 = vector.broadcast %372 : vector<16x1xf32> to vector<16x16xf32>
    %374 = arith.mulf %371, %373 : vector<16x16xf32>
    %c560 = arith.constant 560 : index
    %c0_138 = arith.constant 0 : index
    %375 = vector.load %arg1[%c560, %c0_138] : memref<1304x128xf32, #tpu.memory_space<vmem>>, vector<16x1xf32>
    %376 = vector.broadcast %375 : vector<16x1xf32> to vector<16x16xf32>
    %377 = arith.addf %374, %376 : vector<16x16xf32>
    %cst_139 = arith.constant 0.000000e+00 : f32
    %378 = vector.broadcast %cst_139 : f32 to vector<16x16xf32>
    %379 = arith.maximumf %377, %378 : vector<16x16xf32>
    %380 = vector.broadcast %cst_139 : f32 to vector<16x16xf32>
    %381 = arith.subf %377, %380 : vector<16x16xf32>
    %382 = arith.cmpf one, %381, %381 : vector<16x16xf32>
    %383 = vector.broadcast %cst_139 : f32 to vector<16x16xf32>
    %384 = arith.addf %377, %383 : vector<16x16xf32>
    %385 = math.absf %381 : vector<16x16xf32>
    %cst_140 = arith.constant 0.000000e+00 : f32
    %386 = vector.broadcast %cst_140 : f32 to vector<16x16xf32>
    %387 = arith.subf %386, %385 : vector<16x16xf32>
    %388 = math.exp %387 : vector<16x16xf32>
    %389 = math.log1p %388 : vector<16x16xf32>
    %390 = arith.addf %379, %389 : vector<16x16xf32>
    %391 = arith.select %382, %384, %390 : vector<16x16xi1>, vector<16x16xf32>
    %392 = math.tanh %391 : vector<16x16xf32>
    %393 = arith.mulf %377, %392 : vector<16x16xf32>
    %cst_141 = arith.constant 0.000000e+00 : f32
    %394 = vector.broadcast %cst_141 : f32 to vector<16x2xf32>
    %395 = tpu.concatenate %394, %393, %394 in 1 : vector<16x2xf32>, vector<16x16xf32>, vector<16x2xf32> -> vector<16x20xf32>
    %c736 = arith.constant 736 : index
    %c0_142 = arith.constant 0 : index
    %396 = vector.load %arg1[%c736, %c0_142] : memref<1304x128xf32, #tpu.memory_space<vmem>>, vector<16x16xf32>
    %397 = vector.extract_strided_slice %395 {offsets = [0, 0], sizes = [16, 16], strides = [1, 1]} : vector<16x20xf32> to vector<16x16xf32>
    %cst_143 = arith.constant dense<0.000000e+00> : vector<16x16xf32>
    %398 = tpu.matmul %396, %397, %cst_143 {dimension_numbers = #tpu.dot_dimension_numbers<[1], [0], [0], [1], [0, 0, 1, 1], [], []>} : vector<16x16xf32>, vector<16x16xf32>, vector<16x16xf32> -> vector<16x16xf32>
    %c752 = arith.constant 752 : index
    %c0_144 = arith.constant 0 : index
    %399 = vector.load %arg1[%c752, %c0_144] : memref<1304x128xf32, #tpu.memory_space<vmem>>, vector<16x16xf32>
    %400 = vector.extract_strided_slice %395 {offsets = [0, 1], sizes = [16, 16], strides = [1, 1]} : vector<16x20xf32> to vector<16x16xf32>
    %cst_145 = arith.constant dense<0.000000e+00> : vector<16x16xf32>
    %401 = tpu.matmul %399, %400, %cst_145 {dimension_numbers = #tpu.dot_dimension_numbers<[1], [0], [0], [1], [0, 0, 1, 1], [], []>} : vector<16x16xf32>, vector<16x16xf32>, vector<16x16xf32> -> vector<16x16xf32>
    %402 = arith.addf %398, %401 : vector<16x16xf32>
    %c768 = arith.constant 768 : index
    %c0_146 = arith.constant 0 : index
    %403 = vector.load %arg1[%c768, %c0_146] : memref<1304x128xf32, #tpu.memory_space<vmem>>, vector<16x16xf32>
    %404 = vector.extract_strided_slice %395 {offsets = [0, 2], sizes = [16, 16], strides = [1, 1]} : vector<16x20xf32> to vector<16x16xf32>
    %cst_147 = arith.constant dense<0.000000e+00> : vector<16x16xf32>
    %405 = tpu.matmul %403, %404, %cst_147 {dimension_numbers = #tpu.dot_dimension_numbers<[1], [0], [0], [1], [0, 0, 1, 1], [], []>} : vector<16x16xf32>, vector<16x16xf32>, vector<16x16xf32> -> vector<16x16xf32>
    %406 = arith.addf %402, %405 : vector<16x16xf32>
    %c784 = arith.constant 784 : index
    %c0_148 = arith.constant 0 : index
    %407 = vector.load %arg1[%c784, %c0_148] : memref<1304x128xf32, #tpu.memory_space<vmem>>, vector<16x16xf32>
    %408 = vector.extract_strided_slice %395 {offsets = [0, 3], sizes = [16, 16], strides = [1, 1]} : vector<16x20xf32> to vector<16x16xf32>
    %cst_149 = arith.constant dense<0.000000e+00> : vector<16x16xf32>
    %409 = tpu.matmul %407, %408, %cst_149 {dimension_numbers = #tpu.dot_dimension_numbers<[1], [0], [0], [1], [0, 0, 1, 1], [], []>} : vector<16x16xf32>, vector<16x16xf32>, vector<16x16xf32> -> vector<16x16xf32>
    %410 = arith.addf %406, %409 : vector<16x16xf32>
    %c800 = arith.constant 800 : index
    %c0_150 = arith.constant 0 : index
    %411 = vector.load %arg1[%c800, %c0_150] : memref<1304x128xf32, #tpu.memory_space<vmem>>, vector<16x16xf32>
    %412 = vector.extract_strided_slice %395 {offsets = [0, 4], sizes = [16, 16], strides = [1, 1]} : vector<16x20xf32> to vector<16x16xf32>
    %cst_151 = arith.constant dense<0.000000e+00> : vector<16x16xf32>
    %413 = tpu.matmul %411, %412, %cst_151 {dimension_numbers = #tpu.dot_dimension_numbers<[1], [0], [0], [1], [0, 0, 1, 1], [], []>} : vector<16x16xf32>, vector<16x16xf32>, vector<16x16xf32> -> vector<16x16xf32>
    %414 = arith.addf %410, %413 : vector<16x16xf32>
    %c688 = arith.constant 688 : index
    %c0_152 = arith.constant 0 : index
    %415 = vector.load %arg1[%c688, %c0_152] : memref<1304x128xf32, #tpu.memory_space<vmem>>, vector<16x1xf32>
    %416 = vector.broadcast %415 : vector<16x1xf32> to vector<16x16xf32>
    %417 = arith.addf %414, %416 : vector<16x16xf32>
    %cst_153 = arith.constant dense<0.000000e+00> : vector<16xf32>
    %418 = vector.multi_reduction <add>, %417, %cst_153 [1] : vector<16x16xf32> to vector<16xf32>
    %419 = vector.shape_cast %418 : vector<16xf32> to vector<16x1xf32>
    %cst_154 = arith.constant 1.600000e+01 : f32
    %420 = vector.broadcast %cst_154 : f32 to vector<16x1xf32>
    %421 = arith.divf %419, %420 : vector<16x1xf32>
    %422 = arith.mulf %417, %417 : vector<16x16xf32>
    %cst_155 = arith.constant dense<0.000000e+00> : vector<16xf32>
    %423 = vector.multi_reduction <add>, %422, %cst_155 [1] : vector<16x16xf32> to vector<16xf32>
    %424 = vector.shape_cast %423 : vector<16xf32> to vector<16x1xf32>
    %cst_156 = arith.constant 1.600000e+01 : f32
    %425 = vector.broadcast %cst_156 : f32 to vector<16x1xf32>
    %426 = arith.divf %424, %425 : vector<16x1xf32>
    %c672 = arith.constant 672 : index
    %c0_157 = arith.constant 0 : index
    %427 = vector.load %arg1[%c672, %c0_157] : memref<1304x128xf32, #tpu.memory_space<vmem>>, vector<16x16xf32>
    %428 = tpu.concatenate %421, %426 in 1 : vector<16x1xf32>, vector<16x1xf32> -> vector<16x2xf32>
    %cst_158 = arith.constant dense<0.000000e+00> : vector<16x2xf32>
    %429 = tpu.matmul %427, %428, %cst_158 {dimension_numbers = #tpu.dot_dimension_numbers<[1], [0], [0], [1], [0, 0, 1, 1], [], []>} : vector<16x16xf32>, vector<16x2xf32>, vector<16x2xf32> -> vector<16x2xf32>
    %430 = vector.extract_strided_slice %429 {offsets = [0, 0], sizes = [16, 1], strides = [1, 1]} : vector<16x2xf32> to vector<16x1xf32>
    %431 = vector.extract_strided_slice %429 {offsets = [0, 1], sizes = [16, 1], strides = [1, 1]} : vector<16x2xf32> to vector<16x1xf32>
    %432 = arith.mulf %430, %430 : vector<16x1xf32>
    %433 = arith.subf %431, %432 : vector<16x1xf32>
    %cst_159 = arith.constant 0.000000e+00 : f32
    %434 = vector.broadcast %cst_159 : f32 to vector<16x1xf32>
    %435 = arith.maximumf %433, %434 : vector<16x1xf32>
    %436 = vector.broadcast %430 : vector<16x1xf32> to vector<16x16xf32>
    %437 = arith.subf %417, %436 : vector<16x16xf32>
    %cst_160 = arith.constant 9.99999974E-6 : f32
    %438 = vector.broadcast %cst_160 : f32 to vector<16x1xf32>
    %439 = arith.addf %435, %438 : vector<16x1xf32>
    %440 = math.rsqrt %439 : vector<16x1xf32>
    %441 = vector.broadcast %440 : vector<16x1xf32> to vector<16x16xf32>
    %442 = arith.mulf %437, %441 : vector<16x16xf32>
    %c720 = arith.constant 720 : index
    %c0_161 = arith.constant 0 : index
    %443 = vector.load %arg1[%c720, %c0_161] : memref<1304x128xf32, #tpu.memory_space<vmem>>, vector<16x1xf32>
    %444 = vector.broadcast %443 : vector<16x1xf32> to vector<16x16xf32>
    %445 = arith.mulf %442, %444 : vector<16x16xf32>
    %c704 = arith.constant 704 : index
    %c0_162 = arith.constant 0 : index
    %446 = vector.load %arg1[%c704, %c0_162] : memref<1304x128xf32, #tpu.memory_space<vmem>>, vector<16x1xf32>
    %447 = vector.broadcast %446 : vector<16x1xf32> to vector<16x16xf32>
    %448 = arith.addf %445, %447 : vector<16x16xf32>
    %cst_163 = arith.constant 0.000000e+00 : f32
    %449 = vector.broadcast %cst_163 : f32 to vector<16x16xf32>
    %450 = arith.maximumf %448, %449 : vector<16x16xf32>
    %451 = vector.broadcast %cst_163 : f32 to vector<16x16xf32>
    %452 = arith.subf %448, %451 : vector<16x16xf32>
    %453 = arith.cmpf one, %452, %452 : vector<16x16xf32>
    %454 = vector.broadcast %cst_163 : f32 to vector<16x16xf32>
    %455 = arith.addf %448, %454 : vector<16x16xf32>
    %456 = math.absf %452 : vector<16x16xf32>
    %cst_164 = arith.constant 0.000000e+00 : f32
    %457 = vector.broadcast %cst_164 : f32 to vector<16x16xf32>
    %458 = arith.subf %457, %456 : vector<16x16xf32>
    %459 = math.exp %458 : vector<16x16xf32>
    %460 = math.log1p %459 : vector<16x16xf32>
    %461 = arith.addf %450, %460 : vector<16x16xf32>
    %462 = arith.select %453, %455, %461 : vector<16x16xi1>, vector<16x16xf32>
    %463 = math.tanh %462 : vector<16x16xf32>
    %464 = arith.mulf %448, %463 : vector<16x16xf32>
    %465 = arith.addf %464, %322 : vector<16x16xf32>
    %cst_165 = arith.constant 0.000000e+00 : f32
    %466 = vector.broadcast %cst_165 : f32 to vector<16x1xf32>
    %467 = tpu.concatenate %466, %465, %466 in 1 : vector<16x1xf32>, vector<16x16xf32>, vector<16x1xf32> -> vector<16x18xf32>
    %c160 = arith.constant 160 : index
    %c0_166 = arith.constant 0 : index
    %468 = vector.load %arg1[%c160, %c0_166] : memref<1304x128xf32, #tpu.memory_space<vmem>>, vector<16x16xf32>
    %469 = vector.extract_strided_slice %467 {offsets = [0, 0], sizes = [16, 16], strides = [1, 1]} : vector<16x18xf32> to vector<16x16xf32>
    %cst_167 = arith.constant dense<0.000000e+00> : vector<16x16xf32>
    %470 = tpu.matmul %468, %469, %cst_167 {dimension_numbers = #tpu.dot_dimension_numbers<[1], [0], [0], [1], [0, 0, 1, 1], [], []>} : vector<16x16xf32>, vector<16x16xf32>, vector<16x16xf32> -> vector<16x16xf32>
    %c176 = arith.constant 176 : index
    %c0_168 = arith.constant 0 : index
    %471 = vector.load %arg1[%c176, %c0_168] : memref<1304x128xf32, #tpu.memory_space<vmem>>, vector<16x16xf32>
    %472 = vector.extract_strided_slice %467 {offsets = [0, 1], sizes = [16, 16], strides = [1, 1]} : vector<16x18xf32> to vector<16x16xf32>
    %cst_169 = arith.constant dense<0.000000e+00> : vector<16x16xf32>
    %473 = tpu.matmul %471, %472, %cst_169 {dimension_numbers = #tpu.dot_dimension_numbers<[1], [0], [0], [1], [0, 0, 1, 1], [], []>} : vector<16x16xf32>, vector<16x16xf32>, vector<16x16xf32> -> vector<16x16xf32>
    %474 = arith.addf %470, %473 : vector<16x16xf32>
    %c192 = arith.constant 192 : index
    %c0_170 = arith.constant 0 : index
    %475 = vector.load %arg1[%c192, %c0_170] : memref<1304x128xf32, #tpu.memory_space<vmem>>, vector<16x16xf32>
    %476 = vector.extract_strided_slice %467 {offsets = [0, 2], sizes = [16, 16], strides = [1, 1]} : vector<16x18xf32> to vector<16x16xf32>
    %cst_171 = arith.constant dense<0.000000e+00> : vector<16x16xf32>
    %477 = tpu.matmul %475, %476, %cst_171 {dimension_numbers = #tpu.dot_dimension_numbers<[1], [0], [0], [1], [0, 0, 1, 1], [], []>} : vector<16x16xf32>, vector<16x16xf32>, vector<16x16xf32> -> vector<16x16xf32>
    %478 = arith.addf %474, %477 : vector<16x16xf32>
    %c128 = arith.constant 128 : index
    %c0_172 = arith.constant 0 : index
    %479 = vector.load %arg1[%c128, %c0_172] : memref<1304x128xf32, #tpu.memory_space<vmem>>, vector<16x1xf32>
    %480 = vector.broadcast %479 : vector<16x1xf32> to vector<16x16xf32>
    %481 = arith.addf %478, %480 : vector<16x16xf32>
    %c144 = arith.constant 144 : index
    %c0_173 = arith.constant 0 : index
    %482 = vector.load %arg1[%c144, %c0_173] : memref<1304x128xf32, #tpu.memory_space<vmem>>, vector<16x8xf32>
    %cst_174 = arith.constant dense<0.000000e+00> : vector<16x8xf32>
    %483 = tpu.matmul %481, %482, %cst_174 {dimension_numbers = #tpu.dot_dimension_numbers<[1], [0], [0], [1], [0, 0, 1, 1], [], []>} : vector<16x16xf32>, vector<16x8xf32>, vector<16x8xf32> -> vector<16x8xf32>
    %cst_175 = arith.constant 0.000000e+00 : f32
    %484 = vector.broadcast %cst_175 : f32 to vector<16x2xf32>
    %485 = tpu.concatenate %484, %483, %484 in 1 : vector<16x2xf32>, vector<16x8xf32>, vector<16x2xf32> -> vector<16x12xf32>
    %c880 = arith.constant 880 : index
    %c0_176 = arith.constant 0 : index
    %486 = vector.load %arg1[%c880, %c0_176] : memref<1304x128xf32, #tpu.memory_space<vmem>>, vector<16x16xf32>
    %487 = vector.extract_strided_slice %485 {offsets = [0, 0], sizes = [16, 8], strides = [1, 1]} : vector<16x12xf32> to vector<16x8xf32>
    %cst_177 = arith.constant dense<0.000000e+00> : vector<16x8xf32>
    %488 = tpu.matmul %486, %487, %cst_177 {dimension_numbers = #tpu.dot_dimension_numbers<[1], [0], [0], [1], [0, 0, 1, 1], [], []>} : vector<16x16xf32>, vector<16x8xf32>, vector<16x8xf32> -> vector<16x8xf32>
    %c896 = arith.constant 896 : index
    %c0_178 = arith.constant 0 : index
    %489 = vector.load %arg1[%c896, %c0_178] : memref<1304x128xf32, #tpu.memory_space<vmem>>, vector<16x16xf32>
    %490 = vector.extract_strided_slice %485 {offsets = [0, 1], sizes = [16, 8], strides = [1, 1]} : vector<16x12xf32> to vector<16x8xf32>
    %cst_179 = arith.constant dense<0.000000e+00> : vector<16x8xf32>
    %491 = tpu.matmul %489, %490, %cst_179 {dimension_numbers = #tpu.dot_dimension_numbers<[1], [0], [0], [1], [0, 0, 1, 1], [], []>} : vector<16x16xf32>, vector<16x8xf32>, vector<16x8xf32> -> vector<16x8xf32>
    %492 = arith.addf %488, %491 : vector<16x8xf32>
    %c912 = arith.constant 912 : index
    %c0_180 = arith.constant 0 : index
    %493 = vector.load %arg1[%c912, %c0_180] : memref<1304x128xf32, #tpu.memory_space<vmem>>, vector<16x16xf32>
    %494 = vector.extract_strided_slice %485 {offsets = [0, 2], sizes = [16, 8], strides = [1, 1]} : vector<16x12xf32> to vector<16x8xf32>
    %cst_181 = arith.constant dense<0.000000e+00> : vector<16x8xf32>
    %495 = tpu.matmul %493, %494, %cst_181 {dimension_numbers = #tpu.dot_dimension_numbers<[1], [0], [0], [1], [0, 0, 1, 1], [], []>} : vector<16x16xf32>, vector<16x8xf32>, vector<16x8xf32> -> vector<16x8xf32>
    %496 = arith.addf %492, %495 : vector<16x8xf32>
    %c928 = arith.constant 928 : index
    %c0_182 = arith.constant 0 : index
    %497 = vector.load %arg1[%c928, %c0_182] : memref<1304x128xf32, #tpu.memory_space<vmem>>, vector<16x16xf32>
    %498 = vector.extract_strided_slice %485 {offsets = [0, 3], sizes = [16, 8], strides = [1, 1]} : vector<16x12xf32> to vector<16x8xf32>
    %cst_183 = arith.constant dense<0.000000e+00> : vector<16x8xf32>
    %499 = tpu.matmul %497, %498, %cst_183 {dimension_numbers = #tpu.dot_dimension_numbers<[1], [0], [0], [1], [0, 0, 1, 1], [], []>} : vector<16x16xf32>, vector<16x8xf32>, vector<16x8xf32> -> vector<16x8xf32>
    %500 = arith.addf %496, %499 : vector<16x8xf32>
    %c944 = arith.constant 944 : index
    %c0_184 = arith.constant 0 : index
    %501 = vector.load %arg1[%c944, %c0_184] : memref<1304x128xf32, #tpu.memory_space<vmem>>, vector<16x16xf32>
    %502 = vector.extract_strided_slice %485 {offsets = [0, 4], sizes = [16, 8], strides = [1, 1]} : vector<16x12xf32> to vector<16x8xf32>
    %cst_185 = arith.constant dense<0.000000e+00> : vector<16x8xf32>
    %503 = tpu.matmul %501, %502, %cst_185 {dimension_numbers = #tpu.dot_dimension_numbers<[1], [0], [0], [1], [0, 0, 1, 1], [], []>} : vector<16x16xf32>, vector<16x8xf32>, vector<16x8xf32> -> vector<16x8xf32>
    %504 = arith.addf %500, %503 : vector<16x8xf32>
    %c832 = arith.constant 832 : index
    %c0_186 = arith.constant 0 : index
    %505 = vector.load %arg1[%c832, %c0_186] : memref<1304x128xf32, #tpu.memory_space<vmem>>, vector<16x1xf32>
    %506 = vector.broadcast %505 : vector<16x1xf32> to vector<16x8xf32>
    %507 = arith.addf %504, %506 : vector<16x8xf32>
    %cst_187 = arith.constant dense<0.000000e+00> : vector<16xf32>
    %508 = vector.multi_reduction <add>, %507, %cst_187 [1] : vector<16x8xf32> to vector<16xf32>
    %509 = vector.shape_cast %508 : vector<16xf32> to vector<16x1xf32>
    %cst_188 = arith.constant 8.000000e+00 : f32
    %510 = vector.broadcast %cst_188 : f32 to vector<16x1xf32>
    %511 = arith.divf %509, %510 : vector<16x1xf32>
    %512 = arith.mulf %507, %507 : vector<16x8xf32>
    %cst_189 = arith.constant dense<0.000000e+00> : vector<16xf32>
    %513 = vector.multi_reduction <add>, %512, %cst_189 [1] : vector<16x8xf32> to vector<16xf32>
    %514 = vector.shape_cast %513 : vector<16xf32> to vector<16x1xf32>
    %cst_190 = arith.constant 8.000000e+00 : f32
    %515 = vector.broadcast %cst_190 : f32 to vector<16x1xf32>
    %516 = arith.divf %514, %515 : vector<16x1xf32>
    %c816 = arith.constant 816 : index
    %c0_191 = arith.constant 0 : index
    %517 = vector.load %arg1[%c816, %c0_191] : memref<1304x128xf32, #tpu.memory_space<vmem>>, vector<16x16xf32>
    %518 = tpu.concatenate %511, %516 in 1 : vector<16x1xf32>, vector<16x1xf32> -> vector<16x2xf32>
    %cst_192 = arith.constant dense<0.000000e+00> : vector<16x2xf32>
    %519 = tpu.matmul %517, %518, %cst_192 {dimension_numbers = #tpu.dot_dimension_numbers<[1], [0], [0], [1], [0, 0, 1, 1], [], []>} : vector<16x16xf32>, vector<16x2xf32>, vector<16x2xf32> -> vector<16x2xf32>
    %520 = vector.extract_strided_slice %519 {offsets = [0, 0], sizes = [16, 1], strides = [1, 1]} : vector<16x2xf32> to vector<16x1xf32>
    %521 = vector.extract_strided_slice %519 {offsets = [0, 1], sizes = [16, 1], strides = [1, 1]} : vector<16x2xf32> to vector<16x1xf32>
    %522 = arith.mulf %520, %520 : vector<16x1xf32>
    %523 = arith.subf %521, %522 : vector<16x1xf32>
    %cst_193 = arith.constant 0.000000e+00 : f32
    %524 = vector.broadcast %cst_193 : f32 to vector<16x1xf32>
    %525 = arith.maximumf %523, %524 : vector<16x1xf32>
    %526 = vector.broadcast %520 : vector<16x1xf32> to vector<16x8xf32>
    %527 = arith.subf %507, %526 : vector<16x8xf32>
    %cst_194 = arith.constant 9.99999974E-6 : f32
    %528 = vector.broadcast %cst_194 : f32 to vector<16x1xf32>
    %529 = arith.addf %525, %528 : vector<16x1xf32>
    %530 = math.rsqrt %529 : vector<16x1xf32>
    %531 = vector.broadcast %530 : vector<16x1xf32> to vector<16x8xf32>
    %532 = arith.mulf %527, %531 : vector<16x8xf32>
    %c864 = arith.constant 864 : index
    %c0_195 = arith.constant 0 : index
    %533 = vector.load %arg1[%c864, %c0_195] : memref<1304x128xf32, #tpu.memory_space<vmem>>, vector<16x1xf32>
    %534 = vector.broadcast %533 : vector<16x1xf32> to vector<16x8xf32>
    %535 = arith.mulf %532, %534 : vector<16x8xf32>
    %c848 = arith.constant 848 : index
    %c0_196 = arith.constant 0 : index
    %536 = vector.load %arg1[%c848, %c0_196] : memref<1304x128xf32, #tpu.memory_space<vmem>>, vector<16x1xf32>
    %537 = vector.broadcast %536 : vector<16x1xf32> to vector<16x8xf32>
    %538 = arith.addf %535, %537 : vector<16x8xf32>
    %cst_197 = arith.constant 0.000000e+00 : f32
    %539 = vector.broadcast %cst_197 : f32 to vector<16x8xf32>
    %540 = arith.maximumf %538, %539 : vector<16x8xf32>
    %541 = vector.broadcast %cst_197 : f32 to vector<16x8xf32>
    %542 = arith.subf %538, %541 : vector<16x8xf32>
    %543 = arith.cmpf one, %542, %542 : vector<16x8xf32>
    %544 = vector.broadcast %cst_197 : f32 to vector<16x8xf32>
    %545 = arith.addf %538, %544 : vector<16x8xf32>
    %546 = math.absf %542 : vector<16x8xf32>
    %cst_198 = arith.constant 0.000000e+00 : f32
    %547 = vector.broadcast %cst_198 : f32 to vector<16x8xf32>
    %548 = arith.subf %547, %546 : vector<16x8xf32>
    %549 = math.exp %548 : vector<16x8xf32>
    %550 = math.log1p %549 : vector<16x8xf32>
    %551 = arith.addf %540, %550 : vector<16x8xf32>
    %552 = arith.select %543, %545, %551 : vector<16x8xi1>, vector<16x8xf32>
    %553 = math.tanh %552 : vector<16x8xf32>
    %554 = arith.mulf %538, %553 : vector<16x8xf32>
    %cst_199 = arith.constant 0.000000e+00 : f32
    %555 = vector.broadcast %cst_199 : f32 to vector<16x2xf32>
    %556 = tpu.concatenate %555, %554, %555 in 1 : vector<16x2xf32>, vector<16x8xf32>, vector<16x2xf32> -> vector<16x12xf32>
    %c1024 = arith.constant 1024 : index
    %c0_200 = arith.constant 0 : index
    %557 = vector.load %arg1[%c1024, %c0_200] : memref<1304x128xf32, #tpu.memory_space<vmem>>, vector<16x16xf32>
    %558 = vector.extract_strided_slice %556 {offsets = [0, 0], sizes = [16, 8], strides = [1, 1]} : vector<16x12xf32> to vector<16x8xf32>
    %cst_201 = arith.constant dense<0.000000e+00> : vector<16x8xf32>
    %559 = tpu.matmul %557, %558, %cst_201 {dimension_numbers = #tpu.dot_dimension_numbers<[1], [0], [0], [1], [0, 0, 1, 1], [], []>} : vector<16x16xf32>, vector<16x8xf32>, vector<16x8xf32> -> vector<16x8xf32>
    %c1040 = arith.constant 1040 : index
    %c0_202 = arith.constant 0 : index
    %560 = vector.load %arg1[%c1040, %c0_202] : memref<1304x128xf32, #tpu.memory_space<vmem>>, vector<16x16xf32>
    %561 = vector.extract_strided_slice %556 {offsets = [0, 1], sizes = [16, 8], strides = [1, 1]} : vector<16x12xf32> to vector<16x8xf32>
    %cst_203 = arith.constant dense<0.000000e+00> : vector<16x8xf32>
    %562 = tpu.matmul %560, %561, %cst_203 {dimension_numbers = #tpu.dot_dimension_numbers<[1], [0], [0], [1], [0, 0, 1, 1], [], []>} : vector<16x16xf32>, vector<16x8xf32>, vector<16x8xf32> -> vector<16x8xf32>
    %563 = arith.addf %559, %562 : vector<16x8xf32>
    %c1056 = arith.constant 1056 : index
    %c0_204 = arith.constant 0 : index
    %564 = vector.load %arg1[%c1056, %c0_204] : memref<1304x128xf32, #tpu.memory_space<vmem>>, vector<16x16xf32>
    %565 = vector.extract_strided_slice %556 {offsets = [0, 2], sizes = [16, 8], strides = [1, 1]} : vector<16x12xf32> to vector<16x8xf32>
    %cst_205 = arith.constant dense<0.000000e+00> : vector<16x8xf32>
    %566 = tpu.matmul %564, %565, %cst_205 {dimension_numbers = #tpu.dot_dimension_numbers<[1], [0], [0], [1], [0, 0, 1, 1], [], []>} : vector<16x16xf32>, vector<16x8xf32>, vector<16x8xf32> -> vector<16x8xf32>
    %567 = arith.addf %563, %566 : vector<16x8xf32>
    %c1072 = arith.constant 1072 : index
    %c0_206 = arith.constant 0 : index
    %568 = vector.load %arg1[%c1072, %c0_206] : memref<1304x128xf32, #tpu.memory_space<vmem>>, vector<16x16xf32>
    %569 = vector.extract_strided_slice %556 {offsets = [0, 3], sizes = [16, 8], strides = [1, 1]} : vector<16x12xf32> to vector<16x8xf32>
    %cst_207 = arith.constant dense<0.000000e+00> : vector<16x8xf32>
    %570 = tpu.matmul %568, %569, %cst_207 {dimension_numbers = #tpu.dot_dimension_numbers<[1], [0], [0], [1], [0, 0, 1, 1], [], []>} : vector<16x16xf32>, vector<16x8xf32>, vector<16x8xf32> -> vector<16x8xf32>
    %571 = arith.addf %567, %570 : vector<16x8xf32>
    %c1088 = arith.constant 1088 : index
    %c0_208 = arith.constant 0 : index
    %572 = vector.load %arg1[%c1088, %c0_208] : memref<1304x128xf32, #tpu.memory_space<vmem>>, vector<16x16xf32>
    %573 = vector.extract_strided_slice %556 {offsets = [0, 4], sizes = [16, 8], strides = [1, 1]} : vector<16x12xf32> to vector<16x8xf32>
    %cst_209 = arith.constant dense<0.000000e+00> : vector<16x8xf32>
    %574 = tpu.matmul %572, %573, %cst_209 {dimension_numbers = #tpu.dot_dimension_numbers<[1], [0], [0], [1], [0, 0, 1, 1], [], []>} : vector<16x16xf32>, vector<16x8xf32>, vector<16x8xf32> -> vector<16x8xf32>
    %575 = arith.addf %571, %574 : vector<16x8xf32>
    %c976 = arith.constant 976 : index
    %c0_210 = arith.constant 0 : index
    %576 = vector.load %arg1[%c976, %c0_210] : memref<1304x128xf32, #tpu.memory_space<vmem>>, vector<16x1xf32>
    %577 = vector.broadcast %576 : vector<16x1xf32> to vector<16x8xf32>
    %578 = arith.addf %575, %577 : vector<16x8xf32>
    %cst_211 = arith.constant dense<0.000000e+00> : vector<16xf32>
    %579 = vector.multi_reduction <add>, %578, %cst_211 [1] : vector<16x8xf32> to vector<16xf32>
    %580 = vector.shape_cast %579 : vector<16xf32> to vector<16x1xf32>
    %cst_212 = arith.constant 8.000000e+00 : f32
    %581 = vector.broadcast %cst_212 : f32 to vector<16x1xf32>
    %582 = arith.divf %580, %581 : vector<16x1xf32>
    %583 = arith.mulf %578, %578 : vector<16x8xf32>
    %cst_213 = arith.constant dense<0.000000e+00> : vector<16xf32>
    %584 = vector.multi_reduction <add>, %583, %cst_213 [1] : vector<16x8xf32> to vector<16xf32>
    %585 = vector.shape_cast %584 : vector<16xf32> to vector<16x1xf32>
    %cst_214 = arith.constant 8.000000e+00 : f32
    %586 = vector.broadcast %cst_214 : f32 to vector<16x1xf32>
    %587 = arith.divf %585, %586 : vector<16x1xf32>
    %c960 = arith.constant 960 : index
    %c0_215 = arith.constant 0 : index
    %588 = vector.load %arg1[%c960, %c0_215] : memref<1304x128xf32, #tpu.memory_space<vmem>>, vector<16x16xf32>
    %589 = tpu.concatenate %582, %587 in 1 : vector<16x1xf32>, vector<16x1xf32> -> vector<16x2xf32>
    %cst_216 = arith.constant dense<0.000000e+00> : vector<16x2xf32>
    %590 = tpu.matmul %588, %589, %cst_216 {dimension_numbers = #tpu.dot_dimension_numbers<[1], [0], [0], [1], [0, 0, 1, 1], [], []>} : vector<16x16xf32>, vector<16x2xf32>, vector<16x2xf32> -> vector<16x2xf32>
    %591 = vector.extract_strided_slice %590 {offsets = [0, 0], sizes = [16, 1], strides = [1, 1]} : vector<16x2xf32> to vector<16x1xf32>
    %592 = vector.extract_strided_slice %590 {offsets = [0, 1], sizes = [16, 1], strides = [1, 1]} : vector<16x2xf32> to vector<16x1xf32>
    %593 = arith.mulf %591, %591 : vector<16x1xf32>
    %594 = arith.subf %592, %593 : vector<16x1xf32>
    %cst_217 = arith.constant 0.000000e+00 : f32
    %595 = vector.broadcast %cst_217 : f32 to vector<16x1xf32>
    %596 = arith.maximumf %594, %595 : vector<16x1xf32>
    %597 = vector.broadcast %591 : vector<16x1xf32> to vector<16x8xf32>
    %598 = arith.subf %578, %597 : vector<16x8xf32>
    %cst_218 = arith.constant 9.99999974E-6 : f32
    %599 = vector.broadcast %cst_218 : f32 to vector<16x1xf32>
    %600 = arith.addf %596, %599 : vector<16x1xf32>
    %601 = math.rsqrt %600 : vector<16x1xf32>
    %602 = vector.broadcast %601 : vector<16x1xf32> to vector<16x8xf32>
    %603 = arith.mulf %598, %602 : vector<16x8xf32>
    %c1008 = arith.constant 1008 : index
    %c0_219 = arith.constant 0 : index
    %604 = vector.load %arg1[%c1008, %c0_219] : memref<1304x128xf32, #tpu.memory_space<vmem>>, vector<16x1xf32>
    %605 = vector.broadcast %604 : vector<16x1xf32> to vector<16x8xf32>
    %606 = arith.mulf %603, %605 : vector<16x8xf32>
    %c992 = arith.constant 992 : index
    %c0_220 = arith.constant 0 : index
    %607 = vector.load %arg1[%c992, %c0_220] : memref<1304x128xf32, #tpu.memory_space<vmem>>, vector<16x1xf32>
    %608 = vector.broadcast %607 : vector<16x1xf32> to vector<16x8xf32>
    %609 = arith.addf %606, %608 : vector<16x8xf32>
    %cst_221 = arith.constant 0.000000e+00 : f32
    %610 = vector.broadcast %cst_221 : f32 to vector<16x8xf32>
    %611 = arith.maximumf %609, %610 : vector<16x8xf32>
    %612 = vector.broadcast %cst_221 : f32 to vector<16x8xf32>
    %613 = arith.subf %609, %612 : vector<16x8xf32>
    %614 = arith.cmpf one, %613, %613 : vector<16x8xf32>
    %615 = vector.broadcast %cst_221 : f32 to vector<16x8xf32>
    %616 = arith.addf %609, %615 : vector<16x8xf32>
    %617 = math.absf %613 : vector<16x8xf32>
    %cst_222 = arith.constant 0.000000e+00 : f32
    %618 = vector.broadcast %cst_222 : f32 to vector<16x8xf32>
    %619 = arith.subf %618, %617 : vector<16x8xf32>
    %620 = math.exp %619 : vector<16x8xf32>
    %621 = math.log1p %620 : vector<16x8xf32>
    %622 = arith.addf %611, %621 : vector<16x8xf32>
    %623 = arith.select %614, %616, %622 : vector<16x8xi1>, vector<16x8xf32>
    %624 = math.tanh %623 : vector<16x8xf32>
    %625 = arith.mulf %609, %624 : vector<16x8xf32>
    %626 = arith.addf %625, %483 : vector<16x8xf32>
    %c1112 = arith.constant 1112 : index
    %c0_223 = arith.constant 0 : index
    %627 = vector.load %arg1[%c1112, %c0_223] : memref<1304x128xf32, #tpu.memory_space<vmem>>, vector<8x16xf32>
    %c1104 = arith.constant 1104 : index
    %c0_224 = arith.constant 0 : index
    %628 = vector.load %arg1[%c1104, %c0_224] : memref<1304x128xf32, #tpu.memory_space<vmem>>, vector<8x1xf32>
    %cst_225 = arith.constant dense<0.000000e+00> : vector<8x8xf32>
    %629 = tpu.matmul %627, %626, %cst_225 {dimension_numbers = #tpu.dot_dimension_numbers<[1], [0], [0], [1], [0, 0, 1, 1], [], []>} : vector<8x16xf32>, vector<16x8xf32>, vector<8x8xf32> -> vector<8x8xf32>
    %630 = vector.broadcast %628 : vector<8x1xf32> to vector<8x8xf32>
    %631 = arith.addf %629, %630 : vector<8x8xf32>
    %c0_226 = arith.constant 0 : index
    %c0_227 = arith.constant 0 : index
    %c0_228 = arith.constant 0 : index
    %632 = vector.load %arg3[%c0_226, %c0_227, %c0_228] : memref<2x8x8xf32, #tpu.memory_space<vmem>>, vector<1x8x8xf32>
    %633 = vector.shape_cast %632 : vector<1x8x8xf32> to vector<8x8xf32>
    %634 = vector.shape_cast %631 : vector<8x8xf32> to vector<1x8x8xf32>
    tpu.vector_store %arg3[%c0_226, %c0_227, %c0_228], %634 {strides = array<i32>} : memref<2x8x8xf32, #tpu.memory_space<vmem>>, vector<1x8x8xf32>,
    %c1 = arith.constant 1 : index
    %c0_229 = arith.constant 0 : index
    %c0_230 = arith.constant 0 : index
    %635 = vector.load %arg2[%c1, %c0_229, %c0_230] : memref<2x4x16xf32, #tpu.memory_space<vmem>>, vector<1x4x16xf32>
    %636 = vector.shape_cast %635 : vector<1x4x16xf32> to vector<4x16xf32>
    %c1136_231 = arith.constant 1136 : index
    %c0_232 = arith.constant 0 : index
    %637 = vector.load %arg1[%c1136_231, %c0_232] : memref<1304x128xf32, #tpu.memory_space<vmem>>, vector<4x1xf32>
    %c1120_233 = arith.constant 1120 : index
    %c0_234 = arith.constant 0 : index
    %638 = vector.load %arg1[%c1120_233, %c0_234] : memref<1304x128xf32, #tpu.memory_space<vmem>>, vector<4x1xf32>
    %cst_235 = arith.constant dense<0.000000e+00> : vector<16xf32>
    %639 = vector.multi_reduction <add>, %636, %cst_235 [0] : vector<4x16xf32> to vector<16xf32>
    %640 = vector.shape_cast %639 : vector<16xf32> to vector<1x16xf32>
    %cst_236 = arith.constant 4.000000e+00 : f32
    %641 = vector.broadcast %cst_236 : f32 to vector<1x16xf32>
    %642 = arith.divf %640, %641 : vector<1x16xf32>
    %643 = vector.broadcast %642 : vector<1x16xf32> to vector<4x16xf32>
    %644 = arith.subf %636, %643 : vector<4x16xf32>
    %645 = arith.mulf %644, %644 : vector<4x16xf32>
    %cst_237 = arith.constant dense<0.000000e+00> : vector<16xf32>
    %646 = vector.multi_reduction <add>, %645, %cst_237 [0] : vector<4x16xf32> to vector<16xf32>
    %647 = vector.shape_cast %646 : vector<16xf32> to vector<1x16xf32>
    %cst_238 = arith.constant 4.000000e+00 : f32
    %648 = vector.broadcast %cst_238 : f32 to vector<1x16xf32>
    %649 = arith.divf %647, %648 : vector<1x16xf32>
    %650 = vector.broadcast %642 : vector<1x16xf32> to vector<4x16xf32>
    %651 = arith.subf %636, %650 : vector<4x16xf32>
    %cst_239 = arith.constant 9.99999974E-6 : f32
    %652 = vector.broadcast %cst_239 : f32 to vector<1x16xf32>
    %653 = arith.addf %649, %652 : vector<1x16xf32>
    %654 = math.rsqrt %653 : vector<1x16xf32>
    %655 = vector.broadcast %654 : vector<1x16xf32> to vector<4x16xf32>
    %656 = arith.mulf %651, %655 : vector<4x16xf32>
    %657 = vector.broadcast %637 : vector<4x1xf32> to vector<4x16xf32>
    %658 = arith.mulf %656, %657 : vector<4x16xf32>
    %659 = vector.broadcast %638 : vector<4x1xf32> to vector<4x16xf32>
    %660 = arith.addf %658, %659 : vector<4x16xf32>
    %c1216_240 = arith.constant 1216 : index
    %c0_241 = arith.constant 0 : index
    %661 = vector.load %arg1[%c1216_240, %c0_241] : memref<1304x128xf32, #tpu.memory_space<vmem>>, vector<4x128xf32>
    %c1224_242 = arith.constant 1224 : index
    %c0_243 = arith.constant 0 : index
    %662 = vector.load %arg1[%c1224_242, %c0_243] : memref<1304x128xf32, #tpu.memory_space<vmem>>, vector<4x64xf32>
    %cst_244 = arith.constant dense<0.000000e+00> : vector<128x16xf32>
    %663 = tpu.matmul %661, %660, %cst_244 {dimension_numbers = #tpu.dot_dimension_numbers<[0], [0], [1], [1], [0, 1, 1, 1], [], []>} : vector<4x128xf32>, vector<4x16xf32>, vector<128x16xf32> -> vector<128x16xf32>
    %cst_245 = arith.constant dense<0.000000e+00> : vector<64x16xf32>
    %664 = tpu.matmul %662, %660, %cst_245 {dimension_numbers = #tpu.dot_dimension_numbers<[0], [0], [1], [1], [0, 1, 1, 1], [], []>} : vector<4x64xf32>, vector<4x16xf32>, vector<64x16xf32> -> vector<64x16xf32>
    %665 = vector.extract_strided_slice %663 {offsets = [0, 0], sizes = [64, 16], strides = [1, 1]} : vector<128x16xf32> to vector<64x16xf32>
    %cst_246 = arith.constant 2.500000e-01 : f32
    %666 = vector.broadcast %cst_246 : f32 to vector<64x16xf32>
    %667 = arith.mulf %665, %666 : vector<64x16xf32>
    %668 = vector.extract_strided_slice %663 {offsets = [64, 0], sizes = [64, 16], strides = [1, 1]} : vector<128x16xf32> to vector<64x16xf32>
    %cst_247 = arith.constant dense<0xFF800000> : vector<64xf32>
    %669 = vector.multi_reduction <maximumf>, %668, %cst_247 [1] : vector<64x16xf32> to vector<64xf32>
    %670 = vector.shape_cast %669 : vector<64xf32> to vector<64x1xf32>
    %671 = vector.broadcast %670 : vector<64x1xf32> to vector<64x16xf32>
    %672 = arith.subf %668, %671 : vector<64x16xf32>
    %673 = math.exp %672 : vector<64x16xf32>
    %cst_248 = arith.constant dense<0.000000e+00> : vector<64xf32>
    %674 = vector.multi_reduction <add>, %673, %cst_248 [1] : vector<64x16xf32> to vector<64xf32>
    %675 = vector.shape_cast %674 : vector<64xf32> to vector<64x1xf32>
    %676 = vector.broadcast %675 : vector<64x1xf32> to vector<64x16xf32>
    %677 = arith.divf %673, %676 : vector<64x16xf32>
    %cst_249 = arith.constant dense<0.000000e+00> : vector<64x64xf32>
    %678 = tpu.matmul %677, %664, %cst_249 {dimension_numbers = #tpu.dot_dimension_numbers<[1], [1], [0], [0], [0, 0, 1, 0], [], []>} : vector<64x16xf32>, vector<64x16xf32>, vector<64x64xf32> -> vector<64x64xf32>
    %c1144_250 = arith.constant 1144 : index
    %c0_251 = arith.constant 0 : index
    %679 = vector.load %arg1[%c1144_250, %c0_251] : memref<1304x128xf32, #tpu.memory_space<vmem>>, vector<64x64xf32>
    %680 = arith.mulf %678, %679 : vector<64x64xf32>
    %cst_252 = arith.constant dense<0.000000e+00> : vector<64x16xf32>
    %681 = tpu.matmul %680, %667, %cst_252 {dimension_numbers = #tpu.dot_dimension_numbers<[0], [0], [1], [1], [0, 1, 1, 1], [], []>} : vector<64x64xf32>, vector<64x16xf32>, vector<64x16xf32> -> vector<64x16xf32>
    %c1208_253 = arith.constant 1208 : index
    %c0_254 = arith.constant 0 : index
    %682 = vector.load %arg1[%c1208_253, %c0_254] : memref<1304x128xf32, #tpu.memory_space<vmem>>, vector<4x64xf32>
    %cst_255 = arith.constant dense<0.000000e+00> : vector<4x16xf32>
    %683 = tpu.matmul %682, %681, %cst_255 {dimension_numbers = #tpu.dot_dimension_numbers<[1], [0], [0], [1], [0, 0, 1, 1], [], []>} : vector<4x64xf32>, vector<64x16xf32>, vector<4x16xf32> -> vector<4x16xf32>
    %c1128_256 = arith.constant 1128 : index
    %c0_257 = arith.constant 0 : index
    %684 = vector.load %arg1[%c1128_256, %c0_257] : memref<1304x128xf32, #tpu.memory_space<vmem>>, vector<4x1xf32>
    %685 = vector.broadcast %684 : vector<4x1xf32> to vector<4x16xf32>
    %686 = arith.addf %683, %685 : vector<4x16xf32>
    %687 = arith.addf %686, %636 : vector<4x16xf32>
    %cst_258 = arith.constant 0.000000e+00 : f32
    %688 = vector.broadcast %cst_258 : f32 to vector<4x2xf32>
    %689 = tpu.concatenate %688, %687, %688 in 1 : vector<4x2xf32>, vector<4x16xf32>, vector<4x2xf32> -> vector<4x20xf32>
    %c1264_259 = arith.constant 1264 : index
    %c0_260 = arith.constant 0 : index
    %690 = vector.load %arg1[%c1264_259, %c0_260] : memref<1304x128xf32, #tpu.memory_space<vmem>>, vector<8x4xf32>
    %691 = vector.extract_strided_slice %689 {offsets = [0, 0], sizes = [4, 16], strides = [1, 1]} : vector<4x20xf32> to vector<4x16xf32>
    %cst_261 = arith.constant dense<0.000000e+00> : vector<8x16xf32>
    %692 = tpu.matmul %690, %691, %cst_261 {dimension_numbers = #tpu.dot_dimension_numbers<[1], [0], [0], [1], [0, 0, 1, 1], [], []>} : vector<8x4xf32>, vector<4x16xf32>, vector<8x16xf32> -> vector<8x16xf32>
    %c1272_262 = arith.constant 1272 : index
    %c0_263 = arith.constant 0 : index
    %693 = vector.load %arg1[%c1272_262, %c0_263] : memref<1304x128xf32, #tpu.memory_space<vmem>>, vector<8x4xf32>
    %694 = vector.extract_strided_slice %689 {offsets = [0, 1], sizes = [4, 16], strides = [1, 1]} : vector<4x20xf32> to vector<4x16xf32>
    %cst_264 = arith.constant dense<0.000000e+00> : vector<8x16xf32>
    %695 = tpu.matmul %693, %694, %cst_264 {dimension_numbers = #tpu.dot_dimension_numbers<[1], [0], [0], [1], [0, 0, 1, 1], [], []>} : vector<8x4xf32>, vector<4x16xf32>, vector<8x16xf32> -> vector<8x16xf32>
    %696 = arith.addf %692, %695 : vector<8x16xf32>
    %c1280_265 = arith.constant 1280 : index
    %c0_266 = arith.constant 0 : index
    %697 = vector.load %arg1[%c1280_265, %c0_266] : memref<1304x128xf32, #tpu.memory_space<vmem>>, vector<8x4xf32>
    %698 = vector.extract_strided_slice %689 {offsets = [0, 2], sizes = [4, 16], strides = [1, 1]} : vector<4x20xf32> to vector<4x16xf32>
    %cst_267 = arith.constant dense<0.000000e+00> : vector<8x16xf32>
    %699 = tpu.matmul %697, %698, %cst_267 {dimension_numbers = #tpu.dot_dimension_numbers<[1], [0], [0], [1], [0, 0, 1, 1], [], []>} : vector<8x4xf32>, vector<4x16xf32>, vector<8x16xf32> -> vector<8x16xf32>
    %700 = arith.addf %696, %699 : vector<8x16xf32>
    %c1288_268 = arith.constant 1288 : index
    %c0_269 = arith.constant 0 : index
    %701 = vector.load %arg1[%c1288_268, %c0_269] : memref<1304x128xf32, #tpu.memory_space<vmem>>, vector<8x4xf32>
    %702 = vector.extract_strided_slice %689 {offsets = [0, 3], sizes = [4, 16], strides = [1, 1]} : vector<4x20xf32> to vector<4x16xf32>
    %cst_270 = arith.constant dense<0.000000e+00> : vector<8x16xf32>
    %703 = tpu.matmul %701, %702, %cst_270 {dimension_numbers = #tpu.dot_dimension_numbers<[1], [0], [0], [1], [0, 0, 1, 1], [], []>} : vector<8x4xf32>, vector<4x16xf32>, vector<8x16xf32> -> vector<8x16xf32>
    %704 = arith.addf %700, %703 : vector<8x16xf32>
    %c1296_271 = arith.constant 1296 : index
    %c0_272 = arith.constant 0 : index
    %705 = vector.load %arg1[%c1296_271, %c0_272] : memref<1304x128xf32, #tpu.memory_space<vmem>>, vector<8x4xf32>
    %706 = vector.extract_strided_slice %689 {offsets = [0, 4], sizes = [4, 16], strides = [1, 1]} : vector<4x20xf32> to vector<4x16xf32>
    %cst_273 = arith.constant dense<0.000000e+00> : vector<8x16xf32>
    %707 = tpu.matmul %705, %706, %cst_273 {dimension_numbers = #tpu.dot_dimension_numbers<[1], [0], [0], [1], [0, 0, 1, 1], [], []>} : vector<8x4xf32>, vector<4x16xf32>, vector<8x16xf32> -> vector<8x16xf32>
    %708 = arith.addf %704, %707 : vector<8x16xf32>
    %c1240_274 = arith.constant 1240 : index
    %c0_275 = arith.constant 0 : index
    %709 = vector.load %arg1[%c1240_274, %c0_275] : memref<1304x128xf32, #tpu.memory_space<vmem>>, vector<8x1xf32>
    %710 = vector.broadcast %709 : vector<8x1xf32> to vector<8x16xf32>
    %711 = arith.addf %708, %710 : vector<8x16xf32>
    %cst_276 = arith.constant dense<0.000000e+00> : vector<8xf32>
    %712 = vector.multi_reduction <add>, %711, %cst_276 [1] : vector<8x16xf32> to vector<8xf32>
    %713 = vector.shape_cast %712 : vector<8xf32> to vector<8x1xf32>
    %cst_277 = arith.constant 1.600000e+01 : f32
    %714 = vector.broadcast %cst_277 : f32 to vector<8x1xf32>
    %715 = arith.divf %713, %714 : vector<8x1xf32>
    %716 = arith.mulf %711, %711 : vector<8x16xf32>
    %cst_278 = arith.constant dense<0.000000e+00> : vector<8xf32>
    %717 = vector.multi_reduction <add>, %716, %cst_278 [1] : vector<8x16xf32> to vector<8xf32>
    %718 = vector.shape_cast %717 : vector<8xf32> to vector<8x1xf32>
    %cst_279 = arith.constant 1.600000e+01 : f32
    %719 = vector.broadcast %cst_279 : f32 to vector<8x1xf32>
    %720 = arith.divf %718, %719 : vector<8x1xf32>
    %c1232_280 = arith.constant 1232 : index
    %c0_281 = arith.constant 0 : index
    %721 = vector.load %arg1[%c1232_280, %c0_281] : memref<1304x128xf32, #tpu.memory_space<vmem>>, vector<8x8xf32>
    %722 = tpu.concatenate %715, %720 in 1 : vector<8x1xf32>, vector<8x1xf32> -> vector<8x2xf32>
    %cst_282 = arith.constant dense<0.000000e+00> : vector<8x2xf32>
    %723 = tpu.matmul %721, %722, %cst_282 {dimension_numbers = #tpu.dot_dimension_numbers<[1], [0], [0], [1], [0, 0, 1, 1], [], []>} : vector<8x8xf32>, vector<8x2xf32>, vector<8x2xf32> -> vector<8x2xf32>
    %724 = vector.extract_strided_slice %723 {offsets = [0, 0], sizes = [8, 1], strides = [1, 1]} : vector<8x2xf32> to vector<8x1xf32>
    %725 = vector.extract_strided_slice %723 {offsets = [0, 1], sizes = [8, 1], strides = [1, 1]} : vector<8x2xf32> to vector<8x1xf32>
    %726 = arith.mulf %724, %724 : vector<8x1xf32>
    %727 = arith.subf %725, %726 : vector<8x1xf32>
    %cst_283 = arith.constant 0.000000e+00 : f32
    %728 = vector.broadcast %cst_283 : f32 to vector<8x1xf32>
    %729 = arith.maximumf %727, %728 : vector<8x1xf32>
    %730 = vector.broadcast %724 : vector<8x1xf32> to vector<8x16xf32>
    %731 = arith.subf %711, %730 : vector<8x16xf32>
    %cst_284 = arith.constant 9.99999974E-6 : f32
    %732 = vector.broadcast %cst_284 : f32 to vector<8x1xf32>
    %733 = arith.addf %729, %732 : vector<8x1xf32>
    %734 = math.rsqrt %733 : vector<8x1xf32>
    %735 = vector.broadcast %734 : vector<8x1xf32> to vector<8x16xf32>
    %736 = arith.mulf %731, %735 : vector<8x16xf32>
    %c1256_285 = arith.constant 1256 : index
    %c0_286 = arith.constant 0 : index
    %737 = vector.load %arg1[%c1256_285, %c0_286] : memref<1304x128xf32, #tpu.memory_space<vmem>>, vector<8x1xf32>
    %738 = vector.broadcast %737 : vector<8x1xf32> to vector<8x16xf32>
    %739 = arith.mulf %736, %738 : vector<8x16xf32>
    %c1248_287 = arith.constant 1248 : index
    %c0_288 = arith.constant 0 : index
    %740 = vector.load %arg1[%c1248_287, %c0_288] : memref<1304x128xf32, #tpu.memory_space<vmem>>, vector<8x1xf32>
    %741 = vector.broadcast %740 : vector<8x1xf32> to vector<8x16xf32>
    %742 = arith.addf %739, %741 : vector<8x16xf32>
    %cst_289 = arith.constant 0.000000e+00 : f32
    %743 = vector.broadcast %cst_289 : f32 to vector<8x16xf32>
    %744 = arith.maximumf %742, %743 : vector<8x16xf32>
    %745 = vector.broadcast %cst_289 : f32 to vector<8x16xf32>
    %746 = arith.subf %742, %745 : vector<8x16xf32>
    %747 = arith.cmpf one, %746, %746 : vector<8x16xf32>
    %748 = vector.broadcast %cst_289 : f32 to vector<8x16xf32>
    %749 = arith.addf %742, %748 : vector<8x16xf32>
    %750 = math.absf %746 : vector<8x16xf32>
    %cst_290 = arith.constant 0.000000e+00 : f32
    %751 = vector.broadcast %cst_290 : f32 to vector<8x16xf32>
    %752 = arith.subf %751, %750 : vector<8x16xf32>
    %753 = math.exp %752 : vector<8x16xf32>
    %754 = math.log1p %753 : vector<8x16xf32>
    %755 = arith.addf %744, %754 : vector<8x16xf32>
    %756 = arith.select %747, %749, %755 : vector<8x16xi1>, vector<8x16xf32>
    %757 = math.tanh %756 : vector<8x16xf32>
    %758 = arith.mulf %742, %757 : vector<8x16xf32>
    %cst_291 = arith.constant 0.000000e+00 : f32
    %759 = vector.broadcast %cst_291 : f32 to vector<8x2xf32>
    %760 = tpu.concatenate %759, %758, %759 in 1 : vector<8x2xf32>, vector<8x16xf32>, vector<8x2xf32> -> vector<8x20xf32>
    %c272_292 = arith.constant 272 : index
    %c0_293 = arith.constant 0 : index
    %761 = vector.load %arg1[%c272_292, %c0_293] : memref<1304x128xf32, #tpu.memory_space<vmem>>, vector<16x8xf32>
    %762 = vector.extract_strided_slice %760 {offsets = [0, 0], sizes = [8, 16], strides = [1, 1]} : vector<8x20xf32> to vector<8x16xf32>
    %cst_294 = arith.constant dense<0.000000e+00> : vector<16x16xf32>
    %763 = tpu.matmul %761, %762, %cst_294 {dimension_numbers = #tpu.dot_dimension_numbers<[1], [0], [0], [1], [0, 0, 1, 1], [], []>} : vector<16x8xf32>, vector<8x16xf32>, vector<16x16xf32> -> vector<16x16xf32>
    %c288_295 = arith.constant 288 : index
    %c0_296 = arith.constant 0 : index
    %764 = vector.load %arg1[%c288_295, %c0_296] : memref<1304x128xf32, #tpu.memory_space<vmem>>, vector<16x8xf32>
    %765 = vector.extract_strided_slice %760 {offsets = [0, 1], sizes = [8, 16], strides = [1, 1]} : vector<8x20xf32> to vector<8x16xf32>
    %cst_297 = arith.constant dense<0.000000e+00> : vector<16x16xf32>
    %766 = tpu.matmul %764, %765, %cst_297 {dimension_numbers = #tpu.dot_dimension_numbers<[1], [0], [0], [1], [0, 0, 1, 1], [], []>} : vector<16x8xf32>, vector<8x16xf32>, vector<16x16xf32> -> vector<16x16xf32>
    %767 = arith.addf %763, %766 : vector<16x16xf32>
    %c304_298 = arith.constant 304 : index
    %c0_299 = arith.constant 0 : index
    %768 = vector.load %arg1[%c304_298, %c0_299] : memref<1304x128xf32, #tpu.memory_space<vmem>>, vector<16x8xf32>
    %769 = vector.extract_strided_slice %760 {offsets = [0, 2], sizes = [8, 16], strides = [1, 1]} : vector<8x20xf32> to vector<8x16xf32>
    %cst_300 = arith.constant dense<0.000000e+00> : vector<16x16xf32>
    %770 = tpu.matmul %768, %769, %cst_300 {dimension_numbers = #tpu.dot_dimension_numbers<[1], [0], [0], [1], [0, 0, 1, 1], [], []>} : vector<16x8xf32>, vector<8x16xf32>, vector<16x16xf32> -> vector<16x16xf32>
    %771 = arith.addf %767, %770 : vector<16x16xf32>
    %c320_301 = arith.constant 320 : index
    %c0_302 = arith.constant 0 : index
    %772 = vector.load %arg1[%c320_301, %c0_302] : memref<1304x128xf32, #tpu.memory_space<vmem>>, vector<16x8xf32>
    %773 = vector.extract_strided_slice %760 {offsets = [0, 3], sizes = [8, 16], strides = [1, 1]} : vector<8x20xf32> to vector<8x16xf32>
    %cst_303 = arith.constant dense<0.000000e+00> : vector<16x16xf32>
    %774 = tpu.matmul %772, %773, %cst_303 {dimension_numbers = #tpu.dot_dimension_numbers<[1], [0], [0], [1], [0, 0, 1, 1], [], []>} : vector<16x8xf32>, vector<8x16xf32>, vector<16x16xf32> -> vector<16x16xf32>
    %775 = arith.addf %771, %774 : vector<16x16xf32>
    %c336_304 = arith.constant 336 : index
    %c0_305 = arith.constant 0 : index
    %776 = vector.load %arg1[%c336_304, %c0_305] : memref<1304x128xf32, #tpu.memory_space<vmem>>, vector<16x8xf32>
    %777 = vector.extract_strided_slice %760 {offsets = [0, 4], sizes = [8, 16], strides = [1, 1]} : vector<8x20xf32> to vector<8x16xf32>
    %cst_306 = arith.constant dense<0.000000e+00> : vector<16x16xf32>
    %778 = tpu.matmul %776, %777, %cst_306 {dimension_numbers = #tpu.dot_dimension_numbers<[1], [0], [0], [1], [0, 0, 1, 1], [], []>} : vector<16x8xf32>, vector<8x16xf32>, vector<16x16xf32> -> vector<16x16xf32>
    %779 = arith.addf %775, %778 : vector<16x16xf32>
    %c224_307 = arith.constant 224 : index
    %c0_308 = arith.constant 0 : index
    %780 = vector.load %arg1[%c224_307, %c0_308] : memref<1304x128xf32, #tpu.memory_space<vmem>>, vector<16x1xf32>
    %781 = vector.broadcast %780 : vector<16x1xf32> to vector<16x16xf32>
    %782 = arith.addf %779, %781 : vector<16x16xf32>
    %cst_309 = arith.constant dense<0.000000e+00> : vector<16xf32>
    %783 = vector.multi_reduction <add>, %782, %cst_309 [1] : vector<16x16xf32> to vector<16xf32>
    %784 = vector.shape_cast %783 : vector<16xf32> to vector<16x1xf32>
    %cst_310 = arith.constant 1.600000e+01 : f32
    %785 = vector.broadcast %cst_310 : f32 to vector<16x1xf32>
    %786 = arith.divf %784, %785 : vector<16x1xf32>
    %787 = arith.mulf %782, %782 : vector<16x16xf32>
    %cst_311 = arith.constant dense<0.000000e+00> : vector<16xf32>
    %788 = vector.multi_reduction <add>, %787, %cst_311 [1] : vector<16x16xf32> to vector<16xf32>
    %789 = vector.shape_cast %788 : vector<16xf32> to vector<16x1xf32>
    %cst_312 = arith.constant 1.600000e+01 : f32
    %790 = vector.broadcast %cst_312 : f32 to vector<16x1xf32>
    %791 = arith.divf %789, %790 : vector<16x1xf32>
    %c208_313 = arith.constant 208 : index
    %c0_314 = arith.constant 0 : index
    %792 = vector.load %arg1[%c208_313, %c0_314] : memref<1304x128xf32, #tpu.memory_space<vmem>>, vector<16x16xf32>
    %793 = tpu.concatenate %786, %791 in 1 : vector<16x1xf32>, vector<16x1xf32> -> vector<16x2xf32>
    %cst_315 = arith.constant dense<0.000000e+00> : vector<16x2xf32>
    %794 = tpu.matmul %792, %793, %cst_315 {dimension_numbers = #tpu.dot_dimension_numbers<[1], [0], [0], [1], [0, 0, 1, 1], [], []>} : vector<16x16xf32>, vector<16x2xf32>, vector<16x2xf32> -> vector<16x2xf32>
    %795 = vector.extract_strided_slice %794 {offsets = [0, 0], sizes = [16, 1], strides = [1, 1]} : vector<16x2xf32> to vector<16x1xf32>
    %796 = vector.extract_strided_slice %794 {offsets = [0, 1], sizes = [16, 1], strides = [1, 1]} : vector<16x2xf32> to vector<16x1xf32>
    %797 = arith.mulf %795, %795 : vector<16x1xf32>
    %798 = arith.subf %796, %797 : vector<16x1xf32>
    %cst_316 = arith.constant 0.000000e+00 : f32
    %799 = vector.broadcast %cst_316 : f32 to vector<16x1xf32>
    %800 = arith.maximumf %798, %799 : vector<16x1xf32>
    %801 = vector.broadcast %795 : vector<16x1xf32> to vector<16x16xf32>
    %802 = arith.subf %782, %801 : vector<16x16xf32>
    %cst_317 = arith.constant 9.99999974E-6 : f32
    %803 = vector.broadcast %cst_317 : f32 to vector<16x1xf32>
    %804 = arith.addf %800, %803 : vector<16x1xf32>
    %805 = math.rsqrt %804 : vector<16x1xf32>
    %806 = vector.broadcast %805 : vector<16x1xf32> to vector<16x16xf32>
    %807 = arith.mulf %802, %806 : vector<16x16xf32>
    %c256_318 = arith.constant 256 : index
    %c0_319 = arith.constant 0 : index
    %808 = vector.load %arg1[%c256_318, %c0_319] : memref<1304x128xf32, #tpu.memory_space<vmem>>, vector<16x1xf32>
    %809 = vector.broadcast %808 : vector<16x1xf32> to vector<16x16xf32>
    %810 = arith.mulf %807, %809 : vector<16x16xf32>
    %c240_320 = arith.constant 240 : index
    %c0_321 = arith.constant 0 : index
    %811 = vector.load %arg1[%c240_320, %c0_321] : memref<1304x128xf32, #tpu.memory_space<vmem>>, vector<16x1xf32>
    %812 = vector.broadcast %811 : vector<16x1xf32> to vector<16x16xf32>
    %813 = arith.addf %810, %812 : vector<16x16xf32>
    %cst_322 = arith.constant 0.000000e+00 : f32
    %814 = vector.broadcast %cst_322 : f32 to vector<16x16xf32>
    %815 = arith.maximumf %813, %814 : vector<16x16xf32>
    %816 = vector.broadcast %cst_322 : f32 to vector<16x16xf32>
    %817 = arith.subf %813, %816 : vector<16x16xf32>
    %818 = arith.cmpf one, %817, %817 : vector<16x16xf32>
    %819 = vector.broadcast %cst_322 : f32 to vector<16x16xf32>
    %820 = arith.addf %813, %819 : vector<16x16xf32>
    %821 = math.absf %817 : vector<16x16xf32>
    %cst_323 = arith.constant 0.000000e+00 : f32
    %822 = vector.broadcast %cst_323 : f32 to vector<16x16xf32>
    %823 = arith.subf %822, %821 : vector<16x16xf32>
    %824 = math.exp %823 : vector<16x16xf32>
    %825 = math.log1p %824 : vector<16x16xf32>
    %826 = arith.addf %815, %825 : vector<16x16xf32>
    %827 = arith.select %818, %820, %826 : vector<16x16xi1>, vector<16x16xf32>
    %828 = math.tanh %827 : vector<16x16xf32>
    %829 = arith.mulf %813, %828 : vector<16x16xf32>
    %cst_324 = arith.constant 0.000000e+00 : f32
    %830 = vector.broadcast %cst_324 : f32 to vector<16x2xf32>
    %831 = tpu.concatenate %830, %829, %830 in 1 : vector<16x2xf32>, vector<16x16xf32>, vector<16x2xf32> -> vector<16x20xf32>
    %c416_325 = arith.constant 416 : index
    %c0_326 = arith.constant 0 : index
    %832 = vector.load %arg1[%c416_325, %c0_326] : memref<1304x128xf32, #tpu.memory_space<vmem>>, vector<16x16xf32>
    %833 = vector.extract_strided_slice %831 {offsets = [0, 0], sizes = [16, 16], strides = [1, 1]} : vector<16x20xf32> to vector<16x16xf32>
    %cst_327 = arith.constant dense<0.000000e+00> : vector<16x16xf32>
    %834 = tpu.matmul %832, %833, %cst_327 {dimension_numbers = #tpu.dot_dimension_numbers<[1], [0], [0], [1], [0, 0, 1, 1], [], []>} : vector<16x16xf32>, vector<16x16xf32>, vector<16x16xf32> -> vector<16x16xf32>
    %c432_328 = arith.constant 432 : index
    %c0_329 = arith.constant 0 : index
    %835 = vector.load %arg1[%c432_328, %c0_329] : memref<1304x128xf32, #tpu.memory_space<vmem>>, vector<16x16xf32>
    %836 = vector.extract_strided_slice %831 {offsets = [0, 1], sizes = [16, 16], strides = [1, 1]} : vector<16x20xf32> to vector<16x16xf32>
    %cst_330 = arith.constant dense<0.000000e+00> : vector<16x16xf32>
    %837 = tpu.matmul %835, %836, %cst_330 {dimension_numbers = #tpu.dot_dimension_numbers<[1], [0], [0], [1], [0, 0, 1, 1], [], []>} : vector<16x16xf32>, vector<16x16xf32>, vector<16x16xf32> -> vector<16x16xf32>
    %838 = arith.addf %834, %837 : vector<16x16xf32>
    %c448_331 = arith.constant 448 : index
    %c0_332 = arith.constant 0 : index
    %839 = vector.load %arg1[%c448_331, %c0_332] : memref<1304x128xf32, #tpu.memory_space<vmem>>, vector<16x16xf32>
    %840 = vector.extract_strided_slice %831 {offsets = [0, 2], sizes = [16, 16], strides = [1, 1]} : vector<16x20xf32> to vector<16x16xf32>
    %cst_333 = arith.constant dense<0.000000e+00> : vector<16x16xf32>
    %841 = tpu.matmul %839, %840, %cst_333 {dimension_numbers = #tpu.dot_dimension_numbers<[1], [0], [0], [1], [0, 0, 1, 1], [], []>} : vector<16x16xf32>, vector<16x16xf32>, vector<16x16xf32> -> vector<16x16xf32>
    %842 = arith.addf %838, %841 : vector<16x16xf32>
    %c464_334 = arith.constant 464 : index
    %c0_335 = arith.constant 0 : index
    %843 = vector.load %arg1[%c464_334, %c0_335] : memref<1304x128xf32, #tpu.memory_space<vmem>>, vector<16x16xf32>
    %844 = vector.extract_strided_slice %831 {offsets = [0, 3], sizes = [16, 16], strides = [1, 1]} : vector<16x20xf32> to vector<16x16xf32>
    %cst_336 = arith.constant dense<0.000000e+00> : vector<16x16xf32>
    %845 = tpu.matmul %843, %844, %cst_336 {dimension_numbers = #tpu.dot_dimension_numbers<[1], [0], [0], [1], [0, 0, 1, 1], [], []>} : vector<16x16xf32>, vector<16x16xf32>, vector<16x16xf32> -> vector<16x16xf32>
    %846 = arith.addf %842, %845 : vector<16x16xf32>
    %c480_337 = arith.constant 480 : index
    %c0_338 = arith.constant 0 : index
    %847 = vector.load %arg1[%c480_337, %c0_338] : memref<1304x128xf32, #tpu.memory_space<vmem>>, vector<16x16xf32>
    %848 = vector.extract_strided_slice %831 {offsets = [0, 4], sizes = [16, 16], strides = [1, 1]} : vector<16x20xf32> to vector<16x16xf32>
    %cst_339 = arith.constant dense<0.000000e+00> : vector<16x16xf32>
    %849 = tpu.matmul %847, %848, %cst_339 {dimension_numbers = #tpu.dot_dimension_numbers<[1], [0], [0], [1], [0, 0, 1, 1], [], []>} : vector<16x16xf32>, vector<16x16xf32>, vector<16x16xf32> -> vector<16x16xf32>
    %850 = arith.addf %846, %849 : vector<16x16xf32>
    %c368_340 = arith.constant 368 : index
    %c0_341 = arith.constant 0 : index
    %851 = vector.load %arg1[%c368_340, %c0_341] : memref<1304x128xf32, #tpu.memory_space<vmem>>, vector<16x1xf32>
    %852 = vector.broadcast %851 : vector<16x1xf32> to vector<16x16xf32>
    %853 = arith.addf %850, %852 : vector<16x16xf32>
    %cst_342 = arith.constant dense<0.000000e+00> : vector<16xf32>
    %854 = vector.multi_reduction <add>, %853, %cst_342 [1] : vector<16x16xf32> to vector<16xf32>
    %855 = vector.shape_cast %854 : vector<16xf32> to vector<16x1xf32>
    %cst_343 = arith.constant 1.600000e+01 : f32
    %856 = vector.broadcast %cst_343 : f32 to vector<16x1xf32>
    %857 = arith.divf %855, %856 : vector<16x1xf32>
    %858 = arith.mulf %853, %853 : vector<16x16xf32>
    %cst_344 = arith.constant dense<0.000000e+00> : vector<16xf32>
    %859 = vector.multi_reduction <add>, %858, %cst_344 [1] : vector<16x16xf32> to vector<16xf32>
    %860 = vector.shape_cast %859 : vector<16xf32> to vector<16x1xf32>
    %cst_345 = arith.constant 1.600000e+01 : f32
    %861 = vector.broadcast %cst_345 : f32 to vector<16x1xf32>
    %862 = arith.divf %860, %861 : vector<16x1xf32>
    %c352_346 = arith.constant 352 : index
    %c0_347 = arith.constant 0 : index
    %863 = vector.load %arg1[%c352_346, %c0_347] : memref<1304x128xf32, #tpu.memory_space<vmem>>, vector<16x16xf32>
    %864 = tpu.concatenate %857, %862 in 1 : vector<16x1xf32>, vector<16x1xf32> -> vector<16x2xf32>
    %cst_348 = arith.constant dense<0.000000e+00> : vector<16x2xf32>
    %865 = tpu.matmul %863, %864, %cst_348 {dimension_numbers = #tpu.dot_dimension_numbers<[1], [0], [0], [1], [0, 0, 1, 1], [], []>} : vector<16x16xf32>, vector<16x2xf32>, vector<16x2xf32> -> vector<16x2xf32>
    %866 = vector.extract_strided_slice %865 {offsets = [0, 0], sizes = [16, 1], strides = [1, 1]} : vector<16x2xf32> to vector<16x1xf32>
    %867 = vector.extract_strided_slice %865 {offsets = [0, 1], sizes = [16, 1], strides = [1, 1]} : vector<16x2xf32> to vector<16x1xf32>
    %868 = arith.mulf %866, %866 : vector<16x1xf32>
    %869 = arith.subf %867, %868 : vector<16x1xf32>
    %cst_349 = arith.constant 0.000000e+00 : f32
    %870 = vector.broadcast %cst_349 : f32 to vector<16x1xf32>
    %871 = arith.maximumf %869, %870 : vector<16x1xf32>
    %872 = vector.broadcast %866 : vector<16x1xf32> to vector<16x16xf32>
    %873 = arith.subf %853, %872 : vector<16x16xf32>
    %cst_350 = arith.constant 9.99999974E-6 : f32
    %874 = vector.broadcast %cst_350 : f32 to vector<16x1xf32>
    %875 = arith.addf %871, %874 : vector<16x1xf32>
    %876 = math.rsqrt %875 : vector<16x1xf32>
    %877 = vector.broadcast %876 : vector<16x1xf32> to vector<16x16xf32>
    %878 = arith.mulf %873, %877 : vector<16x16xf32>
    %c400_351 = arith.constant 400 : index
    %c0_352 = arith.constant 0 : index
    %879 = vector.load %arg1[%c400_351, %c0_352] : memref<1304x128xf32, #tpu.memory_space<vmem>>, vector<16x1xf32>
    %880 = vector.broadcast %879 : vector<16x1xf32> to vector<16x16xf32>
    %881 = arith.mulf %878, %880 : vector<16x16xf32>
    %c384_353 = arith.constant 384 : index
    %c0_354 = arith.constant 0 : index
    %882 = vector.load %arg1[%c384_353, %c0_354] : memref<1304x128xf32, #tpu.memory_space<vmem>>, vector<16x1xf32>
    %883 = vector.broadcast %882 : vector<16x1xf32> to vector<16x16xf32>
    %884 = arith.addf %881, %883 : vector<16x16xf32>
    %cst_355 = arith.constant 0.000000e+00 : f32
    %885 = vector.broadcast %cst_355 : f32 to vector<16x16xf32>
    %886 = arith.maximumf %884, %885 : vector<16x16xf32>
    %887 = vector.broadcast %cst_355 : f32 to vector<16x16xf32>
    %888 = arith.subf %884, %887 : vector<16x16xf32>
    %889 = arith.cmpf one, %888, %888 : vector<16x16xf32>
    %890 = vector.broadcast %cst_355 : f32 to vector<16x16xf32>
    %891 = arith.addf %884, %890 : vector<16x16xf32>
    %892 = math.absf %888 : vector<16x16xf32>
    %cst_356 = arith.constant 0.000000e+00 : f32
    %893 = vector.broadcast %cst_356 : f32 to vector<16x16xf32>
    %894 = arith.subf %893, %892 : vector<16x16xf32>
    %895 = math.exp %894 : vector<16x16xf32>
    %896 = math.log1p %895 : vector<16x16xf32>
    %897 = arith.addf %886, %896 : vector<16x16xf32>
    %898 = arith.select %889, %891, %897 : vector<16x16xi1>, vector<16x16xf32>
    %899 = math.tanh %898 : vector<16x16xf32>
    %900 = arith.mulf %884, %899 : vector<16x16xf32>
    %c512_357 = arith.constant 512 : index
    %c0_358 = arith.constant 0 : index
    %901 = vector.load %arg1[%c512_357, %c0_358] : memref<1304x128xf32, #tpu.memory_space<vmem>>, vector<16x8xf32>
    %c496_359 = arith.constant 496 : index
    %c0_360 = arith.constant 0 : index
    %902 = vector.load %arg1[%c496_359, %c0_360] : memref<1304x128xf32, #tpu.memory_space<vmem>>, vector<16x1xf32>
    %cst_361 = arith.constant dense<0.000000e+00> : vector<16x16xf32>
    %903 = tpu.matmul %901, %758, %cst_361 {dimension_numbers = #tpu.dot_dimension_numbers<[1], [0], [0], [1], [0, 0, 1, 1], [], []>} : vector<16x8xf32>, vector<8x16xf32>, vector<16x16xf32> -> vector<16x16xf32>
    %904 = vector.broadcast %902 : vector<16x1xf32> to vector<16x16xf32>
    %905 = arith.addf %903, %904 : vector<16x16xf32>
    %906 = arith.addf %900, %905 : vector<16x16xf32>
    %c32_362 = arith.constant 32 : index
    %c0_363 = arith.constant 0 : index
    %907 = vector.load %arg1[%c32_362, %c0_363] : memref<1304x128xf32, #tpu.memory_space<vmem>>, vector<16x1xf32>
    %c0_364 = arith.constant 0 : index
    %c0_365 = arith.constant 0 : index
    %908 = vector.load %arg1[%c0_364, %c0_365] : memref<1304x128xf32, #tpu.memory_space<vmem>>, vector<16x1xf32>
    %cst_366 = arith.constant dense<0.000000e+00> : vector<16xf32>
    %909 = vector.multi_reduction <add>, %906, %cst_366 [0] : vector<16x16xf32> to vector<16xf32>
    %910 = vector.shape_cast %909 : vector<16xf32> to vector<1x16xf32>
    %cst_367 = arith.constant 1.600000e+01 : f32
    %911 = vector.broadcast %cst_367 : f32 to vector<1x16xf32>
    %912 = arith.divf %910, %911 : vector<1x16xf32>
    %913 = vector.broadcast %912 : vector<1x16xf32> to vector<16x16xf32>
    %914 = arith.subf %906, %913 : vector<16x16xf32>
    %915 = arith.mulf %914, %914 : vector<16x16xf32>
    %cst_368 = arith.constant dense<0.000000e+00> : vector<16xf32>
    %916 = vector.multi_reduction <add>, %915, %cst_368 [0] : vector<16x16xf32> to vector<16xf32>
    %917 = vector.shape_cast %916 : vector<16xf32> to vector<1x16xf32>
    %cst_369 = arith.constant 1.600000e+01 : f32
    %918 = vector.broadcast %cst_369 : f32 to vector<1x16xf32>
    %919 = arith.divf %917, %918 : vector<1x16xf32>
    %920 = vector.broadcast %912 : vector<1x16xf32> to vector<16x16xf32>
    %921 = arith.subf %906, %920 : vector<16x16xf32>
    %cst_370 = arith.constant 9.99999974E-6 : f32
    %922 = vector.broadcast %cst_370 : f32 to vector<1x16xf32>
    %923 = arith.addf %919, %922 : vector<1x16xf32>
    %924 = math.rsqrt %923 : vector<1x16xf32>
    %925 = vector.broadcast %924 : vector<1x16xf32> to vector<16x16xf32>
    %926 = arith.mulf %921, %925 : vector<16x16xf32>
    %927 = vector.broadcast %907 : vector<16x1xf32> to vector<16x16xf32>
    %928 = arith.mulf %926, %927 : vector<16x16xf32>
    %929 = vector.broadcast %908 : vector<16x1xf32> to vector<16x16xf32>
    %930 = arith.addf %928, %929 : vector<16x16xf32>
    %c96_371 = arith.constant 96 : index
    %c0_372 = arith.constant 0 : index
    %931 = vector.load %arg1[%c96_371, %c0_372] : memref<1304x128xf32, #tpu.memory_space<vmem>>, vector<16x64xf32>
    %c112_373 = arith.constant 112 : index
    %c0_374 = arith.constant 0 : index
    %932 = vector.load %arg1[%c112_373, %c0_374] : memref<1304x128xf32, #tpu.memory_space<vmem>>, vector<16x32xf32>
    %cst_375 = arith.constant dense<0.000000e+00> : vector<64x16xf32>
    %933 = tpu.matmul %931, %930, %cst_375 {dimension_numbers = #tpu.dot_dimension_numbers<[0], [0], [1], [1], [0, 1, 1, 1], [], []>} : vector<16x64xf32>, vector<16x16xf32>, vector<64x16xf32> -> vector<64x16xf32>
    %cst_376 = arith.constant dense<0.000000e+00> : vector<32x16xf32>
    %934 = tpu.matmul %932, %930, %cst_376 {dimension_numbers = #tpu.dot_dimension_numbers<[0], [0], [1], [1], [0, 1, 1, 1], [], []>} : vector<16x32xf32>, vector<16x16xf32>, vector<32x16xf32> -> vector<32x16xf32>
    %935 = vector.extract_strided_slice %933 {offsets = [0, 0], sizes = [32, 16], strides = [1, 1]} : vector<64x16xf32> to vector<32x16xf32>
    %cst_377 = arith.constant 0.353553385 : f32
    %936 = vector.broadcast %cst_377 : f32 to vector<32x16xf32>
    %937 = arith.mulf %935, %936 : vector<32x16xf32>
    %938 = vector.extract_strided_slice %933 {offsets = [32, 0], sizes = [32, 16], strides = [1, 1]} : vector<64x16xf32> to vector<32x16xf32>
    %cst_378 = arith.constant dense<0xFF800000> : vector<32xf32>
    %939 = vector.multi_reduction <maximumf>, %938, %cst_378 [1] : vector<32x16xf32> to vector<32xf32>
    %940 = vector.shape_cast %939 : vector<32xf32> to vector<32x1xf32>
    %941 = vector.broadcast %940 : vector<32x1xf32> to vector<32x16xf32>
    %942 = arith.subf %938, %941 : vector<32x16xf32>
    %943 = math.exp %942 : vector<32x16xf32>
    %cst_379 = arith.constant dense<0.000000e+00> : vector<32xf32>
    %944 = vector.multi_reduction <add>, %943, %cst_379 [1] : vector<32x16xf32> to vector<32xf32>
    %945 = vector.shape_cast %944 : vector<32xf32> to vector<32x1xf32>
    %946 = vector.broadcast %945 : vector<32x1xf32> to vector<32x16xf32>
    %947 = arith.divf %943, %946 : vector<32x16xf32>
    %cst_380 = arith.constant dense<0.000000e+00> : vector<32x32xf32>
    %948 = tpu.matmul %947, %934, %cst_380 {dimension_numbers = #tpu.dot_dimension_numbers<[1], [1], [0], [0], [0, 0, 1, 0], [], []>} : vector<32x16xf32>, vector<32x16xf32>, vector<32x32xf32> -> vector<32x32xf32>
    %c48_381 = arith.constant 48 : index
    %c0_382 = arith.constant 0 : index
    %949 = vector.load %arg1[%c48_381, %c0_382] : memref<1304x128xf32, #tpu.memory_space<vmem>>, vector<32x32xf32>
    %950 = arith.mulf %948, %949 : vector<32x32xf32>
    %cst_383 = arith.constant dense<0.000000e+00> : vector<32x16xf32>
    %951 = tpu.matmul %950, %937, %cst_383 {dimension_numbers = #tpu.dot_dimension_numbers<[0], [0], [1], [1], [0, 1, 1, 1], [], []>} : vector<32x32xf32>, vector<32x16xf32>, vector<32x16xf32> -> vector<32x16xf32>
    %c80_384 = arith.constant 80 : index
    %c0_385 = arith.constant 0 : index
    %952 = vector.load %arg1[%c80_384, %c0_385] : memref<1304x128xf32, #tpu.memory_space<vmem>>, vector<16x32xf32>
    %cst_386 = arith.constant dense<0.000000e+00> : vector<16x16xf32>
    %953 = tpu.matmul %952, %951, %cst_386 {dimension_numbers = #tpu.dot_dimension_numbers<[1], [0], [0], [1], [0, 0, 1, 1], [], []>} : vector<16x32xf32>, vector<32x16xf32>, vector<16x16xf32> -> vector<16x16xf32>
    %c16_387 = arith.constant 16 : index
    %c0_388 = arith.constant 0 : index
    %954 = vector.load %arg1[%c16_387, %c0_388] : memref<1304x128xf32, #tpu.memory_space<vmem>>, vector<16x1xf32>
    %955 = vector.broadcast %954 : vector<16x1xf32> to vector<16x16xf32>
    %956 = arith.addf %953, %955 : vector<16x16xf32>
    %957 = arith.addf %956, %906 : vector<16x16xf32>
    %cst_389 = arith.constant 0.000000e+00 : f32
    %958 = vector.broadcast %cst_389 : f32 to vector<16x2xf32>
    %959 = tpu.concatenate %958, %957, %958 in 1 : vector<16x2xf32>, vector<16x16xf32>, vector<16x2xf32> -> vector<16x20xf32>
    %c592_390 = arith.constant 592 : index
    %c0_391 = arith.constant 0 : index
    %960 = vector.load %arg1[%c592_390, %c0_391] : memref<1304x128xf32, #tpu.memory_space<vmem>>, vector<16x16xf32>
    %961 = vector.extract_strided_slice %959 {offsets = [0, 0], sizes = [16, 16], strides = [1, 1]} : vector<16x20xf32> to vector<16x16xf32>
    %cst_392 = arith.constant dense<0.000000e+00> : vector<16x16xf32>
    %962 = tpu.matmul %960, %961, %cst_392 {dimension_numbers = #tpu.dot_dimension_numbers<[1], [0], [0], [1], [0, 0, 1, 1], [], []>} : vector<16x16xf32>, vector<16x16xf32>, vector<16x16xf32> -> vector<16x16xf32>
    %c608_393 = arith.constant 608 : index
    %c0_394 = arith.constant 0 : index
    %963 = vector.load %arg1[%c608_393, %c0_394] : memref<1304x128xf32, #tpu.memory_space<vmem>>, vector<16x16xf32>
    %964 = vector.extract_strided_slice %959 {offsets = [0, 1], sizes = [16, 16], strides = [1, 1]} : vector<16x20xf32> to vector<16x16xf32>
    %cst_395 = arith.constant dense<0.000000e+00> : vector<16x16xf32>
    %965 = tpu.matmul %963, %964, %cst_395 {dimension_numbers = #tpu.dot_dimension_numbers<[1], [0], [0], [1], [0, 0, 1, 1], [], []>} : vector<16x16xf32>, vector<16x16xf32>, vector<16x16xf32> -> vector<16x16xf32>
    %966 = arith.addf %962, %965 : vector<16x16xf32>
    %c624_396 = arith.constant 624 : index
    %c0_397 = arith.constant 0 : index
    %967 = vector.load %arg1[%c624_396, %c0_397] : memref<1304x128xf32, #tpu.memory_space<vmem>>, vector<16x16xf32>
    %968 = vector.extract_strided_slice %959 {offsets = [0, 2], sizes = [16, 16], strides = [1, 1]} : vector<16x20xf32> to vector<16x16xf32>
    %cst_398 = arith.constant dense<0.000000e+00> : vector<16x16xf32>
    %969 = tpu.matmul %967, %968, %cst_398 {dimension_numbers = #tpu.dot_dimension_numbers<[1], [0], [0], [1], [0, 0, 1, 1], [], []>} : vector<16x16xf32>, vector<16x16xf32>, vector<16x16xf32> -> vector<16x16xf32>
    %970 = arith.addf %966, %969 : vector<16x16xf32>
    %c640_399 = arith.constant 640 : index
    %c0_400 = arith.constant 0 : index
    %971 = vector.load %arg1[%c640_399, %c0_400] : memref<1304x128xf32, #tpu.memory_space<vmem>>, vector<16x16xf32>
    %972 = vector.extract_strided_slice %959 {offsets = [0, 3], sizes = [16, 16], strides = [1, 1]} : vector<16x20xf32> to vector<16x16xf32>
    %cst_401 = arith.constant dense<0.000000e+00> : vector<16x16xf32>
    %973 = tpu.matmul %971, %972, %cst_401 {dimension_numbers = #tpu.dot_dimension_numbers<[1], [0], [0], [1], [0, 0, 1, 1], [], []>} : vector<16x16xf32>, vector<16x16xf32>, vector<16x16xf32> -> vector<16x16xf32>
    %974 = arith.addf %970, %973 : vector<16x16xf32>
    %c656_402 = arith.constant 656 : index
    %c0_403 = arith.constant 0 : index
    %975 = vector.load %arg1[%c656_402, %c0_403] : memref<1304x128xf32, #tpu.memory_space<vmem>>, vector<16x16xf32>
    %976 = vector.extract_strided_slice %959 {offsets = [0, 4], sizes = [16, 16], strides = [1, 1]} : vector<16x20xf32> to vector<16x16xf32>
    %cst_404 = arith.constant dense<0.000000e+00> : vector<16x16xf32>
    %977 = tpu.matmul %975, %976, %cst_404 {dimension_numbers = #tpu.dot_dimension_numbers<[1], [0], [0], [1], [0, 0, 1, 1], [], []>} : vector<16x16xf32>, vector<16x16xf32>, vector<16x16xf32> -> vector<16x16xf32>
    %978 = arith.addf %974, %977 : vector<16x16xf32>
    %c544_405 = arith.constant 544 : index
    %c0_406 = arith.constant 0 : index
    %979 = vector.load %arg1[%c544_405, %c0_406] : memref<1304x128xf32, #tpu.memory_space<vmem>>, vector<16x1xf32>
    %980 = vector.broadcast %979 : vector<16x1xf32> to vector<16x16xf32>
    %981 = arith.addf %978, %980 : vector<16x16xf32>
    %cst_407 = arith.constant dense<0.000000e+00> : vector<16xf32>
    %982 = vector.multi_reduction <add>, %981, %cst_407 [1] : vector<16x16xf32> to vector<16xf32>
    %983 = vector.shape_cast %982 : vector<16xf32> to vector<16x1xf32>
    %cst_408 = arith.constant 1.600000e+01 : f32
    %984 = vector.broadcast %cst_408 : f32 to vector<16x1xf32>
    %985 = arith.divf %983, %984 : vector<16x1xf32>
    %986 = arith.mulf %981, %981 : vector<16x16xf32>
    %cst_409 = arith.constant dense<0.000000e+00> : vector<16xf32>
    %987 = vector.multi_reduction <add>, %986, %cst_409 [1] : vector<16x16xf32> to vector<16xf32>
    %988 = vector.shape_cast %987 : vector<16xf32> to vector<16x1xf32>
    %cst_410 = arith.constant 1.600000e+01 : f32
    %989 = vector.broadcast %cst_410 : f32 to vector<16x1xf32>
    %990 = arith.divf %988, %989 : vector<16x1xf32>
    %c528_411 = arith.constant 528 : index
    %c0_412 = arith.constant 0 : index
    %991 = vector.load %arg1[%c528_411, %c0_412] : memref<1304x128xf32, #tpu.memory_space<vmem>>, vector<16x16xf32>
    %992 = tpu.concatenate %985, %990 in 1 : vector<16x1xf32>, vector<16x1xf32> -> vector<16x2xf32>
    %cst_413 = arith.constant dense<0.000000e+00> : vector<16x2xf32>
    %993 = tpu.matmul %991, %992, %cst_413 {dimension_numbers = #tpu.dot_dimension_numbers<[1], [0], [0], [1], [0, 0, 1, 1], [], []>} : vector<16x16xf32>, vector<16x2xf32>, vector<16x2xf32> -> vector<16x2xf32>
    %994 = vector.extract_strided_slice %993 {offsets = [0, 0], sizes = [16, 1], strides = [1, 1]} : vector<16x2xf32> to vector<16x1xf32>
    %995 = vector.extract_strided_slice %993 {offsets = [0, 1], sizes = [16, 1], strides = [1, 1]} : vector<16x2xf32> to vector<16x1xf32>
    %996 = arith.mulf %994, %994 : vector<16x1xf32>
    %997 = arith.subf %995, %996 : vector<16x1xf32>
    %cst_414 = arith.constant 0.000000e+00 : f32
    %998 = vector.broadcast %cst_414 : f32 to vector<16x1xf32>
    %999 = arith.maximumf %997, %998 : vector<16x1xf32>
    %1000 = vector.broadcast %994 : vector<16x1xf32> to vector<16x16xf32>
    %1001 = arith.subf %981, %1000 : vector<16x16xf32>
    %cst_415 = arith.constant 9.99999974E-6 : f32
    %1002 = vector.broadcast %cst_415 : f32 to vector<16x1xf32>
    %1003 = arith.addf %999, %1002 : vector<16x1xf32>
    %1004 = math.rsqrt %1003 : vector<16x1xf32>
    %1005 = vector.broadcast %1004 : vector<16x1xf32> to vector<16x16xf32>
    %1006 = arith.mulf %1001, %1005 : vector<16x16xf32>
    %c576_416 = arith.constant 576 : index
    %c0_417 = arith.constant 0 : index
    %1007 = vector.load %arg1[%c576_416, %c0_417] : memref<1304x128xf32, #tpu.memory_space<vmem>>, vector<16x1xf32>
    %1008 = vector.broadcast %1007 : vector<16x1xf32> to vector<16x16xf32>
    %1009 = arith.mulf %1006, %1008 : vector<16x16xf32>
    %c560_418 = arith.constant 560 : index
    %c0_419 = arith.constant 0 : index
    %1010 = vector.load %arg1[%c560_418, %c0_419] : memref<1304x128xf32, #tpu.memory_space<vmem>>, vector<16x1xf32>
    %1011 = vector.broadcast %1010 : vector<16x1xf32> to vector<16x16xf32>
    %1012 = arith.addf %1009, %1011 : vector<16x16xf32>
    %cst_420 = arith.constant 0.000000e+00 : f32
    %1013 = vector.broadcast %cst_420 : f32 to vector<16x16xf32>
    %1014 = arith.maximumf %1012, %1013 : vector<16x16xf32>
    %1015 = vector.broadcast %cst_420 : f32 to vector<16x16xf32>
    %1016 = arith.subf %1012, %1015 : vector<16x16xf32>
    %1017 = arith.cmpf one, %1016, %1016 : vector<16x16xf32>
    %1018 = vector.broadcast %cst_420 : f32 to vector<16x16xf32>
    %1019 = arith.addf %1012, %1018 : vector<16x16xf32>
    %1020 = math.absf %1016 : vector<16x16xf32>
    %cst_421 = arith.constant 0.000000e+00 : f32
    %1021 = vector.broadcast %cst_421 : f32 to vector<16x16xf32>
    %1022 = arith.subf %1021, %1020 : vector<16x16xf32>
    %1023 = math.exp %1022 : vector<16x16xf32>
    %1024 = math.log1p %1023 : vector<16x16xf32>
    %1025 = arith.addf %1014, %1024 : vector<16x16xf32>
    %1026 = arith.select %1017, %1019, %1025 : vector<16x16xi1>, vector<16x16xf32>
    %1027 = math.tanh %1026 : vector<16x16xf32>
    %1028 = arith.mulf %1012, %1027 : vector<16x16xf32>
    %cst_422 = arith.constant 0.000000e+00 : f32
    %1029 = vector.broadcast %cst_422 : f32 to vector<16x2xf32>
    %1030 = tpu.concatenate %1029, %1028, %1029 in 1 : vector<16x2xf32>, vector<16x16xf32>, vector<16x2xf32> -> vector<16x20xf32>
    %c736_423 = arith.constant 736 : index
    %c0_424 = arith.constant 0 : index
    %1031 = vector.load %arg1[%c736_423, %c0_424] : memref<1304x128xf32, #tpu.memory_space<vmem>>, vector<16x16xf32>
    %1032 = vector.extract_strided_slice %1030 {offsets = [0, 0], sizes = [16, 16], strides = [1, 1]} : vector<16x20xf32> to vector<16x16xf32>
    %cst_425 = arith.constant dense<0.000000e+00> : vector<16x16xf32>
    %1033 = tpu.matmul %1031, %1032, %cst_425 {dimension_numbers = #tpu.dot_dimension_numbers<[1], [0], [0], [1], [0, 0, 1, 1], [], []>} : vector<16x16xf32>, vector<16x16xf32>, vector<16x16xf32> -> vector<16x16xf32>
    %c752_426 = arith.constant 752 : index
    %c0_427 = arith.constant 0 : index
    %1034 = vector.load %arg1[%c752_426, %c0_427] : memref<1304x128xf32, #tpu.memory_space<vmem>>, vector<16x16xf32>
    %1035 = vector.extract_strided_slice %1030 {offsets = [0, 1], sizes = [16, 16], strides = [1, 1]} : vector<16x20xf32> to vector<16x16xf32>
    %cst_428 = arith.constant dense<0.000000e+00> : vector<16x16xf32>
    %1036 = tpu.matmul %1034, %1035, %cst_428 {dimension_numbers = #tpu.dot_dimension_numbers<[1], [0], [0], [1], [0, 0, 1, 1], [], []>} : vector<16x16xf32>, vector<16x16xf32>, vector<16x16xf32> -> vector<16x16xf32>
    %1037 = arith.addf %1033, %1036 : vector<16x16xf32>
    %c768_429 = arith.constant 768 : index
    %c0_430 = arith.constant 0 : index
    %1038 = vector.load %arg1[%c768_429, %c0_430] : memref<1304x128xf32, #tpu.memory_space<vmem>>, vector<16x16xf32>
    %1039 = vector.extract_strided_slice %1030 {offsets = [0, 2], sizes = [16, 16], strides = [1, 1]} : vector<16x20xf32> to vector<16x16xf32>
    %cst_431 = arith.constant dense<0.000000e+00> : vector<16x16xf32>
    %1040 = tpu.matmul %1038, %1039, %cst_431 {dimension_numbers = #tpu.dot_dimension_numbers<[1], [0], [0], [1], [0, 0, 1, 1], [], []>} : vector<16x16xf32>, vector<16x16xf32>, vector<16x16xf32> -> vector<16x16xf32>
    %1041 = arith.addf %1037, %1040 : vector<16x16xf32>
    %c784_432 = arith.constant 784 : index
    %c0_433 = arith.constant 0 : index
    %1042 = vector.load %arg1[%c784_432, %c0_433] : memref<1304x128xf32, #tpu.memory_space<vmem>>, vector<16x16xf32>
    %1043 = vector.extract_strided_slice %1030 {offsets = [0, 3], sizes = [16, 16], strides = [1, 1]} : vector<16x20xf32> to vector<16x16xf32>
    %cst_434 = arith.constant dense<0.000000e+00> : vector<16x16xf32>
    %1044 = tpu.matmul %1042, %1043, %cst_434 {dimension_numbers = #tpu.dot_dimension_numbers<[1], [0], [0], [1], [0, 0, 1, 1], [], []>} : vector<16x16xf32>, vector<16x16xf32>, vector<16x16xf32> -> vector<16x16xf32>
    %1045 = arith.addf %1041, %1044 : vector<16x16xf32>
    %c800_435 = arith.constant 800 : index
    %c0_436 = arith.constant 0 : index
    %1046 = vector.load %arg1[%c800_435, %c0_436] : memref<1304x128xf32, #tpu.memory_space<vmem>>, vector<16x16xf32>
    %1047 = vector.extract_strided_slice %1030 {offsets = [0, 4], sizes = [16, 16], strides = [1, 1]} : vector<16x20xf32> to vector<16x16xf32>
    %cst_437 = arith.constant dense<0.000000e+00> : vector<16x16xf32>
    %1048 = tpu.matmul %1046, %1047, %cst_437 {dimension_numbers = #tpu.dot_dimension_numbers<[1], [0], [0], [1], [0, 0, 1, 1], [], []>} : vector<16x16xf32>, vector<16x16xf32>, vector<16x16xf32> -> vector<16x16xf32>
    %1049 = arith.addf %1045, %1048 : vector<16x16xf32>
    %c688_438 = arith.constant 688 : index
    %c0_439 = arith.constant 0 : index
    %1050 = vector.load %arg1[%c688_438, %c0_439] : memref<1304x128xf32, #tpu.memory_space<vmem>>, vector<16x1xf32>
    %1051 = vector.broadcast %1050 : vector<16x1xf32> to vector<16x16xf32>
    %1052 = arith.addf %1049, %1051 : vector<16x16xf32>
    %cst_440 = arith.constant dense<0.000000e+00> : vector<16xf32>
    %1053 = vector.multi_reduction <add>, %1052, %cst_440 [1] : vector<16x16xf32> to vector<16xf32>
    %1054 = vector.shape_cast %1053 : vector<16xf32> to vector<16x1xf32>
    %cst_441 = arith.constant 1.600000e+01 : f32
    %1055 = vector.broadcast %cst_441 : f32 to vector<16x1xf32>
    %1056 = arith.divf %1054, %1055 : vector<16x1xf32>
    %1057 = arith.mulf %1052, %1052 : vector<16x16xf32>
    %cst_442 = arith.constant dense<0.000000e+00> : vector<16xf32>
    %1058 = vector.multi_reduction <add>, %1057, %cst_442 [1] : vector<16x16xf32> to vector<16xf32>
    %1059 = vector.shape_cast %1058 : vector<16xf32> to vector<16x1xf32>
    %cst_443 = arith.constant 1.600000e+01 : f32
    %1060 = vector.broadcast %cst_443 : f32 to vector<16x1xf32>
    %1061 = arith.divf %1059, %1060 : vector<16x1xf32>
    %c672_444 = arith.constant 672 : index
    %c0_445 = arith.constant 0 : index
    %1062 = vector.load %arg1[%c672_444, %c0_445] : memref<1304x128xf32, #tpu.memory_space<vmem>>, vector<16x16xf32>
    %1063 = tpu.concatenate %1056, %1061 in 1 : vector<16x1xf32>, vector<16x1xf32> -> vector<16x2xf32>
    %cst_446 = arith.constant dense<0.000000e+00> : vector<16x2xf32>
    %1064 = tpu.matmul %1062, %1063, %cst_446 {dimension_numbers = #tpu.dot_dimension_numbers<[1], [0], [0], [1], [0, 0, 1, 1], [], []>} : vector<16x16xf32>, vector<16x2xf32>, vector<16x2xf32> -> vector<16x2xf32>
    %1065 = vector.extract_strided_slice %1064 {offsets = [0, 0], sizes = [16, 1], strides = [1, 1]} : vector<16x2xf32> to vector<16x1xf32>
    %1066 = vector.extract_strided_slice %1064 {offsets = [0, 1], sizes = [16, 1], strides = [1, 1]} : vector<16x2xf32> to vector<16x1xf32>
    %1067 = arith.mulf %1065, %1065 : vector<16x1xf32>
    %1068 = arith.subf %1066, %1067 : vector<16x1xf32>
    %cst_447 = arith.constant 0.000000e+00 : f32
    %1069 = vector.broadcast %cst_447 : f32 to vector<16x1xf32>
    %1070 = arith.maximumf %1068, %1069 : vector<16x1xf32>
    %1071 = vector.broadcast %1065 : vector<16x1xf32> to vector<16x16xf32>
    %1072 = arith.subf %1052, %1071 : vector<16x16xf32>
    %cst_448 = arith.constant 9.99999974E-6 : f32
    %1073 = vector.broadcast %cst_448 : f32 to vector<16x1xf32>
    %1074 = arith.addf %1070, %1073 : vector<16x1xf32>
    %1075 = math.rsqrt %1074 : vector<16x1xf32>
    %1076 = vector.broadcast %1075 : vector<16x1xf32> to vector<16x16xf32>
    %1077 = arith.mulf %1072, %1076 : vector<16x16xf32>
    %c720_449 = arith.constant 720 : index
    %c0_450 = arith.constant 0 : index
    %1078 = vector.load %arg1[%c720_449, %c0_450] : memref<1304x128xf32, #tpu.memory_space<vmem>>, vector<16x1xf32>
    %1079 = vector.broadcast %1078 : vector<16x1xf32> to vector<16x16xf32>
    %1080 = arith.mulf %1077, %1079 : vector<16x16xf32>
    %c704_451 = arith.constant 704 : index
    %c0_452 = arith.constant 0 : index
    %1081 = vector.load %arg1[%c704_451, %c0_452] : memref<1304x128xf32, #tpu.memory_space<vmem>>, vector<16x1xf32>
    %1082 = vector.broadcast %1081 : vector<16x1xf32> to vector<16x16xf32>
    %1083 = arith.addf %1080, %1082 : vector<16x16xf32>
    %cst_453 = arith.constant 0.000000e+00 : f32
    %1084 = vector.broadcast %cst_453 : f32 to vector<16x16xf32>
    %1085 = arith.maximumf %1083, %1084 : vector<16x16xf32>
    %1086 = vector.broadcast %cst_453 : f32 to vector<16x16xf32>
    %1087 = arith.subf %1083, %1086 : vector<16x16xf32>
    %1088 = arith.cmpf one, %1087, %1087 : vector<16x16xf32>
    %1089 = vector.broadcast %cst_453 : f32 to vector<16x16xf32>
    %1090 = arith.addf %1083, %1089 : vector<16x16xf32>
    %1091 = math.absf %1087 : vector<16x16xf32>
    %cst_454 = arith.constant 0.000000e+00 : f32
    %1092 = vector.broadcast %cst_454 : f32 to vector<16x16xf32>
    %1093 = arith.subf %1092, %1091 : vector<16x16xf32>
    %1094 = math.exp %1093 : vector<16x16xf32>
    %1095 = math.log1p %1094 : vector<16x16xf32>
    %1096 = arith.addf %1085, %1095 : vector<16x16xf32>
    %1097 = arith.select %1088, %1090, %1096 : vector<16x16xi1>, vector<16x16xf32>
    %1098 = math.tanh %1097 : vector<16x16xf32>
    %1099 = arith.mulf %1083, %1098 : vector<16x16xf32>
    %1100 = arith.addf %1099, %957 : vector<16x16xf32>
    %cst_455 = arith.constant 0.000000e+00 : f32
    %1101 = vector.broadcast %cst_455 : f32 to vector<16x1xf32>
    %1102 = tpu.concatenate %1101, %1100, %1101 in 1 : vector<16x1xf32>, vector<16x16xf32>, vector<16x1xf32> -> vector<16x18xf32>
    %c160_456 = arith.constant 160 : index
    %c0_457 = arith.constant 0 : index
    %1103 = vector.load %arg1[%c160_456, %c0_457] : memref<1304x128xf32, #tpu.memory_space<vmem>>, vector<16x16xf32>
    %1104 = vector.extract_strided_slice %1102 {offsets = [0, 0], sizes = [16, 16], strides = [1, 1]} : vector<16x18xf32> to vector<16x16xf32>
    %cst_458 = arith.constant dense<0.000000e+00> : vector<16x16xf32>
    %1105 = tpu.matmul %1103, %1104, %cst_458 {dimension_numbers = #tpu.dot_dimension_numbers<[1], [0], [0], [1], [0, 0, 1, 1], [], []>} : vector<16x16xf32>, vector<16x16xf32>, vector<16x16xf32> -> vector<16x16xf32>
    %c176_459 = arith.constant 176 : index
    %c0_460 = arith.constant 0 : index
    %1106 = vector.load %arg1[%c176_459, %c0_460] : memref<1304x128xf32, #tpu.memory_space<vmem>>, vector<16x16xf32>
    %1107 = vector.extract_strided_slice %1102 {offsets = [0, 1], sizes = [16, 16], strides = [1, 1]} : vector<16x18xf32> to vector<16x16xf32>
    %cst_461 = arith.constant dense<0.000000e+00> : vector<16x16xf32>
    %1108 = tpu.matmul %1106, %1107, %cst_461 {dimension_numbers = #tpu.dot_dimension_numbers<[1], [0], [0], [1], [0, 0, 1, 1], [], []>} : vector<16x16xf32>, vector<16x16xf32>, vector<16x16xf32> -> vector<16x16xf32>
    %1109 = arith.addf %1105, %1108 : vector<16x16xf32>
    %c192_462 = arith.constant 192 : index
    %c0_463 = arith.constant 0 : index
    %1110 = vector.load %arg1[%c192_462, %c0_463] : memref<1304x128xf32, #tpu.memory_space<vmem>>, vector<16x16xf32>
    %1111 = vector.extract_strided_slice %1102 {offsets = [0, 2], sizes = [16, 16], strides = [1, 1]} : vector<16x18xf32> to vector<16x16xf32>
    %cst_464 = arith.constant dense<0.000000e+00> : vector<16x16xf32>
    %1112 = tpu.matmul %1110, %1111, %cst_464 {dimension_numbers = #tpu.dot_dimension_numbers<[1], [0], [0], [1], [0, 0, 1, 1], [], []>} : vector<16x16xf32>, vector<16x16xf32>, vector<16x16xf32> -> vector<16x16xf32>
    %1113 = arith.addf %1109, %1112 : vector<16x16xf32>
    %c128_465 = arith.constant 128 : index
    %c0_466 = arith.constant 0 : index
    %1114 = vector.load %arg1[%c128_465, %c0_466] : memref<1304x128xf32, #tpu.memory_space<vmem>>, vector<16x1xf32>
    %1115 = vector.broadcast %1114 : vector<16x1xf32> to vector<16x16xf32>
    %1116 = arith.addf %1113, %1115 : vector<16x16xf32>
    %c144_467 = arith.constant 144 : index
    %c0_468 = arith.constant 0 : index
    %1117 = vector.load %arg1[%c144_467, %c0_468] : memref<1304x128xf32, #tpu.memory_space<vmem>>, vector<16x8xf32>
    %cst_469 = arith.constant dense<0.000000e+00> : vector<16x8xf32>
    %1118 = tpu.matmul %1116, %1117, %cst_469 {dimension_numbers = #tpu.dot_dimension_numbers<[1], [0], [0], [1], [0, 0, 1, 1], [], []>} : vector<16x16xf32>, vector<16x8xf32>, vector<16x8xf32> -> vector<16x8xf32>
    %cst_470 = arith.constant 0.000000e+00 : f32
    %1119 = vector.broadcast %cst_470 : f32 to vector<16x2xf32>
    %1120 = tpu.concatenate %1119, %1118, %1119 in 1 : vector<16x2xf32>, vector<16x8xf32>, vector<16x2xf32> -> vector<16x12xf32>
    %c880_471 = arith.constant 880 : index
    %c0_472 = arith.constant 0 : index
    %1121 = vector.load %arg1[%c880_471, %c0_472] : memref<1304x128xf32, #tpu.memory_space<vmem>>, vector<16x16xf32>
    %1122 = vector.extract_strided_slice %1120 {offsets = [0, 0], sizes = [16, 8], strides = [1, 1]} : vector<16x12xf32> to vector<16x8xf32>
    %cst_473 = arith.constant dense<0.000000e+00> : vector<16x8xf32>
    %1123 = tpu.matmul %1121, %1122, %cst_473 {dimension_numbers = #tpu.dot_dimension_numbers<[1], [0], [0], [1], [0, 0, 1, 1], [], []>} : vector<16x16xf32>, vector<16x8xf32>, vector<16x8xf32> -> vector<16x8xf32>
    %c896_474 = arith.constant 896 : index
    %c0_475 = arith.constant 0 : index
    %1124 = vector.load %arg1[%c896_474, %c0_475] : memref<1304x128xf32, #tpu.memory_space<vmem>>, vector<16x16xf32>
    %1125 = vector.extract_strided_slice %1120 {offsets = [0, 1], sizes = [16, 8], strides = [1, 1]} : vector<16x12xf32> to vector<16x8xf32>
    %cst_476 = arith.constant dense<0.000000e+00> : vector<16x8xf32>
    %1126 = tpu.matmul %1124, %1125, %cst_476 {dimension_numbers = #tpu.dot_dimension_numbers<[1], [0], [0], [1], [0, 0, 1, 1], [], []>} : vector<16x16xf32>, vector<16x8xf32>, vector<16x8xf32> -> vector<16x8xf32>
    %1127 = arith.addf %1123, %1126 : vector<16x8xf32>
    %c912_477 = arith.constant 912 : index
    %c0_478 = arith.constant 0 : index
    %1128 = vector.load %arg1[%c912_477, %c0_478] : memref<1304x128xf32, #tpu.memory_space<vmem>>, vector<16x16xf32>
    %1129 = vector.extract_strided_slice %1120 {offsets = [0, 2], sizes = [16, 8], strides = [1, 1]} : vector<16x12xf32> to vector<16x8xf32>
    %cst_479 = arith.constant dense<0.000000e+00> : vector<16x8xf32>
    %1130 = tpu.matmul %1128, %1129, %cst_479 {dimension_numbers = #tpu.dot_dimension_numbers<[1], [0], [0], [1], [0, 0, 1, 1], [], []>} : vector<16x16xf32>, vector<16x8xf32>, vector<16x8xf32> -> vector<16x8xf32>
    %1131 = arith.addf %1127, %1130 : vector<16x8xf32>
    %c928_480 = arith.constant 928 : index
    %c0_481 = arith.constant 0 : index
    %1132 = vector.load %arg1[%c928_480, %c0_481] : memref<1304x128xf32, #tpu.memory_space<vmem>>, vector<16x16xf32>
    %1133 = vector.extract_strided_slice %1120 {offsets = [0, 3], sizes = [16, 8], strides = [1, 1]} : vector<16x12xf32> to vector<16x8xf32>
    %cst_482 = arith.constant dense<0.000000e+00> : vector<16x8xf32>
    %1134 = tpu.matmul %1132, %1133, %cst_482 {dimension_numbers = #tpu.dot_dimension_numbers<[1], [0], [0], [1], [0, 0, 1, 1], [], []>} : vector<16x16xf32>, vector<16x8xf32>, vector<16x8xf32> -> vector<16x8xf32>
    %1135 = arith.addf %1131, %1134 : vector<16x8xf32>
    %c944_483 = arith.constant 944 : index
    %c0_484 = arith.constant 0 : index
    %1136 = vector.load %arg1[%c944_483, %c0_484] : memref<1304x128xf32, #tpu.memory_space<vmem>>, vector<16x16xf32>
    %1137 = vector.extract_strided_slice %1120 {offsets = [0, 4], sizes = [16, 8], strides = [1, 1]} : vector<16x12xf32> to vector<16x8xf32>
    %cst_485 = arith.constant dense<0.000000e+00> : vector<16x8xf32>
    %1138 = tpu.matmul %1136, %1137, %cst_485 {dimension_numbers = #tpu.dot_dimension_numbers<[1], [0], [0], [1], [0, 0, 1, 1], [], []>} : vector<16x16xf32>, vector<16x8xf32>, vector<16x8xf32> -> vector<16x8xf32>
    %1139 = arith.addf %1135, %1138 : vector<16x8xf32>
    %c832_486 = arith.constant 832 : index
    %c0_487 = arith.constant 0 : index
    %1140 = vector.load %arg1[%c832_486, %c0_487] : memref<1304x128xf32, #tpu.memory_space<vmem>>, vector<16x1xf32>
    %1141 = vector.broadcast %1140 : vector<16x1xf32> to vector<16x8xf32>
    %1142 = arith.addf %1139, %1141 : vector<16x8xf32>
    %cst_488 = arith.constant dense<0.000000e+00> : vector<16xf32>
    %1143 = vector.multi_reduction <add>, %1142, %cst_488 [1] : vector<16x8xf32> to vector<16xf32>
    %1144 = vector.shape_cast %1143 : vector<16xf32> to vector<16x1xf32>
    %cst_489 = arith.constant 8.000000e+00 : f32
    %1145 = vector.broadcast %cst_489 : f32 to vector<16x1xf32>
    %1146 = arith.divf %1144, %1145 : vector<16x1xf32>
    %1147 = arith.mulf %1142, %1142 : vector<16x8xf32>
    %cst_490 = arith.constant dense<0.000000e+00> : vector<16xf32>
    %1148 = vector.multi_reduction <add>, %1147, %cst_490 [1] : vector<16x8xf32> to vector<16xf32>
    %1149 = vector.shape_cast %1148 : vector<16xf32> to vector<16x1xf32>
    %cst_491 = arith.constant 8.000000e+00 : f32
    %1150 = vector.broadcast %cst_491 : f32 to vector<16x1xf32>
    %1151 = arith.divf %1149, %1150 : vector<16x1xf32>
    %c816_492 = arith.constant 816 : index
    %c0_493 = arith.constant 0 : index
    %1152 = vector.load %arg1[%c816_492, %c0_493] : memref<1304x128xf32, #tpu.memory_space<vmem>>, vector<16x16xf32>
    %1153 = tpu.concatenate %1146, %1151 in 1 : vector<16x1xf32>, vector<16x1xf32> -> vector<16x2xf32>
    %cst_494 = arith.constant dense<0.000000e+00> : vector<16x2xf32>
    %1154 = tpu.matmul %1152, %1153, %cst_494 {dimension_numbers = #tpu.dot_dimension_numbers<[1], [0], [0], [1], [0, 0, 1, 1], [], []>} : vector<16x16xf32>, vector<16x2xf32>, vector<16x2xf32> -> vector<16x2xf32>
    %1155 = vector.extract_strided_slice %1154 {offsets = [0, 0], sizes = [16, 1], strides = [1, 1]} : vector<16x2xf32> to vector<16x1xf32>
    %1156 = vector.extract_strided_slice %1154 {offsets = [0, 1], sizes = [16, 1], strides = [1, 1]} : vector<16x2xf32> to vector<16x1xf32>
    %1157 = arith.mulf %1155, %1155 : vector<16x1xf32>
    %1158 = arith.subf %1156, %1157 : vector<16x1xf32>
    %cst_495 = arith.constant 0.000000e+00 : f32
    %1159 = vector.broadcast %cst_495 : f32 to vector<16x1xf32>
    %1160 = arith.maximumf %1158, %1159 : vector<16x1xf32>
    %1161 = vector.broadcast %1155 : vector<16x1xf32> to vector<16x8xf32>
    %1162 = arith.subf %1142, %1161 : vector<16x8xf32>
    %cst_496 = arith.constant 9.99999974E-6 : f32
    %1163 = vector.broadcast %cst_496 : f32 to vector<16x1xf32>
    %1164 = arith.addf %1160, %1163 : vector<16x1xf32>
    %1165 = math.rsqrt %1164 : vector<16x1xf32>
    %1166 = vector.broadcast %1165 : vector<16x1xf32> to vector<16x8xf32>
    %1167 = arith.mulf %1162, %1166 : vector<16x8xf32>
    %c864_497 = arith.constant 864 : index
    %c0_498 = arith.constant 0 : index
    %1168 = vector.load %arg1[%c864_497, %c0_498] : memref<1304x128xf32, #tpu.memory_space<vmem>>, vector<16x1xf32>
    %1169 = vector.broadcast %1168 : vector<16x1xf32> to vector<16x8xf32>
    %1170 = arith.mulf %1167, %1169 : vector<16x8xf32>
    %c848_499 = arith.constant 848 : index
    %c0_500 = arith.constant 0 : index
    %1171 = vector.load %arg1[%c848_499, %c0_500] : memref<1304x128xf32, #tpu.memory_space<vmem>>, vector<16x1xf32>
    %1172 = vector.broadcast %1171 : vector<16x1xf32> to vector<16x8xf32>
    %1173 = arith.addf %1170, %1172 : vector<16x8xf32>
    %cst_501 = arith.constant 0.000000e+00 : f32
    %1174 = vector.broadcast %cst_501 : f32 to vector<16x8xf32>
    %1175 = arith.maximumf %1173, %1174 : vector<16x8xf32>
    %1176 = vector.broadcast %cst_501 : f32 to vector<16x8xf32>
    %1177 = arith.subf %1173, %1176 : vector<16x8xf32>
    %1178 = arith.cmpf one, %1177, %1177 : vector<16x8xf32>
    %1179 = vector.broadcast %cst_501 : f32 to vector<16x8xf32>
    %1180 = arith.addf %1173, %1179 : vector<16x8xf32>
    %1181 = math.absf %1177 : vector<16x8xf32>
    %cst_502 = arith.constant 0.000000e+00 : f32
    %1182 = vector.broadcast %cst_502 : f32 to vector<16x8xf32>
    %1183 = arith.subf %1182, %1181 : vector<16x8xf32>
    %1184 = math.exp %1183 : vector<16x8xf32>
    %1185 = math.log1p %1184 : vector<16x8xf32>
    %1186 = arith.addf %1175, %1185 : vector<16x8xf32>
    %1187 = arith.select %1178, %1180, %1186 : vector<16x8xi1>, vector<16x8xf32>
    %1188 = math.tanh %1187 : vector<16x8xf32>
    %1189 = arith.mulf %1173, %1188 : vector<16x8xf32>
    %cst_503 = arith.constant 0.000000e+00 : f32
    %1190 = vector.broadcast %cst_503 : f32 to vector<16x2xf32>
    %1191 = tpu.concatenate %1190, %1189, %1190 in 1 : vector<16x2xf32>, vector<16x8xf32>, vector<16x2xf32> -> vector<16x12xf32>
    %c1024_504 = arith.constant 1024 : index
    %c0_505 = arith.constant 0 : index
    %1192 = vector.load %arg1[%c1024_504, %c0_505] : memref<1304x128xf32, #tpu.memory_space<vmem>>, vector<16x16xf32>
    %1193 = vector.extract_strided_slice %1191 {offsets = [0, 0], sizes = [16, 8], strides = [1, 1]} : vector<16x12xf32> to vector<16x8xf32>
    %cst_506 = arith.constant dense<0.000000e+00> : vector<16x8xf32>
    %1194 = tpu.matmul %1192, %1193, %cst_506 {dimension_numbers = #tpu.dot_dimension_numbers<[1], [0], [0], [1], [0, 0, 1, 1], [], []>} : vector<16x16xf32>, vector<16x8xf32>, vector<16x8xf32> -> vector<16x8xf32>
    %c1040_507 = arith.constant 1040 : index
    %c0_508 = arith.constant 0 : index
    %1195 = vector.load %arg1[%c1040_507, %c0_508] : memref<1304x128xf32, #tpu.memory_space<vmem>>, vector<16x16xf32>
    %1196 = vector.extract_strided_slice %1191 {offsets = [0, 1], sizes = [16, 8], strides = [1, 1]} : vector<16x12xf32> to vector<16x8xf32>
    %cst_509 = arith.constant dense<0.000000e+00> : vector<16x8xf32>
    %1197 = tpu.matmul %1195, %1196, %cst_509 {dimension_numbers = #tpu.dot_dimension_numbers<[1], [0], [0], [1], [0, 0, 1, 1], [], []>} : vector<16x16xf32>, vector<16x8xf32>, vector<16x8xf32> -> vector<16x8xf32>
    %1198 = arith.addf %1194, %1197 : vector<16x8xf32>
    %c1056_510 = arith.constant 1056 : index
    %c0_511 = arith.constant 0 : index
    %1199 = vector.load %arg1[%c1056_510, %c0_511] : memref<1304x128xf32, #tpu.memory_space<vmem>>, vector<16x16xf32>
    %1200 = vector.extract_strided_slice %1191 {offsets = [0, 2], sizes = [16, 8], strides = [1, 1]} : vector<16x12xf32> to vector<16x8xf32>
    %cst_512 = arith.constant dense<0.000000e+00> : vector<16x8xf32>
    %1201 = tpu.matmul %1199, %1200, %cst_512 {dimension_numbers = #tpu.dot_dimension_numbers<[1], [0], [0], [1], [0, 0, 1, 1], [], []>} : vector<16x16xf32>, vector<16x8xf32>, vector<16x8xf32> -> vector<16x8xf32>
    %1202 = arith.addf %1198, %1201 : vector<16x8xf32>
    %c1072_513 = arith.constant 1072 : index
    %c0_514 = arith.constant 0 : index
    %1203 = vector.load %arg1[%c1072_513, %c0_514] : memref<1304x128xf32, #tpu.memory_space<vmem>>, vector<16x16xf32>
    %1204 = vector.extract_strided_slice %1191 {offsets = [0, 3], sizes = [16, 8], strides = [1, 1]} : vector<16x12xf32> to vector<16x8xf32>
    %cst_515 = arith.constant dense<0.000000e+00> : vector<16x8xf32>
    %1205 = tpu.matmul %1203, %1204, %cst_515 {dimension_numbers = #tpu.dot_dimension_numbers<[1], [0], [0], [1], [0, 0, 1, 1], [], []>} : vector<16x16xf32>, vector<16x8xf32>, vector<16x8xf32> -> vector<16x8xf32>
    %1206 = arith.addf %1202, %1205 : vector<16x8xf32>
    %c1088_516 = arith.constant 1088 : index
    %c0_517 = arith.constant 0 : index
    %1207 = vector.load %arg1[%c1088_516, %c0_517] : memref<1304x128xf32, #tpu.memory_space<vmem>>, vector<16x16xf32>
    %1208 = vector.extract_strided_slice %1191 {offsets = [0, 4], sizes = [16, 8], strides = [1, 1]} : vector<16x12xf32> to vector<16x8xf32>
    %cst_518 = arith.constant dense<0.000000e+00> : vector<16x8xf32>
    %1209 = tpu.matmul %1207, %1208, %cst_518 {dimension_numbers = #tpu.dot_dimension_numbers<[1], [0], [0], [1], [0, 0, 1, 1], [], []>} : vector<16x16xf32>, vector<16x8xf32>, vector<16x8xf32> -> vector<16x8xf32>
    %1210 = arith.addf %1206, %1209 : vector<16x8xf32>
    %c976_519 = arith.constant 976 : index
    %c0_520 = arith.constant 0 : index
    %1211 = vector.load %arg1[%c976_519, %c0_520] : memref<1304x128xf32, #tpu.memory_space<vmem>>, vector<16x1xf32>
    %1212 = vector.broadcast %1211 : vector<16x1xf32> to vector<16x8xf32>
    %1213 = arith.addf %1210, %1212 : vector<16x8xf32>
    %cst_521 = arith.constant dense<0.000000e+00> : vector<16xf32>
    %1214 = vector.multi_reduction <add>, %1213, %cst_521 [1] : vector<16x8xf32> to vector<16xf32>
    %1215 = vector.shape_cast %1214 : vector<16xf32> to vector<16x1xf32>
    %cst_522 = arith.constant 8.000000e+00 : f32
    %1216 = vector.broadcast %cst_522 : f32 to vector<16x1xf32>
    %1217 = arith.divf %1215, %1216 : vector<16x1xf32>
    %1218 = arith.mulf %1213, %1213 : vector<16x8xf32>
    %cst_523 = arith.constant dense<0.000000e+00> : vector<16xf32>
    %1219 = vector.multi_reduction <add>, %1218, %cst_523 [1] : vector<16x8xf32> to vector<16xf32>
    %1220 = vector.shape_cast %1219 : vector<16xf32> to vector<16x1xf32>
    %cst_524 = arith.constant 8.000000e+00 : f32
    %1221 = vector.broadcast %cst_524 : f32 to vector<16x1xf32>
    %1222 = arith.divf %1220, %1221 : vector<16x1xf32>
    %c960_525 = arith.constant 960 : index
    %c0_526 = arith.constant 0 : index
    %1223 = vector.load %arg1[%c960_525, %c0_526] : memref<1304x128xf32, #tpu.memory_space<vmem>>, vector<16x16xf32>
    %1224 = tpu.concatenate %1217, %1222 in 1 : vector<16x1xf32>, vector<16x1xf32> -> vector<16x2xf32>
    %cst_527 = arith.constant dense<0.000000e+00> : vector<16x2xf32>
    %1225 = tpu.matmul %1223, %1224, %cst_527 {dimension_numbers = #tpu.dot_dimension_numbers<[1], [0], [0], [1], [0, 0, 1, 1], [], []>} : vector<16x16xf32>, vector<16x2xf32>, vector<16x2xf32> -> vector<16x2xf32>
    %1226 = vector.extract_strided_slice %1225 {offsets = [0, 0], sizes = [16, 1], strides = [1, 1]} : vector<16x2xf32> to vector<16x1xf32>
    %1227 = vector.extract_strided_slice %1225 {offsets = [0, 1], sizes = [16, 1], strides = [1, 1]} : vector<16x2xf32> to vector<16x1xf32>
    %1228 = arith.mulf %1226, %1226 : vector<16x1xf32>
    %1229 = arith.subf %1227, %1228 : vector<16x1xf32>
    %cst_528 = arith.constant 0.000000e+00 : f32
    %1230 = vector.broadcast %cst_528 : f32 to vector<16x1xf32>
    %1231 = arith.maximumf %1229, %1230 : vector<16x1xf32>
    %1232 = vector.broadcast %1226 : vector<16x1xf32> to vector<16x8xf32>
    %1233 = arith.subf %1213, %1232 : vector<16x8xf32>
    %cst_529 = arith.constant 9.99999974E-6 : f32
    %1234 = vector.broadcast %cst_529 : f32 to vector<16x1xf32>
    %1235 = arith.addf %1231, %1234 : vector<16x1xf32>
    %1236 = math.rsqrt %1235 : vector<16x1xf32>
    %1237 = vector.broadcast %1236 : vector<16x1xf32> to vector<16x8xf32>
    %1238 = arith.mulf %1233, %1237 : vector<16x8xf32>
    %c1008_530 = arith.constant 1008 : index
    %c0_531 = arith.constant 0 : index
    %1239 = vector.load %arg1[%c1008_530, %c0_531] : memref<1304x128xf32, #tpu.memory_space<vmem>>, vector<16x1xf32>
    %1240 = vector.broadcast %1239 : vector<16x1xf32> to vector<16x8xf32>
    %1241 = arith.mulf %1238, %1240 : vector<16x8xf32>
    %c992_532 = arith.constant 992 : index
    %c0_533 = arith.constant 0 : index
    %1242 = vector.load %arg1[%c992_532, %c0_533] : memref<1304x128xf32, #tpu.memory_space<vmem>>, vector<16x1xf32>
    %1243 = vector.broadcast %1242 : vector<16x1xf32> to vector<16x8xf32>
    %1244 = arith.addf %1241, %1243 : vector<16x8xf32>
    %cst_534 = arith.constant 0.000000e+00 : f32
    %1245 = vector.broadcast %cst_534 : f32 to vector<16x8xf32>
    %1246 = arith.maximumf %1244, %1245 : vector<16x8xf32>
    %1247 = vector.broadcast %cst_534 : f32 to vector<16x8xf32>
    %1248 = arith.subf %1244, %1247 : vector<16x8xf32>
    %1249 = arith.cmpf one, %1248, %1248 : vector<16x8xf32>
    %1250 = vector.broadcast %cst_534 : f32 to vector<16x8xf32>
    %1251 = arith.addf %1244, %1250 : vector<16x8xf32>
    %1252 = math.absf %1248 : vector<16x8xf32>
    %cst_535 = arith.constant 0.000000e+00 : f32
    %1253 = vector.broadcast %cst_535 : f32 to vector<16x8xf32>
    %1254 = arith.subf %1253, %1252 : vector<16x8xf32>
    %1255 = math.exp %1254 : vector<16x8xf32>
    %1256 = math.log1p %1255 : vector<16x8xf32>
    %1257 = arith.addf %1246, %1256 : vector<16x8xf32>
    %1258 = arith.select %1249, %1251, %1257 : vector<16x8xi1>, vector<16x8xf32>
    %1259 = math.tanh %1258 : vector<16x8xf32>
    %1260 = arith.mulf %1244, %1259 : vector<16x8xf32>
    %1261 = arith.addf %1260, %1118 : vector<16x8xf32>
    %c1112_536 = arith.constant 1112 : index
    %c0_537 = arith.constant 0 : index
    %1262 = vector.load %arg1[%c1112_536, %c0_537] : memref<1304x128xf32, #tpu.memory_space<vmem>>, vector<8x16xf32>
    %c1104_538 = arith.constant 1104 : index
    %c0_539 = arith.constant 0 : index
    %1263 = vector.load %arg1[%c1104_538, %c0_539] : memref<1304x128xf32, #tpu.memory_space<vmem>>, vector<8x1xf32>
    %cst_540 = arith.constant dense<0.000000e+00> : vector<8x8xf32>
    %1264 = tpu.matmul %1262, %1261, %cst_540 {dimension_numbers = #tpu.dot_dimension_numbers<[1], [0], [0], [1], [0, 0, 1, 1], [], []>} : vector<8x16xf32>, vector<16x8xf32>, vector<8x8xf32> -> vector<8x8xf32>
    %1265 = vector.broadcast %1263 : vector<8x1xf32> to vector<8x8xf32>
    %1266 = arith.addf %1264, %1265 : vector<8x8xf32>
    %c1_541 = arith.constant 1 : index
    %c0_542 = arith.constant 0 : index
    %c0_543 = arith.constant 0 : index
    %1267 = vector.load %arg3[%c1_541, %c0_542, %c0_543] : memref<2x8x8xf32, #tpu.memory_space<vmem>>, vector<1x8x8xf32>
    %1268 = vector.shape_cast %1267 : vector<1x8x8xf32> to vector<8x8xf32>
    %1269 = vector.shape_cast %1266 : vector<8x8xf32> to vector<1x8x8xf32>
    tpu.vector_store %arg3[%c1_541, %c0_542, %c0_543], %1269 {strides = array<i32>} : memref<2x8x8xf32, #tpu.memory_space<vmem>>, vector<1x8x8xf32>,
    return
  }
  func.func @transform_0(%arg0: i32) -> (i32, i32) {
    %c0_i32 = arith.constant 0 : i32
    %c0_i32_0 = arith.constant 0 : i32
    %c0_i32_1 = arith.constant 0 : i32
    return %c0_i32, %c0_i32_0 : i32, i32
  }
  func.func @transform_1(%arg0: i32) -> (i32, i32, i32) {
    %c0_i32 = arith.constant 0 : i32
    %c0_i32_0 = arith.constant 0 : i32
    %c0_i32_1 = arith.constant 0 : i32
    %c0_i32_2 = arith.constant 0 : i32
    return %c0_i32, %c0_i32_0, %c0_i32_1 : i32, i32, i32
  }
  func.func @transform_2(%arg0: i32) -> (i32, i32, i32) {
    %c0_i32 = arith.constant 0 : i32
    %c0_i32_0 = arith.constant 0 : i32
    %c0_i32_1 = arith.constant 0 : i32
    %c0_i32_2 = arith.constant 0 : i32
    return %c0_i32, %c0_i32_0, %c0_i32_1 : i32, i32, i32
  }
}

</mosaic_0001>

<bundles_post_ra>
// kernel: encoder1d_forward.1
= control target key start
LH: loop header
LB: loop body
LE: loop exit
PB: predicated region body
PF: predicated region fallthrough
CT: control target
= control target key end

     0   :  { %7 = vsyncpa [#allocation3], 0  ;;  %s17387_s0 = inlined_call_operand.hbm [shape: f32[1304,128], index: 0, kind: input, shape index: {}]   ;;  %s17388_s1 = inlined_call_operand.hbm [shape: f32[2,4,16], index: 1, kind: input, shape index: {}]   ;;  %s17389_s2 = inlined_call_operand.vmem [shape: f32[2,8,8], index: 2, kind: output, shape index: {}]  }
   0x1   :  { %8 = vsyncpa [#allocation5], 0  ;;  %s16135_s9 = smov [#allocation2]  }
   0x2   :  { %s14_s10 = sshll.u32 %s16135_s9, 4  ;;  %s15_s10 = int_to_ptr.vmem [resolvable:$true] %s14_s10 }
   0x3   :  { %s16099_s11 = scalar_lea.vmem %s15_s10, 20864  ;;  %p16104_p1 = scmp.lt.s32.totalorder %s15_s10, %s15_s10 }
   0x4   :  { %p16100_p0 = scmp.ne.s32.totalorder %s15_s10, %s16099_s11  ;;  %p16105_p2 = scmp.lt.s32.totalorder %s16099_s11, %s16099_s11 }
   0x6   :  { %p16106_p3 = por %p16105_p2, %p16104_p1 }
   0x8   :  { %p16107_p4 = pnand %p16106_p3, %p16100_p0 }
   0xa   :  { %16110 = shalt.err (!%p16107_p4)
}
   0xb   :  { %s16136_s12 = smov 128   ;;  %s16137_s13 = smov 8  }
   0xc   :  { %20 = dma.hbm_to_vmem [thread:$0]  %s17387_s0, 20864, %s15_s10, [#allocation3], %s16136_s12, %s16136_s12, %s16137_s13  }
   0xd   :  { %s16138_s16 = smov [#allocation4]  }
   0xe   :  { %s26_s17 = sshll.u32 %s16138_s16, 4  ;;  %s27_s17 = int_to_ptr.vmem [resolvable:$true] %s26_s17 }
   0xf   :  { %s16119_s18 = scalar_lea.vmem %s27_s17, 128  ;;  %p16124_p6 = scmp.lt.s32.totalorder %s27_s17, %s27_s17 }
  0x10   :  { %p16120_p5 = scmp.ne.s32.totalorder %s27_s17, %s16119_s18  ;;  %p16125_p7 = scmp.lt.s32.totalorder %s16119_s18, %s16119_s18 }
  0x12   :  { %p16126_p8 = por %p16125_p7, %p16124_p6 }
  0x14   :  { %p16127_p9 = pnand %p16126_p8, %p16120_p5 }
  0x16   :  { %16130 = shalt.err (!%p16127_p9)
}
  0x17   :  { %s16139_s19 = smov 64   ;;  %s16140_s20 = smov 4  }
  0x18   :  { %32 = dma.hbm_to_vmem [thread:$0]  %s17388_s1, 128, %s27_s17, [#allocation5], %s16139_s19, %s16139_s19, %s16140_s20  }
  0x19   :  { %16131 = dma.done.wait [#allocation3], 20864  }
  0x1a   :  { %16132 = vsyncadd [#allocation3], 4294946432 }
  0x1b   :  { %16133 = dma.done.wait [#allocation5], 128  }
  0x1c   :  { %16134 = vsyncadd [#allocation5], 4294967168  ;;  %v16141_v0 = vmov 0   ;;  %v77_v1 = vld [vmem:[#allocation2 + $0x4c0] sm:$0xf]  ;;  %vm42_vm0 = vcmask 125952  }
  0x1d   :  { %15731 = vset.pattern.permute.xlu0 %v16141_v0  ;;  %v40_v2 = vld [vmem:[#allocation2 + $0x470] sm:$0xf]  ;;  %79 = vxpose.xlu1.b32.start.end [1/1] (short) %v77_v1, 128  ;;  %v41_v3 = vld [vmem:[#allocation2 + $0x460] sm:$0xf]  ;;  %v16173_v4 = vld [vmem:[#allocation4] sm:$0xf] }
  0x1e   :  { %67 = vperm.xlu0 %15731, %v40_v2   ;;  %v43_v5 = vsel %vm42_vm0, %v16173_v4, 0.0  ;;  %v78_v13 = vld [vmem:[#allocation2 + $0x4c8] sm:$0xf]  ;;  %vm111_vm1 = vcmask 31744   ;;  %vm160_vm2 = vcmask 1043456   ;;  %vm478_vm3 = vcmask 130048  }
  0x1f   :  { %v44_v6 = vrot.slane %v43_v5, 4  ;;  %vm768_vm4 = vcmask 523264   ;;  %vm16143_vm5 = vmmov 0   ;;  %s16144_s0 = smov 2   ;;  %vm983_vm6 = vcmask 15360   ;;  %s16145_s1 = smov 127  }
  0x20   :  { %vm985_vm7 = vcmask 146432   ;;  %s16146_s23 = smov 126   ;;  %s16147_s24 = smov 125   ;;  %vm1397_vm8 = vcmask 7168   ;;  %vm1399_vm9 = vcmask 64512  }
  0x21   :  { %v45_v7 = vadd.f32 %v44_v6, %v43_v5  ;;  %s16148_s25 = smov 124   ;;  %s16150_s26 = smov 1  }
  0x22   :  { %73 = vperm.xlu0 %15731, %v41_v3  }
  0x23   :  { %v46_v8 = vrot.slane %v45_v7, 2 }
  0x25   :  { %v47_v9 = vadd.f32 %v46_v8, %v45_v7 }
  0x27   :  { %v48_v10 = vrot.slane %v47_v9, 1 }
  0x29   :  { %v49_v11 = vadd.f32 %v48_v10, %v47_v9 }
  0x2b   :  { %v51_v12 = vmul.f32 0.25, %v49_v11 }
  0x2d   :  { %v52_v14 = vsub.f32 %v16173_v4, %v51_v12 }
  0x2f   :  { %v53_v15 = vmul.f32 %v52_v14, %v52_v14 }
  0x31   :  { %v54_v16 = vsel %vm42_vm0, %v53_v15, 0.0 }
  0x32   :  { %v55_v17 = vrot.slane %v54_v16, 4 }
  0x34   :  { %v56_v18 = vadd.f32 %v55_v17, %v54_v16 }
  0x36   :  { %v57_v19 = vrot.slane %v56_v18, 2 }
  0x38   :  { %v58_v20 = vadd.f32 %v57_v19, %v56_v18 }
  0x3a   :  { %v59_v21 = vrot.slane %v58_v20, 1 }
  0x3c   :  { %v60_v22 = vadd.f32 %v59_v21, %v58_v20 }
  0x3e   :  { %v61_v23 = vmul.f32 0.25, %v60_v22 }
  0x40   :  { %v62_v24 = vadd.f32 1e-05, %v61_v23 }
  0x42   :  { %15779 = vrsqrt.f32 %v62_v24 }
  0x4f   :  { %v15780_v25 = vpop.eup %15779 }
  0x50   :  { %v64_v26 = vmul.f32 %v15780_v25, %v52_v14 }
  0x5a   :  { %309 = vxpose.xlu1.b32.start.end [1/1] (short) (narrow) %v78_v13, 64 }
  0x78   :  { %15732 = vset.pattern.permute.xlu1 %v16141_v0 }
  0x99   :  { %v68_v27 = vpop.permute.xlu0 %67  ;;  %v95_v29 = vpop.trf.xlu1 }
  0x9a   :  { %v70_v28 = vmul.f32 %v68_v27, %v64_v26  ;;  %14733 = vmatprep.mubr.msk.f32.mxu0 %vm111_vm1, %v95_v29 }
  0x9d   :  { %v74_v30 = vpop.permute.xlu0 %73  ;;  %v96_v32 = vpop.trf.xlu1 }
  0x9e   :  { %v76_v31 = vadd.f32 %v74_v30, %v70_v28 }
  0xa0   :  { %14731 = vmatprep.subr.msk.mxu0 %vm160_vm2, %v76_v31  ;;  %14757 = vmatprep.subr.msk.mxu1 %vm160_vm2, %v76_v31 }
  0xa1   :  { %14732 = vmatpush3.msk.msra.mxu0 %vm160_vm2, %v76_v31  ;;  %14758 = vmatpush3.msk.msra.mxu1 %vm160_vm2, %v76_v31  ;;  %v97_v33 = vpop.trf.xlu1 }
  0xa2   :  { %14734 = vmatmul.mubr.msk.f32.vlgmr.msra.gmra.mxu0 %vm111_vm1, %v96_v32 }
  0xa3   :  { %14736 = vmatprep.mubr.msk.f32.mxu0 %vm111_vm1, %v97_v33 }
  0xa5   :  { %v98_v34 = vpop.trf.xlu1 }
  0xa6   :  { %14737 = vmatmul.mubr.msk.f32.gmra.mxu0 %vm111_vm1, %v98_v34 }
  0xa9   :  { %v99_v35 = vpop.trf.xlu1 }
  0xaa   :  { %14739 = vmatprep.mubr.msk.f32.mxu0 %vm111_vm1, %v99_v35 }
  0xad   :  { %v100_v36 = vpop.trf.xlu1 }
  0xae   :  { %14740 = vmatmul.mubr.msk.f32.gmra.mxu0 %vm111_vm1, %v100_v36 }
  0xb1   :  { %v101_v37 = vpop.trf.xlu1 }
  0xb2   :  { %14742 = vmatprep.mubr.msk.f32.mxu0 %vm111_vm1, %v101_v37 }
  0xb5   :  { %v102_v38 = vpop.trf.xlu1 }
  0xb6   :  { %14743 = vmatmul.mubr.msk.f32.gmra.mxu0 %vm111_vm1, %v102_v38 }
  0xb9   :  { %v103_v39 = vpop.trf.xlu1 }
  0xba   :  { %14745 = vmatprep.mubr.msk.f32.mxu0 %vm111_vm1, %v103_v39 }
  0xbd   :  { %v104_v40 = vpop.trf.xlu1 }
  0xbe   :  { %14746 = vmatmul.mubr.msk.f32.gmra.mxu0 %vm111_vm1, %v104_v40 }
  0xc1   :  { %v105_v41 = vpop.trf.xlu1 }
  0xc2   :  { %14748 = vmatprep.mubr.msk.f32.mxu0 %vm111_vm1, %v105_v41 }
  0xc5   :  { %v106_v42 = vpop.trf.xlu1 }
  0xc6   :  { %14749 = vmatmul.mubr.msk.f32.gmra.mxu0 %vm111_vm1, %v106_v42 }
  0xc9   :  { %v107_v43 = vpop.trf.xlu1 }
  0xca   :  { %14751 = vmatprep.mubr.msk.f32.mxu0 %vm111_vm1, %v107_v43 }
  0xcd   :  { %v108_v44 = vpop.trf.xlu1 }
  0xce   :  { %14752 = vmatmul.mubr.msk.f32.gmra.mxu0 %vm111_vm1, %v108_v44 }
  0xd1   :  { %v109_v45 = vpop.trf.xlu1 }
  0xd2   :  { %14754 = vmatprep.mubr.msk.f32.mxu0 %vm111_vm1, %v109_v45 }
  0xd5   :  { %v110_v46 = vpop.trf.xlu1 }
  0xd6   :  { %14755 = vmatmul.mubr.msk.f32.gmra.mxu0 %vm111_vm1, %v110_v46 }
  0xd9   :  { %v325_v47 = vpop.trf.xlu1 }
  0xda   :  { %14759 = vmatprep.mubr.msk.f32.mxu1 %vm111_vm1, %v325_v47 }
  0xdd   :  { %v326_v48 = vpop.trf.xlu1 }
  0xde   :  { %14760 = vmatmul.mubr.msk.f32.vlgmr.msra.gmra.mxu1 %vm111_vm1, %v326_v48 }
  0xe1   :  { %v327_v49 = vpop.trf.xlu1 }
  0xe2   :  { %14762 = vmatprep.mubr.msk.f32.mxu1 %vm111_vm1, %v327_v49 }
  0xe5   :  { %v328_v50 = vpop.trf.xlu1 }
  0xe6   :  { %14763 = vmatmul.mubr.msk.f32.gmra.mxu1 %vm111_vm1, %v328_v50 }
  0xe9   :  { %v329_v51 = vpop.trf.xlu1 }
  0xea   :  { %14765 = vmatprep.mubr.msk.f32.mxu1 %vm111_vm1, %v329_v51 }
  0xed   :  { %v330_v52 = vpop.trf.xlu1 }
  0xee   :  { %14766 = vmatmul.mubr.msk.f32.gmra.mxu1 %vm111_vm1, %v330_v52 }
  0xf1   :  { %v331_v53 = vpop.trf.xlu1 }
  0xf2   :  { %14768 = vmatprep.mubr.msk.f32.mxu1 %vm111_vm1, %v331_v53 }
  0xf5   :  { %v332_v54 = vpop.trf.xlu1 }
  0xf6   :  { %14769 = vmatmul.mubr.msk.f32.gmra.mxu1 %vm111_vm1, %v332_v54 }
 0x162   :  { %v14735_v55 = vpop.f32.mrf.mxu0 }
 0x163   :  { %v471_v10 = vmul.f32 0.25, %v14735_v55 }
 0x164   :  { %v230_v56 = vpop.f32.mrf.mxu0 }
 0x165   :  { %v470_v12 = vmul.f32 0.25, %v230_v56 }
 0x166   :  { %v14738_v57 = vpop.f32.mrf.mxu0 }
 0x167   :  { %v473_v6 = vmul.f32 0.25, %v14738_v57 }
 0x168   :  { %v240_v58 = vpop.f32.mrf.mxu0 }
 0x169   :  { %v472_v9 = vmul.f32 0.25, %v240_v58 }
 0x16e   :  { %v14741_v59 = vpop.f32.mrf.mxu0 }
 0x16f   :  { %v475_v2 = vmul.f32 0.25, %v14741_v59 }
 0x170   :  { %v250_v60 = vpop.f32.mrf.mxu0 }
 0x171   :  { %v474_v3 = vmul.f32 0.25, %v250_v60 }
 0x176   :  { %v14744_v61 = vpop.f32.mrf.mxu0 }
 0x177   :  { %v477_v62 = vmul.f32 0.25, %v14744_v61 }
 0x178   :  { %v260_v63 = vpop.f32.mrf.mxu0 }
 0x179   :  { %v476_v1 = vmul.f32 0.25, %v260_v63  ;;  %14799 = vmatprep.subr.mxu1 %v477_v62 }
 0x17a   :  { %14800 = vmatpush3.msra.mxu1 %v477_v62 }
 0x17b   :  { %14801 = vmatprep.subr.mxu1 %v476_v1 }
 0x17c   :  { %14802 = vmatpush3.msra.mxu1 %v476_v1 }
 0x17d   :  { %14803 = vmatprep.subr.mxu1 %v475_v2 }
 0x17e   :  { %v16208_v5 = vpop.f32.mrf.mxu0  ;;  %14804 = vmatpush3.msra.mxu1 %v475_v2 }
 0x17f   :  { %14805 = vmatprep.subr.mxu1 %v474_v3  ;;  %v482_v7 = vsel %vm478_vm3, %v16208_v5, -inf }
 0x180   :  { %14806 = vmatpush3.msra.mxu1 %v474_v3  ;;  %483 = vmax.xlane.f32.xlu0 %v482_v7  ;;  %v270_v8 = vpop.f32.mrf.mxu0 }
 0x181   :  { %14807 = vmatprep.subr.mxu1 %v473_v6  ;;  %v479_v11 = vsel %vm478_vm3, %v270_v8, -inf }
 0x182   :  { %14808 = vmatpush3.msra.mxu1 %v473_v6 }
 0x183   :  { %14809 = vmatprep.subr.mxu1 %v472_v9 }
 0x184   :  { %14810 = vmatpush3.msra.mxu1 %v472_v9  ;;  %480 = vmax.xlane.f32.xlu0 %v479_v11 }
 0x185   :  { %14811 = vmatprep.subr.mxu1 %v471_v10 }
 0x186   :  { %v14750_v13 = vpop.f32.mrf.mxu0  ;;  %14812 = vmatpush3.msra.mxu1 %v471_v10 }
 0x187   :  { %14813 = vmatprep.subr.mxu1 %v470_v12  ;;  %v488_v14 = vsel %vm478_vm3, %v14750_v13, -inf }
 0x188   :  { %14814 = vmatpush3.msra.mxu1 %v470_v12  ;;  %489 = vmax.xlane.f32.xlu0 %v488_v14  ;;  %v280_v15 = vpop.f32.mrf.mxu0 }
 0x189   :  { %v485_v16 = vsel %vm478_vm3, %v280_v15, -inf }
 0x18c   :  { %486 = vmax.xlane.f32.xlu0 %v485_v16 }
 0x18e   :  { %v14753_v17 = vpop.f32.mrf.mxu0 }
 0x18f   :  { %v494_v18 = vsel %vm478_vm3, %v14753_v17, -inf }
 0x190   :  { %495 = vmax.xlane.f32.xlu0 %v494_v18  ;;  %v290_v19 = vpop.f32.mrf.mxu0 }
 0x191   :  { %v491_v20 = vsel %vm478_vm3, %v290_v19, -inf }
 0x194   :  { %492 = vmax.xlane.f32.xlu0 %v491_v20 }
 0x196   :  { %v16217_v21 = vpop.f32.mrf.mxu0 }
 0x197   :  { %v500_v24 = vsel %vm478_vm3, %v16217_v21, -inf }
 0x198   :  { %v16219_v22 = vpop.f32.mrf.mxu0 }
 0x199   :  { %v497_v23 = vsel %vm478_vm3, %v16219_v22, -inf }
 0x19a   :  { %498 = vmax.xlane.f32.xlu0 %v497_v23 }
 0x19e   :  { %501 = vmax.xlane.f32.xlu0 %v500_v24  ;;  %v14761_v25 = vpop.f32.mrf.mxu1 }
 0x1a0   :  { %v431_v26 = vpop.f32.mrf.mxu1 }
 0x1a6   :  { %v14764_v27 = vpop.f32.mrf.mxu1 }
 0x1a8   :  { %v441_v28 = vpop.f32.mrf.mxu1 }
 0x1ae   :  { %v14767_v29 = vpop.f32.mrf.mxu1 }
 0x1b0   :  { %v451_v30 = vpop.f32.mrf.mxu1 }
 0x1b6   :  { %v14770_v31 = vpop.f32.mrf.mxu1 }
 0x1b7   :  { %14771 = vmatprep.subr.msk.mxu0 %vm478_vm3, %v14770_v31 }
 0x1b8   :  { %14772 = vmatpush3.xpose.msk.msra.mxu0 %vm478_vm3, %v14770_v31  ;;  %v461_v32 = vpop.f32.mrf.mxu1 }
 0x1b9   :  { %14773 = vmatprep.subr.msk.mxu0 %vm478_vm3, %v461_v32 }
 0x1bc   :  { %14774 = vmatpush3.xpose.msk.msra.mxu0 %vm478_vm3, %v461_v32 }
 0x1bd   :  { %14775 = vmatprep.subr.msk.mxu0 %vm478_vm3, %v14767_v29 }
 0x1c0   :  { %14776 = vmatpush3.xpose.msk.msra.mxu0 %vm478_vm3, %v14767_v29 }
 0x1c1   :  { %14777 = vmatprep.subr.msk.mxu0 %vm478_vm3, %v451_v30 }
 0x1c4   :  { %14778 = vmatpush3.xpose.msk.msra.mxu0 %vm478_vm3, %v451_v30 }
 0x1c5   :  { %14779 = vmatprep.subr.msk.mxu0 %vm478_vm3, %v14764_v27 }
 0x1c8   :  { %14780 = vmatpush3.xpose.msk.msra.mxu0 %vm478_vm3, %v14764_v27 }
 0x1c9   :  { %14781 = vmatprep.subr.msk.mxu0 %vm478_vm3, %v441_v28 }
 0x1cc   :  { %14782 = vmatpush3.xpose.msk.msra.mxu0 %vm478_vm3, %v441_v28 }
 0x1cd   :  { %14783 = vmatprep.subr.msk.mxu0 %vm478_vm3, %v14761_v25 }
 0x1d0   :  { %14784 = vmatpush3.xpose.msk.msra.mxu0 %vm478_vm3, %v14761_v25 }
 0x1d1   :  { %14785 = vmatprep.subr.msk.mxu0 %vm478_vm3, %v431_v26 }
 0x1d4   :  { %14786 = vmatpush3.xpose.msk.msra.mxu0 %vm478_vm3, %v431_v26 }
 0x209   :  { %v484_v33 = vpop.xlane.xlu0 %483 }
 0x20a   :  { %v504_v34 = vsub.f32 %v16208_v5, %v484_v33 }
 0x20c   :  { %v513_v35 = vmul.f32 1.442695, %v504_v34 }
 0x20d   :  { %v481_v36 = vpop.xlane.xlu0 %480 }
 0x20e   :  { %15781 = vpow2.f32 %v513_v35  ;;  %v503_v37 = vsub.f32 %v270_v8, %v481_v36  ;;  %v720_v36 = vld [vmem:[#allocation2 + $0x478] sm:$0xff] }
 0x210   :  { %v511_v38 = vmul.f32 1.442695, %v503_v37 }
 0x211   :  { %v490_v39 = vpop.xlane.xlu0 %489 }
 0x212   :  { %15783 = vpow2.f32 %v511_v38  ;;  %v506_v40 = vsub.f32 %v14750_v13, %v490_v39  ;;  %v721_v39 = vld [vmem:[#allocation2 + $0x480] sm:$0xff] }
 0x214   :  { %v517_v41 = vmul.f32 1.442695, %v506_v40 }
 0x215   :  { %v487_v42 = vpop.xlane.xlu0 %486 }
 0x216   :  { %15785 = vpow2.f32 %v517_v41  ;;  %v505_v43 = vsub.f32 %v280_v15, %v487_v42  ;;  %v722_v42 = vld [vmem:[#allocation2 + $0x488] sm:$0xff] }
 0x218   :  { %v515_v44 = vmul.f32 1.442695, %v505_v43 }
 0x219   :  { %v496_v45 = vpop.xlane.xlu0 %495 }
 0x21a   :  { %15787 = vpow2.f32 %v515_v44  ;;  %v508_v46 = vsub.f32 %v14753_v17, %v496_v45  ;;  %v723_v45 = vld [vmem:[#allocation2 + $0x490] sm:$0xff] }
 0x21b   :  { %v15782_v47 = vpop.eup %15781 }
 0x21c   :  { %v521_v48 = vmul.f32 1.442695, %v508_v46  ;;  %v530_v49 = vsel %vm478_vm3, %v15782_v47, 0.0 }
 0x21d   :  { %v493_v50 = vpop.xlane.xlu0 %492  ;;  %531 = vadd.xlane.f32.xlu0 %v530_v49 }
 0x21e   :  { %15789 = vpow2.f32 %v521_v48  ;;  %v507_v51 = vsub.f32 %v290_v19, %v493_v50  ;;  %v724_v48 = vld [vmem:[#allocation2 + $0x498] sm:$0xff] }
 0x21f   :  { %v15784_v52 = vpop.eup %15783 }
 0x220   :  { %v519_v53 = vmul.f32 1.442695, %v507_v51  ;;  %v527_v54 = vsel %vm478_vm3, %v15784_v52, 0.0  ;;  %v725_v51 = vld [vmem:[#allocation2 + $0x4a0] sm:$0xff] }
 0x221   :  { %528 = vadd.xlane.f32.xlu1 %v527_v54  ;;  %v726_v54 = vld [vmem:[#allocation2 + $0x4a8] sm:$0xff] }
 0x222   :  { %15791 = vpow2.f32 %v519_v53 }
 0x223   :  { %v15786_v55 = vpop.eup %15785  ;;  %v499_v56 = vpop.xlane.xlu0 %498 }
 0x224   :  { %v509_v57 = vsub.f32 %v16219_v22, %v499_v56  ;;  %v536_v58 = vsel %vm478_vm3, %v15786_v55, 0.0 }
 0x225   :  { %537 = vadd.xlane.f32.xlu0 %v536_v58 }
 0x226   :  { %v523_v59 = vmul.f32 1.442695, %v509_v57  ;;  %v727_v57 = vld [vmem:[#allocation2 + $0x4b0] sm:$0xff] }
 0x227   :  { %v15788_v60 = vpop.eup %15787  ;;  %v502_v61 = vpop.xlane.xlu0 %501 }
 0x228   :  { %15793 = vpow2.f32 %v523_v59  ;;  %v510_v62 = vsub.f32 %v16217_v21, %v502_v61  ;;  %v533_v63 = vsel %vm478_vm3, %v15788_v60, 0.0  ;;  %v1379_v59 = vld [vmem:[#allocation2 + $0x4d8] sm:$0xff] }
 0x229   :  { %534 = vadd.xlane.f32.xlu0 %v533_v63 }
 0x22a   :  { %v525_v1 = vmul.f32 1.442695, %v510_v62 }
 0x22b   :  { %v15790_v2 = vpop.eup %15789 }
 0x22c   :  { %15795 = vpow2.f32 %v525_v1  ;;  %v542_v3 = vsel %vm478_vm3, %v15790_v2, 0.0 }
 0x22d   :  { %543 = vadd.xlane.f32.xlu0 %v542_v3 }
 0x22f   :  { %v15792_v5 = vpop.eup %15791 }
 0x230   :  { %v539_v6 = vsel %vm478_vm3, %v15792_v5, 0.0 }
 0x231   :  { %540 = vadd.xlane.f32.xlu0 %v539_v6  ;;  %v16142_v6 = vmov 0.0  }
 0x232   :  { %14827 = vmatprep.subr.mxu1 %v16142_v6  ;;  %14861 = vmatprep.subr.mxu0 %v16142_v6 }
 0x235   :  { %v15794_v7 = vpop.eup %15793 }
 0x236   :  { %v545_v8 = vsel %vm478_vm3, %v15794_v7, 0.0 }
 0x237   :  { %546 = vadd.xlane.f32.xlu0 %v545_v8 }
 0x239   :  { %v15796_v9 = vpop.eup %15795 }
 0x23a   :  { %v548_v10 = vsel %vm478_vm3, %v15796_v9, 0.0 }
 0x23b   :  { %549 = vadd.xlane.f32.xlu0 %v548_v10 }
 0x2a6   :  { %v532_v11 = vpop.xlane.xlu0 %531 }
 0x2a7   :  { %15797 = vrcp.f32 %v532_v11 }
 0x2aa   :  { %v529_v12 = vpop.xlane.xlu1 %528 }
 0x2ab   :  { %15799 = vrcp.f32 %v529_v12 }
 0x2ae   :  { %v538_v13 = vpop.xlane.xlu0 %537 }
 0x2af   :  { %15801 = vrcp.f32 %v538_v13 }
 0x2b2   :  { %v535_v14 = vpop.xlane.xlu0 %534 }
 0x2b3   :  { %15803 = vrcp.f32 %v535_v14 }
 0x2b4   :  { %v15798_v16 = vpop.eup %15797 }
 0x2b5   :  { %v554_v19 = vmul.f32 %v15798_v16, %v15782_v47  ;;  %v898_v16 = vld [vmem:[#allocation2 + $0x4b8] sm:$0xf] }
 0x2b6   :  { %v544_v15 = vpop.xlane.xlu0 %543 }
 0x2b7   :  { %15805 = vrcp.f32 %v544_v15 }
 0x2b8   :  { %v15800_v17 = vpop.eup %15799 }
 0x2b9   :  { %v552_v18 = vmul.f32 %v15800_v17, %v15784_v52 }
 0x2ba   :  { %v541_v20 = vpop.xlane.xlu0 %540 }
 0x2bb   :  { %15807 = vrcp.f32 %v541_v20  ;;  %14787 = vmatprep.mubr.msk.f32.mxu0 %vm478_vm3, %v552_v18 }
 0x2bc   :  { %14788 = vmatmul.mubr.msk.f32.vlgmr.msra.gmra.mxu0 %vm478_vm3, %v554_v19  ;;  %v15802_v21 = vpop.eup %15801 }
 0x2bd   :  { %v558_v25 = vmul.f32 %v15802_v21, %v15786_v55 }
 0x2c0   :  { %v15804_v22 = vpop.eup %15803  ;;  %v547_v23 = vpop.xlane.xlu0 %546 }
 0x2c1   :  { %15809 = vrcp.f32 %v547_v23  ;;  %v556_v24 = vmul.f32 %v15804_v22, %v15788_v60 }
 0x2c3   :  { %14790 = vmatprep.mubr.msk.f32.mxu0 %vm478_vm3, %v556_v24 }
 0x2c4   :  { %14791 = vmatmul.mubr.msk.f32.gmra.mxu0 %vm478_vm3, %v558_v25  ;;  %v550_v26 = vpop.xlane.xlu0 %549  ;;  %v15806_v27 = vpop.eup %15805 }
 0x2c5   :  { %15811 = vrcp.f32 %v550_v26  ;;  %v562_v30 = vmul.f32 %v15806_v27, %v15790_v2  ;;  %v987_v26 = vld [vmem:[#allocation2 + $0x4f0] sm:$0xff] }
 0x2c8   :  { %v15808_v28 = vpop.eup %15807 }
 0x2c9   :  { %v560_v29 = vmul.f32 %v15808_v28, %v15792_v5  ;;  %v1142_v28 = vld [vmem:[#allocation2 + $0x500] sm:$0xff] }
 0x2cb   :  { %14793 = vmatprep.mubr.msk.f32.mxu0 %vm478_vm3, %v560_v29  ;;  %v1221_v29 = vld [vmem:[#allocation2 + $0x508] sm:$0xff] }
 0x2cc   :  { %14794 = vmatmul.mubr.msk.f32.gmra.mxu0 %vm478_vm3, %v562_v30 }
 0x2ce   :  { %v15810_v31 = vpop.eup %15809 }
 0x2cf   :  { %v564_v32 = vmul.f32 %v15810_v31, %v15794_v7  ;;  %v899_v7 = vld [vmem:[#allocation2 + $0x468] sm:$0xf]  ;;  %v1300_v31 = vld [vmem:[#allocation2 + $0x510] sm:$0xff] }
 0x2d0   :  { %902 = vperm.xlu1 %15732, %v899_v7   ;;  %v1494_v7 = vld [vmem:[#allocation2 + $0x4e8] sm:$0xff] }
 0x2d1   :  { %14796 = vmatprep.mubr.msk.f32.mxu0 %vm478_vm3, %v564_v32 }
 0x2d2   :  { %v15812_v33 = vpop.eup %15811 }
 0x2d3   :  { %v566_v34 = vmul.f32 %v15812_v33, %v15796_v9 }
 0x2d5   :  { %14797 = vmatmul.mubr.msk.f32.gmra.mxu0 %vm478_vm3, %v566_v34 }
 0x2d6   :  { %14863 = vmatprep.mubr.msk.f32.mxu0 %vm16143_vm5, %v16142_v6 }
 0x34b   :  { %v903_v17 = vpop.permute.xlu1 %902 }
 0x37c   :  { %v14789_v35 = vpop.f32.mrf.mxu0 }
 0x37d   :  { %v729_v40 = vmul.f32 %v14789_v35, %v721_v39 }
 0x37e   :  { %v681_v37 = vpop.f32.mrf.mxu0 }
 0x37f   :  { %v728_v38 = vmul.f32 %v720_v36, %v681_v37 }
 0x381   :  { %736 = vxpose.xlu0.b32.start [1/8] (short) (narrow) %v728_v38, 64 }
 0x384   :  { %v14792_v41 = vpop.f32.mrf.mxu0 }
 0x385   :  { %737 = vxpose.xlu0.b32.cont [2/8] (short) (narrow) %v729_v40, 64  ;;  %v731_v46 = vmul.f32 %v14792_v41, %v723_v45 }
 0x386   :  { %v691_v43 = vpop.f32.mrf.mxu0 }
 0x387   :  { %v730_v44 = vmul.f32 %v722_v42, %v691_v43 }
 0x389   :  { %738 = vxpose.xlu0.b32.cont [3/8] (short) (narrow) %v730_v44, 64 }
 0x38c   :  { %v14795_v47 = vpop.f32.mrf.mxu0 }
 0x38d   :  { %739 = vxpose.xlu0.b32.cont [4/8] (short) (narrow) %v731_v46, 64  ;;  %v733_v52 = vmul.f32 %v14795_v47, %v725_v51 }
 0x38e   :  { %v701_v49 = vpop.f32.mrf.mxu0 }
 0x38f   :  { %v732_v50 = vmul.f32 %v724_v48, %v701_v49 }
 0x391   :  { %740 = vxpose.xlu0.b32.cont [5/8] (short) (narrow) %v732_v50, 64 }
 0x395   :  { %741 = vxpose.xlu0.b32.cont [6/8] (short) (narrow) %v733_v52, 64  ;;  %v14798_v53 = vpop.f32.mrf.mxu0 }
 0x396   :  { %v735_v58 = vmul.f32 %v14798_v53, %v727_v57 }
 0x397   :  { %v711_v55 = vpop.f32.mrf.mxu0 }
 0x398   :  { %v734_v56 = vmul.f32 %v726_v54, %v711_v55 }
 0x39a   :  { %742 = vxpose.xlu0.b32.cont [7/8] (short) (narrow) %v734_v56, 64  ;;  %v1396_v56 = vld [vmem:[#allocation2 + $0x4d0] sm:$0xff] }
 0x39e   :  { %743 = vxpose.xlu0.b32.end [8/8] (short) (narrow) %v735_v58, 64 }
 0x3c7   :  { %1382 = vperm.xlu0 %15731, %v1379_v59  }
 0x3fe   :  { %v752_v60 = vpop.trf.xlu0 }
 0x3ff   :  { %14815 = vmatprep.mubr.msk.f32.mxu1 %vm768_vm4, %v752_v60  ;;  %v16149_v60 = vmov 1  }
 0x400   :  { %15733 = vset.pattern.permute.xlu0 %v16149_v60 }
 0x402   :  { %v753_v61 = vpop.trf.xlu0 }
 0x403   :  { %14816 = vmatmul.mubr.msk.f32.vlgmr.msra.gmra.mxu1 %vm768_vm4, %v753_v61 }
 0x406   :  { %v754_v62 = vpop.trf.xlu0 }
 0x407   :  { %14818 = vmatprep.mubr.msk.f32.mxu1 %vm768_vm4, %v754_v62  ;;  %v1501_v62 = vld [vmem:[#allocation2 + $0x4e0] sm:$0xff] }
 0x40a   :  { %v755_v63 = vpop.trf.xlu0 }
 0x40b   :  { %14819 = vmatmul.mubr.msk.f32.gmra.mxu1 %vm768_vm4, %v755_v63 }
 0x40e   :  { %v756_v1 = vpop.trf.xlu0 }
 0x40f   :  { %14821 = vmatprep.mubr.msk.f32.mxu1 %vm768_vm4, %v756_v1 }
 0x412   :  { %v757_v2 = vpop.trf.xlu0 }
 0x413   :  { %14822 = vmatmul.mubr.msk.f32.gmra.mxu1 %vm768_vm4, %v757_v2 }
 0x416   :  { %v758_v3 = vpop.trf.xlu0 }
 0x417   :  { %14824 = vmatprep.mubr.msk.f32.mxu1 %vm768_vm4, %v758_v3 }
 0x41a   :  { %v759_v5 = vpop.trf.xlu0 }
 0x41b   :  { %14825 = vmatmul.mubr.msk.f32.gmra.mxu1 %vm768_vm4, %v759_v5 }
 0x41c   :  { %14843 = vmatprep.mubr.msk.f32.mxu1 %vm16143_vm5, %v16142_v6 }
 0x442   :  { %v1383_v46 = vpop.permute.xlu0 %1382 }
 0x4c3   :  { %v14817_v8 = vpop.f32.mrf.mxu1 }
 0x4c5   :  { %v859_v9 = vpop.f32.mrf.mxu1 }
 0x4cb   :  { %v14820_v10 = vpop.f32.mrf.mxu1 }
 0x4cd   :  { %v869_v11 = vpop.f32.mrf.mxu1 }
 0x4d3   :  { %v14823_v12 = vpop.f32.mrf.mxu1 }
 0x4d5   :  { %v879_v13 = vpop.f32.mrf.mxu1 }
 0x4db   :  { %v14826_v14 = vpop.f32.mrf.mxu1 }
 0x4dc   :  { %14828 = vmatpush3.msra.mxu1 %v14826_v14 }
 0x4dd   :  { %v889_v15 = vpop.f32.mrf.mxu1  ;;  %14829 = vmatprep.subr.mxu1 %v16142_v6 }
 0x4de   :  { %14830 = vmatpush3.msra.mxu1 %v889_v15 }
 0x4df   :  { %14831 = vmatprep.subr.mxu1 %v16142_v6 }
 0x4e0   :  { %14832 = vmatpush3.msra.mxu1 %v14823_v12 }
 0x4e1   :  { %14833 = vmatprep.subr.mxu1 %v16142_v6 }
 0x4e2   :  { %14834 = vmatpush3.msra.mxu1 %v879_v13 }
 0x4e3   :  { %14835 = vmatprep.subr.mxu1 %v16142_v6 }
 0x4e4   :  { %14836 = vmatpush3.msra.mxu1 %v14820_v10 }
 0x4e5   :  { %14837 = vmatprep.subr.mxu1 %v16142_v6 }
 0x4e6   :  { %14838 = vmatpush3.msra.mxu1 %v869_v11 }
 0x4e7   :  { %14839 = vmatprep.subr.mxu1 %v16142_v6 }
 0x4e8   :  { %14840 = vmatpush3.msra.mxu1 %v14817_v8 }
 0x4e9   :  { %14841 = vmatprep.subr.mxu1 %v16142_v6 }
 0x4ea   :  { %14842 = vmatpush3.msra.mxu1 %v859_v9 }
 0x4eb   :  { %14844 = vmatmul.mubr.msk.f32.vlgmr.msra.gmra.mxu1 %vm768_vm4, %v898_v16  ;;  %14846 = vmatprep.subr.mxu1 %v16142_v6 }
 0x4ec   :  { %14848 = vmatprep.mubr.msk.f32.mxu1 %vm16143_vm5, %v16142_v6 }
 0x5ab   :  { %v974_v18 = vpop.f32.mrf.mxu1 }
 0x5ac   :  { %v975_v19 = vadd.f32 %v974_v18, %v903_v17 }
 0x5ad   :  { %v14845_v20 = vpop.f32.mrf.mxu1 }
 0x5ae   :  { %v978_v21 = vadd.f32 %v975_v19, %v16173_v4  ;;  %v988_v4 = vld [vmem:[#allocation2 + $0x4f8] sm:$0xff] }
 0x5b0   :  { %980 = vrot.lane.b32.xlu1 %v978_v21, %s16144_s0 }
 0x622   :  { %v981_v22 = vpop.permute.xlu1 %980 }
 0x623   :  { %v984_v23 = vsel %vm983_vm6, 0.0, %v981_v22 }
 0x624   :  { %v986_v24 = vsel %vm985_vm7, %v984_v23, 0.0 }
 0x625   :  { %990 = vrot.lane.b32.xlu1 %v986_v24, %s16145_s1 }
 0x629   :  { %1143 = vrot.lane.b32.xlu1 %v986_v24, %s16146_s23 }
 0x62d   :  { %1222 = vrot.lane.b32.xlu1 %v986_v24, %s16147_s24 }
 0x631   :  { %1301 = vrot.lane.b32.xlu1 %v986_v24, %s16148_s25 }
 0x697   :  { %v991_v25 = vpop.permute.xlu1 %990 }
 0x698   :  { %14847 = vmatpush3.msk.msra.mxu1 %vm160_vm2, %v991_v25 }
 0x699   :  { %14849 = vmatmul.mubr.msk.f32.vlgmr.msra.gmra.mxu1 %vm111_vm1, %v988_v4  ;;  %14851 = vmatprep.subr.mxu1 %v16142_v6 }
 0x69a   :  { %14852 = vmatpush3.msk.msra.mxu1 %vm160_vm2, %v986_v24  ;;  %14853 = vmatprep.mubr.msk.f32.mxu1 %vm16143_vm5, %v16142_v6 }
 0x69b   :  { %v1144_v27 = vpop.permute.xlu1 %1143  ;;  %14856 = vmatprep.subr.mxu1 %v16142_v6 }
 0x69d   :  { %14854 = vmatmul.mubr.msk.f32.vlgmr.msra.gmra.mxu1 %vm111_vm1, %v987_v26 }
 0x69e   :  { %14857 = vmatpush3.msk.msra.mxu1 %vm160_vm2, %v1144_v27  ;;  %14858 = vmatprep.mubr.msk.f32.mxu1 %vm16143_vm5, %v16142_v6 }
 0x69f   :  { %v1223_v30 = vpop.permute.xlu1 %1222  ;;  %14866 = vmatprep.subr.mxu1 %v16142_v6 }
 0x6a0   :  { %14862 = vmatpush3.msk.msra.mxu0 %vm160_vm2, %v1223_v30 }
 0x6a1   :  { %14859 = vmatmul.mubr.msk.f32.vlgmr.msra.gmra.mxu1 %vm111_vm1, %v1142_v28  ;;  %14864 = vmatmul.mubr.msk.f32.vlgmr.msra.gmra.mxu0 %vm111_vm1, %v1221_v29 }
 0x6a2   :  { %14868 = vmatprep.mubr.msk.f32.mxu1 %vm16143_vm5, %v16142_v6  ;;  %14871 = vmatprep.subr.mxu0 %v16142_v6 }
 0x6a3   :  { %v1302_v32 = vpop.permute.xlu1 %1301  ;;  %14873 = vmatprep.mubr.msk.f32.mxu0 %vm16143_vm5, %v16142_v6 }
 0x6a4   :  { %14867 = vmatpush3.msk.msra.mxu1 %vm160_vm2, %v1302_v32  ;;  %v1536_v32 = vld [vmem:[#allocation2 + $0x120] sm:$0xff] }
 0x6a5   :  { %14869 = vmatmul.mubr.msk.f32.vlgmr.msra.gmra.mxu1 %vm111_vm1, %v1300_v31 }
 0x6a6   :  { %14878 = vmatprep.mubr.msk.f32.mxu1 %vm1399_vm9, %v1536_v32 }
 0x759   :  { %v1063_v33 = vpop.f32.mrf.mxu1 }
 0x75b   :  { %v14850_v34 = vpop.f32.mrf.mxu1 }
 0x75d   :  { %v1138_v35 = vpop.f32.mrf.mxu1 }
 0x75e   :  { %v1139_v37 = vadd.f32 %v1138_v35, %v1063_v33  ;;  %v1534_v33 = vld [vmem:[#allocation2 + $0x110] sm:$0xff] }
 0x75f   :  { %v14855_v36 = vpop.f32.mrf.mxu1 }
 0x760   :  { %v1535_v36 = vld [vmem:[#allocation2 + $0x118] sm:$0xff] }
 0x761   :  { %v1216_v38 = vpop.f32.mrf.mxu1  ;;  %v1295_v39 = vpop.f32.mrf.mxu0 }
 0x762   :  { %v1220_v40 = vadd.f32 %v1216_v38, %v1139_v37  ;;  %v1792_v38 = vld [vmem:[#allocation2 + $0x140] sm:$0xff] }
 0x763   :  { %v14860_v41 = vpop.f32.mrf.mxu1  ;;  %v14865_v42 = vpop.f32.mrf.mxu0 }
 0x764   :  { %v1299_v43 = vadd.f32 %v1295_v39, %v1220_v40  ;;  %v1968_v39 = vld [vmem:[#allocation2 + $0xe0] sm:$0xff]  ;;  %v1969_v40 = vld [vmem:[#allocation2 + $0xe8] sm:$0xff] }
 0x765   :  { %v1374_v44 = vpop.f32.mrf.mxu1 }
 0x766   :  { %v1378_v45 = vadd.f32 %v1374_v44, %v1299_v43  ;;  %v1537_v43 = vld [vmem:[#allocation2 + $0x128] sm:$0xff]  ;;  %v1704_v44 = vld [vmem:[#allocation2 + $0x130] sm:$0xff] }
 0x767   :  { %v14870_v47 = vpop.f32.mrf.mxu1 }
 0x768   :  { %v1385_v48 = vadd.f32 %v1383_v46, %v1378_v45  ;;  %v1705_v47 = vld [vmem:[#allocation2 + $0x138] sm:$0xff] }
 0x76a   :  { %v1386_v49 = vsel %vm478_vm3, %v1385_v48, 0.0  ;;  %v1391_v50 = vmul.f32 %v1385_v48, %v1385_v48 }
 0x76b   :  { %1387 = vadd.xlane.f32.xlu1 %v1386_v49  ;;  %v1880_v49 = vld [vmem:[#allocation2 + $0x150] sm:$0xff] }
 0x76c   :  { %v1392_v51 = vsel %vm478_vm3, %v1391_v50, 0.0  ;;  %v1881_v50 = vld [vmem:[#allocation2 + $0x158] sm:$0xff] }
 0x76f   :  { %1393 = vadd.xlane.f32.xlu1 %v1392_v51 }
 0x7f4   :  { %v1388_v52 = vpop.xlane.xlu1 %1387 }
 0x7f5   :  { %v1390_v54 = vmul.f32 0.0625, %v1388_v52 }
 0x7f8   :  { %v1394_v53 = vpop.xlane.xlu1 %1393 }
 0x7f9   :  { %v1395_v55 = vmul.f32 0.0625, %v1394_v53 }
 0x7fb   :  { %v1398_v57 = vsel %vm1397_vm8, %v1390_v54, %v1395_v55 }
 0x7fc   :  { %14872 = vmatpush3.msra.mxu0 %v1398_v57 }
 0x7fd   :  { %14874 = vmatmul.mubr.msk.f32.vlgmr.msra.gmra.mxu0 %vm1399_vm9, %v1396_v56 }
 0x7fe   :  { %14883 = vmatprep.mubr.msk.f32.mxu0 %vm1399_vm9, %v1534_v33 }
 0x8bd   :  { %v1469_v58 = vpop.f32.mrf.mxu0 }
 0x8be   :  { %v1473_v59 = vmul.f32 %v1469_v58, %v1469_v58  ;;  %1482 = vperm.xlu1 %15732, %v1469_v58  }
 0x8bf   :  { %v14875_v61 = vpop.f32.mrf.mxu0 }
 0x8c0   :  { %1475 = vrot.lane.b32.xlu0 %v1473_v59, %s16150_s26 }
 0x8c2   :  { %1504 = vperm.xlu1 %15732, %v1501_v62  }
 0x932   :  { %v1476_v63 = vpop.permute.xlu0 %1475 }
 0x933   :  { %v1478_v1 = vsub.f32 %v1469_v58, %v1476_v63 }
 0x935   :  { %v1479_v2 = vmax.f32 %v1478_v1, 0.0 }
 0x937   :  { %v1486_v3 = vadd.f32 1e-05, %v1479_v2 }
 0x939   :  { %15813 = vrsqrt.f32 %v1486_v3  ;;  %v1483_v8 = vpop.permute.xlu1 %1482 }
 0x93a   :  { %v1485_v10 = vsub.f32 %v1385_v48, %v1483_v8  ;;  %v1793_v48 = vld [vmem:[#allocation2 + $0x148] sm:$0xff] }
 0x93d   :  { %v1505_v14 = vpop.permute.xlu1 %1504 }
 0x946   :  { %v15814_v5 = vpop.eup %15813 }
 0x947   :  { %1490 = vperm.xlu0 %15733, %v15814_v5  }
 0x94b   :  { %15734 = vset.pattern.permute.xlu0 %v16141_v0 }
 0x94c   :  { %1497 = vperm.xlu0 %15734, %v1494_v7  }
 0x9c2   :  { %v1491_v9 = vpop.permute.xlu0 %1490 }
 0x9c3   :  { %v1493_v11 = vmul.f32 %v1491_v9, %v1485_v10 }
 0x9c7   :  { %v1498_v12 = vpop.permute.xlu0 %1497 }
 0x9c8   :  { %v1500_v13 = vmul.f32 %v1498_v12, %v1493_v11 }
 0x9ca   :  { %v1507_v15 = vadd.f32 %v1505_v14, %v1500_v13 }
 0x9cc   :  { %v1511_v16 = vand.u32 2147483647, %v1507_v15  ;;  %v1508_v26 = vmax.f32 %v1507_v15, 0.0  ;;  %vm1509_vm11 = vcmp.ne.f32.partialorder %v1507_v15, %v1507_v15 }
 0x9ce   :  { %v1512_v17 = vsub.f32 0.0, %v1511_v16 }
 0x9d0   :  { %v1513_v18 = vmul.f32 1.442695, %v1512_v17 }
 0x9d2   :  { %15815 = vpow2.f32 %v1513_v18 }
 0x9df   :  { %v15816_v19 = vpop.eup %15815 }
 0x9e0   :  { %v1515_v20 = vadd.f32 1.0, %v15816_v19  ;;  %v1518_v21 = vmul.f32 -0.5, %v15816_v19  ;;  %v1521_v23 = vand.u32 2147483647, %v15816_v19 }
 0x9e2   :  { %15817 = vlog2.f32 %v1515_v20  ;;  %v1519_v22 = vadd.f32 1.0, %v1518_v21  ;;  %vm1522_vm10 = vcmp.lt.f32.partialorder %v1521_v23, 0.0004427343 }
 0x9e4   :  { %v1520_v25 = vmul.f32 %v15816_v19, %v1519_v22  ;;  %v2000_v19 = vld [vmem:[#allocation2 + $0xd0] sm:$0xff] }
 0x9ef   :  { %v15818_v24 = vpop.eup %15817 }
 0x9f0   :  { %v1517_v4 = vmul.f32 0.6931472, %v15818_v24 }
 0x9f2   :  { %v1523_v27 = vsel %vm1522_vm10, %v1520_v25, %v1517_v4 }
 0x9f3   :  { %v1524_v28 = vadd.f32 %v1523_v27, %v1508_v26 }
 0x9f5   :  { %v1525_v29 = vsel %vm1509_vm11, %v1507_v15, %v1524_v28 }
 0x9f6   :  { %15819 = vtanh.f32 %v1525_v29  ;;  %v2001_v29 = vld [vmem:[#allocation2 + $0xd8] sm:$0xff] }
 0xa03   :  { %v15820_v30 = vpop.eup %15819 }
 0xa04   :  { %v16322_v31 = vmul.f32 %v15820_v30, %v1507_v15 }
 0xa06   :  { %1529 = vrot.lane.b32.xlu0 %v16322_v31, %s16144_s0 }
 0xa78   :  { %v1530_v34 = vpop.permute.xlu0 %1529 }
 0xa79   :  { %v1532_v35 = vsel %vm983_vm6, 0.0, %v1530_v34 }
 0xa7a   :  { %14881 = vmatprep.subr.msk.mxu0 %vm985_vm7, %v1532_v35  ;;  %v1533_v37 = vsel %vm985_vm7, %v1532_v35, 0.0 }
 0xa7b   :  { %14882 = vmatpush3.msk.msra.mxu0 %vm985_vm7, %v1532_v35  ;;  %1706 = vrot.lane.b32.xlu0 %v1533_v37, %s16146_s23  ;;  %v2128_v35 = vld [vmem:[#allocation2 + $0x108] sm:$0xff] }
 0xa7c   :  { %1539 = vrot.lane.b32.xlu1 %v1533_v37, %s16145_s1  ;;  %14884 = vmatmul.mubr.msk.f32.vlgmr.msra.gmra.mxu0 %vm1399_vm9, %v1535_v36 }
 0xa7d   :  { %14893 = vmatprep.mubr.msk.f32.mxu0 %vm1399_vm9, %v1792_v38 }
 0xa7f   :  { %1882 = vrot.lane.b32.xlu0 %v1533_v37, %s16148_s25 }
 0xa80   :  { %1794 = vrot.lane.b32.xlu1 %v1533_v37, %s16147_s24 }
 0xa83   :  { %1972 = vperm.xlu0 %15734, %v1968_v39  }
 0xa84   :  { %1977 = vperm.xlu1 %15732, %v1969_v40  }
 0xaed   :  { %v1707_v41 = vpop.permute.xlu0 %1706 }
 0xaee   :  { %v1540_v42 = vpop.permute.xlu1 %1539 }
 0xaef   :  { %14876 = vmatprep.subr.mxu1 %v1540_v42 }
 0xaf0   :  { %14877 = vmatpush3.msra.mxu1 %v1540_v42 }
 0xaf1   :  { %14879 = vmatmul.mubr.msk.f32.vlgmr.msra.gmra.mxu1 %vm1399_vm9, %v1537_v43  ;;  %14886 = vmatprep.subr.mxu1 %v1707_v41  ;;  %v1883_v45 = vpop.permute.xlu0 %1882 }
 0xaf2   :  { %14887 = vmatpush3.msra.mxu1 %v1707_v41  ;;  %v1795_v46 = vpop.permute.xlu1 %1794  ;;  %14888 = vmatprep.mubr.msk.f32.mxu1 %vm1399_vm9, %v1704_v44 }
 0xaf3   :  { %14891 = vmatprep.subr.mxu0 %v1795_v46  ;;  %14896 = vmatprep.subr.mxu1 %v1883_v45 }
 0xaf4   :  { %14892 = vmatpush3.msra.mxu0 %v1795_v46  ;;  %v2127_v46 = vld [vmem:[#allocation2 + $0x100] sm:$0xff] }
 0xaf5   :  { %14889 = vmatmul.mubr.msk.f32.vlgmr.msra.gmra.mxu1 %vm1399_vm9, %v1705_v47  ;;  %14894 = vmatmul.mubr.msk.f32.vlgmr.msra.gmra.mxu0 %vm1399_vm9, %v1793_v48  ;;  %v2142_v47 = vld [vmem:[#allocation2 + $0xf8] sm:$0xff]  ;;  %v2141_v48 = vld [vmem:[#allocation2 + $0xf0] sm:$0xff] }
 0xaf6   :  { %14897 = vmatpush3.msra.mxu1 %v1883_v45  ;;  %14898 = vmatprep.mubr.msk.f32.mxu1 %vm1399_vm9, %v1880_v49 }
 0xaf7   :  { %14905 = vmatprep.mubr.msk.f32.mxu0 %vm478_vm3, %v2000_v19 }
 0xaf9   :  { %14899 = vmatmul.mubr.msk.f32.vlgmr.msra.gmra.mxu1 %vm1399_vm9, %v1881_v50 }
 0xafe   :  { %v1973_v11 = vpop.permute.xlu0 %1972 }
 0xaff   :  { %v1978_v7 = vpop.permute.xlu1 %1977 }
 0xb3c   :  { %v14885_v51 = vpop.f32.mrf.mxu0 }
 0xb3e   :  { %v1695_v53 = vpop.f32.mrf.mxu0 }
 0xbb1   :  { %v14880_v52 = vpop.f32.mrf.mxu1 }
 0xbb2   :  { %v1701_v55 = vadd.f32 %v14885_v51, %v14880_v52 }
 0xbb3   :  { %v1614_v54 = vpop.f32.mrf.mxu1 }
 0xbb4   :  { %v1696_v58 = vadd.f32 %v1695_v53, %v1614_v54 }
 0xbb5   :  { %v14890_v56 = vpop.f32.mrf.mxu1  ;;  %v14895_v57 = vpop.f32.mrf.mxu0 }
 0xbb6   :  { %v1791_v59 = vadd.f32 %v14890_v56, %v1701_v55 }
 0xbb7   :  { %v1781_v61 = vpop.f32.mrf.mxu1  ;;  %v1869_v1 = vpop.f32.mrf.mxu0 }
 0xbb8   :  { %v1879_v62 = vadd.f32 %v14895_v57, %v1791_v59  ;;  %v1790_v63 = vadd.f32 %v1781_v61, %v1696_v58 }
 0xbb9   :  { %v14900_v2 = vpop.f32.mrf.mxu1 }
 0xbba   :  { %v1878_v3 = vadd.f32 %v1869_v1, %v1790_v63  ;;  %v1967_v5 = vadd.f32 %v14900_v2, %v1879_v62 }
 0xbbb   :  { %v1957_v8 = vpop.f32.mrf.mxu1 }
 0xbbc   :  { %v16344_v9 = vadd.f32 %v1978_v7, %v1967_v5  ;;  %v1966_v10 = vadd.f32 %v1957_v8, %v1878_v3 }
 0xbbe   :  { %v16346_v12 = vadd.f32 %v1973_v11, %v1966_v10  ;;  %v1985_v13 = vsel %vm478_vm3, %v16344_v9, 0.0  ;;  %v1991_v14 = vmul.f32 %v16344_v9, %v16344_v9 }
 0xbbf   :  { %1986 = vadd.xlane.f32.xlu1 %v1985_v13 }
 0xbc0   :  { %v1995_v15 = vsel %vm478_vm3, %v1991_v14, 0.0  ;;  %v1990_v16 = vmul.f32 %v16346_v12, %v16346_v12  ;;  %v1982_v18 = vsel %vm478_vm3, %v16346_v12, 0.0 }
 0xbc1   :  { %1996 = vadd.xlane.f32.xlu0 %v1995_v15 }
 0xbc2   :  { %v1992_v17 = vsel %vm478_vm3, %v1990_v16, 0.0 }
 0xbc3   :  { %1993 = vadd.xlane.f32.xlu1 %v1992_v17 }
 0xbc5   :  { %1983 = vadd.xlane.f32.xlu0 %v1982_v18 }
 0xc48   :  { %v1987_v20 = vpop.xlane.xlu1 %1986 }
 0xc49   :  { %v1989_v22 = vmul.f32 0.0625, %v1987_v20 }
 0xc4a   :  { %v1997_v21 = vpop.xlane.xlu0 %1996 }
 0xc4b   :  { %v1999_v23 = vmul.f32 0.0625, %v1997_v21 }
 0xc4c   :  { %v1994_v24 = vpop.xlane.xlu1 %1993 }
 0xc4d   :  { %v2003_v4 = vsel %vm1397_vm8, %v1989_v22, %v1999_v23  ;;  %v1998_v26 = vmul.f32 0.0625, %v1994_v24 }
 0xc4e   :  { %14901 = vmatprep.subr.mxu0 %v2003_v4  ;;  %v1984_v25 = vpop.xlane.xlu0 %1983 }
 0xc4f   :  { %v1988_v27 = vmul.f32 0.0625, %v1984_v25  ;;  %14902 = vmatpush3.msra.mxu0 %v2003_v4 }
 0xc51   :  { %v2002_v28 = vsel %vm1397_vm8, %v1988_v27, %v1998_v26 }
 0xc52   :  { %14903 = vmatprep.subr.mxu0 %v2002_v28 }
 0xc53   :  { %14904 = vmatpush3.msra.mxu0 %v2002_v28 }
 0xc54   :  { %14906 = vmatmul.mubr.msk.f32.vlgmr.msra.gmra.mxu0 %vm478_vm3, %v2001_v29 }
 0xd14   :  { %v14907_v30 = vpop.f32.mrf.mxu0 }
 0xd15   :  { %v2086_v32 = vmul.f32 %v14907_v30, %v14907_v30 }
 0xd16   :  { %v2076_v33 = vpop.f32.mrf.mxu0 }
 0xd17   :  { %2091 = vrot.lane.b32.xlu0 %v2086_v32, %s16150_s26  ;;  %v2085_v34 = vmul.f32 %v2076_v33, %v2076_v33 }
 0xd19   :  { %2089 = vrot.lane.b32.xlu1 %v2085_v34, %s16150_s26 }
 0xd1b   :  { %2101 = vperm.xlu0 %15734, %v2076_v33  }
 0xd1d   :  { %2106 = vperm.xlu1 %15732, %v14907_v30  }
 0xd1f   :  { %15737 = vset.pattern.permute.xlu0 %v16149_v60 }
 0xd21   :  { %2136 = vperm.xlu1 %15732, %v2128_v35  }
 0xd25   :  { %15735 = vset.pattern.permute.xlu1 %v16149_v60 }
 0xd89   :  { %v2092_v36 = vpop.permute.xlu0 %2091 }
 0xd8a   :  { %v2096_v37 = vsub.f32 %v14907_v30, %v2092_v36 }
 0xd8b   :  { %v2090_v38 = vpop.permute.xlu1 %2089 }
 0xd8c   :  { %v2098_v39 = vmax.f32 %v2096_v37, 0.0  ;;  %v2095_v40 = vsub.f32 %v2076_v33, %v2090_v38 }
 0xd8e   :  { %v2112_v41 = vadd.f32 1e-05, %v2098_v39  ;;  %v2097_v42 = vmax.f32 %v2095_v40, 0.0  ;;  %v2209_v39 = vld [vmem:[#allocation2 + $0x1b0] sm:$0xff]  ;;  %v2207_v40 = vld [vmem:[#allocation2 + $0x1a0] sm:$0xff] }
 0xd8f   :  { %14912 = vmatprep.mubr.msk.f32.mxu1 %vm478_vm3, %v2209_v39  ;;  %14919 = vmatprep.mubr.msk.f32.mxu0 %vm478_vm3, %v2207_v40 }
 0xd90   :  { %15821 = vrsqrt.f32 %v2112_v41  ;;  %v2111_v43 = vadd.f32 1e-05, %v2097_v42 }
 0xd92   :  { %15823 = vrsqrt.f32 %v2111_v43 }
 0xd96   :  { %v2102_v51 = vpop.permute.xlu0 %2101 }
 0xd97   :  { %v2109_v54 = vsub.f32 %v16346_v12, %v2102_v51 }
 0xd98   :  { %v2107_v49 = vpop.permute.xlu1 %2106 }
 0xd99   :  { %v2110_v52 = vsub.f32 %v16344_v9, %v2107_v49  ;;  %v2655_v49 = vld [vmem:[#allocation2 + $0x178] sm:$0xff] }
 0xd9c   :  { %v2137_v50 = vpop.permute.xlu1 %2136 }
 0xd9d   :  { %v15822_v44 = vpop.eup %15821 }
 0xd9e   :  { %2122 = vperm.xlu1 %15735, %v15822_v44  }
 0xd9f   :  { %v15824_v45 = vpop.eup %15823 }
 0xda0   :  { %2117 = vperm.xlu0 %15737, %v15824_v45  }
 0xda2   :  { %15736 = vset.pattern.permute.xlu1 %v16141_v0 }
 0xda3   :  { %2131 = vperm.xlu1 %15736, %v2127_v46   ;;  %v2208_v46 = vld [vmem:[#allocation2 + $0x1a8] sm:$0xff] }
 0xda4   :  { %15738 = vset.pattern.permute.xlu0 %v16141_v0 }
 0xda5   :  { %2150 = vperm.xlu0 %15738, %v2142_v47  }
 0xda7   :  { %2145 = vperm.xlu1 %15736, %v2141_v48   ;;  %v2472_v48 = vld [vmem:[#allocation2 + $0x1d0] sm:$0xff] }
 0xe19   :  { %v2123_v53 = vpop.permute.xlu1 %2122 }
 0xe1a   :  { %v2126_v55 = vmul.f32 %v2123_v53, %v2110_v52  ;;  %v2210_v53 = vld [vmem:[#allocation2 + $0x1b8] sm:$0xff] }
 0xe1b   :  { %v2118_v56 = vpop.permute.xlu0 %2117 }
 0xe1c   :  { %v2125_v57 = vmul.f32 %v2118_v56, %v2109_v54  ;;  %v2140_v59 = vmul.f32 %v2137_v50, %v2126_v55  ;;  %v2654_v50 = vld [vmem:[#allocation2 + $0x170] sm:$0xff]  ;;  %v2381_v54 = vld [vmem:[#allocation2 + $0x1c0] sm:$0xff] }
 0xe1e   :  { %v2132_v58 = vpop.permute.xlu1 %2131 }
 0xe1f   :  { %v2139_v62 = vmul.f32 %v2132_v58, %v2125_v57  ;;  %v2382_v57 = vld [vmem:[#allocation2 + $0x1c8] sm:$0xff]  ;;  %v2563_v58 = vld [vmem:[#allocation2 + $0x1e0] sm:$0xff] }
 0xe20   :  { %v2151_v61 = vpop.permute.xlu0 %2150 }
 0xe21   :  { %v2154_v63 = vadd.f32 %v2151_v61, %v2140_v59 }
 0xe22   :  { %v2146_v1 = vpop.permute.xlu1 %2145 }
 0xe23   :  { %v2162_v2 = vand.u32 2147483647, %v2154_v63  ;;  %v2153_v3 = vadd.f32 %v2146_v1, %v2139_v62  ;;  %v2156_v4 = vmax.f32 %v2154_v63, 0.0  ;;  %vm2158_vm14 = vcmp.ne.f32.partialorder %v2154_v63, %v2154_v63  ;;  %v2473_v62 = vld [vmem:[#allocation2 + $0x1d8] sm:$0xff] }
 0xe25   :  { %v2164_v5 = vsub.f32 0.0, %v2162_v2  ;;  %v2161_v7 = vand.u32 2147483647, %v2153_v3  ;;  %v2155_v29 = vmax.f32 %v2153_v3, 0.0  ;;  %vm2157_vm15 = vcmp.ne.f32.partialorder %v2153_v3, %v2153_v3  ;;  %v2564_v2 = vld [vmem:[#allocation2 + $0x1e8] sm:$0xff] }
 0xe27   :  { %v2167_v8 = vmul.f32 1.442695, %v2164_v5  ;;  %v2163_v10 = vsub.f32 0.0, %v2161_v7 }
 0xe29   :  { %15825 = vpow2.f32 %v2167_v8  ;;  %v2165_v9 = vmul.f32 1.442695, %v2163_v10 }
 0xe2b   :  { %15827 = vpow2.f32 %v2165_v9 }
 0xe36   :  { %v15826_v11 = vpop.eup %15825 }
 0xe37   :  { %v2178_v12 = vadd.f32 1.0, %v15826_v11  ;;  %v2181_v15 = vmul.f32 -0.5, %v15826_v11  ;;  %v2184_v18 = vand.u32 2147483647, %v15826_v11 }
 0xe38   :  { %v15828_v13 = vpop.eup %15827 }
 0xe39   :  { %15829 = vlog2.f32 %v2178_v12  ;;  %v2169_v14 = vadd.f32 1.0, %v15828_v13  ;;  %v2172_v16 = vmul.f32 -0.5, %v15828_v13  ;;  %v2182_v17 = vadd.f32 1.0, %v2181_v15 }
 0xe3a   :  { %v2175_v21 = vand.u32 2147483647, %v15828_v13  ;;  %vm2185_vm12 = vcmp.lt.f32.partialorder %v2184_v18, 0.0004427343 }
 0xe3b   :  { %15831 = vlog2.f32 %v2169_v14  ;;  %v2173_v19 = vadd.f32 1.0, %v2172_v16  ;;  %v2183_v23 = vmul.f32 %v15826_v11, %v2182_v17 }
 0xe3c   :  { %vm2176_vm13 = vcmp.lt.f32.partialorder %v2175_v21, 0.0004427343 }
 0xe3d   :  { %v2174_v27 = vmul.f32 %v15828_v13, %v2173_v19 }
 0xe46   :  { %v15830_v20 = vpop.eup %15829 }
 0xe47   :  { %v2180_v22 = vmul.f32 0.6931472, %v15830_v20 }
 0xe48   :  { %v15832_v24 = vpop.eup %15831 }
 0xe49   :  { %v2186_v25 = vsel %vm2185_vm12, %v2183_v23, %v2180_v22  ;;  %v2171_v26 = vmul.f32 0.6931472, %v15832_v24 }
 0xe4a   :  { %v2188_v28 = vadd.f32 %v2186_v25, %v2156_v4 }
 0xe4b   :  { %v2177_v30 = vsel %vm2176_vm13, %v2174_v27, %v2171_v26 }
 0xe4c   :  { %v2190_v32 = vsel %vm2158_vm14, %v2154_v63, %v2188_v28  ;;  %v2187_v33 = vadd.f32 %v2177_v30, %v2155_v29  ;;  %vm3525_vm14 = vcmask 261120  }
 0xe4d   :  { %15833 = vtanh.f32 %v2190_v32  ;;  %v2686_v32 = vld [vmem:[#allocation2 + $0x160] sm:$0xff] }
 0xe4e   :  { %v2189_v34 = vsel %vm2157_vm15, %v2153_v3, %v2187_v33 }
 0xe4f   :  { %15835 = vtanh.f32 %v2189_v34 }
 0xe5a   :  { %v15834_v35 = vpop.eup %15833 }
 0xe5b   :  { %v2194_v36 = vmul.f32 %v15834_v35, %v2154_v63 }
 0xe5c   :  { %v15836_v37 = vpop.eup %15835 }
 0xe5d   :  { %2199 = vrot.lane.b32.xlu1 %v2194_v36, %s16144_s0  ;;  %v2193_v38 = vmul.f32 %v15836_v37, %v2153_v3 }
 0xe5f   :  { %2197 = vrot.lane.b32.xlu0 %v2193_v38, %s16144_s0 }
 0xecf   :  { %v2200_v41 = vpop.permute.xlu1 %2199 }
 0xed0   :  { %v2204_v42 = vsel %vm983_vm6, 0.0, %v2200_v41 }
 0xed1   :  { %v2198_v43 = vpop.permute.xlu0 %2197  ;;  %14915 = vmatprep.subr.msk.mxu0 %vm985_vm7, %v2204_v42  ;;  %v2206_v44 = vsel %vm985_vm7, %v2204_v42, 0.0 }
 0xed2   :  { %v2203_v45 = vsel %vm983_vm6, 0.0, %v2198_v43  ;;  %14916 = vmatpush3.msk.msra.mxu0 %vm985_vm7, %v2204_v42  ;;  %2215 = vrot.lane.b32.xlu1 %v2206_v44, %s16145_s1  ;;  %v2687_v43 = vld [vmem:[#allocation2 + $0x168] sm:$0xff] }
 0xed3   :  { %14917 = vmatprep.subr.msk.mxu0 %vm985_vm7, %v2203_v45  ;;  %v2205_v47 = vsel %vm985_vm7, %v2203_v45, 0.0 }
 0xed4   :  { %2213 = vrot.lane.b32.xlu0 %v2205_v47, %s16145_s1  ;;  %14918 = vmatpush3.msk.msra.mxu0 %vm985_vm7, %v2203_v45  ;;  %v2882_v45 = vld [vmem:[#allocation2 + $0x208] sm:$0xff] }
 0xed5   :  { %14920 = vmatmul.mubr.msk.f32.vlgmr.msra.gmra.mxu0 %vm478_vm3, %v2208_v46 }
 0xed6   :  { %2385 = vrot.lane.b32.xlu1 %v2206_v44, %s16146_s23  ;;  %14933 = vmatprep.mubr.msk.f32.mxu0 %vm478_vm3, %v2472_v48 }
 0xed8   :  { %2383 = vrot.lane.b32.xlu0 %v2205_v47, %s16146_s23 }
 0xeda   :  { %2476 = vrot.lane.b32.xlu1 %v2206_v44, %s16147_s24 }
 0xedc   :  { %2474 = vrot.lane.b32.xlu0 %v2205_v47, %s16147_s24 }
 0xede   :  { %2567 = vrot.lane.b32.xlu1 %v2206_v44, %s16148_s25  ;;  %v2881_v44 = vld [vmem:[#allocation2 + $0x200] sm:$0xff] }
 0xee0   :  { %2565 = vrot.lane.b32.xlu0 %v2205_v47, %s16148_s25 }
 0xee2   :  { %2663 = vperm.xlu1 %15736, %v2655_v49  }
 0xee4   :  { %2658 = vperm.xlu0 %15738, %v2654_v50   ;;  %v2813_v50 = vld [vmem:[#allocation2 + $0x190] sm:$0xff] }
 0xf44   :  { %v2216_v51 = vpop.permute.xlu1 %2215 }
 0xf45   :  { %14908 = vmatprep.subr.mxu1 %v2216_v51 }
 0xf46   :  { %v2214_v52 = vpop.permute.xlu0 %2213  ;;  %14909 = vmatpush3.msra.mxu1 %v2216_v51  ;;  %v2814_v51 = vld [vmem:[#allocation2 + $0x198] sm:$0xff] }
 0xf47   :  { %14910 = vmatprep.subr.mxu1 %v2214_v52 }
 0xf48   :  { %14911 = vmatpush3.msra.mxu1 %v2214_v52  ;;  %v2386_v55 = vpop.permute.xlu1 %2385 }
 0xf49   :  { %14913 = vmatmul.mubr.msk.f32.vlgmr.msra.gmra.mxu1 %vm478_vm3, %v2210_v53  ;;  %14922 = vmatprep.subr.mxu1 %v2386_v55 }
 0xf4a   :  { %v2384_v56 = vpop.permute.xlu0 %2383  ;;  %14923 = vmatpush3.msra.mxu1 %v2386_v55  ;;  %14926 = vmatprep.mubr.msk.f32.mxu1 %vm478_vm3, %v2381_v54 }
 0xf4b   :  { %14924 = vmatprep.subr.mxu1 %v2384_v56 }
 0xf4c   :  { %14925 = vmatpush3.msra.mxu1 %v2384_v56  ;;  %v2477_v59 = vpop.permute.xlu1 %2476 }
 0xf4d   :  { %14927 = vmatmul.mubr.msk.f32.vlgmr.msra.gmra.mxu1 %vm478_vm3, %v2382_v57  ;;  %14929 = vmatprep.subr.mxu0 %v2477_v59 }
 0xf4e   :  { %v2475_v61 = vpop.permute.xlu0 %2474  ;;  %14930 = vmatpush3.msra.mxu0 %v2477_v59  ;;  %14940 = vmatprep.mubr.msk.f32.mxu1 %vm478_vm3, %v2563_v58 }
 0xf4f   :  { %14931 = vmatprep.subr.mxu0 %v2475_v61 }
 0xf50   :  { %14932 = vmatpush3.msra.mxu0 %v2475_v61  ;;  %v2568_v63 = vpop.permute.xlu1 %2567 }
 0xf51   :  { %14934 = vmatmul.mubr.msk.f32.vlgmr.msra.gmra.mxu0 %vm478_vm3, %v2473_v62  ;;  %14936 = vmatprep.subr.mxu1 %v2568_v63 }
 0xf52   :  { %v2566_v1 = vpop.permute.xlu0 %2565  ;;  %14937 = vmatpush3.msra.mxu1 %v2568_v63  ;;  %14947 = vmatprep.mubr.msk.f32.mxu0 %vm478_vm3, %v2686_v32  ;;  %v2827_v63 = vld [vmem:[#allocation2 + $0x180] sm:$0xff] }
 0xf53   :  { %14938 = vmatprep.subr.mxu1 %v2566_v1 }
 0xf54   :  { %14939 = vmatpush3.msra.mxu1 %v2566_v1  ;;  %v2828_v1 = vld [vmem:[#allocation2 + $0x188] sm:$0xff] }
 0xf55   :  { %14941 = vmatmul.mubr.msk.f32.vlgmr.msra.gmra.mxu1 %vm478_vm3, %v2564_v2  ;;  %14950 = vmatprep.subr.mxu1 %v16322_v31  ;;  %v2884_v2 = vld [vmem:[#allocation2 + $0x1f8] sm:$0xff] }
 0xf56   :  { %14951 = vmatpush3.msra.mxu1 %v16322_v31  ;;  %14952 = vmatprep.mubr.msk.f32.mxu1 %vm1399_vm9, %v2881_v44 }
 0xf59   :  { %14953 = vmatmul.mubr.msk.f32.vlgmr.msra.gmra.mxu1 %vm1399_vm9, %v2882_v45 }
 0xf5d   :  { %v2664_v21 = vpop.permute.xlu1 %2663 }
 0xf5f   :  { %v2659_v24 = vpop.permute.xlu0 %2658 }
 0xf95   :  { %v14921_v5 = vpop.f32.mrf.mxu0 }
 0xf97   :  { %v2372_v10 = vpop.f32.mrf.mxu0 }
0x1009   :  { %v14914_v3 = vpop.f32.mrf.mxu1 }
0x100a   :  { %v2378_v8 = vadd.f32 %v14921_v5, %v14914_v3  ;;  %v2883_v3 = vld [vmem:[#allocation2 + $0x1f0] sm:$0xff]  ;;  %v2978_v5 = vld [vmem:[#allocation2 + $0x20] sm:$0xff] }
0x100b   :  { %v2291_v7 = vpop.f32.mrf.mxu1 }
0x100c   :  { %v2373_v11 = vadd.f32 %v2372_v10, %v2291_v7  ;;  %v2979_v7 = vld [vmem:[#allocation2 + $0x28] sm:$0xff] }
0x100d   :  { %v14928_v9 = vpop.f32.mrf.mxu1  ;;  %v2981_v10 = vld [vmem:[#allocation2 + $0x8] sm:$0xff] }
0x100e   :  { %v2471_v12 = vadd.f32 %v14928_v9, %v2378_v8  ;;  %v2980_v8 = vld [vmem:[#allocation2] sm:$0xff] }
0x100f   :  { %v2461_v13 = vpop.f32.mrf.mxu1  ;;  %v3034_v9 = vld [vmem:[#allocation2 + $0x60] sm:$0xff] }
0x1010   :  { %v2470_v16 = vadd.f32 %v2461_v13, %v2373_v11  ;;  %v3035_v11 = vld [vmem:[#allocation2 + $0x68] sm:$0xff] }
0x1011   :  { %v14935_v14 = vpop.f32.mrf.mxu0 }
0x1012   :  { %v2562_v17 = vadd.f32 %v14935_v14, %v2471_v12 }
0x1013   :  { %v2552_v15 = vpop.f32.mrf.mxu0 }
0x1014   :  { %v2561_v19 = vadd.f32 %v2552_v15, %v2470_v16 }
0x1015   :  { %v14942_v18 = vpop.f32.mrf.mxu1 }
0x1016   :  { %v2653_v20 = vadd.f32 %v14942_v18, %v2562_v17 }
0x1017   :  { %v2643_v22 = vpop.f32.mrf.mxu1 }
0x1018   :  { %v16400_v23 = vadd.f32 %v2664_v21, %v2653_v20  ;;  %v2652_v31 = vadd.f32 %v2643_v22, %v2561_v19 }
0x101a   :  { %v16402_v4 = vadd.f32 %v2659_v24, %v2652_v31  ;;  %v2671_v25 = vsel %vm478_vm3, %v16400_v23, 0.0  ;;  %v2677_v26 = vmul.f32 %v16400_v23, %v16400_v23 }
0x101b   :  { %2672 = vadd.xlane.f32.xlu1 %v2671_v25 }
0x101c   :  { %v2681_v27 = vsel %vm478_vm3, %v2677_v26, 0.0  ;;  %v2676_v28 = vmul.f32 %v16402_v4, %v16402_v4  ;;  %v2668_v30 = vsel %vm478_vm3, %v16402_v4, 0.0 }
0x101d   :  { %2682 = vadd.xlane.f32.xlu0 %v2681_v27 }
0x101e   :  { %v2678_v29 = vsel %vm478_vm3, %v2676_v28, 0.0 }
0x101f   :  { %2679 = vadd.xlane.f32.xlu1 %v2678_v29 }
0x1021   :  { %2669 = vadd.xlane.f32.xlu0 %v2668_v30 }
0x10a4   :  { %v2673_v33 = vpop.xlane.xlu1 %2672 }
0x10a5   :  { %v2675_v35 = vmul.f32 0.0625, %v2673_v33 }
0x10a6   :  { %v2683_v34 = vpop.xlane.xlu0 %2682 }
0x10a7   :  { %v2685_v36 = vmul.f32 0.0625, %v2683_v34 }
0x10a8   :  { %v2680_v37 = vpop.xlane.xlu1 %2679 }
0x10a9   :  { %v2689_v38 = vsel %vm1397_vm8, %v2675_v35, %v2685_v36  ;;  %v2684_v40 = vmul.f32 0.0625, %v2680_v37 }
0x10aa   :  { %v2670_v39 = vpop.xlane.xlu0 %2669  ;;  %14943 = vmatprep.subr.mxu0 %v2689_v38 }
0x10ab   :  { %v2674_v41 = vmul.f32 0.0625, %v2670_v39  ;;  %14944 = vmatpush3.msra.mxu0 %v2689_v38 }
0x10ad   :  { %v2688_v42 = vsel %vm1397_vm8, %v2674_v41, %v2684_v40 }
0x10ae   :  { %14945 = vmatprep.subr.mxu0 %v2688_v42 }
0x10af   :  { %14946 = vmatpush3.msra.mxu0 %v2688_v42 }
0x10b0   :  { %14948 = vmatmul.mubr.msk.f32.vlgmr.msra.gmra.mxu0 %vm478_vm3, %v2687_v43 }
0x1170   :  { %v14949_v46 = vpop.f32.mrf.mxu0 }
0x1171   :  { %v2772_v47 = vmul.f32 %v14949_v46, %v14949_v46 }
0x1172   :  { %v2762_v48 = vpop.f32.mrf.mxu0 }
0x1173   :  { %2777 = vrot.lane.b32.xlu1 %v2772_v47, %s16150_s26  ;;  %v2771_v49 = vmul.f32 %v2762_v48, %v2762_v48 }
0x1175   :  { %2775 = vrot.lane.b32.xlu0 %v2771_v49, %s16150_s26 }
0x1177   :  { %2787 = vperm.xlu1 %15736, %v2762_v48  }
0x1179   :  { %2792 = vperm.xlu0 %15738, %v14949_v46  }
0x117b   :  { %2817 = vperm.xlu1 %15736, %v2813_v50  }
0x117d   :  { %15739 = vset.pattern.permute.xlu0 %v16149_v60 }
0x117f   :  { %2822 = vperm.xlu1 %15736, %v2814_v51  }
0x1183   :  { %15741 = vset.pattern.permute.xlu1 %v16149_v60 }
0x11e5   :  { %v2778_v52 = vpop.permute.xlu1 %2777 }
0x11e6   :  { %v2782_v53 = vsub.f32 %v14949_v46, %v2778_v52 }
0x11e7   :  { %v2776_v54 = vpop.permute.xlu0 %2775 }
0x11e8   :  { %v2784_v55 = vmax.f32 %v2782_v53, 0.0  ;;  %v2781_v56 = vsub.f32 %v2762_v48, %v2776_v54 }
0x11ea   :  { %v2798_v57 = vadd.f32 1e-05, %v2784_v55  ;;  %v2783_v58 = vmax.f32 %v2781_v56, 0.0 }
0x11ec   :  { %15837 = vrsqrt.f32 %v2798_v57  ;;  %v2797_v59 = vadd.f32 1e-05, %v2783_v58 }
0x11ee   :  { %15839 = vrsqrt.f32 %v2797_v59 }
0x11f2   :  { %v2788_v12 = vpop.permute.xlu1 %2787 }
0x11f3   :  { %v2795_v18 = vsub.f32 %v16402_v4, %v2788_v12  ;;  %v3037_v4 = vld [vmem:[#allocation2 + $0x78] sm:$0xff] }
0x11f4   :  { %v2793_v14 = vpop.permute.xlu0 %2792 }
0x11f5   :  { %v2796_v16 = vsub.f32 %v16400_v23, %v2793_v14  ;;  %v3036_v23 = vld [vmem:[#allocation2 + $0x70] sm:$0xff] }
0x11f6   :  { %v2818_v13 = vpop.permute.xlu1 %2817 }
0x11f9   :  { %v15838_v61 = vpop.eup %15837 }
0x11fa   :  { %2808 = vperm.xlu0 %15739, %v15838_v61   ;;  %v2823_v15 = vpop.permute.xlu1 %2822 }
0x11fb   :  { %v15840_v62 = vpop.eup %15839 }
0x11fc   :  { %2803 = vperm.xlu1 %15741, %v15840_v62  }
0x11fe   :  { %15740 = vset.pattern.permute.xlu0 %v16141_v0 }
0x11ff   :  { %2831 = vperm.xlu0 %15740, %v2827_v63   ;;  %v14954_v63 = vpop.f32.mrf.mxu1 }
0x1200   :  { %15742 = vset.pattern.permute.xlu1 %v16141_v0 }
0x1201   :  { %2836 = vperm.xlu1 %15742, %v2828_v1  }
0x1203   :  { %2892 = vperm.xlu0 %15740, %v2884_v2   ;;  %v2967_v2 = vpop.f32.mrf.mxu1 }
0x1205   :  { %2887 = vperm.xlu1 %15742, %v2883_v3  }
0x1207   :  { %3012 = vperm.xlu0 %15740, %v2978_v5  }
0x1209   :  { %3017 = vperm.xlu1 %15742, %v2979_v7  }
0x120b   :  { %3024 = vperm.xlu0 %15740, %v2980_v8  }
0x120d   :  { %3029 = vperm.xlu1 %15742, %v2981_v10  }
0x1229   :  { %3199 = vxpose.xlu0.b32.start [1/2] (short) (narrow) %v3036_v23, 32 }
0x122d   :  { %3200 = vxpose.xlu0.b32.end [2/2] (short) (narrow) %v3037_v4, 32 }
0x1236   :  { %3038 = vxpose.xlu1.b32.start [1/2] (short) (narrow) %v3034_v9, 64 }
0x123a   :  { %3039 = vxpose.xlu1.b32.end [2/2] (short) (narrow) %v3035_v11, 64 }
0x1275   :  { %v2809_v17 = vpop.permute.xlu0 %2808 }
0x1276   :  { %v2812_v19 = vmul.f32 %v2809_v17, %v2796_v16 }
0x1277   :  { %v2804_v20 = vpop.permute.xlu1 %2803 }
0x1278   :  { %v2811_v21 = vmul.f32 %v2804_v20, %v2795_v18  ;;  %v2826_v24 = vmul.f32 %v2823_v15, %v2812_v19 }
0x127a   :  { %v2825_v22 = vmul.f32 %v2818_v13, %v2811_v21  ;;  %v2832_v31 = vpop.permute.xlu0 %2831 }
0x127c   :  { %v2839_v25 = vadd.f32 %v2832_v31, %v2825_v22  ;;  %v2837_v26 = vpop.permute.xlu1 %2836 }
0x127d   :  { %v2840_v27 = vadd.f32 %v2837_v26, %v2826_v24 }
0x127e   :  { %v2847_v28 = vand.u32 2147483647, %v2839_v25  ;;  %v2841_v50 = vmax.f32 %v2839_v25, 0.0  ;;  %vm2843_vm12 = vcmp.ne.f32.partialorder %v2839_v25, %v2839_v25  ;;  %v2893_v3 = vpop.permute.xlu0 %2892 }
0x127f   :  { %v2848_v29 = vand.u32 2147483647, %v2840_v27  ;;  %v2842_v54 = vmax.f32 %v2840_v27, 0.0  ;;  %vm2844_vm13 = vcmp.ne.f32.partialorder %v2840_v27, %v2840_v27  ;;  %v2973_v11 = vadd.f32 %v14954_v63, %v2893_v3 }
0x1280   :  { %v2849_v30 = vsub.f32 0.0, %v2847_v28  ;;  %v2888_v49 = vpop.permute.xlu1 %2887 }
0x1281   :  { %v2850_v32 = vsub.f32 0.0, %v2848_v29  ;;  %v2968_v10 = vadd.f32 %v2967_v2, %v2888_v49 }
0x1282   :  { %v2851_v33 = vmul.f32 1.442695, %v2849_v30 }
0x1283   :  { %v2853_v34 = vmul.f32 1.442695, %v2850_v32 }
0x1284   :  { %15841 = vpow2.f32 %v2851_v33  ;;  %v3018_v61 = vpop.permute.xlu1 %3017 }
0x1285   :  { %15843 = vpow2.f32 %v2853_v34 }
0x1288   :  { %v3030_v62 = vpop.permute.xlu1 %3029 }
0x1291   :  { %v15842_v35 = vpop.eup %15841 }
0x1292   :  { %v15844_v36 = vpop.eup %15843  ;;  %v2855_v37 = vadd.f32 1.0, %v15842_v35  ;;  %v2858_v39 = vmul.f32 -0.5, %v15842_v35  ;;  %v2861_v42 = vand.u32 2147483647, %v15842_v35 }
0x1293   :  { %v2864_v38 = vadd.f32 1.0, %v15844_v36  ;;  %v2867_v40 = vmul.f32 -0.5, %v15844_v36  ;;  %v2870_v44 = vand.u32 2147483647, %v15844_v36 }
0x1294   :  { %15845 = vlog2.f32 %v2855_v37  ;;  %v2859_v41 = vadd.f32 1.0, %v2858_v39  ;;  %vm2862_vm10 = vcmp.lt.f32.partialorder %v2861_v42, 0.0004427343  ;;  %v3013_v42 = vpop.permute.xlu0 %3012 }
0x1295   :  { %15847 = vlog2.f32 %v2864_v38  ;;  %v2868_v43 = vadd.f32 1.0, %v2867_v40  ;;  %vm2871_vm11 = vcmp.lt.f32.partialorder %v2870_v44, 0.0004427343 }
0x1296   :  { %v2860_v48 = vmul.f32 %v15842_v35, %v2859_v41 }
0x1297   :  { %v2869_v52 = vmul.f32 %v15844_v36, %v2868_v43 }
0x1298   :  { %v3025_v49 = vpop.permute.xlu0 %3024 }
0x12a1   :  { %v15846_v45 = vpop.eup %15845 }
0x12a2   :  { %v15848_v46 = vpop.eup %15847  ;;  %v2857_v47 = vmul.f32 0.6931472, %v15846_v45 }
0x12a3   :  { %v2866_v51 = vmul.f32 0.6931472, %v15848_v46 }
0x12a4   :  { %v2863_v53 = vsel %vm2862_vm10, %v2860_v48, %v2857_v47 }
0x12a5   :  { %v2873_v55 = vadd.f32 %v2863_v53, %v2841_v50  ;;  %v2872_v56 = vsel %vm2871_vm11, %v2869_v52, %v2866_v51 }
0x12a6   :  { %v2874_v57 = vadd.f32 %v2872_v56, %v2842_v54  ;;  %v3215_v54 = vpop.trf.xlu0 }
0x12a7   :  { %v2875_v58 = vsel %vm2843_vm12, %v2839_v25, %v2873_v55  ;;  %14975 = vmatprep.mubr.msk.f32.mxu1 %vm478_vm3, %v3215_v54  ;;  %v3485_v54 = vld [vmem:[#allocation2 + $0x30] sm:$0xff] }
0x12a8   :  { %15849 = vtanh.f32 %v2875_v58  ;;  %v2876_v59 = vsel %vm2844_vm13, %v2840_v27, %v2874_v57 }
0x12a9   :  { %15851 = vtanh.f32 %v2876_v59 }
0x12aa   :  { %v3216_v55 = vpop.trf.xlu0 }
0x12ae   :  { %v3217_v56 = vpop.trf.xlu0 }
0x12b2   :  { %v3054_v1 = vpop.trf.xlu1  ;;  %v3218_v57 = vpop.trf.xlu0 }
0x12b3   :  { %14959 = vmatprep.mubr.msk.f32.mxu0 %vm478_vm3, %v3054_v1 }
0x12b5   :  { %v15850_v5 = vpop.eup %15849 }
0x12b6   :  { %v15852_v7 = vpop.eup %15851  ;;  %v2879_v8 = vmul.f32 %v15850_v5, %v2839_v25  ;;  %v3055_v37 = vpop.trf.xlu1 }
0x12b7   :  { %v2880_v9 = vmul.f32 %v15852_v7, %v2840_v27 }
0x12b8   :  { %v16429_v12 = vadd.f32 %v2968_v10, %v2879_v8 }
0x12b9   :  { %v16431_v13 = vadd.f32 %v2973_v11, %v2880_v9 }
0x12ba   :  { %v2982_v14 = vsel %vm478_vm3, %v16429_v12, 0.0  ;;  %v3056_v39 = vpop.trf.xlu1 }
0x12bb   :  { %v2983_v15 = vsel %vm478_vm3, %v16431_v13, 0.0 }
0x12bc   :  { %v2984_v16 = vadd.f32 %v2983_v15, %v2982_v14 }
0x12be   :  { %v2985_v17 = vrot.slane %v2984_v16, 4  ;;  %v3057_v40 = vpop.trf.xlu1 }
0x12c0   :  { %v2986_v18 = vadd.f32 %v2985_v17, %v2984_v16 }
0x12c2   :  { %v2987_v19 = vrot.slane %v2986_v18, 2  ;;  %v3058_v45 = vpop.trf.xlu1 }
0x12c4   :  { %v2988_v20 = vadd.f32 %v2987_v19, %v2986_v18 }
0x12c6   :  { %v2989_v21 = vrot.slane %v2988_v20, 1  ;;  %v3059_v51 = vpop.trf.xlu1 }
0x12c8   :  { %v2990_v22 = vadd.f32 %v2989_v21, %v2988_v20 }
0x12ca   :  { %v2991_v31 = vmul.f32 0.0625, %v2990_v22  ;;  %v3060_v52 = vpop.trf.xlu1 }
0x12cc   :  { %v2993_v24 = vsub.f32 %v16431_v13, %v2991_v31  ;;  %v2992_v25 = vsub.f32 %v16429_v12, %v2991_v31 }
0x12ce   :  { %v2994_v26 = vmul.f32 %v2992_v25, %v2992_v25  ;;  %v2995_v27 = vmul.f32 %v2993_v24, %v2993_v24  ;;  %v3061_v53 = vpop.trf.xlu1 }
0x12d0   :  { %v2996_v28 = vsel %vm478_vm3, %v2994_v26, 0.0  ;;  %v2997_v29 = vsel %vm478_vm3, %v2995_v27, 0.0 }
0x12d1   :  { %v2998_v30 = vadd.f32 %v2997_v29, %v2996_v28 }
0x12d3   :  { %v2999_v32 = vrot.slane %v2998_v30, 4 }
0x12d5   :  { %v3000_v33 = vadd.f32 %v2999_v32, %v2998_v30 }
0x12d7   :  { %v3001_v34 = vrot.slane %v3000_v33, 2 }
0x12d9   :  { %v3002_v23 = vadd.f32 %v3001_v34, %v3000_v33 }
0x12db   :  { %v3003_v4 = vrot.slane %v3002_v23, 1 }
0x12dd   :  { %v3004_v35 = vadd.f32 %v3003_v4, %v3002_v23 }
0x12df   :  { %v3005_v36 = vmul.f32 0.0625, %v3004_v35 }
0x12e1   :  { %v3006_v38 = vadd.f32 1e-05, %v3005_v36 }
0x12e3   :  { %15853 = vrsqrt.f32 %v3006_v38 }
0x12f0   :  { %v15854_v41 = vpop.eup %15853 }
0x12f1   :  { %v3008_v43 = vmul.f32 %v15854_v41, %v2992_v25  ;;  %v3009_v44 = vmul.f32 %v15854_v41, %v2993_v24 }
0x12f3   :  { %v3020_v46 = vmul.f32 %v3013_v42, %v3008_v43  ;;  %v3021_v47 = vmul.f32 %v3018_v61, %v3009_v44 }
0x12f5   :  { %v3033_v48 = vadd.f32 %v3030_v62, %v3021_v47  ;;  %v3032_v50 = vadd.f32 %v3025_v49, %v3020_v46 }
0x12f7   :  { %14955 = vmatprep.subr.mxu0 %v3033_v48  ;;  %14971 = vmatprep.subr.mxu1 %v3033_v48 }
0x12f8   :  { %14956 = vmatpush3.msra.mxu0 %v3033_v48  ;;  %14972 = vmatpush3.msra.mxu1 %v3033_v48 }
0x12f9   :  { %14957 = vmatprep.subr.mxu0 %v3032_v50  ;;  %14973 = vmatprep.subr.mxu1 %v3032_v50 }
0x12fa   :  { %14958 = vmatpush3.msra.mxu0 %v3032_v50  ;;  %14974 = vmatpush3.msra.mxu1 %v3032_v50 }
0x12fb   :  { %14960 = vmatmul.mubr.msk.f32.vlgmr.msra.gmra.mxu0 %vm478_vm3, %v3055_v37  ;;  %14976 = vmatmul.mubr.msk.f32.vlgmr.msra.gmra.mxu1 %vm478_vm3, %v3216_v55 }
0x12fc   :  { %14962 = vmatprep.mubr.msk.f32.mxu0 %vm478_vm3, %v3056_v39  ;;  %14978 = vmatprep.mubr.msk.f32.mxu1 %vm478_vm3, %v3217_v56  ;;  %v3626_v39 = vld [vmem:[#allocation2 + $0x18] sm:$0xff] }
0x12ff   :  { %14963 = vmatmul.mubr.msk.f32.gmra.mxu0 %vm478_vm3, %v3057_v40  ;;  %14979 = vmatmul.mubr.msk.f32.gmra.mxu1 %vm478_vm3, %v3218_v57  ;;  %v3625_v40 = vld [vmem:[#allocation2 + $0x10] sm:$0xff]  ;;  %v3486_v57 = vld [vmem:[#allocation2 + $0x38] sm:$0xff] }
0x1300   :  { %14965 = vmatprep.mubr.msk.f32.mxu0 %vm478_vm3, %v3058_v45 }
0x1303   :  { %14966 = vmatmul.mubr.msk.f32.gmra.mxu0 %vm478_vm3, %v3059_v51 }
0x1304   :  { %14968 = vmatprep.mubr.msk.f32.mxu0 %vm478_vm3, %v3060_v52 }
0x1307   :  { %14969 = vmatmul.mubr.msk.f32.gmra.mxu0 %vm478_vm3, %v3061_v53 }
0x13bb   :  { %v14961_v58 = vpop.f32.mrf.mxu0  ;;  %v14977_v16 = vpop.f32.mrf.mxu1 }
0x13bc   :  { %v3329_v3 = vmul.f32 0.35355338, %v14961_v58 }
0x13bd   :  { %v3160_v59 = vpop.f32.mrf.mxu0  ;;  %v3309_v17 = vpop.f32.mrf.mxu1 }
0x13be   :  { %v3328_v8 = vmul.f32 0.35355338, %v3160_v59 }
0x13bf   :  { %v14964_v61 = vpop.f32.mrf.mxu0  ;;  %v14980_v18 = vpop.f32.mrf.mxu1 }
0x13c0   :  { %v3331_v62 = vmul.f32 0.35355338, %v14964_v61  ;;  %14981 = vmatprep.subr.msk.mxu0 %vm478_vm3, %v14980_v18 }
0x13c1   :  { %v3170_v63 = vpop.f32.mrf.mxu0  ;;  %14982 = vmatpush3.xpose.msk.msra.mxu0 %vm478_vm3, %v14980_v18  ;;  %v3319_v19 = vpop.f32.mrf.mxu1 }
0x13c2   :  { %v3330_v1 = vmul.f32 0.35355338, %v3170_v63  ;;  %14995 = vmatprep.subr.mxu1 %v3331_v62  ;;  %14983 = vmatprep.subr.msk.mxu0 %vm478_vm3, %v3319_v19 }
0x13c3   :  { %v14967_v2 = vpop.f32.mrf.mxu0  ;;  %14996 = vmatpush3.msra.mxu1 %v3331_v62  ;;  %v3487_v62 = vld [vmem:[#allocation2 + $0x40] sm:$0xff] }
0x13c4   :  { %14997 = vmatprep.subr.mxu1 %v3330_v1  ;;  %v3335_v5 = vsel %vm478_vm3, %v14967_v2, -inf }
0x13c5   :  { %3336 = vmax.xlane.f32.xlu1 %v3335_v5  ;;  %v3180_v7 = vpop.f32.mrf.mxu0  ;;  %14998 = vmatpush3.msra.mxu1 %v3330_v1  ;;  %v3488_v1 = vld [vmem:[#allocation2 + $0x48] sm:$0xff] }
0x13c6   :  { %14999 = vmatprep.subr.mxu1 %v3329_v3  ;;  %v3332_v10 = vsel %vm478_vm3, %v3180_v7, -inf  ;;  %14984 = vmatpush3.xpose.msk.msra.mxu0 %vm478_vm3, %v3319_v19 }
0x13c7   :  { %3333 = vmax.xlane.f32.xlu0 %v3332_v10  ;;  %v14970_v9 = vpop.f32.mrf.mxu0  ;;  %15000 = vmatpush3.msra.mxu1 %v3329_v3  ;;  %v3623_v10 = vld [vmem:[#allocation2 + $0x50] sm:$0xff] }
0x13c8   :  { %15001 = vmatprep.subr.mxu1 %v3328_v8  ;;  %v3341_v15 = vsel %vm478_vm3, %v14970_v9, -inf  ;;  %14985 = vmatprep.subr.msk.mxu0 %vm478_vm3, %v14977_v16 }
0x13c9   :  { %v3190_v11 = vpop.f32.mrf.mxu0  ;;  %15002 = vmatpush3.msra.mxu1 %v3328_v8 }
0x13ca   :  { %v3338_v14 = vsel %vm478_vm3, %v3190_v11, -inf  ;;  %14986 = vmatpush3.xpose.msk.msra.mxu0 %vm478_vm3, %v14977_v16  ;;  %v3624_v16 = vld [vmem:[#allocation2 + $0x58] sm:$0xff] }
0x13cb   :  { %3339 = vmax.xlane.f32.xlu0 %v3338_v14  ;;  %14987 = vmatprep.subr.msk.mxu0 %vm478_vm3, %v3309_v17 }
0x13ce   :  { %14988 = vmatpush3.xpose.msk.msra.mxu0 %vm478_vm3, %v3309_v17 }
0x13cf   :  { %3342 = vmax.xlane.f32.xlu0 %v3341_v15 }
0x144e   :  { %v3337_v20 = vpop.xlane.xlu1 %3336 }
0x144f   :  { %v3345_v21 = vsub.f32 %v14967_v2, %v3337_v20 }
0x1450   :  { %v3334_v22 = vpop.xlane.xlu0 %3333 }
0x1451   :  { %v3350_v31 = vmul.f32 1.442695, %v3345_v21  ;;  %v3344_v24 = vsub.f32 %v3180_v7, %v3334_v22 }
0x1453   :  { %15855 = vpow2.f32 %v3350_v31  ;;  %v3348_v25 = vmul.f32 1.442695, %v3344_v24 }
0x1454   :  { %v3340_v26 = vpop.xlane.xlu0 %3339 }
0x1455   :  { %15857 = vpow2.f32 %v3348_v25  ;;  %v3346_v27 = vsub.f32 %v3190_v11, %v3340_v26  ;;  %v3732_v25 = vld [vmem:[#allocation2 + $0x250] sm:$0xff] }
0x1457   :  { %v3352_v28 = vmul.f32 1.442695, %v3346_v27 }
0x1458   :  { %v3343_v29 = vpop.xlane.xlu0 %3342 }
0x1459   :  { %15859 = vpow2.f32 %v3352_v28  ;;  %v3347_v30 = vsub.f32 %v14970_v9, %v3343_v29  ;;  %v3734_v28 = vld [vmem:[#allocation2 + $0x260] sm:$0xff] }
0x145b   :  { %v3354_v32 = vmul.f32 1.442695, %v3347_v30  ;;  %v3733_v30 = vld [vmem:[#allocation2 + $0x258] sm:$0xff] }
0x145d   :  { %15861 = vpow2.f32 %v3354_v32 }
0x1460   :  { %v15856_v33 = vpop.eup %15855 }
0x1461   :  { %v3359_v34 = vsel %vm478_vm3, %v15856_v33, 0.0 }
0x1462   :  { %v15858_v23 = vpop.eup %15857  ;;  %3360 = vadd.xlane.f32.xlu0 %v3359_v34  ;;  %v4180_v34 = vld [vmem:[#allocation2 + $0x228] sm:$0xff] }
0x1463   :  { %v3356_v4 = vsel %vm478_vm3, %v15858_v23, 0.0 }
0x1466   :  { %v15860_v35 = vpop.eup %15859  ;;  %3357 = vadd.xlane.f32.xlu0 %v3356_v4 }
0x1467   :  { %v3362_v36 = vsel %vm478_vm3, %v15860_v35, 0.0 }
0x146a   :  { %v15862_v37 = vpop.eup %15861  ;;  %3363 = vadd.xlane.f32.xlu0 %v3362_v36 }
0x146b   :  { %v3365_v38 = vsel %vm478_vm3, %v15862_v37, 0.0 }
0x146c   :  { %3366 = vadd.xlane.f32.xlu1 %v3365_v38  ;;  %v3735_v38 = vld [vmem:[#allocation2 + $0x268] sm:$0xff] }
0x147d   :  { %3634 = vperm.xlu1 %15742, %v3626_v39   ;;  %v3906_v39 = vld [vmem:[#allocation2 + $0x270] sm:$0xff] }
0x1481   :  { %3629 = vperm.xlu1 %15742, %v3625_v40  }
0x14eb   :  { %v3361_v41 = vpop.xlane.xlu0 %3360 }
0x14ec   :  { %15863 = vrcp.f32 %v3361_v41  ;;  %v3907_v41 = vld [vmem:[#allocation2 + $0x278] sm:$0xff] }
0x14ef   :  { %v3358_v42 = vpop.xlane.xlu0 %3357 }
0x14f0   :  { %15865 = vrcp.f32 %v3358_v42  ;;  %v4088_v42 = vld [vmem:[#allocation2 + $0x290] sm:$0xff] }
0x14f3   :  { %v3364_v43 = vpop.xlane.xlu0 %3363 }
0x14f4   :  { %15867 = vrcp.f32 %v3364_v43 }
0x14f5   :  { %v3367_v44 = vpop.xlane.xlu1 %3366 }
0x14f6   :  { %15869 = vrcp.f32 %v3367_v44  ;;  %v3998_v44 = vld [vmem:[#allocation2 + $0x288] sm:$0xff] }
0x14f9   :  { %v15864_v45 = vpop.eup %15863  ;;  %v3635_v17 = vpop.permute.xlu1 %3634 }
0x14fa   :  { %v3371_v48 = vmul.f32 %v15864_v45, %v15856_v33  ;;  %v3997_v33 = vld [vmem:[#allocation2 + $0x280] sm:$0xff] }
0x14fd   :  { %v15866_v46 = vpop.eup %15865  ;;  %v3630_v20 = vpop.permute.xlu1 %3629 }
0x14fe   :  { %v3369_v47 = vmul.f32 %v15866_v46, %v15858_v23  ;;  %v4179_v23 = vld [vmem:[#allocation2 + $0x220] sm:$0xff] }
0x1500   :  { %14989 = vmatprep.mubr.msk.f32.mxu0 %vm478_vm3, %v3369_v47  ;;  %v4089_v47 = vld [vmem:[#allocation2 + $0x298] sm:$0xff] }
0x1501   :  { %v15868_v49 = vpop.eup %15867  ;;  %14990 = vmatmul.mubr.msk.f32.vlgmr.msra.gmra.mxu0 %vm478_vm3, %v3371_v48 }
0x1502   :  { %v3373_v50 = vmul.f32 %v15868_v49, %v15860_v35 }
0x1503   :  { %v15870_v51 = vpop.eup %15869 }
0x1504   :  { %14992 = vmatprep.mubr.msk.f32.mxu0 %vm478_vm3, %v3373_v50  ;;  %v3375_v52 = vmul.f32 %v15870_v51, %v15862_v37 }
0x1506   :  { %14993 = vmatmul.mubr.msk.f32.gmra.mxu0 %vm478_vm3, %v3375_v52 }
0x1507   :  { %15031 = vmatprep.mubr.msk.f32.mxu0 %vm478_vm3, %v3732_v25 }
0x15c1   :  { %v14991_v53 = vpop.f32.mrf.mxu0 }
0x15c2   :  { %v3490_v59 = vmul.f32 %v14991_v53, %v3486_v57 }
0x15c3   :  { %v3466_v55 = vpop.f32.mrf.mxu0 }
0x15c4   :  { %v3489_v56 = vmul.f32 %v3485_v54, %v3466_v55 }
0x15c6   :  { %3493 = vxpose.xlu0.b32.start [1/4] (short) (narrow) %v3489_v56, 32  ;;  %v14994_v58 = vpop.f32.mrf.mxu0 }
0x15c7   :  { %v3492_v2 = vmul.f32 %v14994_v58, %v3488_v1 }
0x15c8   :  { %v3476_v61 = vpop.f32.mrf.mxu0 }
0x15c9   :  { %v3491_v63 = vmul.f32 %v3487_v62, %v3476_v61 }
0x15ca   :  { %3494 = vxpose.xlu0.b32.cont [2/4] (short) (narrow) %v3490_v59, 32 }
0x15ce   :  { %3495 = vxpose.xlu0.b32.cont [3/4] (short) (narrow) %v3491_v63, 32 }
0x15d2   :  { %3496 = vxpose.xlu0.b32.end [4/4] (short) (narrow) %v3492_v2, 32 }
0x1642   :  { %v3509_v3 = vpop.trf.xlu0 }
0x1643   :  { %15003 = vmatprep.mubr.msk.f32.mxu1 %vm3525_vm14, %v3509_v3 }
0x1646   :  { %v3510_v5 = vpop.trf.xlu0 }
0x1647   :  { %15004 = vmatmul.mubr.msk.f32.vlgmr.msra.gmra.mxu1 %vm3525_vm14, %v3510_v5 }
0x164a   :  { %v3511_v7 = vpop.trf.xlu0 }
0x164b   :  { %15006 = vmatprep.mubr.msk.f32.mxu1 %vm3525_vm14, %v3511_v7 }
0x164e   :  { %v3512_v8 = vpop.trf.xlu0 }
0x164f   :  { %15007 = vmatmul.mubr.msk.f32.gmra.mxu1 %vm3525_vm14, %v3512_v8 }
0x1650   :  { %15017 = vmatprep.mubr.msk.f32.mxu1 %vm3525_vm14, %v3623_v10 }
0x1707   :  { %v15005_v9 = vpop.f32.mrf.mxu1 }
0x1709   :  { %v3604_v11 = vpop.f32.mrf.mxu1 }
0x170f   :  { %v15008_v14 = vpop.f32.mrf.mxu1 }
0x1710   :  { %15009 = vmatprep.subr.mxu1 %v15008_v14 }
0x1711   :  { %v3614_v15 = vpop.f32.mrf.mxu1  ;;  %15010 = vmatpush3.msra.mxu1 %v15008_v14 }
0x1712   :  { %15011 = vmatprep.subr.mxu1 %v3614_v15 }
0x1713   :  { %15012 = vmatpush3.msra.mxu1 %v3614_v15 }
0x1714   :  { %15013 = vmatprep.subr.mxu1 %v15005_v9 }
0x1715   :  { %15014 = vmatpush3.msra.mxu1 %v15005_v9 }
0x1716   :  { %15015 = vmatprep.subr.mxu1 %v3604_v11 }
0x1717   :  { %15016 = vmatpush3.msra.mxu1 %v3604_v11 }
0x1718   :  { %15018 = vmatmul.mubr.msk.f32.vlgmr.msra.gmra.mxu1 %vm3525_vm14, %v3624_v16 }
0x1719   :  { %15024 = vmatprep.mubr.msk.f32.mxu1 %vm478_vm3, %v3734_v28 }
0x17d8   :  { %v15019_v18 = vpop.f32.mrf.mxu1 }
0x17d9   :  { %v3715_v19 = vadd.f32 %v15019_v18, %v3635_v17  ;;  %v4211_v18 = vld [vmem:[#allocation2 + $0x210] sm:$0xff] }
0x17da   :  { %v3709_v21 = vpop.f32.mrf.mxu1 }
0x17db   :  { %v16479_v22 = vadd.f32 %v3715_v19, %v16431_v13  ;;  %v3710_v31 = vadd.f32 %v3709_v21, %v3630_v20 }
0x17dd   :  { %3724 = vrot.lane.b32.xlu1 %v16479_v22, %s16144_s0  ;;  %v16484_v24 = vadd.f32 %v3710_v31, %v16429_v12 }
0x17e1   :  { %3722 = vrot.lane.b32.xlu1 %v16484_v24, %s16144_s0 }
0x184f   :  { %v3725_v26 = vpop.permute.xlu1 %3724 }
0x1850   :  { %v3729_v27 = vsel %vm983_vm6, 0.0, %v3725_v26 }
0x1851   :  { %15027 = vmatprep.subr.msk.mxu0 %vm985_vm7, %v3729_v27  ;;  %v3731_v13 = vsel %vm985_vm7, %v3729_v27, 0.0 }
0x1852   :  { %15028 = vmatpush3.msk.msra.mxu0 %vm985_vm7, %v3729_v27  ;;  %3740 = vrot.lane.b32.xlu1 %v3731_v13, %s16145_s1 }
0x1853   :  { %v3723_v12 = vpop.permute.xlu1 %3722 }
0x1854   :  { %v3728_v29 = vsel %vm983_vm6, 0.0, %v3723_v12 }
0x1855   :  { %15029 = vmatprep.subr.msk.mxu0 %vm985_vm7, %v3728_v29  ;;  %v3730_v32 = vsel %vm985_vm7, %v3728_v29, 0.0 }
0x1856   :  { %3910 = vrot.lane.b32.xlu1 %v3731_v13, %s16146_s23  ;;  %15030 = vmatpush3.msk.msra.mxu0 %vm985_vm7, %v3728_v29  ;;  %v4212_v29 = vld [vmem:[#allocation2 + $0x218] sm:$0xff] }
0x1857   :  { %4090 = vrot.lane.b32.xlu0 %v3730_v32, %s16148_s25  ;;  %15032 = vmatmul.mubr.msk.f32.vlgmr.msra.gmra.mxu0 %vm478_vm3, %v3733_v30 }
0x1858   :  { %15045 = vmatprep.mubr.msk.f32.mxu0 %vm478_vm3, %v3997_v33 }
0x185a   :  { %4001 = vrot.lane.b32.xlu1 %v3731_v13, %s16147_s24 }
0x185e   :  { %3738 = vrot.lane.b32.xlu1 %v3730_v32, %s16145_s1 }
0x1862   :  { %3908 = vrot.lane.b32.xlu1 %v3730_v32, %s16146_s23 }
0x1866   :  { %3999 = vrot.lane.b32.xlu1 %v3730_v32, %s16147_s24 }
0x186a   :  { %4092 = vrot.lane.b32.xlu1 %v3731_v13, %s16148_s25 }
0x186e   :  { %4188 = vperm.xlu1 %15742, %v4180_v34   ;;  %v4353_v34 = vld [vmem:[#allocation2 + $0x238] sm:$0xff] }
0x1872   :  { %4183 = vperm.xlu1 %15742, %v4179_v23  }
0x18c4   :  { %v3741_v4 = vpop.permute.xlu1 %3740 }
0x18c5   :  { %15020 = vmatprep.subr.mxu1 %v3741_v4 }
0x18c6   :  { %15021 = vmatpush3.msra.mxu1 %v3741_v4  ;;  %v4339_v4 = vld [vmem:[#allocation2 + $0x248] sm:$0xff] }
0x18c8   :  { %v3911_v35 = vpop.permute.xlu1 %3910 }
0x18c9   :  { %v4091_v46 = vpop.permute.xlu0 %4090 }
0x18cc   :  { %v4002_v36 = vpop.permute.xlu1 %4001 }
0x18cd   :  { %15041 = vmatprep.subr.mxu0 %v4002_v36 }
0x18ce   :  { %15042 = vmatpush3.msra.mxu0 %v4002_v36 }
0x18d0   :  { %v3739_v37 = vpop.permute.xlu1 %3738 }
0x18d1   :  { %15022 = vmatprep.subr.mxu1 %v3739_v37 }
0x18d2   :  { %15023 = vmatpush3.msra.mxu1 %v3739_v37 }
0x18d3   :  { %15034 = vmatprep.subr.mxu1 %v3911_v35  ;;  %15025 = vmatmul.mubr.msk.f32.vlgmr.msra.gmra.mxu1 %vm478_vm3, %v3735_v38 }
0x18d4   :  { %15035 = vmatpush3.msra.mxu1 %v3911_v35  ;;  %v3909_v40 = vpop.permute.xlu1 %3908  ;;  %15038 = vmatprep.mubr.msk.f32.mxu1 %vm478_vm3, %v3906_v39  ;;  %v4338_v35 = vld [vmem:[#allocation2 + $0x240] sm:$0xff] }
0x18d5   :  { %15036 = vmatprep.subr.mxu1 %v3909_v40 }
0x18d6   :  { %15037 = vmatpush3.msra.mxu1 %v3909_v40 }
0x18d7   :  { %15039 = vmatmul.mubr.msk.f32.vlgmr.msra.gmra.mxu1 %vm478_vm3, %v3907_v41 }
0x18d8   :  { %v4000_v43 = vpop.permute.xlu1 %3999  ;;  %15052 = vmatprep.mubr.msk.f32.mxu1 %vm478_vm3, %v4088_v42 }
0x18d9   :  { %15043 = vmatprep.subr.mxu0 %v4000_v43 }
0x18da   :  { %15044 = vmatpush3.msra.mxu0 %v4000_v43 }
0x18db   :  { %15046 = vmatmul.mubr.msk.f32.vlgmr.msra.gmra.mxu0 %vm478_vm3, %v3998_v44 }
0x18dc   :  { %v4093_v45 = vpop.permute.xlu1 %4092  ;;  %15059 = vmatprep.mubr.msk.f32.mxu0 %vm478_vm3, %v4211_v18 }
0x18dd   :  { %15048 = vmatprep.subr.mxu1 %v4093_v45 }
0x18de   :  { %15049 = vmatpush3.msra.mxu1 %v4093_v45 }
0x18df   :  { %15050 = vmatprep.subr.mxu1 %v4091_v46 }
0x18e0   :  { %15051 = vmatpush3.msra.mxu1 %v4091_v46  ;;  %v4352_v46 = vld [vmem:[#allocation2 + $0x230] sm:$0xff] }
0x18e1   :  { %15053 = vmatmul.mubr.msk.f32.vlgmr.msra.gmra.mxu1 %vm478_vm3, %v4089_v47 }
0x18e9   :  { %v4189_v59 = vpop.permute.xlu1 %4188 }
0x18ed   :  { %v4184_v8 = vpop.permute.xlu1 %4183 }
0x1917   :  { %v15033_v49 = vpop.f32.mrf.mxu0 }
0x1919   :  { %v3897_v51 = vpop.f32.mrf.mxu0 }
0x1993   :  { %v15026_v48 = vpop.f32.mrf.mxu1 }
0x1994   :  { %v3903_v53 = vadd.f32 %v15033_v49, %v15026_v48 }
0x1995   :  { %v3816_v50 = vpop.f32.mrf.mxu1 }
0x1996   :  { %v3898_v54 = vadd.f32 %v3897_v51, %v3816_v50 }
0x1997   :  { %v15040_v52 = vpop.f32.mrf.mxu1 }
0x1998   :  { %v3996_v57 = vadd.f32 %v15040_v52, %v3903_v53 }
0x1999   :  { %v3986_v55 = vpop.f32.mrf.mxu1 }
0x199a   :  { %v3995_v58 = vadd.f32 %v3986_v55, %v3898_v54 }
0x199b   :  { %v15047_v56 = vpop.f32.mrf.mxu0 }
0x199c   :  { %v4087_v62 = vadd.f32 %v15047_v56, %v3996_v57 }
0x199d   :  { %v4077_v61 = vpop.f32.mrf.mxu0 }
0x199e   :  { %v4086_v1 = vadd.f32 %v4077_v61, %v3995_v58 }
0x19a1   :  { %v15054_v63 = vpop.f32.mrf.mxu1 }
0x19a2   :  { %v4178_v2 = vadd.f32 %v15054_v63, %v4087_v62 }
0x19a3   :  { %v4168_v3 = vpop.f32.mrf.mxu1 }
0x19a4   :  { %v16514_v5 = vadd.f32 %v4189_v59, %v4178_v2  ;;  %v4177_v7 = vadd.f32 %v4168_v3, %v4086_v1 }
0x19a6   :  { %v16516_v10 = vadd.f32 %v4184_v8, %v4177_v7  ;;  %v4196_v9 = vsel %vm478_vm3, %v16514_v5, 0.0  ;;  %v4202_v11 = vmul.f32 %v16514_v5, %v16514_v5 }
0x19a7   :  { %4197 = vadd.xlane.f32.xlu1 %v4196_v9 }
0x19a8   :  { %v4206_v14 = vsel %vm478_vm3, %v4202_v11, 0.0  ;;  %v4193_v15 = vsel %vm478_vm3, %v16516_v10, 0.0  ;;  %v4201_v16 = vmul.f32 %v16516_v10, %v16516_v10 }
0x19a9   :  { %4207 = vadd.xlane.f32.xlu0 %v4206_v14 }
0x19aa   :  { %v4203_v17 = vsel %vm478_vm3, %v4201_v16, 0.0 }
0x19ab   :  { %4194 = vadd.xlane.f32.xlu1 %v4193_v15 }
0x19af   :  { %4204 = vadd.xlane.f32.xlu1 %v4203_v17 }
0x1a30   :  { %v4198_v19 = vpop.xlane.xlu1 %4197 }
0x1a31   :  { %v4200_v21 = vmul.f32 0.0625, %v4198_v19 }
0x1a32   :  { %v4208_v20 = vpop.xlane.xlu0 %4207 }
0x1a33   :  { %v4210_v31 = vmul.f32 0.0625, %v4208_v20 }
0x1a34   :  { %v4195_v25 = vpop.xlane.xlu1 %4194 }
0x1a35   :  { %v4214_v26 = vsel %vm1397_vm8, %v4200_v21, %v4210_v31  ;;  %v4199_v13 = vmul.f32 0.0625, %v4195_v25 }
0x1a36   :  { %15055 = vmatprep.subr.mxu0 %v4214_v26 }
0x1a37   :  { %15056 = vmatpush3.msra.mxu0 %v4214_v26 }
0x1a38   :  { %v4205_v27 = vpop.xlane.xlu1 %4204 }
0x1a39   :  { %v4209_v28 = vmul.f32 0.0625, %v4205_v27 }
0x1a3b   :  { %v4213_v12 = vsel %vm1397_vm8, %v4199_v13, %v4209_v28 }
0x1a3c   :  { %15057 = vmatprep.subr.mxu0 %v4213_v12 }
0x1a3d   :  { %15058 = vmatpush3.msra.mxu0 %v4213_v12 }
0x1a3e   :  { %15060 = vmatmul.mubr.msk.f32.vlgmr.msra.gmra.mxu0 %vm478_vm3, %v4212_v29 }
0x1afe   :  { %v15061_v30 = vpop.f32.mrf.mxu0 }
0x1aff   :  { %v4297_v32 = vmul.f32 %v15061_v30, %v15061_v30  ;;  %4317 = vperm.xlu0 %15740, %v15061_v30  }
0x1b00   :  { %v4287_v33 = vpop.f32.mrf.mxu0 }
0x1b01   :  { %4302 = vrot.lane.b32.xlu1 %v4297_v32, %s16150_s26  ;;  %v4296_v23 = vmul.f32 %v4287_v33, %v4287_v33 }
0x1b03   :  { %4361 = vperm.xlu0 %15740, %v4353_v34  }
0x1b05   :  { %4300 = vrot.lane.b32.xlu1 %v4296_v23, %s16150_s26 }
0x1b09   :  { %4312 = vperm.xlu1 %15742, %v4287_v33  }
0x1b0d   :  { %4347 = vperm.xlu1 %15742, %v4339_v4  }
0x1b11   :  { %4342 = vperm.xlu1 %15742, %v4338_v35  }
0x1b15   :  { %15743 = vset.pattern.permute.xlu1 %v16149_v60 }
0x1b73   :  { %v4303_v36 = vpop.permute.xlu1 %4302 }
0x1b74   :  { %v4307_v37 = vsub.f32 %v15061_v30, %v4303_v36 }
0x1b76   :  { %v4309_v38 = vmax.f32 %v4307_v37, 0.0 }
0x1b77   :  { %v4301_v39 = vpop.permute.xlu1 %4300 }
0x1b78   :  { %v4323_v40 = vadd.f32 1e-05, %v4309_v38  ;;  %v4306_v41 = vsub.f32 %v4287_v33, %v4301_v39  ;;  %v4420_v38 = vld [vmem:[#allocation2 + $0x2f0] sm:$0xff]  ;;  %v4418_v39 = vld [vmem:[#allocation2 + $0x2e0] sm:$0xff] }
0x1b79   :  { %15066 = vmatprep.mubr.msk.f32.mxu1 %vm478_vm3, %v4420_v38  ;;  %15073 = vmatprep.mubr.msk.f32.mxu0 %vm478_vm3, %v4418_v39 }
0x1b7a   :  { %15871 = vrsqrt.f32 %v4323_v40  ;;  %v4308_v42 = vmax.f32 %v4306_v41, 0.0  ;;  %v4318_v49 = vpop.permute.xlu0 %4317 }
0x1b7b   :  { %v4321_v51 = vsub.f32 %v16514_v5, %v4318_v49  ;;  %v4865_v49 = vld [vmem:[#allocation2 + $0x2b0] sm:$0xff] }
0x1b7c   :  { %v4322_v43 = vadd.f32 1e-05, %v4308_v42 }
0x1b7e   :  { %15873 = vrsqrt.f32 %v4322_v43  ;;  %v4362_v56 = vpop.permute.xlu0 %4361 }
0x1b84   :  { %v4313_v47 = vpop.permute.xlu1 %4312 }
0x1b85   :  { %v4320_v54 = vsub.f32 %v16516_v10, %v4313_v47  ;;  %v4683_v47 = vld [vmem:[#allocation2 + $0x310] sm:$0xff] }
0x1b87   :  { %v15872_v44 = vpop.eup %15871 }
0x1b88   :  { %4333 = vperm.xlu1 %15743, %v15872_v44   ;;  %v4348_v48 = vpop.permute.xlu1 %4347 }
0x1b8b   :  { %v15874_v45 = vpop.eup %15873 }
0x1b8c   :  { %4328 = vperm.xlu1 %15743, %v15874_v45   ;;  %v4343_v50 = vpop.permute.xlu1 %4342  ;;  %v4419_v45 = vld [vmem:[#allocation2 + $0x2e8] sm:$0xff] }
0x1b90   :  { %15744 = vset.pattern.permute.xlu1 %v16141_v0 }
0x1b91   :  { %4356 = vperm.xlu1 %15744, %v4352_v46  }
0x1c03   :  { %v4334_v52 = vpop.permute.xlu1 %4333 }
0x1c04   :  { %v4337_v53 = vmul.f32 %v4334_v52, %v4321_v51 }
0x1c06   :  { %v4351_v55 = vmul.f32 %v4348_v48, %v4337_v53  ;;  %v4866_v48 = vld [vmem:[#allocation2 + $0x2b8] sm:$0xff] }
0x1c07   :  { %v4329_v57 = vpop.permute.xlu1 %4328  ;;  %v4421_v53 = vld [vmem:[#allocation2 + $0x2f8] sm:$0xff] }
0x1c08   :  { %v4365_v58 = vadd.f32 %v4362_v56, %v4351_v55  ;;  %v4336_v59 = vmul.f32 %v4329_v57, %v4320_v54  ;;  %v4592_v55 = vld [vmem:[#allocation2 + $0x300] sm:$0xff]  ;;  %v4593_v57 = vld [vmem:[#allocation2 + $0x308] sm:$0xff] }
0x1c0a   :  { %v4373_v61 = vand.u32 2147483647, %v4365_v58  ;;  %v4350_v62 = vmul.f32 %v4343_v50, %v4336_v59  ;;  %v4367_v31 = vmax.f32 %v4365_v58, 0.0  ;;  %vm4369_vm10 = vcmp.ne.f32.partialorder %v4365_v58, %v4365_v58 }
0x1c0c   :  { %v4375_v63 = vsub.f32 0.0, %v4373_v61  ;;  %v4357_v1 = vpop.permute.xlu1 %4356 }
0x1c0d   :  { %v4364_v2 = vadd.f32 %v4357_v1, %v4350_v62  ;;  %v4684_v62 = vld [vmem:[#allocation2 + $0x318] sm:$0xff]  ;;  %v4775_v1 = vld [vmem:[#allocation2 + $0x328] sm:$0xff] }
0x1c0e   :  { %v4378_v3 = vmul.f32 1.442695, %v4375_v63 }
0x1c0f   :  { %v4372_v7 = vand.u32 2147483647, %v4364_v2  ;;  %v4366_v32 = vmax.f32 %v4364_v2, 0.0  ;;  %vm4368_vm12 = vcmp.ne.f32.partialorder %v4364_v2, %v4364_v2 }
0x1c10   :  { %15875 = vpow2.f32 %v4378_v3 }
0x1c11   :  { %v4374_v8 = vsub.f32 0.0, %v4372_v7 }
0x1c13   :  { %v4376_v9 = vmul.f32 1.442695, %v4374_v8 }
0x1c15   :  { %15877 = vpow2.f32 %v4376_v9 }
0x1c1d   :  { %v15876_v5 = vpop.eup %15875 }
0x1c1e   :  { %v4389_v11 = vadd.f32 1.0, %v15876_v5  ;;  %v4392_v15 = vmul.f32 -0.5, %v15876_v5  ;;  %v4395_v17 = vand.u32 2147483647, %v15876_v5 }
0x1c20   :  { %15879 = vlog2.f32 %v4389_v11  ;;  %v4393_v16 = vadd.f32 1.0, %v4392_v15  ;;  %vm4396_vm15 = vcmp.lt.f32.partialorder %v4395_v17, 0.0004427343 }
0x1c22   :  { %v15878_v10 = vpop.eup %15877  ;;  %v4394_v21 = vmul.f32 %v15876_v5, %v4393_v16 }
0x1c23   :  { %v4380_v14 = vadd.f32 1.0, %v15878_v10  ;;  %v4383_v18 = vmul.f32 -0.5, %v15878_v10  ;;  %v4386_v27 = vand.u32 2147483647, %v15878_v10 }
0x1c25   :  { %15881 = vlog2.f32 %v4380_v14  ;;  %v4384_v25 = vadd.f32 1.0, %v4383_v18  ;;  %vm4387_vm11 = vcmp.lt.f32.partialorder %v4386_v27, 0.0004427343 }
0x1c27   :  { %v4385_v30 = vmul.f32 %v15878_v10, %v4384_v25 }
0x1c2d   :  { %v15880_v19 = vpop.eup %15879 }
0x1c2e   :  { %v4391_v20 = vmul.f32 0.6931472, %v15880_v19 }
0x1c30   :  { %v4397_v26 = vsel %vm4396_vm15, %v4394_v21, %v4391_v20 }
0x1c31   :  { %v4399_v13 = vadd.f32 %v4397_v26, %v4367_v31 }
0x1c32   :  { %v15882_v28 = vpop.eup %15881 }
0x1c33   :  { %v4401_v12 = vsel %vm4369_vm10, %v4365_v58, %v4399_v13  ;;  %v4382_v29 = vmul.f32 0.6931472, %v15882_v28 }
0x1c34   :  { %15883 = vtanh.f32 %v4401_v12 }
0x1c35   :  { %v4388_v33 = vsel %vm4387_vm11, %v4385_v30, %v4382_v29 }
0x1c36   :  { %v4398_v34 = vadd.f32 %v4388_v33, %v4366_v32 }
0x1c38   :  { %v4400_v23 = vsel %vm4368_vm12, %v4364_v2, %v4398_v34  ;;  %vm17390_vm12 = vcmask 138240  }
0x1c39   :  { %15885 = vtanh.f32 %v4400_v23  ;;  %v4897_v23 = vld [vmem:[#allocation2 + $0x2a0] sm:$0xff] }
0x1c41   :  { %v15884_v4 = vpop.eup %15883 }
0x1c42   :  { %v4405_v35 = vmul.f32 %v15884_v4, %v4365_v58  ;;  %v4774_v58 = vld [vmem:[#allocation2 + $0x320] sm:$0xff] }
0x1c44   :  { %4410 = vrot.lane.b32.xlu0 %v4405_v35, %s16144_s0 }
0x1c46   :  { %v15886_v36 = vpop.eup %15885 }
0x1c47   :  { %v4404_v37 = vmul.f32 %v15886_v36, %v4364_v2 }
0x1c49   :  { %4408 = vrot.lane.b32.xlu1 %v4404_v37, %s16144_s0 }
0x1cb6   :  { %v4411_v40 = vpop.permute.xlu0 %4410 }
0x1cb7   :  { %v4415_v41 = vsel %vm983_vm6, 0.0, %v4411_v40 }
0x1cb8   :  { %v4417_v42 = vsel %vm985_vm7, %v4415_v41, 0.0  ;;  %15069 = vmatprep.subr.msk.mxu0 %vm985_vm7, %v4415_v41 }
0x1cb9   :  { %15070 = vmatpush3.msk.msra.mxu0 %vm985_vm7, %v4415_v41  ;;  %4426 = vrot.lane.b32.xlu0 %v4417_v42, %s16145_s1 }
0x1cbb   :  { %v4409_v43 = vpop.permute.xlu1 %4408 }
0x1cbc   :  { %v4414_v44 = vsel %vm983_vm6, 0.0, %v4409_v43 }
0x1cbd   :  { %4596 = vrot.lane.b32.xlu0 %v4417_v42, %s16146_s23  ;;  %15071 = vmatprep.subr.msk.mxu0 %vm985_vm7, %v4414_v44  ;;  %v4416_v46 = vsel %vm985_vm7, %v4414_v44, 0.0 }
0x1cbe   :  { %15072 = vmatpush3.msk.msra.mxu0 %vm985_vm7, %v4414_v44  ;;  %4424 = vrot.lane.b32.xlu1 %v4416_v46, %s16145_s1  ;;  %v4898_v44 = vld [vmem:[#allocation2 + $0x2a8] sm:$0xff] }
0x1cbf   :  { %15074 = vmatmul.mubr.msk.f32.vlgmr.msra.gmra.mxu0 %vm478_vm3, %v4419_v45 }
0x1cc0   :  { %15087 = vmatprep.mubr.msk.f32.mxu0 %vm478_vm3, %v4683_v47 }
0x1cc1   :  { %4687 = vrot.lane.b32.xlu0 %v4417_v42, %s16147_s24 }
0x1cc2   :  { %4594 = vrot.lane.b32.xlu1 %v4416_v46, %s16146_s23 }
0x1cc5   :  { %4778 = vrot.lane.b32.xlu0 %v4417_v42, %s16148_s25 }
0x1cc6   :  { %4685 = vrot.lane.b32.xlu1 %v4416_v46, %s16147_s24 }
0x1cc9   :  { %4874 = vperm.xlu0 %15740, %v4866_v48  }
0x1cca   :  { %4776 = vrot.lane.b32.xlu1 %v4416_v46, %s16148_s25 }
0x1ccd   :  { %15745 = vset.pattern.permute.xlu0 %v16149_v60 }
0x1cce   :  { %4869 = vperm.xlu1 %15744, %v4865_v49   ;;  %v5025_v49 = vld [vmem:[#allocation2 + $0x2d8] sm:$0xff] }
0x1d2b   :  { %v4427_v50 = vpop.permute.xlu0 %4426 }
0x1d2c   :  { %15062 = vmatprep.subr.mxu1 %v4427_v50 }
0x1d2d   :  { %15063 = vmatpush3.msra.mxu1 %v4427_v50  ;;  %v5039_v50 = vld [vmem:[#allocation2 + $0x2c8] sm:$0xff] }
0x1d2f   :  { %v4597_v51 = vpop.permute.xlu0 %4596 }
0x1d30   :  { %v4425_v52 = vpop.permute.xlu1 %4424 }
0x1d31   :  { %15064 = vmatprep.subr.mxu1 %v4425_v52 }
0x1d32   :  { %15065 = vmatpush3.msra.mxu1 %v4425_v52 }
0x1d33   :  { %v4688_v54 = vpop.permute.xlu0 %4687  ;;  %15067 = vmatmul.mubr.msk.f32.vlgmr.msra.gmra.mxu1 %vm478_vm3, %v4421_v53  ;;  %15076 = vmatprep.subr.mxu1 %v4597_v51 }
0x1d34   :  { %15077 = vmatpush3.msra.mxu1 %v4597_v51  ;;  %15083 = vmatprep.subr.mxu0 %v4688_v54  ;;  %v4595_v56 = vpop.permute.xlu1 %4594 }
0x1d35   :  { %15078 = vmatprep.subr.mxu1 %v4595_v56  ;;  %15084 = vmatpush3.msra.mxu0 %v4688_v54 }
0x1d36   :  { %15079 = vmatpush3.msra.mxu1 %v4595_v56  ;;  %15080 = vmatprep.mubr.msk.f32.mxu1 %vm478_vm3, %v4592_v55 }
0x1d37   :  { %v4779_v59 = vpop.permute.xlu0 %4778  ;;  %15081 = vmatmul.mubr.msk.f32.vlgmr.msra.gmra.mxu1 %vm478_vm3, %v4593_v57 }
0x1d38   :  { %15090 = vmatprep.subr.mxu1 %v4779_v59  ;;  %v4686_v61 = vpop.permute.xlu1 %4685  ;;  %15094 = vmatprep.mubr.msk.f32.mxu1 %vm478_vm3, %v4774_v58 }
0x1d39   :  { %15085 = vmatprep.subr.mxu0 %v4686_v61  ;;  %15091 = vmatpush3.msra.mxu1 %v4779_v59 }
0x1d3a   :  { %15086 = vmatpush3.msra.mxu0 %v4686_v61 }
0x1d3b   :  { %15088 = vmatmul.mubr.msk.f32.vlgmr.msra.gmra.mxu0 %vm478_vm3, %v4684_v62  ;;  %v5024_v62 = vld [vmem:[#allocation2 + $0x2d0] sm:$0xff] }
0x1d3c   :  { %v4777_v63 = vpop.permute.xlu1 %4776  ;;  %15101 = vmatprep.mubr.msk.f32.mxu0 %vm478_vm3, %v4897_v23 }
0x1d3d   :  { %15092 = vmatprep.subr.mxu1 %v4777_v63 }
0x1d3e   :  { %15093 = vmatpush3.msra.mxu1 %v4777_v63  ;;  %v5038_v63 = vld [vmem:[#allocation2 + $0x2c0] sm:$0xff] }
0x1d3f   :  { %15095 = vmatmul.mubr.msk.f32.vlgmr.msra.gmra.mxu1 %vm478_vm3, %v4775_v1 }
0x1d44   :  { %v4875_v31 = vpop.permute.xlu0 %4874 }
0x1d49   :  { %v4870_v13 = vpop.permute.xlu1 %4869 }
0x1d7f   :  { %v15075_v3 = vpop.f32.mrf.mxu0 }
0x1d81   :  { %v4583_v9 = vpop.f32.mrf.mxu0 }
0x1df3   :  { %v15068_v2 = vpop.f32.mrf.mxu1 }
0x1df4   :  { %v4589_v8 = vadd.f32 %v15075_v3, %v15068_v2 }
0x1df5   :  { %v4502_v7 = vpop.f32.mrf.mxu1 }
0x1df6   :  { %v4584_v11 = vadd.f32 %v4583_v9, %v4502_v7 }
0x1df7   :  { %v15082_v5 = vpop.f32.mrf.mxu1 }
0x1df8   :  { %v4682_v10 = vadd.f32 %v15082_v5, %v4589_v8 }
0x1df9   :  { %v4672_v14 = vpop.f32.mrf.mxu1 }
0x1dfa   :  { %v4681_v17 = vadd.f32 %v4672_v14, %v4584_v11 }
0x1dfb   :  { %v15089_v15 = vpop.f32.mrf.mxu0 }
0x1dfc   :  { %v4773_v18 = vadd.f32 %v15089_v15, %v4682_v10 }
0x1dfd   :  { %v4763_v16 = vpop.f32.mrf.mxu0 }
0x1dfe   :  { %v4772_v20 = vadd.f32 %v4763_v16, %v4681_v17 }
0x1dff   :  { %v15096_v19 = vpop.f32.mrf.mxu1 }
0x1e00   :  { %v4864_v21 = vadd.f32 %v15096_v19, %v4773_v18 }
0x1e01   :  { %v4854_v25 = vpop.f32.mrf.mxu1 }
0x1e02   :  { %v16567_v26 = vadd.f32 %v4875_v31, %v4864_v21  ;;  %v4863_v27 = vadd.f32 %v4854_v25, %v4772_v20 }
0x1e04   :  { %v16569_v28 = vadd.f32 %v4870_v13, %v4863_v27  ;;  %v4882_v12 = vsel %vm478_vm3, %v16567_v26, 0.0  ;;  %v4888_v29 = vmul.f32 %v16567_v26, %v16567_v26 }
0x1e05   :  { %4883 = vadd.xlane.f32.xlu0 %v4882_v12 }
0x1e06   :  { %v4892_v30 = vsel %vm478_vm3, %v4888_v29, 0.0  ;;  %v4879_v32 = vsel %vm478_vm3, %v16569_v28, 0.0  ;;  %v4887_v33 = vmul.f32 %v16569_v28, %v16569_v28 }
0x1e07   :  { %4893 = vadd.xlane.f32.xlu1 %v4892_v30 }
0x1e08   :  { %v4889_v34 = vsel %vm478_vm3, %v4887_v33, 0.0 }
0x1e09   :  { %4880 = vadd.xlane.f32.xlu0 %v4879_v32 }
0x1e0d   :  { %4890 = vadd.xlane.f32.xlu0 %v4889_v34 }
0x1e8e   :  { %v4884_v4 = vpop.xlane.xlu0 %4883 }
0x1e8f   :  { %v4886_v36 = vmul.f32 0.0625, %v4884_v4 }
0x1e90   :  { %v4894_v35 = vpop.xlane.xlu1 %4893 }
0x1e91   :  { %v4896_v37 = vmul.f32 0.0625, %v4894_v35 }
0x1e92   :  { %v4881_v38 = vpop.xlane.xlu0 %4880 }
0x1e93   :  { %v4900_v39 = vsel %vm1397_vm8, %v4886_v36, %v4896_v37  ;;  %v4885_v41 = vmul.f32 0.0625, %v4881_v38 }
0x1e94   :  { %15097 = vmatprep.subr.mxu0 %v4900_v39 }
0x1e95   :  { %15098 = vmatpush3.msra.mxu0 %v4900_v39 }
0x1e96   :  { %v4891_v40 = vpop.xlane.xlu0 %4890 }
0x1e97   :  { %v4895_v42 = vmul.f32 0.0625, %v4891_v40 }
0x1e99   :  { %v4899_v43 = vsel %vm1397_vm8, %v4885_v41, %v4895_v42 }
0x1e9a   :  { %15099 = vmatprep.subr.mxu0 %v4899_v43 }
0x1e9b   :  { %15100 = vmatpush3.msra.mxu0 %v4899_v43 }
0x1e9c   :  { %15102 = vmatmul.mubr.msk.f32.vlgmr.msra.gmra.mxu0 %vm478_vm3, %v4898_v44 }
0x1f5c   :  { %v15103_v45 = vpop.f32.mrf.mxu0 }
0x1f5d   :  { %v4983_v46 = vmul.f32 %v15103_v45, %v15103_v45 }
0x1f5e   :  { %v4973_v47 = vpop.f32.mrf.mxu0 }
0x1f5f   :  { %v4982_v48 = vmul.f32 %v4973_v47, %v4973_v47  ;;  %4988 = vrot.lane.b32.xlu1 %v4983_v46, %s16150_s26 }
0x1f61   :  { %4986 = vrot.lane.b32.xlu0 %v4982_v48, %s16150_s26 }
0x1f63   :  { %5003 = vperm.xlu1 %15744, %v15103_v45  }
0x1f67   :  { %4998 = vperm.xlu1 %15744, %v4973_v47  }
0x1f6b   :  { %5033 = vperm.xlu1 %15744, %v5025_v49  }
0x1f6f   :  { %5047 = vperm.xlu1 %15744, %v5039_v50  }
0x1f73   :  { %15747 = vset.pattern.permute.xlu1 %v16149_v60 }
0x1fd1   :  { %v4989_v51 = vpop.permute.xlu1 %4988 }
0x1fd2   :  { %v4993_v52 = vsub.f32 %v15103_v45, %v4989_v51 }
0x1fd3   :  { %v4987_v53 = vpop.permute.xlu0 %4986 }
0x1fd4   :  { %v4995_v54 = vmax.f32 %v4993_v52, 0.0  ;;  %v4992_v55 = vsub.f32 %v4973_v47, %v4987_v53 }
0x1fd6   :  { %v5009_v56 = vadd.f32 1e-05, %v4995_v54  ;;  %v4994_v57 = vmax.f32 %v4992_v55, 0.0 }
0x1fd8   :  { %15887 = vrsqrt.f32 %v5009_v56  ;;  %v5008_v58 = vadd.f32 1e-05, %v4994_v57  ;;  %v5109_v56 = vld [vmem:[#allocation2 + $0xb0] sm:$0xff]  ;;  %v5107_v57 = vld [vmem:[#allocation2 + $0xa0] sm:$0xff] }
0x1fd9   :  { %15108 = vmatprep.mubr.msk.f32.mxu1 %vm478_vm3, %v5109_v56  ;;  %15115 = vmatprep.mubr.msk.f32.mxu0 %vm478_vm3, %v5107_v57  ;;  %v5839_v56 = vld [vmem:[#allocation2 + $0x3b8] sm:$0xff] }
0x1fda   :  { %15889 = vrsqrt.f32 %v5008_v58 }
0x1fde   :  { %v5004_v1 = vpop.permute.xlu1 %5003 }
0x1fdf   :  { %v5007_v8 = vsub.f32 %v16567_v26, %v5004_v1  ;;  %v5372_v1 = vld [vmem:[#allocation2 + $0x80] sm:$0xff] }
0x1fe2   :  { %v4999_v2 = vpop.permute.xlu1 %4998 }
0x1fe3   :  { %v5006_v5 = vsub.f32 %v16569_v28, %v4999_v2  ;;  %v5373_v2 = vld [vmem:[#allocation2 + $0x88] sm:$0xff] }
0x1fe5   :  { %v15888_v59 = vpop.eup %15887 }
0x1fe6   :  { %5019 = vperm.xlu0 %15745, %v15888_v59   ;;  %v5034_v3 = vpop.permute.xlu1 %5033 }
0x1fe7   :  { %v15890_v61 = vpop.eup %15889 }
0x1fe8   :  { %5014 = vperm.xlu1 %15747, %v15890_v61  }
0x1fea   :  { %15746 = vset.pattern.permute.xlu0 %v16141_v0  ;;  %v5048_v7 = vpop.permute.xlu1 %5047 }
0x1feb   :  { %5028 = vperm.xlu0 %15746, %v5024_v62   ;;  %v5108_v62 = vld [vmem:[#allocation2 + $0xa8] sm:$0xff] }
0x1fec   :  { %15748 = vset.pattern.permute.xlu1 %v16141_v0 }
0x1fed   :  { %5042 = vperm.xlu1 %15748, %v5038_v63  }
0x2061   :  { %v5020_v9 = vpop.permute.xlu0 %5019 }
0x2062   :  { %v5023_v11 = vmul.f32 %v5020_v9, %v5007_v8  ;;  %v5110_v8 = vld [vmem:[#allocation2 + $0xb8] sm:$0xff] }
0x2063   :  { %v5015_v10 = vpop.permute.xlu1 %5014 }
0x2064   :  { %v5037_v14 = vmul.f32 %v5034_v3, %v5023_v11  ;;  %v5022_v15 = vmul.f32 %v5015_v10, %v5006_v5  ;;  %v5281_v5 = vld [vmem:[#allocation2 + $0xc0] sm:$0xff]  ;;  %v5282_v10 = vld [vmem:[#allocation2 + $0xc8] sm:$0xff] }
0x2066   :  { %v5051_v16 = vadd.f32 %v5048_v7, %v5037_v14  ;;  %v5029_v17 = vpop.permute.xlu0 %5028  ;;  %v5387_v14 = vld [vmem:[#allocation2 + $0x98] sm:$0xff] }
0x2067   :  { %v5036_v18 = vmul.f32 %v5029_v17, %v5022_v15  ;;  %v5386_v15 = vld [vmem:[#allocation2 + $0x90] sm:$0xff] }
0x2068   :  { %v5059_v19 = vand.u32 2147483647, %v5051_v16  ;;  %v5043_v20 = vpop.permute.xlu1 %5042  ;;  %v5053_v39 = vmax.f32 %v5051_v16, 0.0  ;;  %vm5055_vm15 = vcmp.ne.f32.partialorder %v5051_v16, %v5051_v16 }
0x2069   :  { %v5050_v21 = vadd.f32 %v5043_v20, %v5036_v18 }
0x206a   :  { %v5061_v31 = vsub.f32 0.0, %v5059_v19 }
0x206b   :  { %v5058_v25 = vand.u32 2147483647, %v5050_v21  ;;  %v5052_v45 = vmax.f32 %v5050_v21, 0.0  ;;  %vm5054_vm11 = vcmp.ne.f32.partialorder %v5050_v21, %v5050_v21 }
0x206c   :  { %v5064_v27 = vmul.f32 1.442695, %v5061_v31 }
0x206d   :  { %v5060_v13 = vsub.f32 0.0, %v5058_v25 }
0x206e   :  { %15891 = vpow2.f32 %v5064_v27 }
0x206f   :  { %v5062_v12 = vmul.f32 1.442695, %v5060_v13 }
0x2071   :  { %15893 = vpow2.f32 %v5062_v12 }
0x207b   :  { %v15892_v26 = vpop.eup %15891 }
0x207c   :  { %v5075_v29 = vadd.f32 1.0, %v15892_v26  ;;  %v5078_v32 = vmul.f32 -0.5, %v15892_v26  ;;  %v5081_v23 = vand.u32 2147483647, %v15892_v26 }
0x207e   :  { %v15894_v28 = vpop.eup %15893  ;;  %15895 = vlog2.f32 %v5075_v29  ;;  %v5079_v34 = vadd.f32 1.0, %v5078_v32  ;;  %vm5082_vm13 = vcmp.lt.f32.partialorder %v5081_v23, 0.0004427343 }
0x207f   :  { %v5066_v30 = vadd.f32 1.0, %v15894_v28  ;;  %v5069_v33 = vmul.f32 -0.5, %v15894_v28  ;;  %v5072_v38 = vand.u32 2147483647, %v15894_v28 }
0x2080   :  { %v5080_v37 = vmul.f32 %v15892_v26, %v5079_v34  ;;  %v5482_v34 = vld [vmem:[#allocation2 + $0x370] sm:$0xff] }
0x2081   :  { %15897 = vlog2.f32 %v5066_v30  ;;  %v5070_v35 = vadd.f32 1.0, %v5069_v33  ;;  %vm5073_vm10 = vcmp.lt.f32.partialorder %v5072_v38, 0.0004427343  ;;  %v5484_v33 = vld [vmem:[#allocation2 + $0x380] sm:$0xff]  ;;  %v5483_v38 = vld [vmem:[#allocation2 + $0x378] sm:$0xff] }
0x2083   :  { %v5071_v44 = vmul.f32 %v15894_v28, %v5070_v35 }
0x208b   :  { %v15896_v4 = vpop.eup %15895 }
0x208c   :  { %v5077_v36 = vmul.f32 0.6931472, %v15896_v4 }
0x208e   :  { %v15898_v40 = vpop.eup %15897  ;;  %v5083_v41 = vsel %vm5082_vm13, %v5080_v37, %v5077_v36  ;;  %vm5479_vm13 = vcmask 80896  }
0x208f   :  { %v5085_v42 = vadd.f32 %v5083_v41, %v5053_v39  ;;  %v5068_v43 = vmul.f32 0.6931472, %v15898_v40  ;;  %v5747_v40 = vld [vmem:[#allocation2 + $0x3a0] sm:$0xff]  ;;  %v5930_v41 = vld [vmem:[#allocation2 + $0x348] sm:$0xff] }
0x2091   :  { %v5087_v46 = vsel %vm5055_vm15, %v5051_v16, %v5085_v42  ;;  %v5074_v47 = vsel %vm5073_vm10, %v5071_v44, %v5068_v43  ;;  %v5929_v42 = vld [vmem:[#allocation2 + $0x340] sm:$0xff] }
0x2092   :  { %15899 = vtanh.f32 %v5087_v46  ;;  %v5084_v48 = vadd.f32 %v5074_v47, %v5052_v45  ;;  %v5485_v45 = vld [vmem:[#allocation2 + $0x388] sm:$0xff]  ;;  %v5656_v46 = vld [vmem:[#allocation2 + $0x390] sm:$0xff] }
0x2094   :  { %v5086_v49 = vsel %vm5054_vm11, %v5050_v21, %v5084_v48 }
0x2095   :  { %15901 = vtanh.f32 %v5086_v49  ;;  %v5657_v49 = vld [vmem:[#allocation2 + $0x398] sm:$0xff] }
0x209f   :  { %v15900_v50 = vpop.eup %15899 }
0x20a0   :  { %v5091_v51 = vmul.f32 %v15900_v50, %v5051_v16  ;;  %v5838_v50 = vld [vmem:[#allocation2 + $0x3b0] sm:$0xff] }
0x20a2   :  { %v15902_v52 = vpop.eup %15901  ;;  %v5093_v53 = vadd.f32 %v5091_v51, %v16479_v22 }
0x20a3   :  { %v5090_v54 = vmul.f32 %v15902_v52, %v5050_v21 }
0x20a4   :  { %5098 = vrot.lane.b32.xlu0 %v5093_v53, %s16150_s26  ;;  %v5748_v53 = vld [vmem:[#allocation2 + $0x3a8] sm:$0xff] }
0x20a5   :  { %v5092_v55 = vadd.f32 %v5090_v54, %v16484_v24 }
0x20a7   :  { %5096 = vrot.lane.b32.xlu1 %v5092_v55, %s16150_s26 }
0x2116   :  { %v5099_v58 = vpop.permute.xlu0 %5098 }
0x2117   :  { %v5103_v59 = vsel %vm1397_vm8, 0.0, %v5099_v58 }
0x2118   :  { %15111 = vmatprep.subr.msk.mxu0 %vm17390_vm12, %v5103_v59  ;;  %v5106_v22 = vsel %vm17390_vm12, %v5103_v59, 0.0 }
0x2119   :  { %v5097_v61 = vpop.permute.xlu1 %5096  ;;  %15112 = vmatpush3.msk.msra.mxu0 %vm17390_vm12, %v5103_v59  ;;  %5115 = vrot.lane.b32.xlu0 %v5106_v22, %s16145_s1 }
0x211a   :  { %v5102_v24 = vsel %vm1397_vm8, 0.0, %v5097_v61 }
0x211b   :  { %15113 = vmatprep.subr.msk.mxu0 %vm17390_vm12, %v5102_v24  ;;  %v5105_v63 = vsel %vm17390_vm12, %v5102_v24, 0.0 }
0x211c   :  { %5113 = vrot.lane.b32.xlu1 %v5105_v63, %s16145_s1  ;;  %15114 = vmatpush3.msk.msra.mxu0 %vm17390_vm12, %v5102_v24 }
0x211d   :  { %5285 = vrot.lane.b32.xlu0 %v5106_v22, %s16146_s23  ;;  %15116 = vmatmul.mubr.msk.f32.vlgmr.msra.gmra.mxu0 %vm478_vm3, %v5108_v62 }
0x211e   :  { %15125 = vmatprep.subr.mxu0 %v5387_v14 }
0x211f   :  { %15126 = vmatpush3.msra.mxu0 %v5387_v14 }
0x2120   :  { %5283 = vrot.lane.b32.xlu1 %v5105_v63, %s16146_s23  ;;  %15127 = vmatprep.subr.mxu0 %v5386_v15 }
0x2121   :  { %5376 = vperm.xlu0 %15746, %v5372_v1   ;;  %15128 = vmatpush3.msra.mxu0 %v5386_v15 }
0x2124   :  { %5381 = vperm.xlu1 %15748, %v5373_v2  }
0x218b   :  { %v5116_v3 = vpop.permute.xlu0 %5115 }
0x218c   :  { %15104 = vmatprep.subr.mxu1 %v5116_v3 }
0x218d   :  { %15105 = vmatpush3.msra.mxu1 %v5116_v3 }
0x218e   :  { %v5114_v7 = vpop.permute.xlu1 %5113 }
0x218f   :  { %15106 = vmatprep.subr.mxu1 %v5114_v7  ;;  %v5286_v9 = vpop.permute.xlu0 %5285 }
0x2190   :  { %15107 = vmatpush3.msra.mxu1 %v5114_v7 }
0x2191   :  { %15109 = vmatmul.mubr.msk.f32.vlgmr.msra.gmra.mxu1 %vm478_vm3, %v5110_v8  ;;  %15118 = vmatprep.subr.mxu1 %v5286_v9 }
0x2192   :  { %v5284_v11 = vpop.permute.xlu1 %5283  ;;  %15119 = vmatpush3.msra.mxu1 %v5286_v9  ;;  %15122 = vmatprep.mubr.msk.f32.mxu1 %vm478_vm3, %v5281_v5 }
0x2193   :  { %15120 = vmatprep.subr.mxu1 %v5284_v11 }
0x2194   :  { %15121 = vmatpush3.msra.mxu1 %v5284_v11 }
0x2195   :  { %15123 = vmatmul.mubr.msk.f32.vlgmr.msra.gmra.mxu1 %vm478_vm3, %v5282_v10 }
0x2196   :  { %15136 = vmatprep.mubr.msk.f32.mxu1 %vm478_vm3, %v5484_v33 }
0x219c   :  { %v5377_v12 = vpop.permute.xlu0 %5376 }
0x219f   :  { %v5382_v26 = vpop.permute.xlu1 %5381 }
0x21dd   :  { %v15117_v16 = vpop.f32.mrf.mxu0 }
0x21df   :  { %v5272_v19 = vpop.f32.mrf.mxu0 }
0x2251   :  { %v15110_v17 = vpop.f32.mrf.mxu1 }
0x2252   :  { %v5278_v20 = vadd.f32 %v15117_v16, %v15110_v17 }
0x2253   :  { %v5191_v18 = vpop.f32.mrf.mxu1 }
0x2254   :  { %v5273_v31 = vadd.f32 %v5272_v19, %v5191_v18 }
0x2255   :  { %v15124_v21 = vpop.f32.mrf.mxu1 }
0x2256   :  { %v5371_v25 = vadd.f32 %v15124_v21, %v5278_v20 }
0x2257   :  { %v5361_v27 = vpop.f32.mrf.mxu1 }
0x2258   :  { %v5370_v13 = vadd.f32 %v5361_v27, %v5273_v31  ;;  %v5385_v28 = vadd.f32 %v5382_v26, %v5371_v25 }
0x225a   :  { %v5384_v29 = vadd.f32 %v5377_v12, %v5370_v13  ;;  %v5962_v13 = vld [vmem:[#allocation2 + $0x330] sm:$0xff] }
0x225c   :  { %15129 = vmatprep.mubr.msk.f32.mxu0 %vm478_vm3, %v5384_v29 }
0x225d   :  { %15130 = vmatmul.mubr.msk.f32.vlgmr.msra.gmra.mxu0 %vm478_vm3, %v5385_v28 }
0x225e   :  { %15143 = vmatprep.mubr.msk.f32.mxu0 %vm478_vm3, %v5482_v34 }
0x231d   :  { %v16616_v30 = vpop.f32.mrf.mxu0 }
0x231e   :  { %5473 = vrot.lane.b32.xlu0 %v16616_v30, %s16144_s0 }
0x231f   :  { %v16620_v32 = vpop.f32.mrf.mxu0 }
0x2320   :  { %5471 = vrot.lane.b32.xlu1 %v16620_v32, %s16144_s0 }
0x2390   :  { %v5474_v23 = vpop.permute.xlu0 %5473 }
0x2391   :  { %v5478_v4 = vsel %vm983_vm6, 0.0, %v5474_v23 }
0x2392   :  { %15139 = vmatprep.subr.msk.mxu0 %vm5479_vm13, %v5478_v4  ;;  %v5472_v35 = vpop.permute.xlu1 %5471  ;;  %v5481_v36 = vsel %vm5479_vm13, %v5478_v4, 0.0 }
0x2393   :  { %v5477_v37 = vsel %vm983_vm6, 0.0, %v5472_v35  ;;  %15140 = vmatpush3.msk.msra.mxu0 %vm5479_vm13, %v5478_v4  ;;  %5490 = vrot.lane.b32.xlu0 %v5481_v36, %s16145_s1 }
0x2394   :  { %v5480_v39 = vsel %vm5479_vm13, %v5477_v37, 0.0  ;;  %15141 = vmatprep.subr.msk.mxu0 %vm5479_vm13, %v5477_v37 }
0x2395   :  { %15142 = vmatpush3.msk.msra.mxu0 %vm5479_vm13, %v5477_v37  ;;  %5488 = vrot.lane.b32.xlu1 %v5480_v39, %s16145_s1  ;;  %v5963_v37 = vld [vmem:[#allocation2 + $0x338] sm:$0xff] }
0x2396   :  { %15144 = vmatmul.mubr.msk.f32.vlgmr.msra.gmra.mxu0 %vm478_vm3, %v5483_v38 }
0x2397   :  { %5660 = vrot.lane.b32.xlu0 %v5481_v36, %s16146_s23  ;;  %15157 = vmatprep.mubr.msk.f32.mxu0 %vm478_vm3, %v5747_v40 }
0x2399   :  { %5658 = vrot.lane.b32.xlu1 %v5480_v39, %s16146_s23 }
0x239b   :  { %5751 = vrot.lane.b32.xlu0 %v5481_v36, %s16147_s24 }
0x239d   :  { %5749 = vrot.lane.b32.xlu1 %v5480_v39, %s16147_s24 }
0x239f   :  { %5842 = vrot.lane.b32.xlu0 %v5481_v36, %s16148_s25 }
0x23a1   :  { %5840 = vrot.lane.b32.xlu1 %v5480_v39, %s16148_s25 }
0x23a3   :  { %5938 = vperm.xlu0 %15746, %v5930_v41  }
0x23a5   :  { %5933 = vperm.xlu1 %15748, %v5929_v42   ;;  %v6090_v42 = vld [vmem:[#allocation2 + $0x368] sm:$0xff] }
0x23a7   :  { %15749 = vset.pattern.permute.xlu0 %v16149_v60 }
0x2405   :  { %v5491_v43 = vpop.permute.xlu0 %5490 }
0x2406   :  { %15132 = vmatprep.subr.mxu1 %v5491_v43 }
0x2407   :  { %15133 = vmatpush3.msra.mxu1 %v5491_v43  ;;  %v5489_v44 = vpop.permute.xlu1 %5488  ;;  %v6104_v43 = vld [vmem:[#allocation2 + $0x358] sm:$0xff] }
0x2408   :  { %15134 = vmatprep.subr.mxu1 %v5489_v44 }
0x2409   :  { %v5661_v47 = vpop.permute.xlu0 %5660  ;;  %15135 = vmatpush3.msra.mxu1 %v5489_v44 }
0x240a   :  { %15137 = vmatmul.mubr.msk.f32.vlgmr.msra.gmra.mxu1 %vm478_vm3, %v5485_v45  ;;  %15146 = vmatprep.subr.mxu1 %v5661_v47 }
0x240b   :  { %15147 = vmatpush3.msra.mxu1 %v5661_v47  ;;  %v5659_v48 = vpop.permute.xlu1 %5658  ;;  %15150 = vmatprep.mubr.msk.f32.mxu1 %vm478_vm3, %v5656_v46 }
0x240c   :  { %15148 = vmatprep.subr.mxu1 %v5659_v48 }
0x240d   :  { %v5752_v51 = vpop.permute.xlu0 %5751  ;;  %15149 = vmatpush3.msra.mxu1 %v5659_v48 }
0x240e   :  { %15151 = vmatmul.mubr.msk.f32.vlgmr.msra.gmra.mxu1 %vm478_vm3, %v5657_v49  ;;  %15153 = vmatprep.subr.mxu0 %v5752_v51 }
0x240f   :  { %15154 = vmatpush3.msra.mxu0 %v5752_v51  ;;  %v5750_v52 = vpop.permute.xlu1 %5749  ;;  %15164 = vmatprep.mubr.msk.f32.mxu1 %vm478_vm3, %v5838_v50 }
0x2410   :  { %15155 = vmatprep.subr.mxu0 %v5750_v52 }
0x2411   :  { %v5843_v54 = vpop.permute.xlu0 %5842  ;;  %15156 = vmatpush3.msra.mxu0 %v5750_v52 }
0x2412   :  { %15158 = vmatmul.mubr.msk.f32.vlgmr.msra.gmra.mxu0 %vm478_vm3, %v5748_v53  ;;  %15160 = vmatprep.subr.mxu1 %v5843_v54 }
0x2413   :  { %15161 = vmatpush3.msra.mxu1 %v5843_v54  ;;  %v5841_v55 = vpop.permute.xlu1 %5840  ;;  %15171 = vmatprep.mubr.msk.f32.mxu0 %vm478_vm3, %v5962_v13  ;;  %v6089_v54 = vld [vmem:[#allocation2 + $0x360] sm:$0xff] }
0x2414   :  { %15162 = vmatprep.subr.mxu1 %v5841_v55 }
0x2415   :  { %15163 = vmatpush3.msra.mxu1 %v5841_v55  ;;  %v6103_v55 = vld [vmem:[#allocation2 + $0x350] sm:$0xff] }
0x2416   :  { %15165 = vmatmul.mubr.msk.f32.vlgmr.msra.gmra.mxu1 %vm478_vm3, %v5839_v56 }
0x241e   :  { %v5939_v10 = vpop.permute.xlu0 %5938 }
0x2420   :  { %v5934_v17 = vpop.permute.xlu1 %5933 }
0x2456   :  { %v15145_v58 = vpop.f32.mrf.mxu0 }
0x2458   :  { %v5647_v61 = vpop.f32.mrf.mxu0 }
0x24ca   :  { %v15138_v57 = vpop.f32.mrf.mxu1 }
0x24cb   :  { %v5653_v22 = vadd.f32 %v15145_v58, %v15138_v57 }
0x24cc   :  { %v5566_v59 = vpop.f32.mrf.mxu1 }
0x24cd   :  { %v5648_v62 = vadd.f32 %v5647_v61, %v5566_v59 }
0x24ce   :  { %v15152_v24 = vpop.f32.mrf.mxu1 }
0x24cf   :  { %v5746_v63 = vadd.f32 %v15152_v24, %v5653_v22 }
0x24d0   :  { %v5736_v1 = vpop.f32.mrf.mxu1 }
0x24d1   :  { %v5745_v7 = vadd.f32 %v5736_v1, %v5648_v62 }
0x24d2   :  { %v15159_v2 = vpop.f32.mrf.mxu0 }
0x24d3   :  { %v5837_v8 = vadd.f32 %v15159_v2, %v5746_v63 }
0x24d4   :  { %v5827_v3 = vpop.f32.mrf.mxu0 }
0x24d5   :  { %v5836_v5 = vadd.f32 %v5827_v3, %v5745_v7 }
0x24d6   :  { %v15166_v9 = vpop.f32.mrf.mxu1 }
0x24d7   :  { %v5928_v11 = vadd.f32 %v15166_v9, %v5837_v8 }
0x24d8   :  { %v5918_v14 = vpop.f32.mrf.mxu1 }
0x24d9   :  { %v16651_v15 = vadd.f32 %v5939_v10, %v5928_v11  ;;  %v5927_v16 = vadd.f32 %v5918_v14, %v5836_v5 }
0x24db   :  { %v16653_v18 = vadd.f32 %v5934_v17, %v5927_v16  ;;  %v5946_v19 = vsel %vm1399_vm9, %v16651_v15, 0.0  ;;  %v5953_v20 = vmul.f32 %v16651_v15, %v16651_v15 }
0x24dc   :  { %5947 = vadd.xlane.f32.xlu0 %v5946_v19 }
0x24dd   :  { %v5957_v21 = vsel %vm1399_vm9, %v5953_v20, 0.0  ;;  %v5943_v31 = vsel %vm1399_vm9, %v16653_v18, 0.0  ;;  %v5952_v25 = vmul.f32 %v16653_v18, %v16653_v18 }
0x24de   :  { %5958 = vadd.xlane.f32.xlu1 %v5957_v21 }
0x24df   :  { %v5954_v27 = vsel %vm1399_vm9, %v5952_v25, 0.0 }
0x24e0   :  { %5944 = vadd.xlane.f32.xlu0 %v5943_v31 }
0x24e4   :  { %5955 = vadd.xlane.f32.xlu0 %v5954_v27 }
0x2565   :  { %v5948_v12 = vpop.xlane.xlu0 %5947 }
0x2566   :  { %v5951_v29 = vmul.f32 0.125, %v5948_v12 }
0x2567   :  { %v5959_v26 = vpop.xlane.xlu1 %5958 }
0x2568   :  { %v5961_v28 = vmul.f32 0.125, %v5959_v26 }
0x2569   :  { %v5945_v33 = vpop.xlane.xlu0 %5944 }
0x256a   :  { %v5965_v34 = vsel %vm1397_vm8, %v5951_v29, %v5961_v28  ;;  %v5950_v4 = vmul.f32 0.125, %v5945_v33 }
0x256b   :  { %15167 = vmatprep.subr.mxu0 %v5965_v34 }
0x256c   :  { %15168 = vmatpush3.msra.mxu0 %v5965_v34 }
0x256d   :  { %v5956_v23 = vpop.xlane.xlu0 %5955 }
0x256e   :  { %v5960_v35 = vmul.f32 0.125, %v5956_v23 }
0x2570   :  { %v5964_v36 = vsel %vm1397_vm8, %v5950_v4, %v5960_v35 }
0x2571   :  { %15169 = vmatprep.subr.mxu0 %v5964_v36 }
0x2572   :  { %15170 = vmatpush3.msra.mxu0 %v5964_v36 }
0x2573   :  { %15172 = vmatmul.mubr.msk.f32.vlgmr.msra.gmra.mxu0 %vm478_vm3, %v5963_v37 }
0x2633   :  { %v15173_v38 = vpop.f32.mrf.mxu0 }
0x2634   :  { %v6048_v39 = vmul.f32 %v15173_v38, %v15173_v38 }
0x2635   :  { %v6038_v40 = vpop.f32.mrf.mxu0 }
0x2636   :  { %v6047_v41 = vmul.f32 %v6038_v40, %v6038_v40  ;;  %6053 = vrot.lane.b32.xlu1 %v6048_v39, %s16150_s26 }
0x2638   :  { %6051 = vrot.lane.b32.xlu0 %v6047_v41, %s16150_s26 }
0x263a   :  { %6068 = vperm.xlu1 %15748, %v15173_v38  }
0x263e   :  { %6063 = vperm.xlu1 %15748, %v6038_v40  }
0x2642   :  { %6098 = vperm.xlu1 %15748, %v6090_v42  }
0x2646   :  { %6112 = vperm.xlu1 %15748, %v6104_v43  }
0x264a   :  { %15751 = vset.pattern.permute.xlu1 %v16149_v60 }
0x26a8   :  { %v6054_v44 = vpop.permute.xlu1 %6053 }
0x26a9   :  { %v6058_v45 = vsub.f32 %v15173_v38, %v6054_v44 }
0x26aa   :  { %v6052_v46 = vpop.permute.xlu0 %6051 }
0x26ab   :  { %v6060_v47 = vmax.f32 %v6058_v45, 0.0  ;;  %v6057_v48 = vsub.f32 %v6038_v40, %v6052_v46 }
0x26ad   :  { %v6074_v49 = vadd.f32 1e-05, %v6060_v47  ;;  %v6059_v50 = vmax.f32 %v6057_v48, 0.0  ;;  %v6171_v47 = vld [vmem:[#allocation2 + $0x410] sm:$0xff]  ;;  %v6169_v48 = vld [vmem:[#allocation2 + $0x400] sm:$0xff] }
0x26ae   :  { %15178 = vmatprep.mubr.msk.f32.mxu1 %vm478_vm3, %v6171_v47  ;;  %15185 = vmatprep.mubr.msk.f32.mxu0 %vm478_vm3, %v6169_v48 }
0x26af   :  { %15903 = vrsqrt.f32 %v6074_v49  ;;  %v6073_v51 = vadd.f32 1e-05, %v6059_v50 }
0x26b1   :  { %15905 = vrsqrt.f32 %v6073_v51 }
0x26b5   :  { %v6069_v56 = vpop.permute.xlu1 %6068 }
0x26b6   :  { %v6072_v22 = vsub.f32 %v16651_v15, %v6069_v56  ;;  %v6434_v56 = vld [vmem:[#allocation2 + $0x430] sm:$0xff] }
0x26b9   :  { %v6064_v57 = vpop.permute.xlu1 %6063 }
0x26ba   :  { %v6071_v24 = vsub.f32 %v16653_v18, %v6064_v57  ;;  %v6617_v57 = vld [vmem:[#allocation2 + $0x3d8] sm:$0xff] }
0x26bc   :  { %v15904_v52 = vpop.eup %15903 }
0x26bd   :  { %6084 = vperm.xlu0 %15749, %v15904_v52   ;;  %v6099_v58 = vpop.permute.xlu1 %6098 }
0x26be   :  { %v15906_v53 = vpop.eup %15905 }
0x26bf   :  { %6079 = vperm.xlu1 %15751, %v15906_v53  }
0x26c1   :  { %15750 = vset.pattern.permute.xlu0 %v16141_v0  ;;  %v6113_v59 = vpop.permute.xlu1 %6112 }
0x26c2   :  { %6093 = vperm.xlu0 %15750, %v6089_v54   ;;  %v6170_v54 = vld [vmem:[#allocation2 + $0x408] sm:$0xff] }
0x26c3   :  { %15752 = vset.pattern.permute.xlu1 %v16141_v0 }
0x26c4   :  { %6107 = vperm.xlu1 %15752, %v6103_v55  }
0x2738   :  { %v6085_v61 = vpop.permute.xlu0 %6084 }
0x2739   :  { %v6088_v62 = vmul.f32 %v6085_v61, %v6072_v22  ;;  %v6172_v61 = vld [vmem:[#allocation2 + $0x418] sm:$0xff] }
0x273a   :  { %v6080_v63 = vpop.permute.xlu1 %6079 }
0x273b   :  { %v6102_v1 = vmul.f32 %v6099_v58, %v6088_v62  ;;  %v6087_v2 = vmul.f32 %v6080_v63, %v6071_v24  ;;  %v6616_v58 = vld [vmem:[#allocation2 + $0x3d0] sm:$0xff]  ;;  %v6343_v62 = vld [vmem:[#allocation2 + $0x420] sm:$0xff] }
0x273d   :  { %v6116_v3 = vadd.f32 %v6113_v59, %v6102_v1  ;;  %v6094_v7 = vpop.permute.xlu0 %6093  ;;  %v6344_v1 = vld [vmem:[#allocation2 + $0x428] sm:$0xff] }
0x273e   :  { %v6101_v8 = vmul.f32 %v6094_v7, %v6087_v2 }
0x273f   :  { %v6124_v9 = vand.u32 2147483647, %v6116_v3  ;;  %v6108_v5 = vpop.permute.xlu1 %6107  ;;  %v6118_v34 = vmax.f32 %v6116_v3, 0.0  ;;  %vm6120_vm10 = vcmp.ne.f32.partialorder %v6116_v3, %v6116_v3 }
0x2740   :  { %v6115_v11 = vadd.f32 %v6108_v5, %v6101_v8  ;;  %v6435_v8 = vld [vmem:[#allocation2 + $0x438] sm:$0xff] }
0x2741   :  { %v6126_v10 = vsub.f32 0.0, %v6124_v9 }
0x2742   :  { %v6123_v14 = vand.u32 2147483647, %v6115_v11  ;;  %v6117_v38 = vmax.f32 %v6115_v11, 0.0  ;;  %vm6119_vm12 = vcmp.ne.f32.partialorder %v6115_v11, %v6115_v11 }
0x2743   :  { %v6129_v16 = vmul.f32 1.442695, %v6126_v10 }
0x2744   :  { %v6125_v17 = vsub.f32 0.0, %v6123_v14 }
0x2745   :  { %15907 = vpow2.f32 %v6129_v16 }
0x2746   :  { %v6127_v19 = vmul.f32 1.442695, %v6125_v17 }
0x2748   :  { %15909 = vpow2.f32 %v6127_v19 }
0x2752   :  { %v15908_v15 = vpop.eup %15907 }
0x2753   :  { %v6140_v20 = vadd.f32 1.0, %v15908_v15  ;;  %v6143_v31 = vmul.f32 -0.5, %v15908_v15  ;;  %v6146_v13 = vand.u32 2147483647, %v15908_v15 }
0x2755   :  { %v15910_v18 = vpop.eup %15909  ;;  %15911 = vlog2.f32 %v6140_v20  ;;  %v6144_v27 = vadd.f32 1.0, %v6143_v31  ;;  %vm6147_vm15 = vcmp.lt.f32.partialorder %v6146_v13, 0.0004427343 }
0x2756   :  { %v6131_v21 = vadd.f32 1.0, %v15910_v18  ;;  %v6134_v25 = vmul.f32 -0.5, %v15910_v18  ;;  %v6137_v33 = vand.u32 2147483647, %v15910_v18 }
0x2757   :  { %v6145_v28 = vmul.f32 %v15908_v15, %v6144_v27 }
0x2758   :  { %15913 = vlog2.f32 %v6131_v21  ;;  %v6135_v26 = vadd.f32 1.0, %v6134_v25  ;;  %vm6138_vm11 = vcmp.lt.f32.partialorder %v6137_v33, 0.0004427343 }
0x275a   :  { %v6136_v37 = vmul.f32 %v15910_v18, %v6135_v26 }
0x2762   :  { %v15912_v12 = vpop.eup %15911 }
0x2763   :  { %v6142_v29 = vmul.f32 0.6931472, %v15912_v12 }
0x2765   :  { %v15914_v23 = vpop.eup %15913  ;;  %v6148_v4 = vsel %vm6147_vm15, %v6145_v28, %v6142_v29 }
0x2766   :  { %v6150_v35 = vadd.f32 %v6148_v4, %v6118_v34  ;;  %v6133_v36 = vmul.f32 0.6931472, %v15914_v23 }
0x2768   :  { %v6152_v39 = vsel %vm6120_vm10, %v6116_v3, %v6150_v35  ;;  %v6139_v40 = vsel %vm6138_vm11, %v6136_v37, %v6133_v36 }
0x2769   :  { %15915 = vtanh.f32 %v6152_v39  ;;  %v6149_v41 = vadd.f32 %v6139_v40, %v6117_v38 }
0x276b   :  { %v6151_v42 = vsel %vm6119_vm12, %v6115_v11, %v6149_v41 }
0x276c   :  { %15917 = vtanh.f32 %v6151_v42  ;;  %v6928_v42 = vld [vmem:[#allocation2 + $0x470] sm:$0xf] }
0x2776   :  { %v15916_v43 = vpop.eup %15915 }
0x2777   :  { %v6156_v44 = vmul.f32 %v15916_v43, %v6116_v3  ;;  %v6525_v3 = vld [vmem:[#allocation2 + $0x440] sm:$0xff] }
0x2778   :  { %v6648_v43 = vld [vmem:[#allocation2 + $0x3c0] sm:$0xff] }
0x2779   :  { %v15918_v45 = vpop.eup %15917  ;;  %6161 = vrot.lane.b32.xlu0 %v6156_v44, %s16144_s0  ;;  %v6929_v44 = vld [vmem:[#allocation2 + $0x460] sm:$0xf] }
0x277a   :  { %v6155_v46 = vmul.f32 %v15918_v45, %v6115_v11  ;;  %v6526_v11 = vld [vmem:[#allocation2 + $0x448] sm:$0xff]  ;;  %v16722_v45 = vld [vmem:[#allocation4 + $0x4] sm:$0xf] }
0x277b   :  { %v6930_v47 = vsel %vm42_vm0, %v16722_v45, 0.0 }
0x277c   :  { %6159 = vrot.lane.b32.xlu1 %v6155_v46, %s16144_s0  ;;  %v6963_v46 = vld [vmem:[#allocation2 + $0x4c0] sm:$0xf]  ;;  %v6931_v48 = vrot.slane %v6930_v47, 4 }
0x27eb   :  { %v6162_v49 = vpop.permute.xlu0 %6161 }
0x27ec   :  { %v6166_v50 = vsel %vm983_vm6, 0.0, %v6162_v49  ;;  %v6932_v49 = vadd.f32 %v6931_v48, %v6930_v47  ;;  %v6776_v48 = vld [vmem:[#allocation2 + $0x3f8] sm:$0xff] }
0x27ed   :  { %15181 = vmatprep.subr.msk.mxu0 %vm5479_vm13, %v6166_v50  ;;  %v6168_v51 = vsel %vm5479_vm13, %v6166_v50, 0.0 }
0x27ee   :  { %v6160_v52 = vpop.permute.xlu1 %6159  ;;  %15182 = vmatpush3.msk.msra.mxu0 %vm5479_vm13, %v6166_v50  ;;  %6177 = vrot.lane.b32.xlu0 %v6168_v51, %s16145_s1  ;;  %v6933_v50 = vrot.slane %v6932_v49, 2 }
0x27ef   :  { %v6165_v53 = vsel %vm983_vm6, 0.0, %v6160_v52 }
0x27f0   :  { %15183 = vmatprep.subr.msk.mxu0 %vm5479_vm13, %v6165_v53  ;;  %v6167_v55 = vsel %vm5479_vm13, %v6165_v53, 0.0 }
0x27f1   :  { %6175 = vrot.lane.b32.xlu1 %v6167_v55, %s16145_s1  ;;  %15184 = vmatpush3.msk.msra.mxu0 %vm5479_vm13, %v6165_v53 }
0x27f2   :  { %6347 = vrot.lane.b32.xlu0 %v6168_v51, %s16146_s23  ;;  %15186 = vmatmul.mubr.msk.f32.vlgmr.msra.gmra.mxu0 %vm478_vm3, %v6170_v54 }
0x27f3   :  { %15199 = vmatprep.mubr.msk.f32.mxu0 %vm478_vm3, %v6434_v56 }
0x27f5   :  { %6345 = vrot.lane.b32.xlu1 %v6167_v55, %s16146_s23 }
0x27f6   :  { %6438 = vrot.lane.b32.xlu0 %v6168_v51, %s16147_s24 }
0x27f9   :  { %6436 = vrot.lane.b32.xlu1 %v6167_v55, %s16147_s24 }
0x27fa   :  { %6529 = vrot.lane.b32.xlu0 %v6168_v51, %s16148_s25  ;;  %v6934_v51 = vadd.f32 %v6933_v50, %v6932_v49  ;;  %v6775_v49 = vld [vmem:[#allocation2 + $0x3f0] sm:$0xff]  ;;  %v6790_v50 = vld [vmem:[#allocation2 + $0x3e8] sm:$0xff] }
0x27fc   :  { %v6935_v52 = vrot.slane %v6934_v51, 1 }
0x27fd   :  { %6527 = vrot.lane.b32.xlu1 %v6167_v55, %s16148_s25 }
0x27fe   :  { %6625 = vperm.xlu0 %15750, %v6617_v57   ;;  %v6936_v53 = vadd.f32 %v6935_v52, %v6934_v51 }
0x2800   :  { %v6937_v54 = vmul.f32 0.25, %v6936_v53 }
0x2801   :  { %6620 = vperm.xlu1 %15752, %v6616_v58  }
0x2802   :  { %v6938_v55 = vsub.f32 %v16722_v45, %v6937_v54 }
0x2804   :  { %v6939_v56 = vmul.f32 %v6938_v55, %v6938_v55 }
0x2806   :  { %v6940_v57 = vsel %vm42_vm0, %v6939_v56, 0.0 }
0x2807   :  { %v6941_v58 = vrot.slane %v6940_v57, 4 }
0x2860   :  { %v6178_v59 = vpop.permute.xlu0 %6177 }
0x2861   :  { %15174 = vmatprep.subr.mxu1 %v6178_v59 }
0x2862   :  { %15175 = vmatpush3.msra.mxu1 %v6178_v59  ;;  %v6942_v59 = vadd.f32 %v6941_v58, %v6940_v57 }
0x2863   :  { %v6176_v22 = vpop.permute.xlu1 %6175 }
0x2864   :  { %15176 = vmatprep.subr.mxu1 %v6176_v22  ;;  %v6348_v24 = vpop.permute.xlu0 %6347 }
0x2865   :  { %15177 = vmatpush3.msra.mxu1 %v6176_v22  ;;  %v6943_v22 = vrot.slane %v6942_v59, 2 }
0x2866   :  { %15179 = vmatmul.mubr.msk.f32.vlgmr.msra.gmra.mxu1 %vm478_vm3, %v6172_v61  ;;  %15188 = vmatprep.subr.mxu1 %v6348_v24 }
0x2867   :  { %v6346_v63 = vpop.permute.xlu1 %6345  ;;  %15189 = vmatpush3.msra.mxu1 %v6348_v24  ;;  %15192 = vmatprep.mubr.msk.f32.mxu1 %vm478_vm3, %v6343_v62  ;;  %v6944_v61 = vadd.f32 %v6943_v22, %v6942_v59 }
0x2868   :  { %15190 = vmatprep.subr.mxu1 %v6346_v63  ;;  %v6439_v2 = vpop.permute.xlu0 %6438 }
0x2869   :  { %15191 = vmatpush3.msra.mxu1 %v6346_v63  ;;  %15195 = vmatprep.subr.mxu0 %v6439_v2  ;;  %v6945_v24 = vrot.slane %v6944_v61, 1 }
0x286a   :  { %15193 = vmatmul.mubr.msk.f32.vlgmr.msra.gmra.mxu1 %vm478_vm3, %v6344_v1  ;;  %15196 = vmatpush3.msra.mxu0 %v6439_v2 }
0x286b   :  { %v6437_v7 = vpop.permute.xlu1 %6436  ;;  %15206 = vmatprep.mubr.msk.f32.mxu1 %vm478_vm3, %v6525_v3  ;;  %v6946_v62 = vadd.f32 %v6945_v24, %v6944_v61 }
0x286c   :  { %15197 = vmatprep.subr.mxu0 %v6437_v7  ;;  %v6530_v9 = vpop.permute.xlu0 %6529 }
0x286d   :  { %15198 = vmatpush3.msra.mxu0 %v6437_v7  ;;  %15202 = vmatprep.subr.mxu1 %v6530_v9  ;;  %v6947_v63 = vmul.f32 0.25, %v6946_v62 }
0x286e   :  { %15200 = vmatmul.mubr.msk.f32.vlgmr.msra.gmra.mxu0 %vm478_vm3, %v6435_v8  ;;  %15203 = vmatpush3.msra.mxu1 %v6530_v9 }
0x286f   :  { %v6528_v5 = vpop.permute.xlu1 %6527  ;;  %15213 = vmatprep.mubr.msk.f32.mxu0 %vm478_vm3, %v6648_v43  ;;  %v6948_v1 = vadd.f32 1e-05, %v6947_v63 }
0x2870   :  { %15204 = vmatprep.subr.mxu1 %v6528_v5 }
0x2871   :  { %15205 = vmatpush3.msra.mxu1 %v6528_v5  ;;  %15919 = vrsqrt.f32 %v6948_v1 }
0x2872   :  { %15207 = vmatmul.mubr.msk.f32.vlgmr.msra.gmra.mxu1 %vm478_vm3, %v6526_v11  ;;  %15216 = vmatprep.subr.mxu1 %v16142_v6 }
0x2873   :  { %15220 = vmatprep.mubr.msk.f32.mxu1 %vm16143_vm5, %v16142_v6 }
0x2879   :  { %v6626_v28 = vpop.permute.xlu0 %6625 }
0x287c   :  { %v6621_v4 = vpop.permute.xlu1 %6620 }
0x287e   :  { %v15920_v11 = vpop.eup %15919 }
0x28b2   :  { %v15187_v14 = vpop.f32.mrf.mxu0 }
0x28b4   :  { %v6334_v19 = vpop.f32.mrf.mxu0 }
0x2926   :  { %v15180_v10 = vpop.f32.mrf.mxu1 }
0x2927   :  { %v6340_v17 = vadd.f32 %v15187_v14, %v15180_v10 }
0x2928   :  { %v6253_v16 = vpop.f32.mrf.mxu1 }
0x2929   :  { %v6335_v20 = vadd.f32 %v6334_v19, %v6253_v16 }
0x292a   :  { %v15194_v15 = vpop.f32.mrf.mxu1 }
0x292b   :  { %v6433_v18 = vadd.f32 %v15194_v15, %v6340_v17  ;;  %v6950_v17 = vmul.f32 %v15920_v11, %v6938_v55  ;;  %v6649_v15 = vld [vmem:[#allocation2 + $0x3c8] sm:$0xff] }
0x292c   :  { %v6423_v21 = vpop.f32.mrf.mxu1 }
0x292d   :  { %v6432_v27 = vadd.f32 %v6423_v21, %v6335_v20 }
0x292e   :  { %v15201_v31 = vpop.f32.mrf.mxu0 }
0x292f   :  { %v6524_v13 = vadd.f32 %v15201_v31, %v6433_v18 }
0x2930   :  { %v6514_v25 = vpop.f32.mrf.mxu0 }
0x2931   :  { %v6523_v26 = vadd.f32 %v6514_v25, %v6432_v27 }
0x2932   :  { %v15208_v12 = vpop.f32.mrf.mxu1 }
0x2933   :  { %v6615_v29 = vadd.f32 %v15208_v12, %v6524_v13 }
0x2934   :  { %v6605_v33 = vpop.f32.mrf.mxu1 }
0x2935   :  { %v16707_v34 = vadd.f32 %v6626_v28, %v6615_v29  ;;  %v6614_v23 = vadd.f32 %v6605_v33, %v6523_v26 }
0x2937   :  { %v16709_v35 = vadd.f32 %v6621_v4, %v6614_v23  ;;  %v6633_v36 = vsel %vm1399_vm9, %v16707_v34, 0.0  ;;  %v6639_v37 = vmul.f32 %v16707_v34, %v16707_v34 }
0x2938   :  { %6634 = vadd.xlane.f32.xlu0 %v6633_v36 }
0x2939   :  { %v6643_v38 = vsel %vm1399_vm9, %v6639_v37, 0.0  ;;  %v6630_v39 = vsel %vm1399_vm9, %v16709_v35, 0.0  ;;  %v6638_v40 = vmul.f32 %v16709_v35, %v16709_v35 }
0x293a   :  { %6644 = vadd.xlane.f32.xlu1 %v6643_v38 }
0x293b   :  { %v6640_v41 = vsel %vm1399_vm9, %v6638_v40, 0.0 }
0x293c   :  { %6631 = vadd.xlane.f32.xlu0 %v6630_v39  ;;  %v6964_v39 = vld [vmem:[#allocation2 + $0x4c8] sm:$0xf] }
0x2940   :  { %6641 = vadd.xlane.f32.xlu0 %v6640_v41 }
0x294b   :  { %6953 = vperm.xlu1 %15752, %v6928_v42  }
0x2956   :  { %6959 = vperm.xlu0 %15750, %v6929_v44  }
0x2974   :  { %6965 = vxpose.xlu0.b32.start.end [1/1] (short) %v6963_v46, 128 }
0x29b1   :  { %7193 = vxpose.xlu0.b32.start.end [1/1] (short) (narrow) %v6964_v39, 64 }
0x29c1   :  { %v6635_v2 = vpop.xlane.xlu0 %6634 }
0x29c2   :  { %v6637_v7 = vmul.f32 0.125, %v6635_v2 }
0x29c3   :  { %v6645_v3 = vpop.xlane.xlu1 %6644 }
0x29c4   :  { %v6647_v8 = vmul.f32 0.125, %v6645_v3  ;;  %v7781_v3 = vld [vmem:[#allocation2 + $0x468] sm:$0xf] }
0x29c5   :  { %v6632_v9 = vpop.xlane.xlu0 %6631 }
0x29c6   :  { %v6651_v5 = vsel %vm1397_vm8, %v6637_v7, %v6647_v8  ;;  %v6636_v14 = vmul.f32 0.125, %v6632_v9 }
0x29c7   :  { %15209 = vmatprep.subr.mxu0 %v6651_v5  ;;  %v6954_v20 = vpop.permute.xlu1 %6953 }
0x29c8   :  { %15210 = vmatpush3.msra.mxu0 %v6651_v5  ;;  %v6956_v18 = vmul.f32 %v6954_v20, %v6950_v17 }
0x29c9   :  { %v6642_v10 = vpop.xlane.xlu0 %6641 }
0x29ca   :  { %v6646_v16 = vmul.f32 0.125, %v6642_v10 }
0x29cc   :  { %v6650_v19 = vsel %vm1397_vm8, %v6636_v14, %v6646_v16 }
0x29cd   :  { %15211 = vmatprep.subr.mxu0 %v6650_v19 }
0x29ce   :  { %15212 = vmatpush3.msra.mxu0 %v6650_v19 }
0x29cf   :  { %15214 = vmatmul.mubr.msk.f32.vlgmr.msra.gmra.mxu0 %vm478_vm3, %v6649_v15  ;;  %v6789_v15 = vld [vmem:[#allocation2 + $0x3e0] sm:$0xff] }
0x29d1   :  { %v6960_v21 = vpop.permute.xlu0 %6959 }
0x29d2   :  { %v16731_v31 = vadd.f32 %v6960_v21, %v6956_v18 }
0x29d4   :  { %15223 = vmatprep.subr.msk.mxu0 %vm160_vm2, %v16731_v31 }
0x29d5   :  { %15224 = vmatpush3.msk.msra.mxu0 %vm160_vm2, %v16731_v31 }
0x29f0   :  { %v6981_v25 = vpop.trf.xlu0 }
0x29f1   :  { %15225 = vmatprep.mubr.msk.f32.mxu0 %vm111_vm1, %v6981_v25 }
0x29f4   :  { %v6982_v27 = vpop.trf.xlu0 }
0x29f5   :  { %15226 = vmatmul.mubr.msk.f32.vlgmr.msra.gmra.mxu0 %vm111_vm1, %v6982_v27 }
0x29f8   :  { %v6983_v13 = vpop.trf.xlu0 }
0x29f9   :  { %15228 = vmatprep.mubr.msk.f32.mxu0 %vm111_vm1, %v6983_v13 }
0x29fc   :  { %v6984_v12 = vpop.trf.xlu0 }
0x29fd   :  { %15229 = vmatmul.mubr.msk.f32.gmra.mxu0 %vm111_vm1, %v6984_v12 }
0x2a00   :  { %v6985_v26 = vpop.trf.xlu0 }
0x2a01   :  { %15231 = vmatprep.mubr.msk.f32.mxu0 %vm111_vm1, %v6985_v26 }
0x2a04   :  { %v6986_v29 = vpop.trf.xlu0 }
0x2a05   :  { %15232 = vmatmul.mubr.msk.f32.gmra.mxu0 %vm111_vm1, %v6986_v29 }
0x2a08   :  { %v6987_v28 = vpop.trf.xlu0 }
0x2a09   :  { %15234 = vmatprep.mubr.msk.f32.mxu0 %vm111_vm1, %v6987_v28 }
0x2a0c   :  { %v6988_v33 = vpop.trf.xlu0 }
0x2a0d   :  { %15235 = vmatmul.mubr.msk.f32.gmra.mxu0 %vm111_vm1, %v6988_v33 }
0x2a10   :  { %v6989_v23 = vpop.trf.xlu0 }
0x2a11   :  { %15237 = vmatprep.mubr.msk.f32.mxu0 %vm111_vm1, %v6989_v23 }
0x2a14   :  { %v6990_v4 = vpop.trf.xlu0 }
0x2a15   :  { %15238 = vmatmul.mubr.msk.f32.gmra.mxu0 %vm111_vm1, %v6990_v4 }
0x2a18   :  { %v6991_v36 = vpop.trf.xlu0 }
0x2a19   :  { %15240 = vmatprep.mubr.msk.f32.mxu0 %vm111_vm1, %v6991_v36 }
0x2a1c   :  { %v6992_v37 = vpop.trf.xlu0 }
0x2a1d   :  { %15241 = vmatmul.mubr.msk.f32.gmra.mxu0 %vm111_vm1, %v6992_v37 }
0x2a20   :  { %v6993_v38 = vpop.trf.xlu0 }
0x2a21   :  { %15243 = vmatprep.mubr.msk.f32.mxu0 %vm111_vm1, %v6993_v38 }
0x2a24   :  { %v6994_v40 = vpop.trf.xlu0 }
0x2a25   :  { %15244 = vmatmul.mubr.msk.f32.gmra.mxu0 %vm111_vm1, %v6994_v40 }
0x2a28   :  { %v6995_v41 = vpop.trf.xlu0 }
0x2a29   :  { %15246 = vmatprep.mubr.msk.f32.mxu0 %vm111_vm1, %v6995_v41 }
0x2a2c   :  { %v6996_v42 = vpop.trf.xlu0 }
0x2a2d   :  { %15247 = vmatmul.mubr.msk.f32.gmra.mxu0 %vm111_vm1, %v6996_v42 }
0x2a8f   :  { %v15215_v43 = vpop.f32.mrf.mxu0 }
0x2a90   :  { %v6734_v44 = vmul.f32 %v15215_v43, %v15215_v43 }
0x2a91   :  { %v6724_v46 = vpop.f32.mrf.mxu0 }
0x2a92   :  { %6739 = vrot.lane.b32.xlu1 %v6734_v44, %s16150_s26  ;;  %v6733_v47 = vmul.f32 %v6724_v46, %v6724_v46 }
0x2a96   :  { %6737 = vrot.lane.b32.xlu1 %v6733_v47, %s16150_s26 }
0x2a9a   :  { %6754 = vperm.xlu1 %15752, %v15215_v43  }
0x2a9e   :  { %6749 = vperm.xlu1 %15752, %v6724_v46  }
0x2aa2   :  { %6784 = vperm.xlu1 %15752, %v6776_v48  }
0x2aa6   :  { %6779 = vperm.xlu1 %15752, %v6775_v49  }
0x2aaa   :  { %6798 = vperm.xlu1 %15752, %v6790_v50  }
0x2aae   :  { %15753 = vset.pattern.permute.xlu1 %v16149_v60 }
0x2ab5   :  { %v16756_v51 = vpop.f32.mrf.mxu0 }
0x2ab7   :  { %v16758_v52 = vpop.f32.mrf.mxu0 }
0x2abd   :  { %v16760_v53 = vpop.f32.mrf.mxu0 }
0x2abf   :  { %v16762_v54 = vpop.f32.mrf.mxu0 }
0x2ac5   :  { %v16764_v55 = vpop.f32.mrf.mxu0 }
0x2ac7   :  { %v16766_v56 = vpop.f32.mrf.mxu0 }
0x2acd   :  { %v16768_v57 = vpop.f32.mrf.mxu0 }
0x2acf   :  { %v16770_v58 = vpop.f32.mrf.mxu0 }
0x2ad5   :  { %v16772_v59 = vpop.f32.mrf.mxu0 }
0x2ad6   :  { %v7365_v18 = vsel %vm478_vm3, %v16772_v59, -inf }
0x2ad7   :  { %v16774_v22 = vpop.f32.mrf.mxu0 }
0x2ad8   :  { %v7362_v20 = vsel %vm478_vm3, %v16774_v22, -inf }
0x2add   :  { %v16776_v61 = vpop.f32.mrf.mxu0 }
0x2ade   :  { %v7371_v25 = vsel %vm478_vm3, %v16776_v61, -inf }
0x2adf   :  { %v16778_v24 = vpop.f32.mrf.mxu0 }
0x2ae0   :  { %v7368_v21 = vsel %vm478_vm3, %v16778_v24, -inf }
0x2ae5   :  { %v16780_v62 = vpop.f32.mrf.mxu0 }
0x2ae6   :  { %v7377_v13 = vsel %vm478_vm3, %v16780_v62, -inf }
0x2ae7   :  { %v16782_v63 = vpop.f32.mrf.mxu0 }
0x2ae8   :  { %v7374_v27 = vsel %vm478_vm3, %v16782_v63, -inf }
0x2aed   :  { %v16784_v1 = vpop.f32.mrf.mxu0 }
0x2aee   :  { %v7383_v2 = vsel %vm478_vm3, %v16784_v1, -inf }
0x2aef   :  { %7384 = vmax.xlane.f32.xlu0 %v7383_v2  ;;  %v16801_v12 = vpop.f32.mrf.mxu0 }
0x2af0   :  { %v7380_v26 = vsel %vm478_vm3, %v16801_v12, -inf }
0x2b04   :  { %v6740_v7 = vpop.permute.xlu1 %6739 }
0x2b05   :  { %v6744_v8 = vsub.f32 %v15215_v43, %v6740_v7  ;;  %7784 = vperm.xlu0 %15750, %v7781_v3  }
0x2b07   :  { %v6746_v9 = vmax.f32 %v6744_v8, 0.0 }
0x2b08   :  { %v6738_v5 = vpop.permute.xlu1 %6737 }
0x2b09   :  { %v6760_v11 = vadd.f32 1e-05, %v6746_v9  ;;  %v6743_v10 = vsub.f32 %v6724_v46, %v6738_v5 }
0x2b0b   :  { %15921 = vrsqrt.f32 %v6760_v11  ;;  %v6745_v14 = vmax.f32 %v6743_v10, 0.0  ;;  %v7209_v11 = vpop.trf.xlu0 }
0x2b0d   :  { %v6759_v16 = vadd.f32 1e-05, %v6745_v14 }
0x2b0f   :  { %15923 = vrsqrt.f32 %v6759_v16 }
0x2b15   :  { %v6755_v29 = vpop.permute.xlu1 %6754 }
0x2b16   :  { %v6758_v36 = vsub.f32 %v16707_v34, %v6755_v29 }
0x2b18   :  { %v15922_v17 = vpop.eup %15921 }
0x2b19   :  { %6770 = vperm.xlu1 %15753, %v15922_v17   ;;  %v6750_v28 = vpop.permute.xlu1 %6749 }
0x2b1a   :  { %v6757_v39 = vsub.f32 %v16709_v35, %v6750_v28 }
0x2b1c   :  { %v15924_v19 = vpop.eup %15923 }
0x2b1d   :  { %6765 = vperm.xlu1 %15753, %v15924_v19   ;;  %v6785_v33 = vpop.permute.xlu1 %6784  ;;  %v7210_v19 = vpop.trf.xlu0 }
0x2b21   :  { %15754 = vset.pattern.permute.xlu1 %v16141_v0  ;;  %v6780_v23 = vpop.permute.xlu1 %6779 }
0x2b22   :  { %6793 = vperm.xlu1 %15754, %v6789_v15  }
0x2b25   :  { %v6799_v4 = vpop.permute.xlu1 %6798 }
0x2b46   :  { %7363 = vmax.xlane.f32.xlu1 %v7362_v20 }
0x2b4a   :  { %7366 = vmax.xlane.f32.xlu1 %v7365_v18 }
0x2b4e   :  { %7369 = vmax.xlane.f32.xlu1 %v7368_v21 }
0x2b52   :  { %7372 = vmax.xlane.f32.xlu1 %v7371_v25 }
0x2b56   :  { %7375 = vmax.xlane.f32.xlu1 %v7374_v27 }
0x2b5a   :  { %7378 = vmax.xlane.f32.xlu1 %v7377_v13 }
0x2b5e   :  { %7381 = vmax.xlane.f32.xlu1 %v7380_v26 }
0x2b94   :  { %v6771_v37 = vpop.permute.xlu1 %6770 }
0x2b95   :  { %v6774_v38 = vmul.f32 %v6771_v37, %v6758_v36 }
0x2b97   :  { %v6788_v40 = vmul.f32 %v6785_v33, %v6774_v38 }
0x2b98   :  { %v6766_v41 = vpop.permute.xlu1 %6765 }
0x2b99   :  { %v6802_v42 = vadd.f32 %v6799_v4, %v6788_v40  ;;  %v6773_v43 = vmul.f32 %v6766_v41, %v6757_v39 }
0x2b9b   :  { %v6810_v44 = vand.u32 2147483647, %v6802_v42  ;;  %v6787_v46 = vmul.f32 %v6780_v23, %v6773_v43  ;;  %v6804_v18 = vmax.f32 %v6802_v42, 0.0  ;;  %vm6806_vm12 = vcmp.ne.f32.partialorder %v6802_v42, %v6802_v42  ;;  %v7211_v23 = vpop.trf.xlu0 }
0x2b9d   :  { %v6812_v47 = vsub.f32 0.0, %v6810_v44  ;;  %v6794_v48 = vpop.permute.xlu1 %6793 }
0x2b9e   :  { %v6801_v49 = vadd.f32 %v6794_v48, %v6787_v46 }
0x2b9f   :  { %v6815_v50 = vmul.f32 1.442695, %v6812_v47  ;;  %v7212_v39 = vpop.trf.xlu0 }
0x2ba0   :  { %v6809_v2 = vand.u32 2147483647, %v6801_v49  ;;  %v6803_v4 = vmax.f32 %v6801_v49, 0.0  ;;  %vm6805_vm10 = vcmp.ne.f32.partialorder %v6801_v49, %v6801_v49 }
0x2ba1   :  { %15925 = vpow2.f32 %v6815_v50 }
0x2ba2   :  { %v6811_v3 = vsub.f32 0.0, %v6809_v2 }
0x2ba3   :  { %v7213_v41 = vpop.trf.xlu0 }
0x2ba4   :  { %v6813_v7 = vmul.f32 1.442695, %v6811_v3 }
0x2ba6   :  { %15927 = vpow2.f32 %v6813_v7 }
0x2bae   :  { %v15926_v34 = vpop.eup %15925 }
0x2baf   :  { %v6826_v8 = vadd.f32 1.0, %v15926_v34  ;;  %v6829_v5 = vmul.f32 -0.5, %v15926_v34  ;;  %v6832_v14 = vand.u32 2147483647, %v15926_v34 }
0x2bb1   :  { %15929 = vlog2.f32 %v6826_v8  ;;  %v6830_v10 = vadd.f32 1.0, %v6829_v5  ;;  %vm6833_vm0 = vcmp.lt.f32.partialorder %v6832_v14, 0.0004427343 }
0x2bb3   :  { %v15928_v9 = vpop.eup %15927  ;;  %v6831_v20 = vmul.f32 %v15926_v34, %v6830_v10  ;;  %v7214_v34 = vpop.trf.xlu0 }
0x2bb4   :  { %v6817_v35 = vadd.f32 1.0, %v15928_v9  ;;  %v6820_v16 = vmul.f32 -0.5, %v15928_v9  ;;  %v6823_v27 = vand.u32 2147483647, %v15928_v9 }
0x2bb6   :  { %15931 = vlog2.f32 %v6817_v35  ;;  %v6821_v21 = vadd.f32 1.0, %v6820_v16  ;;  %vm6824_vm15 = vcmp.lt.f32.partialorder %v6823_v27, 0.0004427343 }
0x2bb7   :  { %v7215_v10 = vpop.trf.xlu0 }
0x2bb8   :  { %v6822_v33 = vmul.f32 %v15928_v9, %v6821_v21 }
0x2bbb   :  { %v7216_v16 = vpop.trf.xlu0 }
0x2bbe   :  { %v15930_v17 = vpop.eup %15929 }
0x2bbf   :  { %v6828_v15 = vmul.f32 0.6931472, %v15930_v17  ;;  %v7385_v21 = vpop.xlane.xlu0 %7384 }
0x2bc1   :  { %v6834_v25 = vsel %vm6833_vm0, %v6831_v20, %v6828_v15  ;;  %v7357_v20 = vmul.f32 0.25, %v16760_v53 }
0x2bc2   :  { %v6836_v13 = vadd.f32 %v6834_v25, %v6804_v18  ;;  %v7356_v18 = vmul.f32 0.25, %v16762_v54  ;;  %v7393_v25 = vsub.f32 %v16784_v1, %v7385_v21  ;;  %v7354_v54 = vmul.f32 0.25, %v16758_v52 }
0x2bc3   :  { %v15932_v26 = vpop.eup %15931 }
0x2bc4   :  { %v6838_v29 = vsel %vm6806_vm12, %v6802_v42, %v6836_v13  ;;  %v6819_v28 = vmul.f32 0.6931472, %v15932_v26  ;;  %v7355_v13 = vmul.f32 0.25, %v16756_v51  ;;  %v7408_v1 = vmul.f32 1.442695, %v7393_v25  ;;  %v7605_v25 = vld [vmem:[#allocation2 + $0x488] sm:$0xff] }
0x2bc5   :  { %15933 = vtanh.f32 %v6838_v29 }
0x2bc6   :  { %v6825_v36 = vsel %vm6824_vm15, %v6822_v33, %v6819_v28 }
0x2bc7   :  { %v6835_v37 = vadd.f32 %v6825_v36, %v6803_v4 }
0x2bc9   :  { %v6837_v38 = vsel %vm6805_vm10, %v6801_v49, %v6835_v37 }
0x2bca   :  { %15935 = vtanh.f32 %v6837_v38 }
0x2bcf   :  { %v7364_v40 = vpop.xlane.xlu1 %7363 }
0x2bd0   :  { %v7386_v44 = vsub.f32 %v16774_v22, %v7364_v40 }
0x2bd2   :  { %v15934_v43 = vpop.eup %15933  ;;  %v7394_v2 = vmul.f32 1.442695, %v7386_v44 }
0x2bd3   :  { %v7367_v46 = vpop.xlane.xlu1 %7366  ;;  %v6842_v47 = vmul.f32 %v15934_v43, %v6802_v42  ;;  %v6845_v42 = vld [vmem:[#allocation2 + $0x458] sm:$0xff] }
0x2bd4   :  { %v7387_v48 = vsub.f32 %v16772_v59, %v7367_v46 }
0x2bd5   :  { %v6844_v50 = vadd.f32 %v16616_v30, %v6842_v47  ;;  %v7361_v30 = vmul.f32 0.25, %v16768_v57 }
0x2bd6   :  { %v7396_v3 = vmul.f32 1.442695, %v7387_v48 }
0x2bd7   :  { %v15936_v7 = vpop.eup %15935  ;;  %15217 = vmatpush3.msra.mxu1 %v6844_v50  ;;  %v7370_v8 = vpop.xlane.xlu1 %7369 }
0x2bd8   :  { %15937 = vpow2.f32 %v7396_v3  ;;  %15218 = vmatprep.subr.mxu1 %v16142_v6  ;;  %v6841_v9 = vmul.f32 %v15936_v7, %v6801_v49  ;;  %v7388_v35 = vsub.f32 %v16778_v24, %v7370_v8  ;;  %v7359_v24 = vmul.f32 0.25, %v16764_v55 }
0x2bd9   :  { %15939 = vpow2.f32 %v7394_v2 }
0x2bda   :  { %v6843_v22 = vadd.f32 %v6841_v9, %v16620_v32  ;;  %v7398_v14 = vmul.f32 1.442695, %v7388_v35 }
0x2bdb   :  { %v7373_v5 = vpop.xlane.xlu1 %7372 }
0x2bdc   :  { %v7389_v59 = vsub.f32 %v16776_v61, %v7373_v5  ;;  %15219 = vmatpush3.msra.mxu1 %v6843_v22  ;;  %v7360_v61 = vmul.f32 0.25, %v16770_v58  ;;  %v7358_v58 = vmul.f32 0.25, %v16766_v56 }
0x2bdd   :  { %15221 = vmatmul.mubr.msk.f32.vlgmr.msra.gmra.mxu1 %vm478_vm3, %v6845_v42  ;;  %15249 = vmatprep.subr.msk.mxu1 %vm160_vm2, %v16731_v31 }
0x2bde   :  { %v7400_v49 = vmul.f32 1.442695, %v7389_v59  ;;  %15250 = vmatpush3.msk.msra.mxu1 %vm160_vm2, %v16731_v31  ;;  %15251 = vmatprep.mubr.msk.f32.mxu1 %vm111_vm1, %v7209_v11 }
0x2bdf   :  { %15291 = vmatprep.subr.mxu1 %v7361_v30  ;;  %v7376_v32 = vpop.xlane.xlu1 %7375 }
0x2be0   :  { %15941 = vpow2.f32 %v7400_v49  ;;  %v7390_v57 = vsub.f32 %v16782_v63, %v7376_v32 }
0x2be1   :  { %15252 = vmatmul.mubr.msk.f32.vlgmr.msra.gmra.mxu1 %vm111_vm1, %v7210_v19  ;;  %15943 = vpow2.f32 %v7398_v14 }
0x2be2   :  { %15292 = vmatpush3.msra.mxu1 %v7361_v30  ;;  %15254 = vmatprep.mubr.msk.f32.mxu1 %vm111_vm1, %v7211_v23  ;;  %v7402_v19 = vmul.f32 1.442695, %v7390_v57 }
0x2be3   :  { %15293 = vmatprep.subr.mxu1 %v7360_v61  ;;  %v7379_v31 = vpop.xlane.xlu1 %7378 }
0x2be4   :  { %v7391_v11 = vsub.f32 %v16780_v62, %v7379_v31  ;;  %15294 = vmatpush3.msra.mxu1 %v7360_v61 }
0x2be5   :  { %v16827_v17 = vpop.eup %15937  ;;  %15295 = vmatprep.subr.mxu1 %v7359_v24  ;;  %15255 = vmatmul.mubr.msk.f32.gmra.mxu1 %vm111_vm1, %v7212_v39 }
0x2be6   :  { %v7404_v63 = vmul.f32 1.442695, %v7391_v11  ;;  %15296 = vmatpush3.msra.mxu1 %v7359_v24  ;;  %15257 = vmatprep.mubr.msk.f32.mxu1 %vm111_vm1, %v7213_v41  ;;  %v7413_v55 = vsel %vm478_vm3, %v16827_v17, 0.0  ;;  %v15940_v15 = vpop.eup %15939 }
0x2be7   :  { %15297 = vmatprep.subr.mxu1 %v7358_v58  ;;  %7414 = vadd.xlane.f32.xlu1 %v7413_v55  ;;  %v7382_v62 = vpop.xlane.xlu1 %7381  ;;  %v7410_v53 = vsel %vm478_vm3, %v15940_v15, 0.0  ;;  %v7603_v55 = vld [vmem:[#allocation2 + $0x478] sm:$0xff] }
0x2be8   :  { %15945 = vpow2.f32 %v7404_v63  ;;  %v7392_v56 = vsub.f32 %v16801_v12, %v7382_v62  ;;  %15298 = vmatpush3.msra.mxu1 %v7358_v58  ;;  %v7604_v62 = vld [vmem:[#allocation2 + $0x480] sm:$0xff] }
0x2be9   :  { %15299 = vmatprep.subr.mxu1 %v7357_v20  ;;  %15258 = vmatmul.mubr.msk.f32.gmra.mxu1 %vm111_vm1, %v7214_v34  ;;  %15947 = vpow2.f32 %v7402_v19 }
0x2bea   :  { %v7406_v27 = vmul.f32 1.442695, %v7392_v56  ;;  %15300 = vmatpush3.msra.mxu1 %v7357_v20  ;;  %15260 = vmatprep.mubr.msk.f32.mxu1 %vm111_vm1, %v7215_v10 }
0x2beb   :  { %15301 = vmatprep.subr.mxu1 %v7356_v18  ;;  %7411 = vadd.xlane.f32.xlu1 %v7410_v53  ;;  %v7606_v53 = vld [vmem:[#allocation2 + $0x490] sm:$0xff] }
0x2bec   :  { %15302 = vmatpush3.msra.mxu1 %v7356_v18  ;;  %15949 = vpow2.f32 %v7406_v27 }
0x2bed   :  { %v16842_v12 = vpop.eup %15941  ;;  %15303 = vmatprep.subr.mxu1 %v7355_v13  ;;  %15261 = vmatmul.mubr.msk.f32.gmra.mxu1 %vm111_vm1, %v7216_v16  ;;  %15951 = vpow2.f32 %v7408_v1  ;;  %v7607_v1 = vld [vmem:[#allocation2 + $0x498] sm:$0xff] }
0x2bee   :  { %15304 = vmatpush3.msra.mxu1 %v7355_v13  ;;  %v7419_v26 = vsel %vm478_vm3, %v16842_v12, 0.0  ;;  %v16848_v29 = vpop.eup %15943 }
0x2bef   :  { %15305 = vmatprep.subr.mxu1 %v7354_v54  ;;  %7420 = vadd.xlane.f32.xlu1 %v7419_v26  ;;  %v7416_v51 = vsel %vm478_vm3, %v16848_v29, 0.0 }
0x2bf0   :  { %15306 = vmatpush3.msra.mxu1 %v7354_v54 }
0x2bf1   :  { %15319 = vmatprep.subr.mxu1 %v16142_v6 }
0x2bf3   :  { %7417 = vadd.xlane.f32.xlu1 %v7416_v51 }
0x2bf5   :  { %v16853_v52 = vpop.eup %15945 }
0x2bf6   :  { %v7425_v28 = vsel %vm478_vm3, %v16853_v52, 0.0  ;;  %v16857_v33 = vpop.eup %15947 }
0x2bf7   :  { %7426 = vadd.xlane.f32.xlu1 %v7425_v28  ;;  %v7422_v23 = vsel %vm478_vm3, %v16857_v33, 0.0 }
0x2bf9   :  { %v16861_v4 = vpop.eup %15949 }
0x2bfa   :  { %v7428_v36 = vsel %vm478_vm3, %v16861_v4, 0.0  ;;  %v16865_v37 = vpop.eup %15951 }
0x2bfb   :  { %7423 = vadd.xlane.f32.xlu1 %v7422_v23  ;;  %v7431_v38 = vsel %vm478_vm3, %v16865_v37, 0.0 }
0x2bff   :  { %7429 = vadd.xlane.f32.xlu1 %v7428_v36 }
0x2c03   :  { %7432 = vadd.xlane.f32.xlu1 %v7431_v38 }
0x2c70   :  { %v7415_v39 = vpop.xlane.xlu1 %7414 }
0x2c74   :  { %v7412_v40 = vpop.xlane.xlu1 %7411 }
0x2c75   :  { %15953 = vrcp.f32 %v7412_v40 }
0x2c76   :  { %15955 = vrcp.f32 %v7415_v39 }
0x2c78   :  { %v7421_v2 = vpop.xlane.xlu1 %7420 }
0x2c7c   :  { %v7418_v8 = vpop.xlane.xlu1 %7417 }
0x2c7d   :  { %15957 = vrcp.f32 %v7418_v8 }
0x2c7e   :  { %15959 = vrcp.f32 %v7421_v2 }
0x2c80   :  { %v7427_v22 = vpop.xlane.xlu1 %7426 }
0x2c82   :  { %v15954_v41 = vpop.eup %15953 }
0x2c83   :  { %v7435_v43 = vmul.f32 %v15954_v41, %v15940_v15  ;;  %v15956_v30 = vpop.eup %15955 }
0x2c84   :  { %v7424_v42 = vpop.xlane.xlu1 %7423  ;;  %v7437_v14 = vmul.f32 %v15956_v30, %v16827_v17 }
0x2c85   :  { %15279 = vmatprep.mubr.msk.f32.mxu0 %vm478_vm3, %v7435_v43  ;;  %15961 = vrcp.f32 %v7424_v42  ;;  %v7785_v42 = vpop.permute.xlu0 %7784 }
0x2c86   :  { %15963 = vrcp.f32 %v7427_v22  ;;  %v7780_v22 = vld [vmem:[#allocation2 + $0x4b8] sm:$0xf] }
0x2c88   :  { %v7430_v5 = vpop.xlane.xlu1 %7429 }
0x2c89   :  { %15965 = vrcp.f32 %v7430_v5 }
0x2c8a   :  { %v15958_v10 = vpop.eup %15957 }
0x2c8b   :  { %v15960_v49 = vpop.eup %15959  ;;  %v7439_v32 = vmul.f32 %v15958_v10, %v16848_v29  ;;  %v7608_v29 = vld [vmem:[#allocation2 + $0x4a0] sm:$0xff] }
0x2c8c   :  { %v7433_v59 = vpop.xlane.xlu1 %7432  ;;  %v7441_v57 = vmul.f32 %v15960_v49, %v16842_v12 }
0x2c8d   :  { %15967 = vrcp.f32 %v7433_v59 }
0x2c92   :  { %v15962_v61 = vpop.eup %15961 }
0x2c93   :  { %v15964_v24 = vpop.eup %15963  ;;  %v7443_v16 = vmul.f32 %v15962_v61, %v16857_v33  ;;  %v7609_v33 = vld [vmem:[#allocation2 + $0x4a8] sm:$0xff]  ;;  %v7868_v61 = vld [vmem:[#allocation2 + $0x4f8] sm:$0xff] }
0x2c94   :  { %v7445_v11 = vmul.f32 %v15964_v24, %v16853_v52 }
0x2c96   :  { %v15966_v31 = vpop.eup %15965 }
0x2c97   :  { %v7447_v58 = vmul.f32 %v15966_v31, %v16861_v4  ;;  %v7610_v4 = vld [vmem:[#allocation2 + $0x4b0] sm:$0xff]  ;;  %v8101_v31 = vld [vmem:[#allocation2 + $0x508] sm:$0xff] }
0x2c9a   :  { %v15968_v17 = vpop.eup %15967 }
0x2c9b   :  { %v7449_v19 = vmul.f32 %v15968_v17, %v16865_v37  ;;  %v8259_v37 = vld [vmem:[#allocation2 + $0x4d8] sm:$0xff]  ;;  %v8180_v17 = vld [vmem:[#allocation2 + $0x510] sm:$0xff] }
0x2c9d   :  { %v16870_v44 = vpop.f32.mrf.mxu1 }
0x2c9f   :  { %v15222_v46 = vpop.f32.mrf.mxu1 }
0x2ca1   :  { %v15253_v47 = vpop.f32.mrf.mxu1 }
0x2ca3   :  { %v7315_v48 = vpop.f32.mrf.mxu1 }
0x2ca5   :  { %v15256_v50 = vpop.f32.mrf.mxu1 }
0x2ca7   :  { %v7325_v3 = vpop.f32.mrf.mxu1 }
0x2ca9   :  { %v15259_v7 = vpop.f32.mrf.mxu1 }
0x2cab   :  { %v7335_v34 = vpop.f32.mrf.mxu1 }
0x2cad   :  { %v15262_v9 = vpop.f32.mrf.mxu1 }
0x2cae   :  { %15263 = vmatprep.subr.msk.mxu0 %vm478_vm3, %v15262_v9 }
0x2caf   :  { %v7345_v35 = vpop.f32.mrf.mxu1  ;;  %15264 = vmatpush3.xpose.msk.msra.mxu0 %vm478_vm3, %v15262_v9 }
0x2cb0   :  { %15265 = vmatprep.subr.msk.mxu0 %vm478_vm3, %v7345_v35 }
0x2cb3   :  { %15266 = vmatpush3.xpose.msk.msra.mxu0 %vm478_vm3, %v7345_v35 }
0x2cb4   :  { %15267 = vmatprep.subr.msk.mxu0 %vm478_vm3, %v15259_v7 }
0x2cb7   :  { %15268 = vmatpush3.xpose.msk.msra.mxu0 %vm478_vm3, %v15259_v7 }
0x2cb8   :  { %15269 = vmatprep.subr.msk.mxu0 %vm478_vm3, %v7335_v34 }
0x2cbb   :  { %15270 = vmatpush3.xpose.msk.msra.mxu0 %vm478_vm3, %v7335_v34 }
0x2cbc   :  { %15271 = vmatprep.subr.msk.mxu0 %vm478_vm3, %v15256_v50 }
0x2cbf   :  { %15272 = vmatpush3.xpose.msk.msra.mxu0 %vm478_vm3, %v15256_v50 }
0x2cc0   :  { %15273 = vmatprep.subr.msk.mxu0 %vm478_vm3, %v7325_v3 }
0x2cc3   :  { %15274 = vmatpush3.xpose.msk.msra.mxu0 %vm478_vm3, %v7325_v3 }
0x2cc4   :  { %15275 = vmatprep.subr.msk.mxu0 %vm478_vm3, %v15253_v47 }
0x2cc7   :  { %15276 = vmatpush3.xpose.msk.msra.mxu0 %vm478_vm3, %v15253_v47 }
0x2cc8   :  { %15277 = vmatprep.subr.msk.mxu0 %vm478_vm3, %v7315_v48 }
0x2ccb   :  { %15278 = vmatpush3.xpose.msk.msra.mxu0 %vm478_vm3, %v7315_v48 }
0x2ccc   :  { %15353 = vmatprep.subr.mxu0 %v16142_v6 }
0x2cce   :  { %15280 = vmatmul.mubr.msk.f32.vlgmr.msra.gmra.mxu0 %vm478_vm3, %v7437_v14 }
0x2ccf   :  { %15282 = vmatprep.mubr.msk.f32.mxu0 %vm478_vm3, %v7439_v32 }
0x2cd2   :  { %15283 = vmatmul.mubr.msk.f32.gmra.mxu0 %vm478_vm3, %v7441_v57 }
0x2cd3   :  { %15285 = vmatprep.mubr.msk.f32.mxu0 %vm478_vm3, %v7443_v16  ;;  %v8022_v16 = vld [vmem:[#allocation2 + $0x500] sm:$0xff] }
0x2cd6   :  { %15286 = vmatmul.mubr.msk.f32.gmra.mxu0 %vm478_vm3, %v7445_v11 }
0x2cd7   :  { %15288 = vmatprep.mubr.msk.f32.mxu0 %vm478_vm3, %v7447_v58 }
0x2cda   :  { %15289 = vmatmul.mubr.msk.f32.gmra.mxu0 %vm478_vm3, %v7449_v19 }
0x2cdb   :  { %15355 = vmatprep.mubr.msk.f32.mxu0 %vm16143_vm5, %v16142_v6 }
0x2d8e   :  { %v15281_v63 = vpop.f32.mrf.mxu0 }
0x2d8f   :  { %v7612_v18 = vmul.f32 %v15281_v63, %v7604_v62 }
0x2d90   :  { %v7564_v15 = vpop.f32.mrf.mxu0 }
0x2d91   :  { %v7611_v20 = vmul.f32 %v7603_v55, %v7564_v15 }
0x2d92   :  { %v15284_v56 = vpop.f32.mrf.mxu0 }
0x2d93   :  { %7619 = vxpose.xlu1.b32.start [1/8] (short) (narrow) %v7611_v20, 64  ;;  %v7614_v12 = vmul.f32 %v15284_v56, %v7606_v53 }
0x2d94   :  { %v7574_v21 = vpop.f32.mrf.mxu0 }
0x2d95   :  { %v7613_v27 = vmul.f32 %v7605_v25, %v7574_v21 }
0x2d96   :  { %v15287_v13 = vpop.f32.mrf.mxu0 }
0x2d97   :  { %7620 = vxpose.xlu1.b32.cont [2/8] (short) (narrow) %v7612_v18, 64  ;;  %v7616_v52 = vmul.f32 %v15287_v13, %v7608_v29 }
0x2d98   :  { %v7584_v54 = vpop.f32.mrf.mxu0 }
0x2d99   :  { %v7615_v26 = vmul.f32 %v7607_v1, %v7584_v54 }
0x2d9a   :  { %v15290_v51 = vpop.f32.mrf.mxu0 }
0x2d9b   :  { %7621 = vxpose.xlu1.b32.cont [3/8] (short) (narrow) %v7613_v27, 64  ;;  %v7618_v36 = vmul.f32 %v15290_v51, %v7610_v4 }
0x2d9c   :  { %v7594_v28 = vpop.f32.mrf.mxu0 }
0x2d9d   :  { %v7617_v23 = vmul.f32 %v7609_v33, %v7594_v28 }
0x2d9f   :  { %7622 = vxpose.xlu1.b32.cont [4/8] (short) (narrow) %v7614_v12, 64 }
0x2da3   :  { %7623 = vxpose.xlu1.b32.cont [5/8] (short) (narrow) %v7615_v26, 64 }
0x2da7   :  { %7624 = vxpose.xlu1.b32.cont [6/8] (short) (narrow) %v7616_v52, 64  ;;  %v8371_v52 = vld [vmem:[#allocation2 + $0x4e8] sm:$0xff] }
0x2dab   :  { %7625 = vxpose.xlu1.b32.cont [7/8] (short) (narrow) %v7617_v23, 64 }
0x2daf   :  { %7626 = vxpose.xlu1.b32.end [8/8] (short) (narrow) %v7618_v36, 64  ;;  %v8275_v36 = vld [vmem:[#allocation2 + $0x4d0] sm:$0xff] }
0x2dcd   :  { %8262 = vperm.xlu1 %15754, %v8259_v37  }
0x2e0f   :  { %v7635_v38 = vpop.trf.xlu1 }
0x2e10   :  { %15307 = vmatprep.mubr.msk.f32.mxu1 %vm768_vm4, %v7635_v38 }
0x2e13   :  { %v7636_v39 = vpop.trf.xlu1 }
0x2e14   :  { %15308 = vmatmul.mubr.msk.f32.vlgmr.msra.gmra.mxu1 %vm768_vm4, %v7636_v39 }
0x2e17   :  { %v7637_v40 = vpop.trf.xlu1 }
0x2e18   :  { %15310 = vmatprep.mubr.msk.f32.mxu1 %vm768_vm4, %v7637_v40 }
0x2e1b   :  { %v7638_v41 = vpop.trf.xlu1 }
0x2e1c   :  { %15311 = vmatmul.mubr.msk.f32.gmra.mxu1 %vm768_vm4, %v7638_v41 }
0x2e1f   :  { %v7639_v43 = vpop.trf.xlu1 }
0x2e20   :  { %15313 = vmatprep.mubr.msk.f32.mxu1 %vm768_vm4, %v7639_v43 }
0x2e23   :  { %v7640_v46 = vpop.trf.xlu1 }
0x2e24   :  { %15314 = vmatmul.mubr.msk.f32.gmra.mxu1 %vm768_vm4, %v7640_v46 }
0x2e27   :  { %v7641_v47 = vpop.trf.xlu1 }
0x2e28   :  { %15316 = vmatprep.mubr.msk.f32.mxu1 %vm768_vm4, %v7641_v47 }
0x2e2b   :  { %v7642_v48 = vpop.trf.xlu1 }
0x2e2c   :  { %15317 = vmatmul.mubr.msk.f32.gmra.mxu1 %vm768_vm4, %v7642_v48 }
0x2e2d   :  { %15335 = vmatprep.mubr.msk.f32.mxu1 %vm16143_vm5, %v16142_v6 }
0x2e48   :  { %v8263_v12 = vpop.permute.xlu1 %8262 }
0x2ed4   :  { %v15309_v50 = vpop.f32.mrf.mxu1 }
0x2ed6   :  { %v7741_v2 = vpop.f32.mrf.mxu1 }
0x2edc   :  { %v15312_v3 = vpop.f32.mrf.mxu1 }
0x2ede   :  { %v7751_v7 = vpop.f32.mrf.mxu1 }
0x2ee4   :  { %v15315_v34 = vpop.f32.mrf.mxu1 }
0x2ee6   :  { %v7761_v8 = vpop.f32.mrf.mxu1 }
0x2eec   :  { %v15318_v9 = vpop.f32.mrf.mxu1 }
0x2eed   :  { %15320 = vmatpush3.msra.mxu1 %v15318_v9 }
0x2eee   :  { %v7771_v35 = vpop.f32.mrf.mxu1  ;;  %15321 = vmatprep.subr.mxu1 %v16142_v6 }
0x2eef   :  { %15322 = vmatpush3.msra.mxu1 %v7771_v35 }
0x2ef0   :  { %15323 = vmatprep.subr.mxu1 %v16142_v6 }
0x2ef1   :  { %15324 = vmatpush3.msra.mxu1 %v15315_v34 }
0x2ef2   :  { %15325 = vmatprep.subr.mxu1 %v16142_v6 }
0x2ef3   :  { %15326 = vmatpush3.msra.mxu1 %v7761_v8 }
0x2ef4   :  { %15327 = vmatprep.subr.mxu1 %v16142_v6 }
0x2ef5   :  { %15328 = vmatpush3.msra.mxu1 %v15312_v3 }
0x2ef6   :  { %15329 = vmatprep.subr.mxu1 %v16142_v6 }
0x2ef7   :  { %15330 = vmatpush3.msra.mxu1 %v7751_v7 }
0x2ef8   :  { %15331 = vmatprep.subr.mxu1 %v16142_v6 }
0x2ef9   :  { %15332 = vmatpush3.msra.mxu1 %v15309_v50  ;;  %v8378_v50 = vld [vmem:[#allocation2 + $0x4e0] sm:$0xff] }
0x2efa   :  { %15333 = vmatprep.subr.mxu1 %v16142_v6 }
0x2efb   :  { %15334 = vmatpush3.msra.mxu1 %v7741_v2 }
0x2efc   :  { %15336 = vmatmul.mubr.msk.f32.vlgmr.msra.gmra.mxu1 %vm768_vm4, %v7780_v22  ;;  %15338 = vmatprep.subr.mxu1 %v16142_v6 }
0x2efd   :  { %15340 = vmatprep.mubr.msk.f32.mxu1 %vm16143_vm5, %v16142_v6 }
0x2fbc   :  { %v7856_v5 = vpop.f32.mrf.mxu1 }
0x2fbd   :  { %v7857_v59 = vadd.f32 %v7856_v5, %v7785_v42 }
0x2fbe   :  { %v15337_v30 = vpop.f32.mrf.mxu1 }
0x2fbf   :  { %v7860_v10 = vadd.f32 %v7857_v59, %v16722_v45  ;;  %v7867_v45 = vld [vmem:[#allocation2 + $0x4f0] sm:$0xff] }
0x2fc1   :  { %7862 = vrot.lane.b32.xlu0 %v7860_v10, %s16144_s0 }
0x3033   :  { %v7863_v14 = vpop.permute.xlu0 %7862 }
0x3034   :  { %v7865_v49 = vsel %vm983_vm6, 0.0, %v7863_v14 }
0x3035   :  { %v7866_v32 = vsel %vm985_vm7, %v7865_v49, 0.0 }
0x3036   :  { %7870 = vrot.lane.b32.xlu0 %v7866_v32, %s16145_s1 }
0x303a   :  { %8023 = vrot.lane.b32.xlu0 %v7866_v32, %s16146_s23 }
0x303e   :  { %8102 = vrot.lane.b32.xlu0 %v7866_v32, %s16147_s24 }
0x3042   :  { %8181 = vrot.lane.b32.xlu0 %v7866_v32, %s16148_s25 }
0x30a8   :  { %v7871_v57 = vpop.permute.xlu0 %7870 }
0x30a9   :  { %15339 = vmatpush3.msk.msra.mxu1 %vm160_vm2, %v7871_v57 }
0x30aa   :  { %15341 = vmatmul.mubr.msk.f32.vlgmr.msra.gmra.mxu1 %vm111_vm1, %v7868_v61  ;;  %15343 = vmatprep.subr.mxu1 %v16142_v6 }
0x30ab   :  { %15344 = vmatpush3.msk.msra.mxu1 %vm160_vm2, %v7866_v32  ;;  %15345 = vmatprep.mubr.msk.f32.mxu1 %vm16143_vm5, %v16142_v6 }
0x30ac   :  { %v8024_v24 = vpop.permute.xlu0 %8023  ;;  %15348 = vmatprep.subr.mxu1 %v16142_v6 }
0x30ae   :  { %15346 = vmatmul.mubr.msk.f32.vlgmr.msra.gmra.mxu1 %vm111_vm1, %v7867_v45 }
0x30af   :  { %15349 = vmatpush3.msk.msra.mxu1 %vm160_vm2, %v8024_v24  ;;  %15350 = vmatprep.mubr.msk.f32.mxu1 %vm16143_vm5, %v16142_v6 }
0x30b0   :  { %v8103_v11 = vpop.permute.xlu0 %8102  ;;  %15358 = vmatprep.subr.mxu1 %v16142_v6 }
0x30b1   :  { %15354 = vmatpush3.msk.msra.mxu0 %vm160_vm2, %v8103_v11 }
0x30b2   :  { %15351 = vmatmul.mubr.msk.f32.vlgmr.msra.gmra.mxu1 %vm111_vm1, %v8022_v16  ;;  %15356 = vmatmul.mubr.msk.f32.vlgmr.msra.gmra.mxu0 %vm111_vm1, %v8101_v31 }
0x30b3   :  { %15360 = vmatprep.mubr.msk.f32.mxu1 %vm16143_vm5, %v16142_v6  ;;  %15363 = vmatprep.subr.mxu0 %v16142_v6 }
0x30b4   :  { %v8182_v58 = vpop.permute.xlu0 %8181  ;;  %15365 = vmatprep.mubr.msk.f32.mxu0 %vm16143_vm5, %v16142_v6 }
0x30b5   :  { %15359 = vmatpush3.msk.msra.mxu1 %vm160_vm2, %v8182_v58 }
0x30b6   :  { %15361 = vmatmul.mubr.msk.f32.vlgmr.msra.gmra.mxu1 %vm111_vm1, %v8180_v17 }
0x316a   :  { %v7943_v19 = vpop.f32.mrf.mxu1 }
0x316c   :  { %v15342_v63 = vpop.f32.mrf.mxu1 }
0x316d   :  { %v8413_v63 = vld [vmem:[#allocation2 + $0x120] sm:$0xff] }
0x316e   :  { %v8018_v55 = vpop.f32.mrf.mxu1  ;;  %15370 = vmatprep.mubr.msk.f32.mxu1 %vm1399_vm9, %v8413_v63 }
0x316f   :  { %v8019_v20 = vadd.f32 %v8018_v55, %v7943_v19  ;;  %v8411_v19 = vld [vmem:[#allocation2 + $0x110] sm:$0xff] }
0x3170   :  { %v15347_v15 = vpop.f32.mrf.mxu1 }
0x3172   :  { %v8096_v62 = vpop.f32.mrf.mxu1  ;;  %v8175_v56 = vpop.f32.mrf.mxu0 }
0x3173   :  { %v8100_v18 = vadd.f32 %v8096_v62, %v8019_v20  ;;  %v8412_v20 = vld [vmem:[#allocation2 + $0x118] sm:$0xff] }
0x3174   :  { %v15352_v21 = vpop.f32.mrf.mxu1  ;;  %v15357_v25 = vpop.f32.mrf.mxu0 }
0x3175   :  { %v8179_v27 = vadd.f32 %v8175_v56, %v8100_v18  ;;  %v8669_v56 = vld [vmem:[#allocation2 + $0x140] sm:$0xff]  ;;  %v8846_v18 = vld [vmem:[#allocation2 + $0xe8] sm:$0xff] }
0x3176   :  { %v8254_v53 = vpop.f32.mrf.mxu1  ;;  %v8845_v21 = vld [vmem:[#allocation2 + $0xe0] sm:$0xff] }
0x3177   :  { %v8258_v13 = vadd.f32 %v8254_v53, %v8179_v27  ;;  %v8670_v27 = vld [vmem:[#allocation2 + $0x148] sm:$0xff] }
0x3178   :  { %v15362_v54 = vpop.f32.mrf.mxu1 }
0x3179   :  { %v8265_v1 = vadd.f32 %v8263_v12, %v8258_v13  ;;  %v8414_v13 = vld [vmem:[#allocation2 + $0x128] sm:$0xff]  ;;  %v8581_v12 = vld [vmem:[#allocation2 + $0x130] sm:$0xff] }
0x317b   :  { %v8266_v26 = vsel %vm478_vm3, %v8265_v1, 0.0  ;;  %v8270_v29 = vmul.f32 %v8265_v1, %v8265_v1 }
0x317c   :  { %8267 = vadd.xlane.f32.xlu0 %v8266_v26  ;;  %v8757_v26 = vld [vmem:[#allocation2 + $0x150] sm:$0xff] }
0x317d   :  { %v8271_v51 = vsel %vm478_vm3, %v8270_v29, 0.0 }
0x317e   :  { %8272 = vadd.xlane.f32.xlu1 %v8271_v51  ;;  %v8758_v51 = vld [vmem:[#allocation2 + $0x158] sm:$0xff] }
0x318f   :  { %8374 = vperm.xlu1 %15754, %v8371_v52  }
0x3205   :  { %v8268_v28 = vpop.xlane.xlu0 %8267 }
0x3206   :  { %v8269_v23 = vmul.f32 0.0625, %v8268_v28 }
0x3207   :  { %v8273_v33 = vpop.xlane.xlu1 %8272 }
0x3208   :  { %v8274_v4 = vmul.f32 0.0625, %v8273_v33 }
0x320a   :  { %v8276_v37 = vsel %vm1397_vm8, %v8269_v23, %v8274_v4 }
0x320b   :  { %15364 = vmatpush3.msra.mxu0 %v8276_v37  ;;  %v8375_v8 = vpop.permute.xlu1 %8374 }
0x320c   :  { %15366 = vmatmul.mubr.msk.f32.vlgmr.msra.gmra.mxu0 %vm1399_vm9, %v8275_v36 }
0x320d   :  { %15375 = vmatprep.mubr.msk.f32.mxu0 %vm1399_vm9, %v8411_v19 }
0x32cc   :  { %v8346_v38 = vpop.f32.mrf.mxu0 }
0x32cd   :  { %v8350_v39 = vmul.f32 %v8346_v38, %v8346_v38 }
0x32ce   :  { %v15367_v40 = vpop.f32.mrf.mxu0 }
0x32cf   :  { %8352 = vrot.lane.b32.xlu0 %v8350_v39, %s16150_s26 }
0x32d3   :  { %8359 = vperm.xlu0 %15750, %v8346_v38  }
0x32d7   :  { %15755 = vset.pattern.permute.xlu0 %v16149_v60 }
0x3341   :  { %v8353_v41 = vpop.permute.xlu0 %8352 }
0x3342   :  { %v8355_v43 = vsub.f32 %v8346_v38, %v8353_v41 }
0x3344   :  { %v8356_v46 = vmax.f32 %v8355_v43, 0.0 }
0x3346   :  { %v8363_v47 = vadd.f32 1e-05, %v8356_v46 }
0x3348   :  { %15969 = vrsqrt.f32 %v8363_v47 }
0x334e   :  { %v8360_v2 = vpop.permute.xlu0 %8359 }
0x334f   :  { %v8362_v3 = vsub.f32 %v8265_v1, %v8360_v2  ;;  %v8582_v1 = vld [vmem:[#allocation2 + $0x138] sm:$0xff] }
0x3355   :  { %v15970_v48 = vpop.eup %15969 }
0x3356   :  { %8367 = vperm.xlu0 %15755, %v15970_v48  }
0x335a   :  { %15756 = vset.pattern.permute.xlu0 %v16141_v0 }
0x335b   :  { %8381 = vperm.xlu0 %15756, %v8378_v50  }
0x33d1   :  { %v8368_v7 = vpop.permute.xlu0 %8367 }
0x33d2   :  { %v8370_v34 = vmul.f32 %v8368_v7, %v8362_v3 }
0x33d4   :  { %v8377_v9 = vmul.f32 %v8375_v8, %v8370_v34 }
0x33d6   :  { %v8382_v35 = vpop.permute.xlu0 %8381 }
0x33d7   :  { %v8384_v22 = vadd.f32 %v8382_v35, %v8377_v9 }
0x33d9   :  { %v8388_v42 = vand.u32 2147483647, %v8384_v22  ;;  %v8385_v24 = vmax.f32 %v8384_v22, 0.0  ;;  %vm8386_vm2 = vcmp.ne.f32.partialorder %v8384_v22, %v8384_v22 }
0x33db   :  { %v8389_v5 = vsub.f32 0.0, %v8388_v42 }
0x33dd   :  { %v8390_v59 = vmul.f32 1.442695, %v8389_v5 }
0x33df   :  { %15971 = vpow2.f32 %v8390_v59 }
0x33ec   :  { %v15972_v30 = vpop.eup %15971 }
0x33ed   :  { %v8392_v10 = vadd.f32 1.0, %v15972_v30  ;;  %v8395_v14 = vmul.f32 -0.5, %v15972_v30  ;;  %v8398_v32 = vand.u32 2147483647, %v15972_v30 }
0x33ef   :  { %15973 = vlog2.f32 %v8392_v10  ;;  %v8396_v49 = vadd.f32 1.0, %v8395_v14  ;;  %vm8399_vm1 = vcmp.lt.f32.partialorder %v8398_v32, 0.0004427343  ;;  %v8877_v10 = vld [vmem:[#allocation2 + $0xd0] sm:$0xff] }
0x33f1   :  { %v8397_v45 = vmul.f32 %v15972_v30, %v8396_v49 }
0x33fc   :  { %v15974_v61 = vpop.eup %15973 }
0x33fd   :  { %v8394_v57 = vmul.f32 0.6931472, %v15974_v61 }
0x33ff   :  { %v8400_v16 = vsel %vm8399_vm1, %v8397_v45, %v8394_v57 }
0x3400   :  { %v8401_v31 = vadd.f32 %v8400_v16, %v8385_v24 }
0x3402   :  { %v8402_v11 = vsel %vm8386_vm2, %v8384_v22, %v8401_v31 }
0x3403   :  { %15975 = vtanh.f32 %v8402_v11 }
0x3410   :  { %v15976_v17 = vpop.eup %15975 }
0x3411   :  { %v16963_v58 = vmul.f32 %v15976_v17, %v8384_v22  ;;  %v8878_v17 = vld [vmem:[#allocation2 + $0xd8] sm:$0xff] }
0x3413   :  { %8406 = vrot.lane.b32.xlu0 %v16963_v58, %s16144_s0 }
0x3485   :  { %v8407_v55 = vpop.permute.xlu0 %8406 }
0x3486   :  { %v8409_v15 = vsel %vm983_vm6, 0.0, %v8407_v55 }
0x3487   :  { %15373 = vmatprep.subr.msk.mxu0 %vm985_vm7, %v8409_v15  ;;  %v8410_v62 = vsel %vm985_vm7, %v8409_v15, 0.0 }
0x3488   :  { %15374 = vmatpush3.msk.msra.mxu0 %vm985_vm7, %v8409_v15  ;;  %8671 = vrot.lane.b32.xlu1 %v8410_v62, %s16147_s24 }
0x3489   :  { %8416 = vrot.lane.b32.xlu0 %v8410_v62, %s16145_s1  ;;  %15376 = vmatmul.mubr.msk.f32.vlgmr.msra.gmra.mxu0 %vm1399_vm9, %v8412_v20  ;;  %v9005_v20 = vld [vmem:[#allocation2 + $0x108] sm:$0xff] }
0x348a   :  { %15385 = vmatprep.mubr.msk.f32.mxu0 %vm1399_vm9, %v8669_v56 }
0x348c   :  { %8854 = vperm.xlu1 %15754, %v8846_v18  }
0x348d   :  { %8583 = vrot.lane.b32.xlu0 %v8410_v62, %s16146_s23 }
0x3491   :  { %8759 = vrot.lane.b32.xlu0 %v8410_v62, %s16148_s25 }
0x3495   :  { %8849 = vperm.xlu0 %15756, %v8845_v21  }
0x34fa   :  { %v8672_v25 = vpop.permute.xlu1 %8671 }
0x34fb   :  { %v8417_v53 = vpop.permute.xlu0 %8416  ;;  %15383 = vmatprep.subr.mxu0 %v8672_v25 }
0x34fc   :  { %15368 = vmatprep.subr.mxu1 %v8417_v53  ;;  %15384 = vmatpush3.msra.mxu0 %v8672_v25 }
0x34fd   :  { %15369 = vmatpush3.msra.mxu1 %v8417_v53  ;;  %15386 = vmatmul.mubr.msk.f32.vlgmr.msra.gmra.mxu0 %vm1399_vm9, %v8670_v27 }
0x34fe   :  { %15371 = vmatmul.mubr.msk.f32.vlgmr.msra.gmra.mxu1 %vm1399_vm9, %v8414_v13  ;;  %15397 = vmatprep.mubr.msk.f32.mxu0 %vm478_vm3, %v8877_v10 }
0x34ff   :  { %v8584_v54 = vpop.permute.xlu0 %8583  ;;  %15380 = vmatprep.mubr.msk.f32.mxu1 %vm1399_vm9, %v8581_v12 }
0x3500   :  { %15378 = vmatprep.subr.mxu1 %v8584_v54 }
0x3501   :  { %15379 = vmatpush3.msra.mxu1 %v8584_v54 }
0x3502   :  { %15381 = vmatmul.mubr.msk.f32.vlgmr.msra.gmra.mxu1 %vm1399_vm9, %v8582_v1  ;;  %v9004_v1 = vld [vmem:[#allocation2 + $0x100] sm:$0xff] }
0x3503   :  { %v8760_v29 = vpop.permute.xlu0 %8759  ;;  %15390 = vmatprep.mubr.msk.f32.mxu1 %vm1399_vm9, %v8757_v26  ;;  %v9019_v26 = vld [vmem:[#allocation2 + $0xf8] sm:$0xff] }
0x3504   :  { %15388 = vmatprep.subr.mxu1 %v8760_v29 }
0x3505   :  { %15389 = vmatpush3.msra.mxu1 %v8760_v29  ;;  %v9018_v29 = vld [vmem:[#allocation2 + $0xf0] sm:$0xff] }
0x3506   :  { %15391 = vmatmul.mubr.msk.f32.vlgmr.msra.gmra.mxu1 %vm1399_vm9, %v8758_v51 }
0x3507   :  { %v8855_v2 = vpop.permute.xlu1 %8854 }
0x3510   :  { %v8850_v8 = vpop.permute.xlu0 %8849 }
0x3549   :  { %v15377_v52 = vpop.f32.mrf.mxu0 }
0x354b   :  { %v8572_v33 = vpop.f32.mrf.mxu0 }
0x35bd   :  { %v15387_v37 = vpop.f32.mrf.mxu0 }
0x35be   :  { %v15372_v28 = vpop.f32.mrf.mxu1 }
0x35bf   :  { %v8578_v4 = vadd.f32 %v15377_v52, %v15372_v28  ;;  %v8746_v46 = vpop.f32.mrf.mxu0 }
0x35c0   :  { %v8491_v23 = vpop.f32.mrf.mxu1 }
0x35c1   :  { %v8573_v38 = vadd.f32 %v8572_v33, %v8491_v23 }
0x35c2   :  { %v15382_v36 = vpop.f32.mrf.mxu1 }
0x35c3   :  { %v8668_v39 = vadd.f32 %v15382_v36, %v8578_v4 }
0x35c4   :  { %v8658_v40 = vpop.f32.mrf.mxu1 }
0x35c5   :  { %v8667_v41 = vadd.f32 %v8658_v40, %v8573_v38  ;;  %v8756_v43 = vadd.f32 %v15387_v37, %v8668_v39 }
0x35c6   :  { %v15392_v47 = vpop.f32.mrf.mxu1 }
0x35c7   :  { %v8755_v48 = vadd.f32 %v8746_v46, %v8667_v41  ;;  %v8844_v50 = vadd.f32 %v15392_v47, %v8756_v43 }
0x35c8   :  { %v8834_v3 = vpop.f32.mrf.mxu1 }
0x35c9   :  { %v16985_v7 = vadd.f32 %v8855_v2, %v8844_v50  ;;  %v8843_v34 = vadd.f32 %v8834_v3, %v8755_v48 }
0x35cb   :  { %v16987_v9 = vadd.f32 %v8850_v8, %v8843_v34  ;;  %v8862_v35 = vsel %vm478_vm3, %v16985_v7, 0.0  ;;  %v8868_v22 = vmul.f32 %v16985_v7, %v16985_v7 }
0x35cc   :  { %8863 = vadd.xlane.f32.xlu1 %v8862_v35 }
0x35cd   :  { %v8872_v42 = vsel %vm478_vm3, %v8868_v22, 0.0  ;;  %v8867_v5 = vmul.f32 %v16987_v9, %v16987_v9  ;;  %v8859_v30 = vsel %vm478_vm3, %v16987_v9, 0.0 }
0x35ce   :  { %8873 = vadd.xlane.f32.xlu0 %v8872_v42 }
0x35cf   :  { %v8869_v59 = vsel %vm478_vm3, %v8867_v5, 0.0 }
0x35d0   :  { %8870 = vadd.xlane.f32.xlu1 %v8869_v59 }
0x35d2   :  { %8860 = vadd.xlane.f32.xlu0 %v8859_v30 }
0x3655   :  { %v8864_v14 = vpop.xlane.xlu1 %8863 }
0x3656   :  { %v8866_v32 = vmul.f32 0.0625, %v8864_v14 }
0x3657   :  { %v8874_v49 = vpop.xlane.xlu0 %8873 }
0x3658   :  { %v8876_v61 = vmul.f32 0.0625, %v8874_v49 }
0x3659   :  { %v8871_v57 = vpop.xlane.xlu1 %8870 }
0x365a   :  { %v8880_v45 = vsel %vm1397_vm8, %v8866_v32, %v8876_v61  ;;  %v8875_v16 = vmul.f32 0.0625, %v8871_v57 }
0x365b   :  { %15393 = vmatprep.subr.mxu0 %v8880_v45  ;;  %v8861_v24 = vpop.xlane.xlu0 %8860 }
0x365c   :  { %v8865_v31 = vmul.f32 0.0625, %v8861_v24  ;;  %15394 = vmatpush3.msra.mxu0 %v8880_v45 }
0x365e   :  { %v8879_v11 = vsel %vm1397_vm8, %v8865_v31, %v8875_v16 }
0x365f   :  { %15395 = vmatprep.subr.mxu0 %v8879_v11 }
0x3660   :  { %15396 = vmatpush3.msra.mxu0 %v8879_v11 }
0x3661   :  { %15398 = vmatmul.mubr.msk.f32.vlgmr.msra.gmra.mxu0 %vm478_vm3, %v8878_v17 }
0x3721   :  { %v15399_v19 = vpop.f32.mrf.mxu0 }
0x3722   :  { %v8963_v63 = vmul.f32 %v15399_v19, %v15399_v19 }
0x3723   :  { %v8953_v55 = vpop.f32.mrf.mxu0 }
0x3724   :  { %v8962_v15 = vmul.f32 %v8953_v55, %v8953_v55  ;;  %8968 = vrot.lane.b32.xlu0 %v8963_v63, %s16150_s26 }
0x3726   :  { %8966 = vrot.lane.b32.xlu1 %v8962_v15, %s16150_s26 }
0x3728   :  { %8978 = vperm.xlu0 %15756, %v8953_v55  }
0x372a   :  { %8983 = vperm.xlu1 %15754, %v15399_v19  }
0x372c   :  { %15759 = vset.pattern.permute.xlu0 %v16149_v60 }
0x372e   :  { %9013 = vperm.xlu1 %15754, %v9005_v20  }
0x3732   :  { %15757 = vset.pattern.permute.xlu1 %v16149_v60 }
0x3796   :  { %v8969_v62 = vpop.permute.xlu0 %8968 }
0x3797   :  { %v8973_v56 = vsub.f32 %v15399_v19, %v8969_v62 }
0x3798   :  { %v8967_v18 = vpop.permute.xlu1 %8966 }
0x3799   :  { %v8975_v21 = vmax.f32 %v8973_v56, 0.0  ;;  %v8972_v25 = vsub.f32 %v8953_v55, %v8967_v18 }
0x379b   :  { %v8989_v27 = vadd.f32 1e-05, %v8975_v21  ;;  %v8974_v53 = vmax.f32 %v8972_v25, 0.0  ;;  %v9086_v25 = vld [vmem:[#allocation2 + $0x1b0] sm:$0xff] }
0x379c   :  { %15404 = vmatprep.mubr.msk.f32.mxu1 %vm478_vm3, %v9086_v25 }
0x379d   :  { %15977 = vrsqrt.f32 %v8989_v27  ;;  %v8988_v13 = vadd.f32 1e-05, %v8974_v53  ;;  %v9084_v27 = vld [vmem:[#allocation2 + $0x1a0] sm:$0xff] }
0x379e   :  { %15411 = vmatprep.mubr.msk.f32.mxu0 %vm478_vm3, %v9084_v27 }
0x379f   :  { %15979 = vrsqrt.f32 %v8988_v13 }
0x37a3   :  { %v8979_v28 = vpop.permute.xlu0 %8978 }
0x37a4   :  { %v8986_v4 = vsub.f32 %v16987_v9, %v8979_v28  ;;  %v9531_v28 = vld [vmem:[#allocation2 + $0x170] sm:$0xff] }
0x37a5   :  { %v8984_v51 = vpop.permute.xlu1 %8983 }
0x37a6   :  { %v8987_v33 = vsub.f32 %v16985_v7, %v8984_v51  ;;  %v9349_v51 = vld [vmem:[#allocation2 + $0x1d0] sm:$0xff] }
0x37a9   :  { %v9014_v52 = vpop.permute.xlu1 %9013 }
0x37aa   :  { %v15978_v12 = vpop.eup %15977 }
0x37ab   :  { %8999 = vperm.xlu1 %15757, %v15978_v12  }
0x37ac   :  { %v15980_v54 = vpop.eup %15979 }
0x37ad   :  { %8994 = vperm.xlu0 %15759, %v15980_v54  }
0x37af   :  { %15758 = vset.pattern.permute.xlu1 %v16141_v0 }
0x37b0   :  { %9008 = vperm.xlu1 %15758, %v9004_v1  }
0x37b1   :  { %15760 = vset.pattern.permute.xlu0 %v16141_v0 }
0x37b2   :  { %9027 = vperm.xlu0 %15760, %v9019_v26   ;;  %v9085_v26 = vld [vmem:[#allocation2 + $0x1a8] sm:$0xff] }
0x37b4   :  { %9022 = vperm.xlu1 %15758, %v9018_v29  }
0x3826   :  { %v9000_v23 = vpop.permute.xlu1 %8999 }
0x3827   :  { %v9003_v36 = vmul.f32 %v9000_v23, %v8987_v33 }
0x3828   :  { %v8995_v37 = vpop.permute.xlu0 %8994 }
0x3829   :  { %v9002_v38 = vmul.f32 %v8995_v37, %v8986_v4  ;;  %v9017_v40 = vmul.f32 %v9014_v52, %v9003_v36  ;;  %v9532_v52 = vld [vmem:[#allocation2 + $0x178] sm:$0xff]  ;;  %v9258_v36 = vld [vmem:[#allocation2 + $0x1c0] sm:$0xff] }
0x382a   :  { %v9087_v4 = vld [vmem:[#allocation2 + $0x1b8] sm:$0xff] }
0x382b   :  { %v9009_v39 = vpop.permute.xlu1 %9008 }
0x382c   :  { %v9016_v43 = vmul.f32 %v9009_v39, %v9002_v38  ;;  %v9259_v39 = vld [vmem:[#allocation2 + $0x1c8] sm:$0xff] }
0x382d   :  { %v9028_v41 = vpop.permute.xlu0 %9027 }
0x382e   :  { %v9031_v46 = vadd.f32 %v9028_v41, %v9017_v40  ;;  %v9440_v40 = vld [vmem:[#allocation2 + $0x1e0] sm:$0xff] }
0x382f   :  { %v9023_v47 = vpop.permute.xlu1 %9022 }
0x3830   :  { %v9039_v48 = vand.u32 2147483647, %v9031_v46  ;;  %v9030_v50 = vadd.f32 %v9023_v47, %v9016_v43  ;;  %v9033_v24 = vmax.f32 %v9031_v46, 0.0  ;;  %vm9035_vm0 = vcmp.ne.f32.partialorder %v9031_v46, %v9031_v46 }
0x3832   :  { %v9041_v2 = vsub.f32 0.0, %v9039_v48  ;;  %v9038_v3 = vand.u32 2147483647, %v9030_v50  ;;  %v9032_v19 = vmax.f32 %v9030_v50, 0.0  ;;  %vm9034_vm12 = vcmp.ne.f32.partialorder %v9030_v50, %v9030_v50 }
0x3834   :  { %v9044_v34 = vmul.f32 1.442695, %v9041_v2  ;;  %v9040_v8 = vsub.f32 0.0, %v9038_v3 }
0x3836   :  { %15981 = vpow2.f32 %v9044_v34  ;;  %v9042_v7 = vmul.f32 1.442695, %v9040_v8 }
0x3838   :  { %15983 = vpow2.f32 %v9042_v7 }
0x3843   :  { %v15982_v35 = vpop.eup %15981 }
0x3844   :  { %v9055_v9 = vadd.f32 1.0, %v15982_v35  ;;  %v9058_v5 = vmul.f32 -0.5, %v15982_v35  ;;  %v9061_v10 = vand.u32 2147483647, %v15982_v35 }
0x3845   :  { %v15984_v22 = vpop.eup %15983 }
0x3846   :  { %15985 = vlog2.f32 %v9055_v9  ;;  %v9046_v42 = vadd.f32 1.0, %v15984_v22  ;;  %v9049_v59 = vmul.f32 -0.5, %v15984_v22  ;;  %v9059_v30 = vadd.f32 1.0, %v9058_v5 }
0x3847   :  { %v9052_v32 = vand.u32 2147483647, %v15984_v22  ;;  %vm9062_vm4 = vcmp.lt.f32.partialorder %v9061_v10, 0.0004427343 }
0x3848   :  { %15987 = vlog2.f32 %v9046_v42  ;;  %v9050_v14 = vadd.f32 1.0, %v9049_v59  ;;  %v9060_v57 = vmul.f32 %v15982_v35, %v9059_v30 }
0x3849   :  { %vm9053_vm11 = vcmp.lt.f32.partialorder %v9052_v32, 0.0004427343 }
0x384a   :  { %v9051_v11 = vmul.f32 %v15984_v22, %v9050_v14 }
0x3853   :  { %v15986_v49 = vpop.eup %15985 }
0x3854   :  { %v9057_v61 = vmul.f32 0.6931472, %v15986_v49 }
0x3855   :  { %v15988_v45 = vpop.eup %15987 }
0x3856   :  { %v9063_v16 = vsel %vm9062_vm4, %v9060_v57, %v9057_v61  ;;  %v9048_v31 = vmul.f32 0.6931472, %v15988_v45 }
0x3857   :  { %v9065_v17 = vadd.f32 %v9063_v16, %v9033_v24 }
0x3858   :  { %v9054_v63 = vsel %vm9053_vm11, %v9051_v11, %v9048_v31 }
0x3859   :  { %v9067_v55 = vsel %vm9035_vm0, %v9031_v46, %v9065_v17  ;;  %v9064_v15 = vadd.f32 %v9054_v63, %v9032_v19 }
0x385a   :  { %15989 = vtanh.f32 %v9067_v55 }
0x385b   :  { %v9066_v20 = vsel %vm9034_vm12, %v9030_v50, %v9064_v15  ;;  %v9563_v15 = vld [vmem:[#allocation2 + $0x160] sm:$0xff] }
0x385c   :  { %15991 = vtanh.f32 %v9066_v20 }
0x3867   :  { %v15990_v62 = vpop.eup %15989 }
0x3868   :  { %v9071_v56 = vmul.f32 %v15990_v62, %v9031_v46  ;;  %v9350_v46 = vld [vmem:[#allocation2 + $0x1d8] sm:$0xff] }
0x3869   :  { %v15992_v18 = vpop.eup %15991 }
0x386a   :  { %9076 = vrot.lane.b32.xlu1 %v9071_v56, %s16144_s0  ;;  %v9070_v21 = vmul.f32 %v15992_v18, %v9030_v50  ;;  %v9441_v50 = vld [vmem:[#allocation2 + $0x1e8] sm:$0xff] }
0x386c   :  { %9074 = vrot.lane.b32.xlu0 %v9070_v21, %s16144_s0 }
0x38dc   :  { %v9077_v53 = vpop.permute.xlu1 %9076 }
0x38dd   :  { %v9081_v13 = vsel %vm983_vm6, 0.0, %v9077_v53 }
0x38de   :  { %v9075_v12 = vpop.permute.xlu0 %9074  ;;  %15407 = vmatprep.subr.msk.mxu0 %vm985_vm7, %v9081_v13  ;;  %v9083_v54 = vsel %vm985_vm7, %v9081_v13, 0.0 }
0x38df   :  { %v9080_v1 = vsel %vm983_vm6, 0.0, %v9075_v12  ;;  %15408 = vmatpush3.msk.msra.mxu0 %vm985_vm7, %v9081_v13  ;;  %9092 = vrot.lane.b32.xlu1 %v9083_v54, %s16145_s1 }
0x38e0   :  { %15409 = vmatprep.subr.msk.mxu0 %vm985_vm7, %v9080_v1  ;;  %v9082_v29 = vsel %vm985_vm7, %v9080_v1, 0.0 }
0x38e1   :  { %9090 = vrot.lane.b32.xlu0 %v9082_v29, %s16145_s1  ;;  %15410 = vmatpush3.msk.msra.mxu0 %vm985_vm7, %v9080_v1  ;;  %v9758_v1 = vld [vmem:[#allocation2 + $0x200] sm:$0xff] }
0x38e2   :  { %15412 = vmatmul.mubr.msk.f32.vlgmr.msra.gmra.mxu0 %vm478_vm3, %v9085_v26  ;;  %v9759_v26 = vld [vmem:[#allocation2 + $0x208] sm:$0xff] }
0x38e3   :  { %9262 = vrot.lane.b32.xlu1 %v9083_v54, %s16146_s23  ;;  %15425 = vmatprep.mubr.msk.f32.mxu0 %vm478_vm3, %v9349_v51 }
0x38e5   :  { %9260 = vrot.lane.b32.xlu0 %v9082_v29, %s16146_s23 }
0x38e7   :  { %9353 = vrot.lane.b32.xlu1 %v9083_v54, %s16147_s24 }
0x38e9   :  { %9351 = vrot.lane.b32.xlu0 %v9082_v29, %s16147_s24 }
0x38eb   :  { %9444 = vrot.lane.b32.xlu1 %v9083_v54, %s16148_s25  ;;  %v9564_v54 = vld [vmem:[#allocation2 + $0x168] sm:$0xff] }
0x38ed   :  { %9442 = vrot.lane.b32.xlu0 %v9082_v29, %s16148_s25 }
0x38ef   :  { %9540 = vperm.xlu1 %15758, %v9532_v52  }
0x38f1   :  { %9535 = vperm.xlu0 %15760, %v9531_v28  }
0x3951   :  { %v9093_v33 = vpop.permute.xlu1 %9092 }
0x3952   :  { %15400 = vmatprep.subr.mxu1 %v9093_v33 }
0x3953   :  { %v9091_v23 = vpop.permute.xlu0 %9090  ;;  %15401 = vmatpush3.msra.mxu1 %v9093_v33  ;;  %v9690_v33 = vld [vmem:[#allocation2 + $0x190] sm:$0xff] }
0x3954   :  { %15402 = vmatprep.subr.mxu1 %v9091_v23 }
0x3955   :  { %15403 = vmatpush3.msra.mxu1 %v9091_v23  ;;  %v9263_v37 = vpop.permute.xlu1 %9262  ;;  %v9691_v23 = vld [vmem:[#allocation2 + $0x198] sm:$0xff] }
0x3956   :  { %15414 = vmatprep.subr.mxu1 %v9263_v37  ;;  %15405 = vmatmul.mubr.msk.f32.vlgmr.msra.gmra.mxu1 %vm478_vm3, %v9087_v4 }
0x3957   :  { %v9261_v38 = vpop.permute.xlu0 %9260  ;;  %15415 = vmatpush3.msra.mxu1 %v9263_v37  ;;  %15418 = vmatprep.mubr.msk.f32.mxu1 %vm478_vm3, %v9258_v36 }
0x3958   :  { %15416 = vmatprep.subr.mxu1 %v9261_v38 }
0x3959   :  { %15417 = vmatpush3.msra.mxu1 %v9261_v38  ;;  %v9354_v41 = vpop.permute.xlu1 %9353 }
0x395a   :  { %15421 = vmatprep.subr.mxu0 %v9354_v41  ;;  %15419 = vmatmul.mubr.msk.f32.vlgmr.msra.gmra.mxu1 %vm478_vm3, %v9259_v39 }
0x395b   :  { %v9352_v43 = vpop.permute.xlu0 %9351  ;;  %15422 = vmatpush3.msra.mxu0 %v9354_v41  ;;  %15432 = vmatprep.mubr.msk.f32.mxu1 %vm478_vm3, %v9440_v40 }
0x395c   :  { %15423 = vmatprep.subr.mxu0 %v9352_v43 }
0x395d   :  { %15424 = vmatpush3.msra.mxu0 %v9352_v43  ;;  %v9445_v47 = vpop.permute.xlu1 %9444 }
0x395e   :  { %15428 = vmatprep.subr.mxu1 %v9445_v47  ;;  %15426 = vmatmul.mubr.msk.f32.vlgmr.msra.gmra.mxu0 %vm478_vm3, %v9350_v46 }
0x395f   :  { %v9443_v48 = vpop.permute.xlu0 %9442  ;;  %15429 = vmatpush3.msra.mxu1 %v9445_v47  ;;  %15439 = vmatprep.mubr.msk.f32.mxu0 %vm478_vm3, %v9563_v15 }
0x3960   :  { %15430 = vmatprep.subr.mxu1 %v9443_v48 }
0x3961   :  { %15431 = vmatpush3.msra.mxu1 %v9443_v48  ;;  %v9704_v48 = vld [vmem:[#allocation2 + $0x180] sm:$0xff] }
0x3962   :  { %15433 = vmatmul.mubr.msk.f32.vlgmr.msra.gmra.mxu1 %vm478_vm3, %v9441_v50  ;;  %15442 = vmatprep.subr.mxu1 %v16963_v58  ;;  %v9705_v50 = vld [vmem:[#allocation2 + $0x188] sm:$0xff] }
0x3963   :  { %15443 = vmatpush3.msra.mxu1 %v16963_v58  ;;  %15444 = vmatprep.mubr.msk.f32.mxu1 %vm1399_vm9, %v9758_v1 }
0x3966   :  { %15445 = vmatmul.mubr.msk.f32.vlgmr.msra.gmra.mxu1 %vm1399_vm9, %v9759_v26 }
0x396a   :  { %v9541_v61 = vpop.permute.xlu1 %9540 }
0x396c   :  { %v9536_v24 = vpop.permute.xlu0 %9535 }
0x39a2   :  { %v15413_v3 = vpop.f32.mrf.mxu0 }
0x39a4   :  { %v9249_v7 = vpop.f32.mrf.mxu0 }
0x3a16   :  { %v15406_v2 = vpop.f32.mrf.mxu1 }
0x3a17   :  { %v9255_v8 = vadd.f32 %v15413_v3, %v15406_v2  ;;  %v9761_v2 = vld [vmem:[#allocation2 + $0x1f8] sm:$0xff]  ;;  %v9760_v3 = vld [vmem:[#allocation2 + $0x1f0] sm:$0xff] }
0x3a18   :  { %v9168_v34 = vpop.f32.mrf.mxu1 }
0x3a19   :  { %v9250_v9 = vadd.f32 %v9249_v7, %v9168_v34  ;;  %v9855_v34 = vld [vmem:[#allocation2 + $0x20] sm:$0xff] }
0x3a1a   :  { %v15420_v35 = vpop.f32.mrf.mxu1  ;;  %v9857_v7 = vld [vmem:[#allocation2] sm:$0xff] }
0x3a1b   :  { %v9348_v22 = vadd.f32 %v15420_v35, %v9255_v8  ;;  %v9856_v8 = vld [vmem:[#allocation2 + $0x28] sm:$0xff] }
0x3a1c   :  { %v9338_v42 = vpop.f32.mrf.mxu1  ;;  %v9858_v35 = vld [vmem:[#allocation2 + $0x8] sm:$0xff] }
0x3a1d   :  { %v9347_v30 = vadd.f32 %v9338_v42, %v9250_v9  ;;  %v9911_v9 = vld [vmem:[#allocation2 + $0x60] sm:$0xff] }
0x3a1e   :  { %v15427_v5 = vpop.f32.mrf.mxu0 }
0x3a1f   :  { %v9439_v10 = vadd.f32 %v15427_v5, %v9348_v22  ;;  %v9912_v22 = vld [vmem:[#allocation2 + $0x68] sm:$0xff] }
0x3a20   :  { %v9429_v59 = vpop.f32.mrf.mxu0 }
0x3a21   :  { %v9438_v49 = vadd.f32 %v9429_v59, %v9347_v30 }
0x3a22   :  { %v15434_v14 = vpop.f32.mrf.mxu1 }
0x3a23   :  { %v9530_v32 = vadd.f32 %v15434_v14, %v9439_v10 }
0x3a24   :  { %v9520_v57 = vpop.f32.mrf.mxu1 }
0x3a25   :  { %v17041_v45 = vadd.f32 %v9541_v61, %v9530_v32  ;;  %v9529_v58 = vadd.f32 %v9520_v57, %v9438_v49 }
0x3a27   :  { %v17043_v16 = vadd.f32 %v9536_v24, %v9529_v58  ;;  %v9548_v31 = vsel %vm478_vm3, %v17041_v45, 0.0  ;;  %v9554_v11 = vmul.f32 %v17041_v45, %v17041_v45 }
0x3a28   :  { %9549 = vadd.xlane.f32.xlu1 %v9548_v31 }
0x3a29   :  { %v9558_v17 = vsel %vm478_vm3, %v9554_v11, 0.0  ;;  %v9553_v19 = vmul.f32 %v17043_v16, %v17043_v16  ;;  %v9545_v55 = vsel %vm478_vm3, %v17043_v16, 0.0 }
0x3a2a   :  { %9559 = vadd.xlane.f32.xlu0 %v9558_v17 }
0x3a2b   :  { %v9555_v63 = vsel %vm478_vm3, %v9553_v19, 0.0 }
0x3a2c   :  { %9556 = vadd.xlane.f32.xlu1 %v9555_v63 }
0x3a2e   :  { %9546 = vadd.xlane.f32.xlu0 %v9545_v55 }
0x3ab1   :  { %v9550_v20 = vpop.xlane.xlu1 %9549 }
0x3ab2   :  { %v9552_v56 = vmul.f32 0.0625, %v9550_v20 }
0x3ab3   :  { %v9560_v62 = vpop.xlane.xlu0 %9559 }
0x3ab4   :  { %v9562_v18 = vmul.f32 0.0625, %v9560_v62 }
0x3ab5   :  { %v9557_v21 = vpop.xlane.xlu1 %9556 }
0x3ab6   :  { %v9566_v25 = vsel %vm1397_vm8, %v9552_v56, %v9562_v18  ;;  %v9561_v53 = vmul.f32 0.0625, %v9557_v21 }
0x3ab7   :  { %v9547_v27 = vpop.xlane.xlu0 %9546  ;;  %15435 = vmatprep.subr.mxu0 %v9566_v25 }
0x3ab8   :  { %v9551_v13 = vmul.f32 0.0625, %v9547_v27  ;;  %15436 = vmatpush3.msra.mxu0 %v9566_v25 }
0x3aba   :  { %v9565_v12 = vsel %vm1397_vm8, %v9551_v13, %v9561_v53 }
0x3abb   :  { %15437 = vmatprep.subr.mxu0 %v9565_v12 }
0x3abc   :  { %15438 = vmatpush3.msra.mxu0 %v9565_v12 }
0x3abd   :  { %15440 = vmatmul.mubr.msk.f32.vlgmr.msra.gmra.mxu0 %vm478_vm3, %v9564_v54 }
0x3b7d   :  { %v15441_v29 = vpop.f32.mrf.mxu0 }
0x3b7e   :  { %v9649_v51 = vmul.f32 %v15441_v29, %v15441_v29 }
0x3b7f   :  { %v9639_v52 = vpop.f32.mrf.mxu0 }
0x3b80   :  { %v9648_v28 = vmul.f32 %v9639_v52, %v9639_v52  ;;  %9654 = vrot.lane.b32.xlu1 %v9649_v51, %s16150_s26 }
0x3b82   :  { %9652 = vrot.lane.b32.xlu0 %v9648_v28, %s16150_s26 }
0x3b84   :  { %9664 = vperm.xlu1 %15758, %v9639_v52  }
0x3b86   :  { %9669 = vperm.xlu0 %15760, %v15441_v29  }
0x3b88   :  { %9694 = vperm.xlu1 %15758, %v9690_v33  }
0x3b8a   :  { %15761 = vset.pattern.permute.xlu0 %v16149_v60 }
0x3b8c   :  { %9699 = vperm.xlu1 %15758, %v9691_v23  }
0x3b90   :  { %15763 = vset.pattern.permute.xlu1 %v16149_v60 }
0x3bf2   :  { %v9655_v4 = vpop.permute.xlu1 %9654 }
0x3bf3   :  { %v9659_v36 = vsub.f32 %v15441_v29, %v9655_v4 }
0x3bf4   :  { %v9653_v37 = vpop.permute.xlu0 %9652 }
0x3bf5   :  { %v9661_v38 = vmax.f32 %v9659_v36, 0.0  ;;  %v9658_v39 = vsub.f32 %v9639_v52, %v9653_v37 }
0x3bf7   :  { %v9675_v40 = vadd.f32 1e-05, %v9661_v38  ;;  %v9660_v41 = vmax.f32 %v9658_v39, 0.0 }
0x3bf9   :  { %15993 = vrsqrt.f32 %v9675_v40  ;;  %v9674_v43 = vadd.f32 1e-05, %v9660_v41 }
0x3bfb   :  { %15995 = vrsqrt.f32 %v9674_v43 }
0x3bff   :  { %v9665_v42 = vpop.permute.xlu1 %9664 }
0x3c00   :  { %v9672_v49 = vsub.f32 %v17043_v16, %v9665_v42  ;;  %v9914_v16 = vld [vmem:[#allocation2 + $0x78] sm:$0xff] }
0x3c01   :  { %v9670_v59 = vpop.permute.xlu0 %9669 }
0x3c02   :  { %v9673_v10 = vsub.f32 %v17041_v45, %v9670_v59  ;;  %v9913_v45 = vld [vmem:[#allocation2 + $0x70] sm:$0xff] }
0x3c03   :  { %v9695_v5 = vpop.permute.xlu1 %9694 }
0x3c06   :  { %v15994_v46 = vpop.eup %15993 }
0x3c07   :  { %9685 = vperm.xlu0 %15761, %v15994_v46   ;;  %v9700_v30 = vpop.permute.xlu1 %9699 }
0x3c08   :  { %v15996_v47 = vpop.eup %15995 }
0x3c09   :  { %9680 = vperm.xlu1 %15763, %v15996_v47  }
0x3c0b   :  { %15762 = vset.pattern.permute.xlu0 %v16141_v0 }
0x3c0c   :  { %9708 = vperm.xlu0 %15762, %v9704_v48  }
0x3c0d   :  { %15764 = vset.pattern.permute.xlu1 %v16141_v0 }
0x3c0e   :  { %9713 = vperm.xlu1 %15764, %v9705_v50   ;;  %v15446_v50 = vpop.f32.mrf.mxu1 }
0x3c10   :  { %9769 = vperm.xlu0 %15762, %v9761_v2  }
0x3c12   :  { %9764 = vperm.xlu1 %15764, %v9760_v3   ;;  %v9844_v3 = vpop.f32.mrf.mxu1 }
0x3c14   :  { %9889 = vperm.xlu0 %15762, %v9855_v34  }
0x3c16   :  { %9894 = vperm.xlu1 %15764, %v9856_v8  }
0x3c18   :  { %9901 = vperm.xlu0 %15762, %v9857_v7  }
0x3c1a   :  { %9906 = vperm.xlu1 %15764, %v9858_v35  }
0x3c36   :  { %10076 = vxpose.xlu0.b32.start [1/2] (short) (narrow) %v9913_v45, 32 }
0x3c3a   :  { %10077 = vxpose.xlu0.b32.end [2/2] (short) (narrow) %v9914_v16, 32 }
0x3c43   :  { %9915 = vxpose.xlu1.b32.start [1/2] (short) (narrow) %v9911_v9, 64 }
0x3c47   :  { %9916 = vxpose.xlu1.b32.end [2/2] (short) (narrow) %v9912_v22, 64 }
0x3c82   :  { %v9686_v14 = vpop.permute.xlu0 %9685 }
0x3c83   :  { %v9689_v32 = vmul.f32 %v9686_v14, %v9673_v10 }
0x3c84   :  { %v9681_v61 = vpop.permute.xlu1 %9680 }
0x3c85   :  { %v9688_v57 = vmul.f32 %v9681_v61, %v9672_v49  ;;  %v9703_v31 = vmul.f32 %v9700_v30, %v9689_v32 }
0x3c87   :  { %v9702_v58 = vmul.f32 %v9695_v5, %v9688_v57  ;;  %v9709_v24 = vpop.permute.xlu0 %9708 }
0x3c89   :  { %v9716_v11 = vadd.f32 %v9709_v24, %v9702_v58  ;;  %v9714_v17 = vpop.permute.xlu1 %9713 }
0x3c8a   :  { %v9717_v19 = vadd.f32 %v9714_v17, %v9703_v31 }
0x3c8b   :  { %v9724_v63 = vand.u32 2147483647, %v9716_v11  ;;  %v9718_v23 = vmax.f32 %v9716_v11, 0.0  ;;  %vm9720_vm1 = vcmp.ne.f32.partialorder %v9716_v11, %v9716_v11  ;;  %v9770_v34 = vpop.permute.xlu0 %9769 }
0x3c8c   :  { %v9725_v55 = vand.u32 2147483647, %v9717_v19  ;;  %v9719_v38 = vmax.f32 %v9717_v19, 0.0  ;;  %vm9721_vm2 = vcmp.ne.f32.partialorder %v9717_v19, %v9717_v19  ;;  %v9850_v42 = vadd.f32 %v15446_v50, %v9770_v34 }
0x3c8d   :  { %v9726_v15 = vsub.f32 0.0, %v9724_v63  ;;  %v9765_v33 = vpop.permute.xlu1 %9764 }
0x3c8e   :  { %v9727_v20 = vsub.f32 0.0, %v9725_v55  ;;  %v9845_v9 = vadd.f32 %v9844_v3, %v9765_v33 }
0x3c8f   :  { %v9728_v62 = vmul.f32 1.442695, %v9726_v15 }
0x3c90   :  { %v9730_v56 = vmul.f32 1.442695, %v9727_v20 }
0x3c91   :  { %15997 = vpow2.f32 %v9728_v62  ;;  %v9895_v47 = vpop.permute.xlu1 %9894 }
0x3c92   :  { %15999 = vpow2.f32 %v9730_v56 }
0x3c95   :  { %v9907_v48 = vpop.permute.xlu1 %9906 }
0x3c9e   :  { %v15998_v18 = vpop.eup %15997 }
0x3c9f   :  { %v16000_v21 = vpop.eup %15999  ;;  %v9732_v25 = vadd.f32 1.0, %v15998_v18  ;;  %v9735_v53 = vmul.f32 -0.5, %v15998_v18  ;;  %v9738_v54 = vand.u32 2147483647, %v15998_v18 }
0x3ca0   :  { %v9741_v27 = vadd.f32 1.0, %v16000_v21  ;;  %v9744_v13 = vmul.f32 -0.5, %v16000_v21  ;;  %v9747_v26 = vand.u32 2147483647, %v16000_v21 }
0x3ca1   :  { %16001 = vlog2.f32 %v9732_v25  ;;  %v9736_v12 = vadd.f32 1.0, %v9735_v53  ;;  %vm9739_vm15 = vcmp.lt.f32.partialorder %v9738_v54, 0.0004427343 }
0x3ca2   :  { %16003 = vlog2.f32 %v9741_v27  ;;  %v9745_v1 = vadd.f32 1.0, %v9744_v13  ;;  %vm9748_vm10 = vcmp.lt.f32.partialorder %v9747_v26, 0.0004427343 }
0x3ca3   :  { %v9737_v28 = vmul.f32 %v15998_v18, %v9736_v12 }
0x3ca4   :  { %v9746_v36 = vmul.f32 %v16000_v21, %v9745_v1  ;;  %v9890_v1 = vpop.permute.xlu0 %9889 }
0x3cae   :  { %v16002_v29 = vpop.eup %16001 }
0x3caf   :  { %v16004_v51 = vpop.eup %16003  ;;  %v9734_v52 = vmul.f32 0.6931472, %v16002_v29 }
0x3cb0   :  { %v9743_v4 = vmul.f32 0.6931472, %v16004_v51 }
0x3cb1   :  { %v9740_v37 = vsel %vm9739_vm15, %v9737_v28, %v9734_v52 }
0x3cb2   :  { %v9750_v39 = vadd.f32 %v9740_v37, %v9718_v23  ;;  %v9749_v40 = vsel %vm9748_vm10, %v9746_v36, %v9743_v4  ;;  %v9902_v23 = vpop.permute.xlu0 %9901 }
0x3cb3   :  { %v9751_v41 = vadd.f32 %v9749_v40, %v9719_v38 }
0x3cb4   :  { %v9752_v43 = vsel %vm9720_vm1, %v9716_v11, %v9750_v39  ;;  %vm17391_vm1 = vcmask 138240  }
0x3cb5   :  { %16005 = vtanh.f32 %v9752_v43  ;;  %v9753_v46 = vsel %vm9721_vm2, %v9717_v19, %v9751_v41  ;;  %vm17392_vm2 = vmmov %vm17391_vm1 }
0x3cb6   :  { %16007 = vtanh.f32 %v9753_v46  ;;  %v10092_v39 = vpop.trf.xlu0 }
0x3cb7   :  { %15467 = vmatprep.mubr.msk.f32.mxu1 %vm478_vm3, %v10092_v39 }
0x3cba   :  { %v10093_v40 = vpop.trf.xlu0 }
0x3cbe   :  { %v10094_v41 = vpop.trf.xlu0 }
0x3cbf   :  { %v9931_v2 = vpop.trf.xlu1 }
0x3cc0   :  { %15451 = vmatprep.mubr.msk.f32.mxu0 %vm478_vm3, %v9931_v2 }
0x3cc2   :  { %v16006_v8 = vpop.eup %16005  ;;  %v10095_v43 = vpop.trf.xlu0 }
0x3cc3   :  { %v16008_v7 = vpop.eup %16007  ;;  %v9756_v35 = vmul.f32 %v16006_v8, %v9716_v11  ;;  %v9932_v27 = vpop.trf.xlu1 }
0x3cc4   :  { %v9757_v22 = vmul.f32 %v16008_v7, %v9717_v19 }
0x3cc5   :  { %v17070_v5 = vadd.f32 %v9845_v9, %v9756_v35 }
0x3cc6   :  { %v17072_v59 = vadd.f32 %v9850_v42, %v9757_v22 }
0x3cc7   :  { %v9859_v30 = vsel %vm478_vm3, %v17070_v5, 0.0  ;;  %v9933_v13 = vpop.trf.xlu1 }
0x3cc8   :  { %v9860_v10 = vsel %vm478_vm3, %v17072_v59, 0.0 }
0x3cc9   :  { %v9861_v14 = vadd.f32 %v9860_v10, %v9859_v30 }
0x3ccb   :  { %v9862_v49 = vrot.slane %v9861_v14, 4  ;;  %v9934_v12 = vpop.trf.xlu1 }
0x3ccd   :  { %v9863_v32 = vadd.f32 %v9862_v49, %v9861_v14 }
0x3ccf   :  { %v9864_v61 = vrot.slane %v9863_v32, 2  ;;  %v9935_v51 = vpop.trf.xlu1 }
0x3cd1   :  { %v9865_v57 = vadd.f32 %v9864_v61, %v9863_v32 }
0x3cd3   :  { %v9866_v58 = vrot.slane %v9865_v57, 1  ;;  %v9936_v36 = vpop.trf.xlu1 }
0x3cd5   :  { %v9867_v24 = vadd.f32 %v9866_v58, %v9865_v57 }
0x3cd7   :  { %v9868_v31 = vmul.f32 0.0625, %v9867_v24  ;;  %v9937_v37 = vpop.trf.xlu1 }
0x3cd9   :  { %v9869_v11 = vsub.f32 %v17070_v5, %v9868_v31  ;;  %v9870_v17 = vsub.f32 %v17072_v59, %v9868_v31 }
0x3cdb   :  { %v9871_v19 = vmul.f32 %v9869_v11, %v9869_v11  ;;  %v9872_v63 = vmul.f32 %v9870_v17, %v9870_v17  ;;  %v9938_v38 = vpop.trf.xlu1 }
0x3cdd   :  { %v9873_v55 = vsel %vm478_vm3, %v9871_v19, 0.0  ;;  %v9874_v15 = vsel %vm478_vm3, %v9872_v63, 0.0 }
0x3cde   :  { %v9875_v20 = vadd.f32 %v9874_v15, %v9873_v55 }
0x3ce0   :  { %v9876_v62 = vrot.slane %v9875_v20, 4 }
0x3ce2   :  { %v9877_v56 = vadd.f32 %v9876_v62, %v9875_v20 }
0x3ce4   :  { %v9878_v45 = vrot.slane %v9877_v56, 2 }
0x3ce6   :  { %v9879_v16 = vadd.f32 %v9878_v45, %v9877_v56 }
0x3ce8   :  { %v9880_v18 = vrot.slane %v9879_v16, 1 }
0x3cea   :  { %v9881_v21 = vadd.f32 %v9880_v18, %v9879_v16 }
0x3cec   :  { %v9882_v25 = vmul.f32 0.0625, %v9881_v21 }
0x3cee   :  { %v9883_v53 = vadd.f32 1e-05, %v9882_v25 }
0x3cf0   :  { %16009 = vrsqrt.f32 %v9883_v53 }
0x3cfd   :  { %v16010_v54 = vpop.eup %16009 }
0x3cfe   :  { %v9886_v26 = vmul.f32 %v16010_v54, %v9870_v17  ;;  %v9885_v29 = vmul.f32 %v16010_v54, %v9869_v11  ;;  %v10501_v54 = vld [vmem:[#allocation2 + $0x10] sm:$0xff] }
0x3d00   :  { %v9898_v52 = vmul.f32 %v9895_v47, %v9886_v26  ;;  %v9897_v28 = vmul.f32 %v9890_v1, %v9885_v29 }
0x3d02   :  { %v9910_v33 = vadd.f32 %v9907_v48, %v9898_v52  ;;  %v9909_v4 = vadd.f32 %v9902_v23, %v9897_v28 }
0x3d04   :  { %15447 = vmatprep.subr.mxu0 %v9910_v33  ;;  %15463 = vmatprep.subr.mxu1 %v9910_v33 }
0x3d05   :  { %15448 = vmatpush3.msra.mxu0 %v9910_v33  ;;  %15464 = vmatpush3.msra.mxu1 %v9910_v33 }
0x3d06   :  { %15449 = vmatprep.subr.mxu0 %v9909_v4  ;;  %15465 = vmatprep.subr.mxu1 %v9909_v4 }
0x3d07   :  { %15450 = vmatpush3.msra.mxu0 %v9909_v4  ;;  %15466 = vmatpush3.msra.mxu1 %v9909_v4 }
0x3d08   :  { %15452 = vmatmul.mubr.msk.f32.vlgmr.msra.gmra.mxu0 %vm478_vm3, %v9932_v27  ;;  %15468 = vmatmul.mubr.msk.f32.vlgmr.msra.gmra.mxu1 %vm478_vm3, %v10093_v40  ;;  %v10362_v40 = vld [vmem:[#allocation2 + $0x30] sm:$0xff] }
0x3d09   :  { %15454 = vmatprep.mubr.msk.f32.mxu0 %vm478_vm3, %v9933_v13  ;;  %15470 = vmatprep.mubr.msk.f32.mxu1 %vm478_vm3, %v10094_v41 }
0x3d0c   :  { %15455 = vmatmul.mubr.msk.f32.gmra.mxu0 %vm478_vm3, %v9934_v12  ;;  %15471 = vmatmul.mubr.msk.f32.gmra.mxu1 %vm478_vm3, %v10095_v43  ;;  %v10502_v12 = vld [vmem:[#allocation2 + $0x18] sm:$0xff] }
0x3d0d   :  { %15457 = vmatprep.mubr.msk.f32.mxu0 %vm478_vm3, %v9935_v51 }
0x3d10   :  { %15458 = vmatmul.mubr.msk.f32.gmra.mxu0 %vm478_vm3, %v9936_v36 }
0x3d11   :  { %15460 = vmatprep.mubr.msk.f32.mxu0 %vm478_vm3, %v9937_v37 }
0x3d14   :  { %15461 = vmatmul.mubr.msk.f32.gmra.mxu0 %vm478_vm3, %v9938_v38 }
0x3dc8   :  { %v15453_v46 = vpop.f32.mrf.mxu0  ;;  %v15469_v49 = vpop.f32.mrf.mxu1 }
0x3dc9   :  { %v10206_v8 = vmul.f32 0.35355338, %v15453_v46  ;;  %v10363_v46 = vld [vmem:[#allocation2 + $0x38] sm:$0xff] }
0x3dca   :  { %v10037_v47 = vpop.f32.mrf.mxu0  ;;  %v10186_v32 = vpop.f32.mrf.mxu1 }
0x3dcb   :  { %v10205_v9 = vmul.f32 0.35355338, %v10037_v47 }
0x3dcc   :  { %v15456_v48 = vpop.f32.mrf.mxu0  ;;  %v15472_v61 = vpop.f32.mrf.mxu1 }
0x3dcd   :  { %v10208_v50 = vmul.f32 0.35355338, %v15456_v48  ;;  %15473 = vmatprep.subr.msk.mxu0 %vm478_vm3, %v15472_v61 }
0x3dce   :  { %v10047_v2 = vpop.f32.mrf.mxu0  ;;  %15474 = vmatpush3.xpose.msk.msra.mxu0 %vm478_vm3, %v15472_v61  ;;  %v10196_v57 = vpop.f32.mrf.mxu1 }
0x3dcf   :  { %v10207_v3 = vmul.f32 0.35355338, %v10047_v2  ;;  %15487 = vmatprep.subr.mxu1 %v10208_v50  ;;  %15475 = vmatprep.subr.msk.mxu0 %vm478_vm3, %v10196_v57  ;;  %v10364_v2 = vld [vmem:[#allocation2 + $0x40] sm:$0xff] }
0x3dd0   :  { %v15459_v34 = vpop.f32.mrf.mxu0  ;;  %15488 = vmatpush3.msra.mxu1 %v10208_v50 }
0x3dd1   :  { %15489 = vmatprep.subr.mxu1 %v10207_v3  ;;  %v10212_v7 = vsel %vm478_vm3, %v15459_v34, -inf }
0x3dd2   :  { %10213 = vmax.xlane.f32.xlu1 %v10212_v7  ;;  %v10057_v35 = vpop.f32.mrf.mxu0  ;;  %15490 = vmatpush3.msra.mxu1 %v10207_v3 }
0x3dd3   :  { %15491 = vmatprep.subr.mxu1 %v10206_v8  ;;  %v10209_v22 = vsel %vm478_vm3, %v10057_v35, -inf  ;;  %15476 = vmatpush3.xpose.msk.msra.mxu0 %vm478_vm3, %v10196_v57 }
0x3dd4   :  { %10210 = vmax.xlane.f32.xlu0 %v10209_v22  ;;  %v15462_v42 = vpop.f32.mrf.mxu0  ;;  %15492 = vmatpush3.msra.mxu1 %v10206_v8 }
0x3dd5   :  { %15493 = vmatprep.subr.mxu1 %v10205_v9  ;;  %v10218_v14 = vsel %vm478_vm3, %v15462_v42, -inf  ;;  %15477 = vmatprep.subr.msk.mxu0 %vm478_vm3, %v15469_v49 }
0x3dd6   :  { %v10067_v30 = vpop.f32.mrf.mxu0  ;;  %15494 = vmatpush3.msra.mxu1 %v10205_v9 }
0x3dd7   :  { %v10215_v10 = vsel %vm478_vm3, %v10067_v30, -inf  ;;  %15478 = vmatpush3.xpose.msk.msra.mxu0 %vm478_vm3, %v15469_v49 }
0x3dd8   :  { %10216 = vmax.xlane.f32.xlu0 %v10215_v10  ;;  %15479 = vmatprep.subr.msk.mxu0 %vm478_vm3, %v10186_v32 }
0x3ddb   :  { %15480 = vmatpush3.xpose.msk.msra.mxu0 %vm478_vm3, %v10186_v32  ;;  %v10500_v32 = vld [vmem:[#allocation2 + $0x58] sm:$0xff] }
0x3ddc   :  { %10219 = vmax.xlane.f32.xlu0 %v10218_v14 }
0x3e5b   :  { %v10214_v58 = vpop.xlane.xlu1 %10213 }
0x3e5c   :  { %v10222_v24 = vsub.f32 %v15459_v34, %v10214_v58  ;;  %v10365_v34 = vld [vmem:[#allocation2 + $0x48] sm:$0xff] }
0x3e5d   :  { %v10211_v31 = vpop.xlane.xlu0 %10210 }
0x3e5e   :  { %v10227_v11 = vmul.f32 1.442695, %v10222_v24  ;;  %v10221_v17 = vsub.f32 %v10057_v35, %v10211_v31 }
0x3e60   :  { %16011 = vpow2.f32 %v10227_v11  ;;  %v10225_v19 = vmul.f32 1.442695, %v10221_v17 }
0x3e61   :  { %v10217_v63 = vpop.xlane.xlu0 %10216 }
0x3e62   :  { %16013 = vpow2.f32 %v10225_v19  ;;  %v10223_v55 = vsub.f32 %v10067_v30, %v10217_v63  ;;  %v10608_v63 = vld [vmem:[#allocation2 + $0x250] sm:$0xff] }
0x3e64   :  { %v10229_v15 = vmul.f32 1.442695, %v10223_v55 }
0x3e65   :  { %v10220_v20 = vpop.xlane.xlu0 %10219 }
0x3e66   :  { %16015 = vpow2.f32 %v10229_v15  ;;  %v10224_v62 = vsub.f32 %v15462_v42, %v10220_v20  ;;  %v10499_v42 = vld [vmem:[#allocation2 + $0x50] sm:$0xff]  ;;  %v10610_v20 = vld [vmem:[#allocation2 + $0x260] sm:$0xff] }
0x3e68   :  { %v10231_v56 = vmul.f32 1.442695, %v10224_v62 }
0x3e6a   :  { %16017 = vpow2.f32 %v10231_v56  ;;  %v10609_v56 = vld [vmem:[#allocation2 + $0x258] sm:$0xff] }
0x3e6d   :  { %v16012_v45 = vpop.eup %16011 }
0x3e6e   :  { %v10236_v16 = vsel %vm478_vm3, %v16012_v45, 0.0 }
0x3e6f   :  { %v16014_v18 = vpop.eup %16013  ;;  %10237 = vadd.xlane.f32.xlu0 %v10236_v16  ;;  %v10873_v16 = vld [vmem:[#allocation2 + $0x280] sm:$0xff] }
0x3e70   :  { %v10233_v21 = vsel %vm478_vm3, %v16014_v18, 0.0 }
0x3e73   :  { %v16016_v25 = vpop.eup %16015  ;;  %10234 = vadd.xlane.f32.xlu0 %v10233_v21  ;;  %v11055_v21 = vld [vmem:[#allocation2 + $0x220] sm:$0xff] }
0x3e74   :  { %v10239_v27 = vsel %vm478_vm3, %v16016_v25, 0.0 }
0x3e77   :  { %v16018_v53 = vpop.eup %16017  ;;  %10240 = vadd.xlane.f32.xlu0 %v10239_v27 }
0x3e78   :  { %v10242_v13 = vsel %vm478_vm3, %v16018_v53, 0.0 }
0x3e79   :  { %10243 = vadd.xlane.f32.xlu1 %v10242_v13 }
0x3e8a   :  { %10510 = vperm.xlu1 %15764, %v10502_v12   ;;  %v10611_v12 = vld [vmem:[#allocation2 + $0x268] sm:$0xff] }
0x3e8e   :  { %10505 = vperm.xlu1 %15764, %v10501_v54   ;;  %v10782_v54 = vld [vmem:[#allocation2 + $0x270] sm:$0xff] }
0x3ef8   :  { %v10238_v1 = vpop.xlane.xlu0 %10237 }
0x3ef9   :  { %16019 = vrcp.f32 %v10238_v1 }
0x3efc   :  { %v10235_v26 = vpop.xlane.xlu0 %10234 }
0x3efd   :  { %16021 = vrcp.f32 %v10235_v26  ;;  %v10783_v26 = vld [vmem:[#allocation2 + $0x278] sm:$0xff] }
0x3f00   :  { %v10241_v29 = vpop.xlane.xlu0 %10240 }
0x3f01   :  { %16023 = vrcp.f32 %v10241_v29  ;;  %v10964_v29 = vld [vmem:[#allocation2 + $0x290] sm:$0xff] }
0x3f02   :  { %v10244_v51 = vpop.xlane.xlu1 %10243 }
0x3f03   :  { %16025 = vrcp.f32 %v10244_v51 }
0x3f06   :  { %v16020_v52 = vpop.eup %16019  ;;  %v10511_v61 = vpop.permute.xlu1 %10510 }
0x3f07   :  { %v10248_v23 = vmul.f32 %v16020_v52, %v16012_v45  ;;  %v10874_v52 = vld [vmem:[#allocation2 + $0x288] sm:$0xff] }
0x3f0a   :  { %v16022_v28 = vpop.eup %16021  ;;  %v10506_v24 = vpop.permute.xlu1 %10505 }
0x3f0b   :  { %v10246_v33 = vmul.f32 %v16022_v28, %v16014_v18  ;;  %v11056_v18 = vld [vmem:[#allocation2 + $0x228] sm:$0xff] }
0x3f0d   :  { %15481 = vmatprep.mubr.msk.f32.mxu0 %vm478_vm3, %v10246_v33 }
0x3f0e   :  { %v16024_v4 = vpop.eup %16023  ;;  %15482 = vmatmul.mubr.msk.f32.vlgmr.msra.gmra.mxu0 %vm478_vm3, %v10248_v23  ;;  %v10965_v23 = vld [vmem:[#allocation2 + $0x298] sm:$0xff] }
0x3f0f   :  { %v10250_v36 = vmul.f32 %v16024_v4, %v16016_v25 }
0x3f10   :  { %v16026_v37 = vpop.eup %16025 }
0x3f11   :  { %15484 = vmatprep.mubr.msk.f32.mxu0 %vm478_vm3, %v10250_v36  ;;  %v10252_v38 = vmul.f32 %v16026_v37, %v16018_v53 }
0x3f13   :  { %15485 = vmatmul.mubr.msk.f32.gmra.mxu0 %vm478_vm3, %v10252_v38 }
0x3f14   :  { %15523 = vmatprep.mubr.msk.f32.mxu0 %vm478_vm3, %v10608_v63 }
0x3fce   :  { %v15483_v39 = vpop.f32.mrf.mxu0 }
0x3fcf   :  { %v10367_v48 = vmul.f32 %v15483_v39, %v10363_v46 }
0x3fd0   :  { %v10343_v41 = vpop.f32.mrf.mxu0 }
0x3fd1   :  { %v10366_v43 = vmul.f32 %v10362_v40, %v10343_v41 }
0x3fd3   :  { %10370 = vxpose.xlu0.b32.start [1/4] (short) (narrow) %v10366_v43, 32  ;;  %v15486_v47 = vpop.f32.mrf.mxu0 }
0x3fd4   :  { %v10369_v8 = vmul.f32 %v15486_v47, %v10365_v34 }
0x3fd5   :  { %v10353_v50 = vpop.f32.mrf.mxu0 }
0x3fd6   :  { %v10368_v3 = vmul.f32 %v10364_v2, %v10353_v50 }
0x3fd7   :  { %10371 = vxpose.xlu0.b32.cont [2/4] (short) (narrow) %v10367_v48, 32 }
0x3fdb   :  { %10372 = vxpose.xlu0.b32.cont [3/4] (short) (narrow) %v10368_v3, 32 }
0x3fdf   :  { %10373 = vxpose.xlu0.b32.end [4/4] (short) (narrow) %v10369_v8, 32 }
0x404f   :  { %v10386_v7 = vpop.trf.xlu0 }
0x4050   :  { %15495 = vmatprep.mubr.msk.f32.mxu1 %vm3525_vm14, %v10386_v7 }
0x4053   :  { %v10387_v35 = vpop.trf.xlu0 }
0x4054   :  { %15496 = vmatmul.mubr.msk.f32.vlgmr.msra.gmra.mxu1 %vm3525_vm14, %v10387_v35 }
0x4057   :  { %v10388_v9 = vpop.trf.xlu0 }
0x4058   :  { %15498 = vmatprep.mubr.msk.f32.mxu1 %vm3525_vm14, %v10388_v9 }
0x405b   :  { %v10389_v22 = vpop.trf.xlu0 }
0x405c   :  { %15499 = vmatmul.mubr.msk.f32.gmra.mxu1 %vm3525_vm14, %v10389_v22 }
0x405d   :  { %15509 = vmatprep.mubr.msk.f32.mxu1 %vm3525_vm14, %v10499_v42 }
0x4114   :  { %v15497_v30 = vpop.f32.mrf.mxu1 }
0x4116   :  { %v10480_v10 = vpop.f32.mrf.mxu1 }
0x411c   :  { %v15500_v14 = vpop.f32.mrf.mxu1 }
0x411d   :  { %15501 = vmatprep.subr.mxu1 %v15500_v14 }
0x411e   :  { %v10490_v49 = vpop.f32.mrf.mxu1  ;;  %15502 = vmatpush3.msra.mxu1 %v15500_v14 }
0x411f   :  { %15503 = vmatprep.subr.mxu1 %v10490_v49 }
0x4120   :  { %15504 = vmatpush3.msra.mxu1 %v10490_v49 }
0x4121   :  { %15505 = vmatprep.subr.mxu1 %v15497_v30 }
0x4122   :  { %15506 = vmatpush3.msra.mxu1 %v15497_v30 }
0x4123   :  { %15507 = vmatprep.subr.mxu1 %v10480_v10 }
0x4124   :  { %15508 = vmatpush3.msra.mxu1 %v10480_v10 }
0x4125   :  { %15510 = vmatmul.mubr.msk.f32.vlgmr.msra.gmra.mxu1 %vm3525_vm14, %v10500_v32 }
0x4126   :  { %15516 = vmatprep.mubr.msk.f32.mxu1 %vm478_vm3, %v10610_v20 }
0x41e5   :  { %v15511_v57 = vpop.f32.mrf.mxu1 }
0x41e6   :  { %v10591_v58 = vadd.f32 %v15511_v57, %v10511_v61 }
0x41e7   :  { %v10585_v31 = vpop.f32.mrf.mxu1 }
0x41e8   :  { %v17120_v11 = vadd.f32 %v10591_v58, %v17072_v59  ;;  %v10586_v17 = vadd.f32 %v10585_v31, %v10506_v24  ;;  %v11087_v58 = vld [vmem:[#allocation2 + $0x210] sm:$0xff] }
0x41ea   :  { %10600 = vrot.lane.b32.xlu1 %v17120_v11, %s16144_s0  ;;  %v17125_v19 = vadd.f32 %v10586_v17, %v17070_v5 }
0x41ee   :  { %10598 = vrot.lane.b32.xlu1 %v17125_v19, %s16144_s0 }
0x425c   :  { %v10601_v55 = vpop.permute.xlu1 %10600 }
0x425d   :  { %v10605_v15 = vsel %vm983_vm6, 0.0, %v10601_v55 }
0x425e   :  { %15519 = vmatprep.subr.msk.mxu0 %vm985_vm7, %v10605_v15  ;;  %v10607_v59 = vsel %vm985_vm7, %v10605_v15, 0.0 }
0x425f   :  { %15520 = vmatpush3.msk.msra.mxu0 %vm985_vm7, %v10605_v15  ;;  %10616 = vrot.lane.b32.xlu1 %v10607_v59, %s16145_s1 }
0x4260   :  { %v10599_v5 = vpop.permute.xlu1 %10598 }
0x4261   :  { %v10604_v62 = vsel %vm983_vm6, 0.0, %v10599_v5 }
0x4262   :  { %15521 = vmatprep.subr.msk.mxu0 %vm985_vm7, %v10604_v62  ;;  %v10606_v45 = vsel %vm985_vm7, %v10604_v62, 0.0 }
0x4263   :  { %10786 = vrot.lane.b32.xlu1 %v10607_v59, %s16146_s23  ;;  %15522 = vmatpush3.msk.msra.mxu0 %vm985_vm7, %v10604_v62 }
0x4264   :  { %10966 = vrot.lane.b32.xlu0 %v10606_v45, %s16148_s25  ;;  %15524 = vmatmul.mubr.msk.f32.vlgmr.msra.gmra.mxu0 %vm478_vm3, %v10609_v56  ;;  %v11088_v56 = vld [vmem:[#allocation2 + $0x218] sm:$0xff] }
0x4265   :  { %15537 = vmatprep.mubr.msk.f32.mxu0 %vm478_vm3, %v10873_v16 }
0x4267   :  { %10877 = vrot.lane.b32.xlu1 %v10607_v59, %s16147_s24 }
0x426b   :  { %10614 = vrot.lane.b32.xlu1 %v10606_v45, %s16145_s1 }
0x426f   :  { %10784 = vrot.lane.b32.xlu1 %v10606_v45, %s16146_s23 }
0x4273   :  { %10875 = vrot.lane.b32.xlu1 %v10606_v45, %s16147_s24 }
0x4277   :  { %10968 = vrot.lane.b32.xlu1 %v10607_v59, %s16148_s25 }
0x427b   :  { %11064 = vperm.xlu1 %15764, %v11056_v18  }
0x427f   :  { %11059 = vperm.xlu1 %15764, %v11055_v21   ;;  %v11229_v21 = vld [vmem:[#allocation2 + $0x238] sm:$0xff] }
0x42d1   :  { %v10617_v25 = vpop.permute.xlu1 %10616 }
0x42d2   :  { %15512 = vmatprep.subr.mxu1 %v10617_v25 }
0x42d3   :  { %15513 = vmatpush3.msra.mxu1 %v10617_v25 }
0x42d5   :  { %v10787_v27 = vpop.permute.xlu1 %10786 }
0x42d6   :  { %v10967_v33 = vpop.permute.xlu0 %10966 }
0x42d9   :  { %v10878_v53 = vpop.permute.xlu1 %10877 }
0x42da   :  { %15533 = vmatprep.subr.mxu0 %v10878_v53 }
0x42db   :  { %15534 = vmatpush3.msra.mxu0 %v10878_v53  ;;  %v11214_v53 = vld [vmem:[#allocation2 + $0x240] sm:$0xff] }
0x42dd   :  { %v10615_v13 = vpop.permute.xlu1 %10614 }
0x42de   :  { %15514 = vmatprep.subr.mxu1 %v10615_v13 }
0x42df   :  { %15515 = vmatpush3.msra.mxu1 %v10615_v13 }
0x42e0   :  { %15526 = vmatprep.subr.mxu1 %v10787_v27  ;;  %15517 = vmatmul.mubr.msk.f32.vlgmr.msra.gmra.mxu1 %vm478_vm3, %v10611_v12 }
0x42e1   :  { %15527 = vmatpush3.msra.mxu1 %v10787_v27  ;;  %v10785_v1 = vpop.permute.xlu1 %10784  ;;  %15530 = vmatprep.mubr.msk.f32.mxu1 %vm478_vm3, %v10782_v54  ;;  %v11215_v27 = vld [vmem:[#allocation2 + $0x248] sm:$0xff] }
0x42e2   :  { %15528 = vmatprep.subr.mxu1 %v10785_v1 }
0x42e3   :  { %15529 = vmatpush3.msra.mxu1 %v10785_v1 }
0x42e4   :  { %15531 = vmatmul.mubr.msk.f32.vlgmr.msra.gmra.mxu1 %vm478_vm3, %v10783_v26 }
0x42e5   :  { %v10876_v51 = vpop.permute.xlu1 %10875  ;;  %15544 = vmatprep.mubr.msk.f32.mxu1 %vm478_vm3, %v10964_v29 }
0x42e6   :  { %15535 = vmatprep.subr.mxu0 %v10876_v51 }
0x42e7   :  { %15536 = vmatpush3.msra.mxu0 %v10876_v51 }
0x42e8   :  { %15538 = vmatmul.mubr.msk.f32.vlgmr.msra.gmra.mxu0 %vm478_vm3, %v10874_v52 }
0x42e9   :  { %v10969_v28 = vpop.permute.xlu1 %10968  ;;  %15551 = vmatprep.mubr.msk.f32.mxu0 %vm478_vm3, %v11087_v58 }
0x42ea   :  { %15540 = vmatprep.subr.mxu1 %v10969_v28 }
0x42eb   :  { %15541 = vmatpush3.msra.mxu1 %v10969_v28 }
0x42ec   :  { %15542 = vmatprep.subr.mxu1 %v10967_v33 }
0x42ed   :  { %15543 = vmatpush3.msra.mxu1 %v10967_v33 }
0x42ee   :  { %15545 = vmatmul.mubr.msk.f32.vlgmr.msra.gmra.mxu1 %vm478_vm3, %v10965_v23  ;;  %v11228_v23 = vld [vmem:[#allocation2 + $0x230] sm:$0xff] }
0x42f6   :  { %v11065_v50 = vpop.permute.xlu1 %11064 }
0x42fa   :  { %v11060_v42 = vpop.permute.xlu1 %11059 }
0x4324   :  { %v15525_v36 = vpop.f32.mrf.mxu0 }
0x4326   :  { %v10773_v38 = vpop.f32.mrf.mxu0 }
0x43a0   :  { %v15518_v4 = vpop.f32.mrf.mxu1 }
0x43a1   :  { %v10779_v40 = vadd.f32 %v15525_v36, %v15518_v4 }
0x43a2   :  { %v10692_v37 = vpop.f32.mrf.mxu1 }
0x43a3   :  { %v10774_v41 = vadd.f32 %v10773_v38, %v10692_v37 }
0x43a4   :  { %v15532_v39 = vpop.f32.mrf.mxu1 }
0x43a5   :  { %v10872_v47 = vadd.f32 %v15532_v39, %v10779_v40 }
0x43a6   :  { %v10862_v43 = vpop.f32.mrf.mxu1 }
0x43a7   :  { %v10871_v48 = vadd.f32 %v10862_v43, %v10774_v41 }
0x43a8   :  { %v15539_v46 = vpop.f32.mrf.mxu0 }
0x43a9   :  { %v10963_v3 = vadd.f32 %v15539_v46, %v10872_v47 }
0x43aa   :  { %v10953_v2 = vpop.f32.mrf.mxu0 }
0x43ab   :  { %v10962_v8 = vadd.f32 %v10953_v2, %v10871_v48 }
0x43ae   :  { %v15546_v34 = vpop.f32.mrf.mxu1 }
0x43af   :  { %v11054_v7 = vadd.f32 %v15546_v34, %v10963_v3 }
0x43b0   :  { %v11044_v35 = vpop.f32.mrf.mxu1 }
0x43b1   :  { %v17155_v9 = vadd.f32 %v11065_v50, %v11054_v7  ;;  %v11053_v22 = vadd.f32 %v11044_v35, %v10962_v8 }
0x43b3   :  { %v17157_v30 = vadd.f32 %v11060_v42, %v11053_v22  ;;  %v11072_v10 = vsel %vm478_vm3, %v17155_v9, 0.0  ;;  %v11078_v14 = vmul.f32 %v17155_v9, %v17155_v9 }
0x43b4   :  { %11073 = vadd.xlane.f32.xlu1 %v11072_v10 }
0x43b5   :  { %v11082_v49 = vsel %vm478_vm3, %v11078_v14, 0.0  ;;  %v11069_v32 = vsel %vm478_vm3, %v17157_v30, 0.0  ;;  %v11077_v61 = vmul.f32 %v17157_v30, %v17157_v30 }
0x43b6   :  { %11083 = vadd.xlane.f32.xlu0 %v11082_v49 }
0x43b7   :  { %v11079_v57 = vsel %vm478_vm3, %v11077_v61, 0.0 }
0x43b8   :  { %11070 = vadd.xlane.f32.xlu1 %v11069_v32 }
0x43bc   :  { %11080 = vadd.xlane.f32.xlu1 %v11079_v57 }
0x443d   :  { %v11074_v24 = vpop.xlane.xlu1 %11073 }
0x443e   :  { %v11076_v17 = vmul.f32 0.0625, %v11074_v24 }
0x443f   :  { %v11084_v31 = vpop.xlane.xlu0 %11083 }
0x4440   :  { %v11086_v63 = vmul.f32 0.0625, %v11084_v31 }
0x4441   :  { %v11071_v55 = vpop.xlane.xlu1 %11070 }
0x4442   :  { %v11090_v15 = vsel %vm1397_vm8, %v11076_v17, %v11086_v63  ;;  %v11075_v20 = vmul.f32 0.0625, %v11071_v55 }
0x4443   :  { %15547 = vmatprep.subr.mxu0 %v11090_v15 }
0x4444   :  { %15548 = vmatpush3.msra.mxu0 %v11090_v15 }
0x4445   :  { %v11081_v59 = vpop.xlane.xlu1 %11080 }
0x4446   :  { %v11085_v5 = vmul.f32 0.0625, %v11081_v59 }
0x4448   :  { %v11089_v62 = vsel %vm1397_vm8, %v11075_v20, %v11085_v5 }
0x4449   :  { %15549 = vmatprep.subr.mxu0 %v11089_v62 }
0x444a   :  { %15550 = vmatpush3.msra.mxu0 %v11089_v62 }
0x444b   :  { %15552 = vmatmul.mubr.msk.f32.vlgmr.msra.gmra.mxu0 %vm478_vm3, %v11088_v56 }
0x450b   :  { %v15553_v45 = vpop.f32.mrf.mxu0 }
0x450c   :  { %v11173_v16 = vmul.f32 %v15553_v45, %v15553_v45  ;;  %11193 = vperm.xlu0 %15762, %v15553_v45  }
0x450d   :  { %v11163_v18 = vpop.f32.mrf.mxu0 }
0x450e   :  { %11178 = vrot.lane.b32.xlu1 %v11173_v16, %s16150_s26  ;;  %v11172_v25 = vmul.f32 %v11163_v18, %v11163_v18 }
0x4510   :  { %11237 = vperm.xlu0 %15762, %v11229_v21  }
0x4512   :  { %11176 = vrot.lane.b32.xlu1 %v11172_v25, %s16150_s26 }
0x4516   :  { %11188 = vperm.xlu1 %15764, %v11163_v18  }
0x451a   :  { %11223 = vperm.xlu1 %15764, %v11215_v27  }
0x451e   :  { %11218 = vperm.xlu1 %15764, %v11214_v53  }
0x4522   :  { %15765 = vset.pattern.permute.xlu1 %v16149_v60 }
0x4580   :  { %v11179_v13 = vpop.permute.xlu1 %11178 }
0x4581   :  { %v11183_v12 = vsub.f32 %v15553_v45, %v11179_v13 }
0x4583   :  { %v11185_v54 = vmax.f32 %v11183_v12, 0.0 }
0x4584   :  { %v11177_v1 = vpop.permute.xlu1 %11176 }
0x4585   :  { %v11199_v26 = vadd.f32 1e-05, %v11185_v54  ;;  %v11182_v29 = vsub.f32 %v11163_v18, %v11177_v1  ;;  %v11296_v1 = vld [vmem:[#allocation2 + $0x2f0] sm:$0xff] }
0x4586   :  { %15558 = vmatprep.mubr.msk.f32.mxu1 %vm478_vm3, %v11296_v1 }
0x4587   :  { %16027 = vrsqrt.f32 %v11199_v26  ;;  %v11184_v51 = vmax.f32 %v11182_v29, 0.0  ;;  %v11194_v37 = vpop.permute.xlu0 %11193  ;;  %v11294_v26 = vld [vmem:[#allocation2 + $0x2e0] sm:$0xff] }
0x4588   :  { %v11197_v39 = vsub.f32 %v17155_v9, %v11194_v37  ;;  %15565 = vmatprep.mubr.msk.f32.mxu0 %vm478_vm3, %v11294_v26  ;;  %v11742_v37 = vld [vmem:[#allocation2 + $0x2b8] sm:$0xff] }
0x4589   :  { %v11198_v52 = vadd.f32 1e-05, %v11184_v51 }
0x458b   :  { %16029 = vrsqrt.f32 %v11198_v52  ;;  %v11238_v47 = vpop.permute.xlu0 %11237 }
0x4591   :  { %v11189_v4 = vpop.permute.xlu1 %11188 }
0x4592   :  { %v11196_v43 = vsub.f32 %v17157_v30, %v11189_v4 }
0x4594   :  { %v16028_v28 = vpop.eup %16027 }
0x4595   :  { %11209 = vperm.xlu1 %15765, %v16028_v28   ;;  %v11224_v36 = vpop.permute.xlu1 %11223 }
0x4598   :  { %v16030_v33 = vpop.eup %16029 }
0x4599   :  { %11204 = vperm.xlu1 %15765, %v16030_v33   ;;  %v11219_v38 = vpop.permute.xlu1 %11218 }
0x459d   :  { %15766 = vset.pattern.permute.xlu1 %v16141_v0 }
0x459e   :  { %11232 = vperm.xlu1 %15766, %v11228_v23   ;;  %v11295_v23 = vld [vmem:[#allocation2 + $0x2e8] sm:$0xff] }
0x4610   :  { %v11210_v40 = vpop.permute.xlu1 %11209 }
0x4611   :  { %v11213_v41 = vmul.f32 %v11210_v40, %v11197_v39 }
0x4613   :  { %v11227_v46 = vmul.f32 %v11224_v36, %v11213_v41  ;;  %v11559_v36 = vld [vmem:[#allocation2 + $0x310] sm:$0xff] }
0x4614   :  { %v11205_v48 = vpop.permute.xlu1 %11204 }
0x4615   :  { %v11241_v50 = vadd.f32 %v11238_v47, %v11227_v46  ;;  %v11212_v2 = vmul.f32 %v11205_v48, %v11196_v43  ;;  %v11297_v43 = vld [vmem:[#allocation2 + $0x2f8] sm:$0xff]  ;;  %v11468_v47 = vld [vmem:[#allocation2 + $0x300] sm:$0xff] }
0x4617   :  { %v11249_v3 = vand.u32 2147483647, %v11241_v50  ;;  %v11226_v34 = vmul.f32 %v11219_v38, %v11212_v2  ;;  %v11243_v55 = vmax.f32 %v11241_v50, 0.0  ;;  %vm11245_vm4 = vcmp.ne.f32.partialorder %v11241_v50, %v11241_v50  ;;  %v11741_v38 = vld [vmem:[#allocation2 + $0x2b0] sm:$0xff]  ;;  %v11650_v2 = vld [vmem:[#allocation2 + $0x320] sm:$0xff] }
0x4619   :  { %v11251_v8 = vsub.f32 0.0, %v11249_v3  ;;  %v11233_v7 = vpop.permute.xlu1 %11232 }
0x461a   :  { %v11240_v35 = vadd.f32 %v11233_v7, %v11226_v34 }
0x461b   :  { %v11254_v22 = vmul.f32 1.442695, %v11251_v8  ;;  %v11560_v8 = vld [vmem:[#allocation2 + $0x318] sm:$0xff] }
0x461c   :  { %v11248_v42 = vand.u32 2147483647, %v11240_v35  ;;  %v11242_v18 = vmax.f32 %v11240_v35, 0.0  ;;  %vm11244_vm0 = vcmp.ne.f32.partialorder %v11240_v35, %v11240_v35 }
0x461d   :  { %16031 = vpow2.f32 %v11254_v22 }
0x461e   :  { %v11250_v10 = vsub.f32 0.0, %v11248_v42 }
0x4620   :  { %v11252_v14 = vmul.f32 1.442695, %v11250_v10 }
0x4622   :  { %16033 = vpow2.f32 %v11252_v14 }
0x462a   :  { %v16032_v9 = vpop.eup %16031 }
0x462b   :  { %v11265_v49 = vadd.f32 1.0, %v16032_v9  ;;  %v11268_v61 = vmul.f32 -0.5, %v16032_v9  ;;  %v11271_v58 = vand.u32 2147483647, %v16032_v9 }
0x462d   :  { %16035 = vlog2.f32 %v11265_v49  ;;  %v11269_v57 = vadd.f32 1.0, %v11268_v61  ;;  %vm11272_vm14 = vcmp.lt.f32.partialorder %v11271_v58, 0.0004427343 }
0x462f   :  { %v16034_v30 = vpop.eup %16033  ;;  %v11270_v63 = vmul.f32 %v16032_v9, %v11269_v57 }
0x4630   :  { %v11256_v32 = vadd.f32 1.0, %v16034_v30  ;;  %v11259_v24 = vmul.f32 -0.5, %v16034_v30  ;;  %v11262_v20 = vand.u32 2147483647, %v16034_v30 }
0x4632   :  { %16037 = vlog2.f32 %v11256_v32  ;;  %v11260_v15 = vadd.f32 1.0, %v11259_v24  ;;  %vm11263_vm11 = vcmp.lt.f32.partialorder %v11262_v20, 0.0004427343 }
0x4634   :  { %v11261_v16 = vmul.f32 %v16034_v30, %v11260_v15 }
0x463a   :  { %v16036_v31 = vpop.eup %16035 }
0x463b   :  { %v11267_v17 = vmul.f32 0.6931472, %v16036_v31 }
0x463d   :  { %v11273_v59 = vsel %vm11272_vm14, %v11270_v63, %v11267_v17  ;;  %vm17393_vm14 = vmmov %vm17391_vm1 }
0x463e   :  { %v11275_v5 = vadd.f32 %v11273_v59, %v11243_v55 }
0x463f   :  { %v16038_v62 = vpop.eup %16037 }
0x4640   :  { %v11277_v56 = vsel %vm11245_vm4, %v11241_v50, %v11275_v5  ;;  %v11258_v45 = vmul.f32 0.6931472, %v16038_v62  ;;  %vm17394_vm4 = vmmov %vm17391_vm1 }
0x4641   :  { %16039 = vtanh.f32 %v11277_v56 }
0x4642   :  { %v11264_v21 = vsel %vm11263_vm11, %v11261_v16, %v11258_v45  ;;  %vm17395_vm11 = vmmov %vm17391_vm1 }
0x4643   :  { %v11274_v25 = vadd.f32 %v11264_v21, %v11242_v18 }
0x4645   :  { %v11276_v27 = vsel %vm11244_vm0, %v11240_v35, %v11274_v25  ;;  %vm17396_vm0 = vmmov %vm17391_vm1 }
0x4646   :  { %16041 = vtanh.f32 %v11276_v27 }
0x464e   :  { %v16040_v53 = vpop.eup %16039 }
0x464f   :  { %v11281_v13 = vmul.f32 %v16040_v53, %v11241_v50  ;;  %v11469_v50 = vld [vmem:[#allocation2 + $0x308] sm:$0xff]  ;;  %v11773_v53 = vld [vmem:[#allocation2 + $0x2a0] sm:$0xff] }
0x4651   :  { %11286 = vrot.lane.b32.xlu0 %v11281_v13, %s16144_s0 }
0x4653   :  { %v16042_v12 = vpop.eup %16041 }
0x4654   :  { %v11280_v54 = vmul.f32 %v16042_v12, %v11240_v35  ;;  %v11651_v35 = vld [vmem:[#allocation2 + $0x328] sm:$0xff] }
0x4656   :  { %11284 = vrot.lane.b32.xlu1 %v11280_v54, %s16144_s0 }
0x46c3   :  { %v11287_v29 = vpop.permute.xlu0 %11286 }
0x46c4   :  { %v11291_v51 = vsel %vm983_vm6, 0.0, %v11287_v29 }
0x46c5   :  { %v11293_v52 = vsel %vm985_vm7, %v11291_v51, 0.0  ;;  %15561 = vmatprep.subr.msk.mxu0 %vm985_vm7, %v11291_v51 }
0x46c6   :  { %15562 = vmatpush3.msk.msra.mxu0 %vm985_vm7, %v11291_v51  ;;  %11302 = vrot.lane.b32.xlu0 %v11293_v52, %s16145_s1 }
0x46c8   :  { %v11285_v28 = vpop.permute.xlu1 %11284 }
0x46c9   :  { %v11290_v33 = vsel %vm983_vm6, 0.0, %v11285_v28 }
0x46ca   :  { %v11292_v4 = vsel %vm985_vm7, %v11290_v33, 0.0  ;;  %11472 = vrot.lane.b32.xlu0 %v11293_v52, %s16146_s23  ;;  %15563 = vmatprep.subr.msk.mxu0 %vm985_vm7, %v11290_v33 }
0x46cb   :  { %15564 = vmatpush3.msk.msra.mxu0 %vm985_vm7, %v11290_v33  ;;  %11300 = vrot.lane.b32.xlu1 %v11292_v4, %s16145_s1 }
0x46cc   :  { %15566 = vmatmul.mubr.msk.f32.vlgmr.msra.gmra.mxu0 %vm478_vm3, %v11295_v23  ;;  %v11774_v23 = vld [vmem:[#allocation2 + $0x2a8] sm:$0xff] }
0x46cd   :  { %15579 = vmatprep.mubr.msk.f32.mxu0 %vm478_vm3, %v11559_v36 }
0x46ce   :  { %11563 = vrot.lane.b32.xlu0 %v11293_v52, %s16147_s24 }
0x46cf   :  { %11470 = vrot.lane.b32.xlu1 %v11292_v4, %s16146_s23 }
0x46d2   :  { %11654 = vrot.lane.b32.xlu0 %v11293_v52, %s16148_s25 }
0x46d3   :  { %11561 = vrot.lane.b32.xlu1 %v11292_v4, %s16147_s24 }
0x46d6   :  { %11750 = vperm.xlu0 %15762, %v11742_v37  }
0x46d7   :  { %11652 = vrot.lane.b32.xlu1 %v11292_v4, %s16148_s25 }
0x46da   :  { %15767 = vset.pattern.permute.xlu0 %v16149_v60 }
0x46db   :  { %11745 = vperm.xlu1 %15766, %v11741_v38  }
0x4738   :  { %v11303_v39 = vpop.permute.xlu0 %11302 }
0x4739   :  { %15554 = vmatprep.subr.mxu1 %v11303_v39 }
0x473a   :  { %15555 = vmatpush3.msra.mxu1 %v11303_v39  ;;  %v11901_v39 = vld [vmem:[#allocation2 + $0x2d8] sm:$0xff] }
0x473c   :  { %v11473_v40 = vpop.permute.xlu0 %11472 }
0x473d   :  { %v11301_v41 = vpop.permute.xlu1 %11300 }
0x473e   :  { %15556 = vmatprep.subr.mxu1 %v11301_v41 }
0x473f   :  { %15557 = vmatpush3.msra.mxu1 %v11301_v41 }
0x4740   :  { %v11564_v46 = vpop.permute.xlu0 %11563  ;;  %15568 = vmatprep.subr.mxu1 %v11473_v40  ;;  %15559 = vmatmul.mubr.msk.f32.vlgmr.msra.gmra.mxu1 %vm478_vm3, %v11297_v43 }
0x4741   :  { %15569 = vmatpush3.msra.mxu1 %v11473_v40  ;;  %15575 = vmatprep.subr.mxu0 %v11564_v46  ;;  %v11471_v48 = vpop.permute.xlu1 %11470  ;;  %v11915_v40 = vld [vmem:[#allocation2 + $0x2c8] sm:$0xff] }
0x4742   :  { %15570 = vmatprep.subr.mxu1 %v11471_v48  ;;  %15576 = vmatpush3.msra.mxu0 %v11564_v46 }
0x4743   :  { %15571 = vmatpush3.msra.mxu1 %v11471_v48  ;;  %15572 = vmatprep.mubr.msk.f32.mxu1 %vm478_vm3, %v11468_v47 }
0x4744   :  { %v11655_v3 = vpop.permute.xlu0 %11654  ;;  %15573 = vmatmul.mubr.msk.f32.vlgmr.msra.gmra.mxu1 %vm478_vm3, %v11469_v50 }
0x4745   :  { %15582 = vmatprep.subr.mxu1 %v11655_v3  ;;  %v11562_v34 = vpop.permute.xlu1 %11561  ;;  %15586 = vmatprep.mubr.msk.f32.mxu1 %vm478_vm3, %v11650_v2 }
0x4746   :  { %15577 = vmatprep.subr.mxu0 %v11562_v34  ;;  %15583 = vmatpush3.msra.mxu1 %v11655_v3 }
0x4747   :  { %15578 = vmatpush3.msra.mxu0 %v11562_v34 }
0x4748   :  { %15580 = vmatmul.mubr.msk.f32.vlgmr.msra.gmra.mxu0 %vm478_vm3, %v11560_v8 }
0x4749   :  { %v11653_v7 = vpop.permute.xlu1 %11652  ;;  %15593 = vmatprep.mubr.msk.f32.mxu0 %vm478_vm3, %v11773_v53 }
0x474a   :  { %15584 = vmatprep.subr.mxu1 %v11653_v7 }
0x474b   :  { %15585 = vmatpush3.msra.mxu1 %v11653_v7  ;;  %v11900_v7 = vld [vmem:[#allocation2 + $0x2d0] sm:$0xff] }
0x474c   :  { %15587 = vmatmul.mubr.msk.f32.vlgmr.msra.gmra.mxu1 %vm478_vm3, %v11651_v35  ;;  %v11914_v35 = vld [vmem:[#allocation2 + $0x2c0] sm:$0xff] }
0x4751   :  { %v11751_v15 = vpop.permute.xlu0 %11750 }
0x4756   :  { %v11746_v62 = vpop.permute.xlu1 %11745 }
0x478c   :  { %v15567_v42 = vpop.f32.mrf.mxu0 }
0x478e   :  { %v11459_v9 = vpop.f32.mrf.mxu0 }
0x4800   :  { %v15560_v22 = vpop.f32.mrf.mxu1 }
0x4801   :  { %v11465_v14 = vadd.f32 %v15567_v42, %v15560_v22 }
0x4802   :  { %v11378_v10 = vpop.f32.mrf.mxu1 }
0x4803   :  { %v11460_v30 = vadd.f32 %v11459_v9, %v11378_v10 }
0x4804   :  { %v15574_v49 = vpop.f32.mrf.mxu1 }
0x4805   :  { %v11558_v32 = vadd.f32 %v15574_v49, %v11465_v14 }
0x4806   :  { %v11548_v61 = vpop.f32.mrf.mxu1 }
0x4807   :  { %v11557_v24 = vadd.f32 %v11548_v61, %v11460_v30 }
0x4808   :  { %v15581_v57 = vpop.f32.mrf.mxu0 }
0x4809   :  { %v11649_v31 = vadd.f32 %v15581_v57, %v11558_v32 }
0x480a   :  { %v11639_v58 = vpop.f32.mrf.mxu0 }
0x480b   :  { %v11648_v63 = vadd.f32 %v11639_v58, %v11557_v24 }
0x480c   :  { %v15588_v17 = vpop.f32.mrf.mxu1 }
0x480d   :  { %v11740_v55 = vadd.f32 %v15588_v17, %v11649_v31 }
0x480e   :  { %v11730_v59 = vpop.f32.mrf.mxu1 }
0x480f   :  { %v17208_v20 = vadd.f32 %v11751_v15, %v11740_v55  ;;  %v11739_v5 = vadd.f32 %v11730_v59, %v11648_v63 }
0x4811   :  { %v17210_v56 = vadd.f32 %v11746_v62, %v11739_v5  ;;  %v11758_v45 = vsel %vm478_vm3, %v17208_v20, 0.0  ;;  %v11764_v16 = vmul.f32 %v17208_v20, %v17208_v20 }
0x4812   :  { %11759 = vadd.xlane.f32.xlu0 %v11758_v45 }
0x4813   :  { %v11768_v18 = vsel %vm478_vm3, %v11764_v16, 0.0  ;;  %v11755_v21 = vsel %vm478_vm3, %v17210_v56, 0.0  ;;  %v11763_v25 = vmul.f32 %v17210_v56, %v17210_v56 }
0x4814   :  { %11769 = vadd.xlane.f32.xlu1 %v11768_v18 }
0x4815   :  { %v11765_v27 = vsel %vm478_vm3, %v11763_v25, 0.0 }
0x4816   :  { %11756 = vadd.xlane.f32.xlu0 %v11755_v21 }
0x481a   :  { %11766 = vadd.xlane.f32.xlu0 %v11765_v27 }
0x489b   :  { %v11760_v13 = vpop.xlane.xlu0 %11759 }
0x489c   :  { %v11762_v54 = vmul.f32 0.0625, %v11760_v13 }
0x489d   :  { %v11770_v12 = vpop.xlane.xlu1 %11769 }
0x489e   :  { %v11772_v1 = vmul.f32 0.0625, %v11770_v12 }
0x489f   :  { %v11757_v26 = vpop.xlane.xlu0 %11756 }
0x48a0   :  { %v11776_v29 = vsel %vm1397_vm8, %v11762_v54, %v11772_v1  ;;  %v11761_v52 = vmul.f32 0.0625, %v11757_v26 }
0x48a1   :  { %15589 = vmatprep.subr.mxu0 %v11776_v29 }
0x48a2   :  { %15590 = vmatpush3.msra.mxu0 %v11776_v29 }
0x48a3   :  { %v11767_v51 = vpop.xlane.xlu0 %11766 }
0x48a4   :  { %v11771_v28 = vmul.f32 0.0625, %v11767_v51 }
0x48a6   :  { %v11775_v33 = vsel %vm1397_vm8, %v11761_v52, %v11771_v28 }
0x48a7   :  { %15591 = vmatprep.subr.mxu0 %v11775_v33 }
0x48a8   :  { %15592 = vmatpush3.msra.mxu0 %v11775_v33 }
0x48a9   :  { %15594 = vmatmul.mubr.msk.f32.vlgmr.msra.gmra.mxu0 %vm478_vm3, %v11774_v23 }
0x4969   :  { %v15595_v4 = vpop.f32.mrf.mxu0 }
0x496a   :  { %v11859_v36 = vmul.f32 %v15595_v4, %v15595_v4 }
0x496b   :  { %v11849_v37 = vpop.f32.mrf.mxu0 }
0x496c   :  { %v11858_v38 = vmul.f32 %v11849_v37, %v11849_v37  ;;  %11864 = vrot.lane.b32.xlu1 %v11859_v36, %s16150_s26 }
0x496e   :  { %11862 = vrot.lane.b32.xlu0 %v11858_v38, %s16150_s26 }
0x4970   :  { %11879 = vperm.xlu1 %15766, %v15595_v4  }
0x4974   :  { %11874 = vperm.xlu1 %15766, %v11849_v37  }
0x4978   :  { %11909 = vperm.xlu1 %15766, %v11901_v39  }
0x497c   :  { %11923 = vperm.xlu1 %15766, %v11915_v40  }
0x4980   :  { %15769 = vset.pattern.permute.xlu1 %v16149_v60 }
0x49de   :  { %v11865_v41 = vpop.permute.xlu1 %11864 }
0x49df   :  { %v11869_v43 = vsub.f32 %v15595_v4, %v11865_v41 }
0x49e0   :  { %v11863_v46 = vpop.permute.xlu0 %11862 }
0x49e1   :  { %v11871_v47 = vmax.f32 %v11869_v43, 0.0  ;;  %v11868_v48 = vsub.f32 %v11849_v37, %v11863_v46 }
0x49e3   :  { %v11885_v50 = vadd.f32 1e-05, %v11871_v47  ;;  %v11870_v2 = vmax.f32 %v11868_v48, 0.0 }
0x49e5   :  { %16043 = vrsqrt.f32 %v11885_v50  ;;  %v11884_v3 = vadd.f32 1e-05, %v11870_v2  ;;  %v11984_v2 = vld [vmem:[#allocation2 + $0xb0] sm:$0xff] }
0x49e6   :  { %15600 = vmatprep.mubr.msk.f32.mxu1 %vm478_vm3, %v11984_v2 }
0x49e7   :  { %16045 = vrsqrt.f32 %v11884_v3  ;;  %v11982_v3 = vld [vmem:[#allocation2 + $0xa0] sm:$0xff] }
0x49e8   :  { %15607 = vmatprep.mubr.msk.f32.mxu0 %vm478_vm3, %v11982_v3  ;;  %v12713_v3 = vld [vmem:[#allocation2 + $0x3b8] sm:$0xff] }
0x49eb   :  { %v11880_v22 = vpop.permute.xlu1 %11879 }
0x49ec   :  { %v11883_v9 = vsub.f32 %v17208_v20, %v11880_v22 }
0x49ef   :  { %v11875_v42 = vpop.permute.xlu1 %11874 }
0x49f0   :  { %v11882_v30 = vsub.f32 %v17210_v56, %v11875_v42  ;;  %v12247_v42 = vld [vmem:[#allocation2 + $0x80] sm:$0xff] }
0x49f2   :  { %v16044_v34 = vpop.eup %16043 }
0x49f3   :  { %11895 = vperm.xlu0 %15767, %v16044_v34   ;;  %v11910_v10 = vpop.permute.xlu1 %11909 }
0x49f4   :  { %v16046_v8 = vpop.eup %16045 }
0x49f5   :  { %11890 = vperm.xlu1 %15769, %v16046_v8  }
0x49f7   :  { %15768 = vset.pattern.permute.xlu0 %v16141_v0  ;;  %v11924_v14 = vpop.permute.xlu1 %11923 }
0x49f8   :  { %11904 = vperm.xlu0 %15768, %v11900_v7  }
0x49f9   :  { %15770 = vset.pattern.permute.xlu1 %v16141_v0 }
0x49fa   :  { %11918 = vperm.xlu1 %15770, %v11914_v35   ;;  %v11983_v35 = vld [vmem:[#allocation2 + $0xa8] sm:$0xff] }
0x4a6e   :  { %v11896_v49 = vpop.permute.xlu0 %11895 }
0x4a6f   :  { %v11899_v32 = vmul.f32 %v11896_v49, %v11883_v9  ;;  %v11985_v49 = vld [vmem:[#allocation2 + $0xb8] sm:$0xff] }
0x4a70   :  { %v11891_v61 = vpop.permute.xlu1 %11890 }
0x4a71   :  { %v11913_v57 = vmul.f32 %v11910_v10, %v11899_v32  ;;  %v11898_v58 = vmul.f32 %v11891_v61, %v11882_v30  ;;  %v12248_v10 = vld [vmem:[#allocation2 + $0x88] sm:$0xff]  ;;  %v12156_v32 = vld [vmem:[#allocation2 + $0xc0] sm:$0xff] }
0x4a73   :  { %v11927_v24 = vadd.f32 %v11924_v14, %v11913_v57  ;;  %v11905_v31 = vpop.permute.xlu0 %11904  ;;  %v12157_v57 = vld [vmem:[#allocation2 + $0xc8] sm:$0xff] }
0x4a74   :  { %v11912_v17 = vmul.f32 %v11905_v31, %v11898_v58  ;;  %v12262_v58 = vld [vmem:[#allocation2 + $0x98] sm:$0xff] }
0x4a75   :  { %v11935_v63 = vand.u32 2147483647, %v11927_v24  ;;  %v11919_v55 = vpop.permute.xlu1 %11918  ;;  %v11929_v51 = vmax.f32 %v11927_v24, 0.0  ;;  %vm11931_vm12 = vcmp.ne.f32.partialorder %v11927_v24, %v11927_v24 }
0x4a76   :  { %v11926_v15 = vadd.f32 %v11919_v55, %v11912_v17 }
0x4a77   :  { %v11937_v59 = vsub.f32 0.0, %v11935_v63 }
0x4a78   :  { %v11934_v5 = vand.u32 2147483647, %v11926_v15  ;;  %v11928_v36 = vmax.f32 %v11926_v15, 0.0  ;;  %vm11930_vm10 = vcmp.ne.f32.partialorder %v11926_v15, %v11926_v15 }
0x4a79   :  { %v11940_v62 = vmul.f32 1.442695, %v11937_v59 }
0x4a7a   :  { %v11936_v45 = vsub.f32 0.0, %v11934_v5 }
0x4a7b   :  { %16047 = vpow2.f32 %v11940_v62 }
0x4a7c   :  { %v11938_v16 = vmul.f32 1.442695, %v11936_v45 }
0x4a7e   :  { %16049 = vpow2.f32 %v11938_v16 }
0x4a88   :  { %v16048_v20 = vpop.eup %16047 }
0x4a89   :  { %v11951_v18 = vadd.f32 1.0, %v16048_v20  ;;  %v11954_v25 = vmul.f32 -0.5, %v16048_v20  ;;  %v11957_v13 = vand.u32 2147483647, %v16048_v20 }
0x4a8b   :  { %v16050_v56 = vpop.eup %16049  ;;  %16051 = vlog2.f32 %v11951_v18  ;;  %v11955_v53 = vadd.f32 1.0, %v11954_v25  ;;  %vm11958_vm7 = vcmp.lt.f32.partialorder %v11957_v13, 0.0004427343  ;;  %v12356_v13 = vld [vmem:[#allocation2 + $0x370] sm:$0xff] }
0x4a8c   :  { %v11942_v21 = vadd.f32 1.0, %v16050_v56  ;;  %v11945_v27 = vmul.f32 -0.5, %v16050_v56  ;;  %v11948_v29 = vand.u32 2147483647, %v16050_v56 }
0x4a8d   :  { %v11956_v26 = vmul.f32 %v16048_v20, %v11955_v53  ;;  %v12358_v53 = vld [vmem:[#allocation2 + $0x380] sm:$0xff] }
0x4a8e   :  { %16053 = vlog2.f32 %v11942_v21  ;;  %v11946_v54 = vadd.f32 1.0, %v11945_v27  ;;  %vm11949_vm15 = vcmp.lt.f32.partialorder %v11948_v29, 0.0004427343 }
0x4a90   :  { %v11947_v4 = vmul.f32 %v16050_v56, %v11946_v54 }
0x4a98   :  { %v16052_v12 = vpop.eup %16051 }
0x4a99   :  { %v11953_v1 = vmul.f32 0.6931472, %v16052_v12 }
0x4a9b   :  { %v16054_v52 = vpop.eup %16053  ;;  %v11959_v28 = vsel %vm11958_vm7, %v11956_v26, %v11953_v1 }
0x4a9c   :  { %v11961_v33 = vadd.f32 %v11959_v28, %v11929_v51  ;;  %v11944_v23 = vmul.f32 0.6931472, %v16054_v52  ;;  %v12357_v51 = vld [vmem:[#allocation2 + $0x378] sm:$0xff]  ;;  %v12621_v28 = vld [vmem:[#allocation2 + $0x3a0] sm:$0xff] }
0x4a9e   :  { %v11963_v37 = vsel %vm11931_vm12, %v11927_v24, %v11961_v33  ;;  %v11950_v38 = vsel %vm11949_vm15, %v11947_v4, %v11944_v23  ;;  %v12804_v33 = vld [vmem:[#allocation2 + $0x348] sm:$0xff]  ;;  %v12803_v23 = vld [vmem:[#allocation2 + $0x340] sm:$0xff] }
0x4a9f   :  { %16055 = vtanh.f32 %v11963_v37  ;;  %v11960_v39 = vadd.f32 %v11950_v38, %v11928_v36  ;;  %v12359_v37 = vld [vmem:[#allocation2 + $0x388] sm:$0xff]  ;;  %v12530_v38 = vld [vmem:[#allocation2 + $0x390] sm:$0xff] }
0x4aa1   :  { %v11962_v40 = vsel %vm11930_vm10, %v11926_v15, %v11960_v39 }
0x4aa2   :  { %16057 = vtanh.f32 %v11962_v40 }
0x4aac   :  { %v16056_v41 = vpop.eup %16055 }
0x4aad   :  { %v11967_v43 = vmul.f32 %v16056_v41, %v11927_v24  ;;  %v12261_v24 = vld [vmem:[#allocation2 + $0x90] sm:$0xff]  ;;  %v12531_v41 = vld [vmem:[#allocation2 + $0x398] sm:$0xff] }
0x4aaf   :  { %v16058_v46 = vpop.eup %16057  ;;  %v11969_v47 = vadd.f32 %v11967_v43, %v17120_v11  ;;  %v12712_v43 = vld [vmem:[#allocation2 + $0x3b0] sm:$0xff] }
0x4ab0   :  { %v11966_v48 = vmul.f32 %v16058_v46, %v11926_v15 }
0x4ab1   :  { %11974 = vrot.lane.b32.xlu0 %v11969_v47, %s16150_s26 }
0x4ab2   :  { %v11968_v50 = vadd.f32 %v11966_v48, %v17125_v19  ;;  %v12622_v48 = vld [vmem:[#allocation2 + $0x3a8] sm:$0xff] }
0x4ab4   :  { %11972 = vrot.lane.b32.xlu1 %v11968_v50, %s16150_s26 }
0x4b23   :  { %v11975_v34 = vpop.permute.xlu0 %11974 }
0x4b24   :  { %v11979_v8 = vsel %vm1397_vm8, 0.0, %v11975_v34 }
0x4b25   :  { %v11981_v7 = vsel %vm17391_vm1, %v11979_v8, 0.0  ;;  %15603 = vmatprep.subr.msk.mxu0 %vm17392_vm2, %v11979_v8 }
0x4b26   :  { %v11973_v11 = vpop.permute.xlu1 %11972  ;;  %15604 = vmatpush3.msk.msra.mxu0 %vm17393_vm14, %v11979_v8  ;;  %11990 = vrot.lane.b32.xlu0 %v11981_v7, %s16145_s1 }
0x4b27   :  { %v11978_v19 = vsel %vm1397_vm8, 0.0, %v11973_v11 }
0x4b28   :  { %v11980_v22 = vsel %vm17394_vm4, %v11978_v19, 0.0  ;;  %15605 = vmatprep.subr.msk.mxu0 %vm17395_vm11, %v11978_v19 }
0x4b29   :  { %11988 = vrot.lane.b32.xlu1 %v11980_v22, %s16145_s1  ;;  %15606 = vmatpush3.msk.msra.mxu0 %vm17396_vm0, %v11978_v19 }
0x4b2a   :  { %12160 = vrot.lane.b32.xlu0 %v11981_v7, %s16146_s23  ;;  %15608 = vmatmul.mubr.msk.f32.vlgmr.msra.gmra.mxu0 %vm478_vm3, %v11983_v35 }
0x4b2b   :  { %15617 = vmatprep.subr.mxu0 %v12262_v58 }
0x4b2c   :  { %15618 = vmatpush3.msra.mxu0 %v12262_v58 }
0x4b2d   :  { %12158 = vrot.lane.b32.xlu1 %v11980_v22, %s16146_s23  ;;  %15619 = vmatprep.subr.mxu0 %v12261_v24 }
0x4b2e   :  { %12251 = vperm.xlu0 %15768, %v12247_v42   ;;  %15620 = vmatpush3.msra.mxu0 %v12261_v24 }
0x4b31   :  { %12256 = vperm.xlu1 %15770, %v12248_v10  }
0x4b98   :  { %v11991_v14 = vpop.permute.xlu0 %11990 }
0x4b99   :  { %15596 = vmatprep.subr.mxu1 %v11991_v14 }
0x4b9a   :  { %15597 = vmatpush3.msra.mxu1 %v11991_v14 }
0x4b9b   :  { %v11989_v9 = vpop.permute.xlu1 %11988 }
0x4b9c   :  { %15598 = vmatprep.subr.mxu1 %v11989_v9  ;;  %v12161_v30 = vpop.permute.xlu0 %12160 }
0x4b9d   :  { %15599 = vmatpush3.msra.mxu1 %v11989_v9 }
0x4b9e   :  { %15601 = vmatmul.mubr.msk.f32.vlgmr.msra.gmra.mxu1 %vm478_vm3, %v11985_v49  ;;  %15610 = vmatprep.subr.mxu1 %v12161_v30 }
0x4b9f   :  { %v12159_v61 = vpop.permute.xlu1 %12158  ;;  %15611 = vmatpush3.msra.mxu1 %v12161_v30  ;;  %15614 = vmatprep.mubr.msk.f32.mxu1 %vm478_vm3, %v12156_v32 }
0x4ba0   :  { %15612 = vmatprep.subr.mxu1 %v12159_v61 }
0x4ba1   :  { %15613 = vmatpush3.msra.mxu1 %v12159_v61 }
0x4ba2   :  { %15615 = vmatmul.mubr.msk.f32.vlgmr.msra.gmra.mxu1 %vm478_vm3, %v12157_v57 }
0x4ba3   :  { %15628 = vmatprep.mubr.msk.f32.mxu1 %vm478_vm3, %v12358_v53 }
0x4ba9   :  { %v12252_v20 = vpop.permute.xlu0 %12251 }
0x4bac   :  { %v12257_v18 = vpop.permute.xlu1 %12256 }
0x4bea   :  { %v15609_v31 = vpop.f32.mrf.mxu0 }
0x4bec   :  { %v12147_v55 = vpop.f32.mrf.mxu0 }
0x4c5e   :  { %v15602_v17 = vpop.f32.mrf.mxu1 }
0x4c5f   :  { %v12153_v15 = vadd.f32 %v15609_v31, %v15602_v17 }
0x4c60   :  { %v12066_v63 = vpop.f32.mrf.mxu1 }
0x4c61   :  { %v12148_v5 = vadd.f32 %v12147_v55, %v12066_v63 }
0x4c62   :  { %v15616_v59 = vpop.f32.mrf.mxu1 }
0x4c63   :  { %v12246_v62 = vadd.f32 %v15616_v59, %v12153_v15 }
0x4c64   :  { %v12236_v45 = vpop.f32.mrf.mxu1 }
0x4c65   :  { %v12245_v16 = vadd.f32 %v12236_v45, %v12148_v5  ;;  %v12260_v21 = vadd.f32 %v12257_v18, %v12246_v62 }
0x4c67   :  { %v12259_v56 = vadd.f32 %v12252_v20, %v12245_v16  ;;  %v12835_v20 = vld [vmem:[#allocation2 + $0x330] sm:$0xff] }
0x4c69   :  { %15621 = vmatprep.mubr.msk.f32.mxu0 %vm478_vm3, %v12259_v56 }
0x4c6a   :  { %15622 = vmatmul.mubr.msk.f32.vlgmr.msra.gmra.mxu0 %vm478_vm3, %v12260_v21 }
0x4c6b   :  { %15635 = vmatprep.mubr.msk.f32.mxu0 %vm478_vm3, %v12356_v13 }
0x4d2a   :  { %v17257_v25 = vpop.f32.mrf.mxu0 }
0x4d2b   :  { %12348 = vrot.lane.b32.xlu0 %v17257_v25, %s16144_s0 }
0x4d2c   :  { %v17261_v27 = vpop.f32.mrf.mxu0 }
0x4d2d   :  { %12346 = vrot.lane.b32.xlu1 %v17261_v27, %s16144_s0 }
0x4d9d   :  { %v12349_v12 = vpop.permute.xlu0 %12348 }
0x4d9e   :  { %v12353_v54 = vsel %vm983_vm6, 0.0, %v12349_v12 }
0x4d9f   :  { %v12355_v1 = vsel %vm5479_vm13, %v12353_v54, 0.0  ;;  %15631 = vmatprep.subr.msk.mxu0 %vm5479_vm13, %v12353_v54  ;;  %v12347_v26 = vpop.permute.xlu1 %12346 }
0x4da0   :  { %v12352_v29 = vsel %vm983_vm6, 0.0, %v12347_v26  ;;  %15632 = vmatpush3.msk.msra.mxu0 %vm5479_vm13, %v12353_v54  ;;  %12364 = vrot.lane.b32.xlu0 %v12355_v1, %s16145_s1 }
0x4da1   :  { %v12354_v52 = vsel %vm5479_vm13, %v12352_v29, 0.0  ;;  %15633 = vmatprep.subr.msk.mxu0 %vm5479_vm13, %v12352_v29 }
0x4da2   :  { %15634 = vmatpush3.msk.msra.mxu0 %vm5479_vm13, %v12352_v29  ;;  %12362 = vrot.lane.b32.xlu1 %v12354_v52, %s16145_s1 }
0x4da3   :  { %15636 = vmatmul.mubr.msk.f32.vlgmr.msra.gmra.mxu0 %vm478_vm3, %v12357_v51  ;;  %v12836_v51 = vld [vmem:[#allocation2 + $0x338] sm:$0xff] }
0x4da4   :  { %12534 = vrot.lane.b32.xlu0 %v12355_v1, %s16146_s23  ;;  %15649 = vmatprep.mubr.msk.f32.mxu0 %vm478_vm3, %v12621_v28 }
0x4da6   :  { %12532 = vrot.lane.b32.xlu1 %v12354_v52, %s16146_s23 }
0x4da8   :  { %12625 = vrot.lane.b32.xlu0 %v12355_v1, %s16147_s24 }
0x4daa   :  { %12623 = vrot.lane.b32.xlu1 %v12354_v52, %s16147_s24 }
0x4dac   :  { %12716 = vrot.lane.b32.xlu0 %v12355_v1, %s16148_s25 }
0x4dae   :  { %12714 = vrot.lane.b32.xlu1 %v12354_v52, %s16148_s25 }
0x4db0   :  { %12812 = vperm.xlu0 %15768, %v12804_v33  }
0x4db2   :  { %12807 = vperm.xlu1 %15770, %v12803_v23  }
0x4db4   :  { %15771 = vset.pattern.permute.xlu0 %v16149_v60 }
0x4e12   :  { %v12365_v4 = vpop.permute.xlu0 %12364 }
0x4e13   :  { %15624 = vmatprep.subr.mxu1 %v12365_v4 }
0x4e14   :  { %15625 = vmatpush3.msra.mxu1 %v12365_v4  ;;  %v12363_v36 = vpop.permute.xlu1 %12362  ;;  %v12963_v4 = vld [vmem:[#allocation2 + $0x368] sm:$0xff] }
0x4e15   :  { %15626 = vmatprep.subr.mxu1 %v12363_v36 }
0x4e16   :  { %v12535_v39 = vpop.permute.xlu0 %12534  ;;  %15627 = vmatpush3.msra.mxu1 %v12363_v36  ;;  %v12977_v36 = vld [vmem:[#allocation2 + $0x358] sm:$0xff] }
0x4e17   :  { %15638 = vmatprep.subr.mxu1 %v12535_v39  ;;  %15629 = vmatmul.mubr.msk.f32.vlgmr.msra.gmra.mxu1 %vm478_vm3, %v12359_v37 }
0x4e18   :  { %15639 = vmatpush3.msra.mxu1 %v12535_v39  ;;  %v12533_v40 = vpop.permute.xlu1 %12532  ;;  %15642 = vmatprep.mubr.msk.f32.mxu1 %vm478_vm3, %v12530_v38 }
0x4e19   :  { %15640 = vmatprep.subr.mxu1 %v12533_v40 }
0x4e1a   :  { %v12626_v46 = vpop.permute.xlu0 %12625  ;;  %15641 = vmatpush3.msra.mxu1 %v12533_v40 }
0x4e1b   :  { %15645 = vmatprep.subr.mxu0 %v12626_v46  ;;  %15643 = vmatmul.mubr.msk.f32.vlgmr.msra.gmra.mxu1 %vm478_vm3, %v12531_v41 }
0x4e1c   :  { %15646 = vmatpush3.msra.mxu0 %v12626_v46  ;;  %v12624_v47 = vpop.permute.xlu1 %12623  ;;  %15656 = vmatprep.mubr.msk.f32.mxu1 %vm478_vm3, %v12712_v43 }
0x4e1d   :  { %15647 = vmatprep.subr.mxu0 %v12624_v47 }
0x4e1e   :  { %v12717_v50 = vpop.permute.xlu0 %12716  ;;  %15648 = vmatpush3.msra.mxu0 %v12624_v47 }
0x4e1f   :  { %15652 = vmatprep.subr.mxu1 %v12717_v50  ;;  %15650 = vmatmul.mubr.msk.f32.vlgmr.msra.gmra.mxu0 %vm478_vm3, %v12622_v48 }
0x4e20   :  { %15653 = vmatpush3.msra.mxu1 %v12717_v50  ;;  %v12715_v2 = vpop.permute.xlu1 %12714  ;;  %15663 = vmatprep.mubr.msk.f32.mxu0 %vm478_vm3, %v12835_v20 }
0x4e21   :  { %15654 = vmatprep.subr.mxu1 %v12715_v2 }
0x4e22   :  { %15655 = vmatpush3.msra.mxu1 %v12715_v2  ;;  %v12962_v2 = vld [vmem:[#allocation2 + $0x360] sm:$0xff] }
0x4e23   :  { %15657 = vmatmul.mubr.msk.f32.vlgmr.msra.gmra.mxu1 %vm478_vm3, %v12713_v3  ;;  %v12976_v3 = vld [vmem:[#allocation2 + $0x350] sm:$0xff] }
0x4e2b   :  { %v12813_v58 = vpop.permute.xlu0 %12812 }
0x4e2d   :  { %v12808_v63 = vpop.permute.xlu1 %12807 }
0x4e63   :  { %v15637_v8 = vpop.f32.mrf.mxu0 }
0x4e65   :  { %v12521_v19 = vpop.f32.mrf.mxu0 }
0x4ed7   :  { %v15630_v34 = vpop.f32.mrf.mxu1 }
0x4ed8   :  { %v12527_v11 = vadd.f32 %v15637_v8, %v15630_v34 }
0x4ed9   :  { %v12440_v7 = vpop.f32.mrf.mxu1 }
0x4eda   :  { %v12522_v22 = vadd.f32 %v12521_v19, %v12440_v7 }
0x4edb   :  { %v15644_v35 = vpop.f32.mrf.mxu1 }
0x4edc   :  { %v12620_v42 = vadd.f32 %v15644_v35, %v12527_v11 }
0x4edd   :  { %v12610_v10 = vpop.f32.mrf.mxu1 }
0x4ede   :  { %v12619_v49 = vadd.f32 %v12610_v10, %v12522_v22 }
0x4edf   :  { %v15651_v14 = vpop.f32.mrf.mxu0 }
0x4ee0   :  { %v12711_v30 = vadd.f32 %v15651_v14, %v12620_v42 }
0x4ee1   :  { %v12701_v9 = vpop.f32.mrf.mxu0 }
0x4ee2   :  { %v12710_v61 = vadd.f32 %v12701_v9, %v12619_v49 }
0x4ee3   :  { %v15658_v32 = vpop.f32.mrf.mxu1 }
0x4ee4   :  { %v12802_v57 = vadd.f32 %v15658_v32, %v12711_v30 }
0x4ee5   :  { %v12792_v24 = vpop.f32.mrf.mxu1 }
0x4ee6   :  { %v17292_v31 = vadd.f32 %v12813_v58, %v12802_v57  ;;  %v12801_v17 = vadd.f32 %v12792_v24, %v12710_v61 }
0x4ee8   :  { %v17294_v55 = vadd.f32 %v12808_v63, %v12801_v17  ;;  %v12820_v15 = vsel %vm1399_vm9, %v17292_v31, 0.0  ;;  %v12826_v59 = vmul.f32 %v17292_v31, %v17292_v31 }
0x4ee9   :  { %12821 = vadd.xlane.f32.xlu0 %v12820_v15 }
0x4eea   :  { %v12830_v5 = vsel %vm1399_vm9, %v12826_v59, 0.0  ;;  %v12817_v62 = vsel %vm1399_vm9, %v17294_v55, 0.0  ;;  %v12825_v45 = vmul.f32 %v17294_v55, %v17294_v55 }
0x4eeb   :  { %12831 = vadd.xlane.f32.xlu1 %v12830_v5 }
0x4eec   :  { %v12827_v16 = vsel %vm1399_vm9, %v12825_v45, 0.0 }
0x4eed   :  { %12818 = vadd.xlane.f32.xlu0 %v12817_v62 }
0x4ef1   :  { %12828 = vadd.xlane.f32.xlu0 %v12827_v16 }
0x4f72   :  { %v12822_v18 = vpop.xlane.xlu0 %12821 }
0x4f73   :  { %v12824_v21 = vmul.f32 0.125, %v12822_v18 }
0x4f74   :  { %v12832_v56 = vpop.xlane.xlu1 %12831 }
0x4f75   :  { %v12834_v53 = vmul.f32 0.125, %v12832_v56 }
0x4f76   :  { %v12819_v13 = vpop.xlane.xlu0 %12818 }
0x4f77   :  { %v12838_v12 = vsel %vm1397_vm8, %v12824_v21, %v12834_v53  ;;  %v12823_v1 = vmul.f32 0.125, %v12819_v13 }
0x4f78   :  { %15659 = vmatprep.subr.mxu0 %v12838_v12 }
0x4f79   :  { %15660 = vmatpush3.msra.mxu0 %v12838_v12 }
0x4f7a   :  { %v12829_v54 = vpop.xlane.xlu0 %12828 }
0x4f7b   :  { %v12833_v26 = vmul.f32 0.125, %v12829_v54 }
0x4f7d   :  { %v12837_v29 = vsel %vm1397_vm8, %v12823_v1, %v12833_v26 }
0x4f7e   :  { %15661 = vmatprep.subr.mxu0 %v12837_v29 }
0x4f7f   :  { %15662 = vmatpush3.msra.mxu0 %v12837_v29 }
0x4f80   :  { %15664 = vmatmul.mubr.msk.f32.vlgmr.msra.gmra.mxu0 %vm478_vm3, %v12836_v51 }
0x5040   :  { %v15665_v52 = vpop.f32.mrf.mxu0 }
0x5041   :  { %v12921_v28 = vmul.f32 %v15665_v52, %v15665_v52 }
0x5042   :  { %v12911_v33 = vpop.f32.mrf.mxu0 }
0x5043   :  { %v12920_v23 = vmul.f32 %v12911_v33, %v12911_v33  ;;  %12926 = vrot.lane.b32.xlu1 %v12921_v28, %s16150_s26 }
0x5045   :  { %12924 = vrot.lane.b32.xlu0 %v12920_v23, %s16150_s26 }
0x5047   :  { %12941 = vperm.xlu1 %15770, %v15665_v52  }
0x504b   :  { %12936 = vperm.xlu1 %15770, %v12911_v33  }
0x504f   :  { %12971 = vperm.xlu1 %15770, %v12963_v4  }
0x5053   :  { %12985 = vperm.xlu1 %15770, %v12977_v36  }
0x5057   :  { %15773 = vset.pattern.permute.xlu1 %v16149_v60 }
0x50b5   :  { %v12927_v37 = vpop.permute.xlu1 %12926 }
0x50b6   :  { %v12931_v38 = vsub.f32 %v15665_v52, %v12927_v37 }
0x50b7   :  { %v12925_v39 = vpop.permute.xlu0 %12924 }
0x50b8   :  { %v12933_v40 = vmax.f32 %v12931_v38, 0.0  ;;  %v12930_v41 = vsub.f32 %v12911_v33, %v12925_v39 }
0x50ba   :  { %v12947_v43 = vadd.f32 1e-05, %v12933_v40  ;;  %v12932_v46 = vmax.f32 %v12930_v41, 0.0  ;;  %v13044_v41 = vld [vmem:[#allocation2 + $0x410] sm:$0xff] }
0x50bb   :  { %15670 = vmatprep.mubr.msk.f32.mxu1 %vm478_vm3, %v13044_v41 }
0x50bc   :  { %16059 = vrsqrt.f32 %v12947_v43  ;;  %v12946_v47 = vadd.f32 1e-05, %v12932_v46  ;;  %v13042_v43 = vld [vmem:[#allocation2 + $0x400] sm:$0xff] }
0x50bd   :  { %15677 = vmatprep.mubr.msk.f32.mxu0 %vm478_vm3, %v13042_v43 }
0x50be   :  { %16061 = vrsqrt.f32 %v12946_v47 }
0x50c2   :  { %v12942_v34 = vpop.permute.xlu1 %12941 }
0x50c3   :  { %v12945_v19 = vsub.f32 %v17292_v31, %v12942_v34 }
0x50c6   :  { %v12937_v8 = vpop.permute.xlu1 %12936 }
0x50c7   :  { %v12944_v22 = vsub.f32 %v17294_v55, %v12937_v8  ;;  %v13307_v8 = vld [vmem:[#allocation2 + $0x430] sm:$0xff] }
0x50c9   :  { %v16060_v48 = vpop.eup %16059 }
0x50ca   :  { %12957 = vperm.xlu0 %15771, %v16060_v48   ;;  %v12972_v7 = vpop.permute.xlu1 %12971 }
0x50cb   :  { %v16062_v50 = vpop.eup %16061 }
0x50cc   :  { %12952 = vperm.xlu1 %15773, %v16062_v50  }
0x50ce   :  { %15772 = vset.pattern.permute.xlu0 %v16141_v0  ;;  %v12986_v11 = vpop.permute.xlu1 %12985 }
0x50cf   :  { %12966 = vperm.xlu0 %15772, %v12962_v2  }
0x50d0   :  { %15774 = vset.pattern.permute.xlu1 %v16141_v0 }
0x50d1   :  { %12980 = vperm.xlu1 %15774, %v12976_v3   ;;  %v13043_v3 = vld [vmem:[#allocation2 + $0x408] sm:$0xff] }
0x5145   :  { %v12958_v35 = vpop.permute.xlu0 %12957 }
0x5146   :  { %v12961_v42 = vmul.f32 %v12958_v35, %v12945_v19 }
0x5147   :  { %v12953_v10 = vpop.permute.xlu1 %12952 }
0x5148   :  { %v12975_v14 = vmul.f32 %v12972_v7, %v12961_v42  ;;  %v12960_v9 = vmul.f32 %v12953_v10, %v12944_v22  ;;  %v13490_v7 = vld [vmem:[#allocation2 + $0x3d8] sm:$0xff]  ;;  %v13216_v10 = vld [vmem:[#allocation2 + $0x420] sm:$0xff] }
0x5149   :  { %v13045_v22 = vld [vmem:[#allocation2 + $0x418] sm:$0xff] }
0x514a   :  { %v12989_v49 = vadd.f32 %v12986_v11, %v12975_v14  ;;  %v12967_v30 = vpop.permute.xlu0 %12966  ;;  %v13489_v11 = vld [vmem:[#allocation2 + $0x3d0] sm:$0xff] }
0x514b   :  { %v12974_v32 = vmul.f32 %v12967_v30, %v12960_v9  ;;  %v13217_v9 = vld [vmem:[#allocation2 + $0x428] sm:$0xff]  ;;  %v13398_v30 = vld [vmem:[#allocation2 + $0x440] sm:$0xff] }
0x514c   :  { %v12997_v61 = vand.u32 2147483647, %v12989_v49  ;;  %v12981_v57 = vpop.permute.xlu1 %12980  ;;  %v12991_v54 = vmax.f32 %v12989_v49, 0.0  ;;  %vm12993_vm12 = vcmp.ne.f32.partialorder %v12989_v49, %v12989_v49 }
0x514d   :  { %v12988_v58 = vadd.f32 %v12981_v57, %v12974_v32 }
0x514e   :  { %v12999_v24 = vsub.f32 0.0, %v12997_v61  ;;  %v13308_v61 = vld [vmem:[#allocation2 + $0x438] sm:$0xff] }
0x514f   :  { %v12996_v17 = vand.u32 2147483647, %v12988_v58  ;;  %v12990_v28 = vmax.f32 %v12988_v58, 0.0  ;;  %vm12992_vm10 = vcmp.ne.f32.partialorder %v12988_v58, %v12988_v58 }
0x5150   :  { %v13002_v63 = vmul.f32 1.442695, %v12999_v24  ;;  %v13399_v24 = vld [vmem:[#allocation2 + $0x448] sm:$0xff] }
0x5151   :  { %v12998_v15 = vsub.f32 0.0, %v12996_v17 }
0x5152   :  { %16063 = vpow2.f32 %v13002_v63 }
0x5153   :  { %v13000_v59 = vmul.f32 1.442695, %v12998_v15 }
0x5155   :  { %16065 = vpow2.f32 %v13000_v59 }
0x515f   :  { %v16064_v31 = vpop.eup %16063 }
0x5160   :  { %v13013_v5 = vadd.f32 1.0, %v16064_v31  ;;  %v13016_v45 = vmul.f32 -0.5, %v16064_v31  ;;  %v13019_v18 = vand.u32 2147483647, %v16064_v31 }
0x5162   :  { %v16066_v55 = vpop.eup %16065  ;;  %16067 = vlog2.f32 %v13013_v5  ;;  %v13017_v20 = vadd.f32 1.0, %v13016_v45  ;;  %vm13020_vm7 = vcmp.lt.f32.partialorder %v13019_v18, 0.0004427343 }
0x5163   :  { %v13004_v62 = vadd.f32 1.0, %v16066_v55  ;;  %v13007_v16 = vmul.f32 -0.5, %v16066_v55  ;;  %v13010_v12 = vand.u32 2147483647, %v16066_v55 }
0x5164   :  { %v13018_v13 = vmul.f32 %v16064_v31, %v13017_v20 }
0x5165   :  { %16069 = vlog2.f32 %v13004_v62  ;;  %v13008_v21 = vadd.f32 1.0, %v13007_v16  ;;  %vm13011_vm15 = vcmp.lt.f32.partialorder %v13010_v12, 0.0004427343 }
0x5167   :  { %v13009_v52 = vmul.f32 %v16066_v55, %v13008_v21 }
0x516f   :  { %v16068_v56 = vpop.eup %16067 }
0x5170   :  { %v13015_v53 = vmul.f32 0.6931472, %v16068_v56 }
0x5172   :  { %v16070_v1 = vpop.eup %16069  ;;  %v13021_v26 = vsel %vm13020_vm7, %v13018_v13, %v13015_v53 }
0x5173   :  { %v13023_v29 = vadd.f32 %v13021_v26, %v12991_v54  ;;  %v13006_v51 = vmul.f32 0.6931472, %v16070_v1 }
0x5175   :  { %v13025_v33 = vsel %vm12993_vm12, %v12989_v49, %v13023_v29  ;;  %v13012_v23 = vsel %vm13011_vm15, %v13009_v52, %v13006_v51 }
0x5176   :  { %16071 = vtanh.f32 %v13025_v33  ;;  %v13022_v4 = vadd.f32 %v13012_v23, %v12990_v28 }
0x5178   :  { %v13024_v36 = vsel %vm12992_vm10, %v12988_v58, %v13022_v4 }
0x5179   :  { %16073 = vtanh.f32 %v13024_v36 }
0x5183   :  { %v16072_v37 = vpop.eup %16071 }
0x5184   :  { %v13029_v38 = vmul.f32 %v16072_v37, %v12989_v49  ;;  %v13521_v37 = vld [vmem:[#allocation2 + $0x3c0] sm:$0xff] }
0x5186   :  { %v16074_v39 = vpop.eup %16073  ;;  %13034 = vrot.lane.b32.xlu0 %v13029_v38, %s16144_s0 }
0x5187   :  { %v13028_v40 = vmul.f32 %v16074_v39, %v12988_v58 }
0x5189   :  { %13032 = vrot.lane.b32.xlu1 %v13028_v40, %s16144_s0 }
0x51f8   :  { %v13035_v46 = vpop.permute.xlu0 %13034 }
0x51f9   :  { %v13039_v47 = vsel %vm983_vm6, 0.0, %v13035_v46 }
0x51fa   :  { %v13041_v48 = vsel %vm5479_vm13, %v13039_v47, 0.0  ;;  %15673 = vmatprep.subr.msk.mxu0 %vm5479_vm13, %v13039_v47 }
0x51fb   :  { %v13033_v50 = vpop.permute.xlu1 %13032  ;;  %15674 = vmatpush3.msk.msra.mxu0 %vm5479_vm13, %v13039_v47  ;;  %13050 = vrot.lane.b32.xlu0 %v13041_v48, %s16145_s1 }
0x51fc   :  { %v13038_v2 = vsel %vm983_vm6, 0.0, %v13033_v50 }
0x51fd   :  { %v13040_v34 = vsel %vm5479_vm13, %v13038_v2, 0.0  ;;  %15675 = vmatprep.subr.msk.mxu0 %vm5479_vm13, %v13038_v2 }
0x51fe   :  { %13048 = vrot.lane.b32.xlu1 %v13040_v34, %s16145_s1  ;;  %15676 = vmatpush3.msk.msra.mxu0 %vm5479_vm13, %v13038_v2 }
0x51ff   :  { %13220 = vrot.lane.b32.xlu0 %v13041_v48, %s16146_s23  ;;  %15678 = vmatmul.mubr.msk.f32.vlgmr.msra.gmra.mxu0 %vm478_vm3, %v13043_v3  ;;  %v13522_v3 = vld [vmem:[#allocation2 + $0x3c8] sm:$0xff] }
0x5200   :  { %15691 = vmatprep.mubr.msk.f32.mxu0 %vm478_vm3, %v13307_v8 }
0x5202   :  { %13218 = vrot.lane.b32.xlu1 %v13040_v34, %s16146_s23 }
0x5203   :  { %13311 = vrot.lane.b32.xlu0 %v13041_v48, %s16147_s24 }
0x5206   :  { %13309 = vrot.lane.b32.xlu1 %v13040_v34, %s16147_s24 }
0x5207   :  { %13402 = vrot.lane.b32.xlu0 %v13041_v48, %s16148_s25 }
0x520a   :  { %13400 = vrot.lane.b32.xlu1 %v13040_v34, %s16148_s25 }
0x520b   :  { %13498 = vperm.xlu0 %15772, %v13490_v7  }
0x520e   :  { %13493 = vperm.xlu1 %15774, %v13489_v11  }
0x520f   :  { %15775 = vset.pattern.permute.xlu0 %v16149_v60 }
0x526d   :  { %v13051_v19 = vpop.permute.xlu0 %13050 }
0x526e   :  { %15666 = vmatprep.subr.mxu1 %v13051_v19 }
0x526f   :  { %15667 = vmatpush3.msra.mxu1 %v13051_v19  ;;  %v13649_v19 = vld [vmem:[#allocation2 + $0x3f8] sm:$0xff] }
0x5270   :  { %v13049_v35 = vpop.permute.xlu1 %13048 }
0x5271   :  { %15668 = vmatprep.subr.mxu1 %v13049_v35  ;;  %v13221_v42 = vpop.permute.xlu0 %13220 }
0x5272   :  { %15669 = vmatpush3.msra.mxu1 %v13049_v35  ;;  %v13663_v35 = vld [vmem:[#allocation2 + $0x3e8] sm:$0xff] }
0x5273   :  { %15680 = vmatprep.subr.mxu1 %v13221_v42  ;;  %15671 = vmatmul.mubr.msk.f32.vlgmr.msra.gmra.mxu1 %vm478_vm3, %v13045_v22 }
0x5274   :  { %v13219_v14 = vpop.permute.xlu1 %13218  ;;  %15681 = vmatpush3.msra.mxu1 %v13221_v42  ;;  %15684 = vmatprep.mubr.msk.f32.mxu1 %vm478_vm3, %v13216_v10 }
0x5275   :  { %15682 = vmatprep.subr.mxu1 %v13219_v14  ;;  %v13312_v49 = vpop.permute.xlu0 %13311 }
0x5276   :  { %15683 = vmatpush3.msra.mxu1 %v13219_v14  ;;  %15687 = vmatprep.subr.mxu0 %v13312_v49 }
0x5277   :  { %15688 = vmatpush3.msra.mxu0 %v13312_v49  ;;  %15685 = vmatmul.mubr.msk.f32.vlgmr.msra.gmra.mxu1 %vm478_vm3, %v13217_v9 }
0x5278   :  { %v13310_v32 = vpop.permute.xlu1 %13309  ;;  %15698 = vmatprep.mubr.msk.f32.mxu1 %vm478_vm3, %v13398_v30 }
0x5279   :  { %15689 = vmatprep.subr.mxu0 %v13310_v32  ;;  %v13403_v57 = vpop.permute.xlu0 %13402 }
0x527a   :  { %15690 = vmatpush3.msra.mxu0 %v13310_v32  ;;  %15694 = vmatprep.subr.mxu1 %v13403_v57 }
0x527b   :  { %15695 = vmatpush3.msra.mxu1 %v13403_v57  ;;  %15692 = vmatmul.mubr.msk.f32.vlgmr.msra.gmra.mxu0 %vm478_vm3, %v13308_v61 }
0x527c   :  { %v13401_v58 = vpop.permute.xlu1 %13400  ;;  %15705 = vmatprep.mubr.msk.f32.mxu0 %vm478_vm3, %v13521_v37 }
0x527d   :  { %15696 = vmatprep.subr.mxu1 %v13401_v58 }
0x527e   :  { %15697 = vmatpush3.msra.mxu1 %v13401_v58  ;;  %v13648_v58 = vld [vmem:[#allocation2 + $0x3f0] sm:$0xff] }
0x527f   :  { %15699 = vmatmul.mubr.msk.f32.vlgmr.msra.gmra.mxu1 %vm478_vm3, %v13399_v24  ;;  %15708 = vmatprep.subr.mxu1 %v16142_v6  ;;  %v13662_v24 = vld [vmem:[#allocation2 + $0x3e0] sm:$0xff] }
0x5280   :  { %15712 = vmatprep.mubr.msk.f32.mxu1 %vm16143_vm5, %v16142_v6 }
0x5286   :  { %v13499_v12 = vpop.permute.xlu0 %13498 }
0x5289   :  { %v13494_v29 = vpop.permute.xlu1 %13493 }
0x52bf   :  { %v15679_v63 = vpop.f32.mrf.mxu0 }
0x52c1   :  { %v13207_v31 = vpop.f32.mrf.mxu0 }
0x5333   :  { %v15672_v17 = vpop.f32.mrf.mxu1 }
0x5334   :  { %v13213_v59 = vadd.f32 %v15679_v63, %v15672_v17 }
0x5335   :  { %v13126_v15 = vpop.f32.mrf.mxu1 }
0x5336   :  { %v13208_v55 = vadd.f32 %v13207_v31, %v13126_v15 }
0x5337   :  { %v15686_v5 = vpop.f32.mrf.mxu1 }
0x5338   :  { %v13306_v62 = vadd.f32 %v15686_v5, %v13213_v59 }
0x5339   :  { %v13296_v45 = vpop.f32.mrf.mxu1 }
0x533a   :  { %v13305_v18 = vadd.f32 %v13296_v45, %v13208_v55 }
0x533b   :  { %v15693_v16 = vpop.f32.mrf.mxu0 }
0x533c   :  { %v13397_v56 = vadd.f32 %v15693_v16, %v13306_v62 }
0x533d   :  { %v13387_v20 = vpop.f32.mrf.mxu0 }
0x533e   :  { %v13396_v53 = vadd.f32 %v13387_v20, %v13305_v18 }
0x533f   :  { %v15700_v21 = vpop.f32.mrf.mxu1 }
0x5340   :  { %v13488_v13 = vadd.f32 %v15700_v21, %v13397_v56 }
0x5341   :  { %v13478_v54 = vpop.f32.mrf.mxu1 }
0x5342   :  { %v17349_v1 = vadd.f32 %v13499_v12, %v13488_v13  ;;  %v13487_v26 = vadd.f32 %v13478_v54, %v13396_v53 }
0x5344   :  { %v17351_v51 = vadd.f32 %v13494_v29, %v13487_v26  ;;  %v13506_v52 = vsel %vm1399_vm9, %v17349_v1, 0.0  ;;  %v13512_v28 = vmul.f32 %v17349_v1, %v17349_v1 }
0x5345   :  { %13507 = vadd.xlane.f32.xlu0 %v13506_v52 }
0x5346   :  { %v13516_v33 = vsel %vm1399_vm9, %v13512_v28, 0.0  ;;  %v13503_v23 = vsel %vm1399_vm9, %v17351_v51, 0.0  ;;  %v13511_v4 = vmul.f32 %v17351_v51, %v17351_v51 }
0x5347   :  { %13517 = vadd.xlane.f32.xlu1 %v13516_v33 }
0x5348   :  { %v13513_v36 = vsel %vm1399_vm9, %v13511_v4, 0.0 }
0x5349   :  { %13504 = vadd.xlane.f32.xlu0 %v13503_v23 }
0x534d   :  { %13514 = vadd.xlane.f32.xlu0 %v13513_v36 }
0x53ce   :  { %v13508_v38 = vpop.xlane.xlu0 %13507 }
0x53cf   :  { %v13510_v40 = vmul.f32 0.125, %v13508_v38 }
0x53d0   :  { %v13518_v39 = vpop.xlane.xlu1 %13517 }
0x53d1   :  { %v13520_v41 = vmul.f32 0.125, %v13518_v39 }
0x53d2   :  { %v13505_v43 = vpop.xlane.xlu0 %13504 }
0x53d3   :  { %v13524_v46 = vsel %vm1397_vm8, %v13510_v40, %v13520_v41  ;;  %v13509_v48 = vmul.f32 0.125, %v13505_v43 }
0x53d4   :  { %15701 = vmatprep.subr.mxu0 %v13524_v46 }
0x53d5   :  { %15702 = vmatpush3.msra.mxu0 %v13524_v46 }
0x53d6   :  { %v13515_v47 = vpop.xlane.xlu0 %13514 }
0x53d7   :  { %v13519_v50 = vmul.f32 0.125, %v13515_v47 }
0x53d9   :  { %v13523_v2 = vsel %vm1397_vm8, %v13509_v48, %v13519_v50 }
0x53da   :  { %15703 = vmatprep.subr.mxu0 %v13523_v2 }
0x53db   :  { %15704 = vmatpush3.msra.mxu0 %v13523_v2 }
0x53dc   :  { %15706 = vmatmul.mubr.msk.f32.vlgmr.msra.gmra.mxu0 %vm478_vm3, %v13522_v3 }
0x549c   :  { %v15707_v34 = vpop.f32.mrf.mxu0 }
0x549d   :  { %v13607_v8 = vmul.f32 %v15707_v34, %v15707_v34 }
0x549e   :  { %v13597_v7 = vpop.f32.mrf.mxu0 }
0x549f   :  { %v13606_v11 = vmul.f32 %v13597_v7, %v13597_v7  ;;  %13612 = vrot.lane.b32.xlu1 %v13607_v8, %s16150_s26 }
0x54a1   :  { %13610 = vrot.lane.b32.xlu0 %v13606_v11, %s16150_s26 }
0x54a3   :  { %13627 = vperm.xlu1 %15774, %v15707_v34  }
0x54a7   :  { %13622 = vperm.xlu1 %15774, %v13597_v7  }
0x54ab   :  { %13657 = vperm.xlu1 %15774, %v13649_v19  }
0x54af   :  { %13671 = vperm.xlu1 %15774, %v13663_v35  }
0x54b3   :  { %15777 = vset.pattern.permute.xlu1 %v16149_v60  ;;  %v6846_v60 = vld [vmem:[#allocation2 + $0x450] sm:$0xff] }
0x5511   :  { %v13613_v22 = vpop.permute.xlu1 %13612 }
0x5512   :  { %v13617_v42 = vsub.f32 %v15707_v34, %v13613_v22 }
0x5513   :  { %v13611_v10 = vpop.permute.xlu0 %13610 }
0x5514   :  { %v13619_v14 = vmax.f32 %v13617_v42, 0.0  ;;  %v13616_v9 = vsub.f32 %v13597_v7, %v13611_v10 }
0x5516   :  { %v13633_v49 = vadd.f32 1e-05, %v13619_v14  ;;  %v13618_v30 = vmax.f32 %v13616_v9, 0.0 }
0x5518   :  { %16075 = vrsqrt.f32 %v13633_v49  ;;  %v13632_v32 = vadd.f32 1e-05, %v13618_v30  ;;  %v13718_v30 = vld [vmem:[#allocation2 + $0x458] sm:$0xff] }
0x551a   :  { %16077 = vrsqrt.f32 %v13632_v32 }
0x551e   :  { %v13628_v17 = vpop.permute.xlu1 %13627 }
0x551f   :  { %v13631_v31 = vsub.f32 %v17349_v1, %v13628_v17 }
0x5522   :  { %v13623_v63 = vpop.permute.xlu1 %13622 }
0x5523   :  { %v13630_v55 = vsub.f32 %v17351_v51, %v13623_v63 }
0x5525   :  { %v16076_v61 = vpop.eup %16075 }
0x5526   :  { %13643 = vperm.xlu0 %15775, %v16076_v61   ;;  %v13658_v15 = vpop.permute.xlu1 %13657 }
0x5527   :  { %v16078_v57 = vpop.eup %16077 }
0x5528   :  { %13638 = vperm.xlu1 %15777, %v16078_v57  }
0x552a   :  { %15776 = vset.pattern.permute.xlu0 %v16141_v0  ;;  %v13672_v59 = vpop.permute.xlu1 %13671 }
0x552b   :  { %13652 = vperm.xlu0 %15776, %v13648_v58  }
0x552c   :  { %15778 = vset.pattern.permute.xlu1 %v16141_v0 }
0x552d   :  { %13666 = vperm.xlu1 %15778, %v13662_v24  }
0x552f   :  { %6849 = vperm.xlu0 %15776, %v6846_v60  }
0x5531   :  { %13722 = vperm.xlu1 %15778, %v6846_v60  }
0x55a1   :  { %v13644_v5 = vpop.permute.xlu0 %13643 }
0x55a2   :  { %v13647_v62 = vmul.f32 %v13644_v5, %v13631_v31 }
0x55a3   :  { %v13639_v45 = vpop.permute.xlu1 %13638 }
0x55a4   :  { %v13661_v16 = vmul.f32 %v13658_v15, %v13647_v62  ;;  %v13646_v20 = vmul.f32 %v13639_v45, %v13630_v55 }
0x55a6   :  { %v13675_v18 = vadd.f32 %v13672_v59, %v13661_v16  ;;  %v13653_v56 = vpop.permute.xlu0 %13652 }
0x55a7   :  { %v13660_v0 = vmul.f32 %v13653_v56, %v13646_v20 }
0x55a8   :  { %v13683_v21 = vand.u32 2147483647, %v13675_v18  ;;  %v13667_v53 = vpop.permute.xlu1 %13666  ;;  %v13677_v47 = vmax.f32 %v13675_v18, 0.0  ;;  %vm13679_vm6 = vcmp.ne.f32.partialorder %v13675_v18, %v13675_v18 }
0x55a9   :  { %v13674_v13 = vadd.f32 %v13667_v53, %v13660_v0 }
0x55aa   :  { %v13685_v12 = vsub.f32 0.0, %v13683_v21  ;;  %v6850_v54 = vpop.permute.xlu0 %6849 }
0x55ab   :  { %v13682_v26 = vand.u32 2147483647, %v13674_v13  ;;  %v6922_v29 = vadd.f32 %v16870_v44, %v6850_v54  ;;  %v13676_v8 = vmax.f32 %v13674_v13, 0.0  ;;  %vm13678_vm13 = vcmp.ne.f32.partialorder %v13674_v13, %v13674_v13 }
0x55ac   :  { %v13688_v52 = vmul.f32 1.442695, %v13685_v12  ;;  %v13723_v32 = vpop.permute.xlu1 %13722 }
0x55ad   :  { %v13684_v1 = vsub.f32 0.0, %v13682_v26  ;;  %6925 = vst.msk [vmem:[%s17389_s2] sm:$0xff] %vm1399_vm9, %v6922_v29 }
0x55ae   :  { %16079 = vpow2.f32 %v13688_v52 }
0x55af   :  { %v13686_v51 = vmul.f32 1.442695, %v13684_v1 }
0x55b1   :  { %16081 = vpow2.f32 %v13686_v51 }
0x55bb   :  { %v16080_v28 = vpop.eup %16079 }
0x55bc   :  { %v13699_v33 = vadd.f32 1.0, %v16080_v28  ;;  %v13702_v36 = vmul.f32 -0.5, %v16080_v28  ;;  %v13705_v44 = vand.u32 2147483647, %v16080_v28 }
0x55be   :  { %v16082_v23 = vpop.eup %16081  ;;  %16083 = vlog2.f32 %v13699_v33  ;;  %v13703_v38 = vadd.f32 1.0, %v13702_v36  ;;  %vm13706_vm5 = vcmp.lt.f32.partialorder %v13705_v44, 0.0004427343 }
0x55bf   :  { %v13690_v4 = vadd.f32 1.0, %v16082_v23  ;;  %v13693_v37 = vmul.f32 -0.5, %v16082_v23  ;;  %v13696_v46 = vand.u32 2147483647, %v16082_v23 }
0x55c0   :  { %v13704_v43 = vmul.f32 %v16080_v28, %v13703_v38 }
0x55c1   :  { %16085 = vlog2.f32 %v13690_v4  ;;  %v13694_v40 = vadd.f32 1.0, %v13693_v37  ;;  %vm13697_vm8 = vcmp.lt.f32.partialorder %v13696_v46, 0.0004427343 }
0x55c3   :  { %v13695_v34 = vmul.f32 %v16082_v23, %v13694_v40 }
0x55cb   :  { %v16084_v39 = vpop.eup %16083 }
0x55cc   :  { %v13701_v41 = vmul.f32 0.6931472, %v16084_v39 }
0x55ce   :  { %v16086_v48 = vpop.eup %16085  ;;  %v13707_v50 = vsel %vm13706_vm5, %v13704_v43, %v13701_v41 }
0x55cf   :  { %v13709_v2 = vadd.f32 %v13707_v50, %v13677_v47  ;;  %v13692_v3 = vmul.f32 0.6931472, %v16086_v48 }
0x55d1   :  { %v13711_v7 = vsel %vm13679_vm6, %v13675_v18, %v13709_v2  ;;  %v13698_v11 = vsel %vm13697_vm8, %v13695_v34, %v13692_v3 }
0x55d2   :  { %16087 = vtanh.f32 %v13711_v7  ;;  %v13708_v19 = vadd.f32 %v13698_v11, %v13676_v8 }
0x55d4   :  { %v13710_v35 = vsel %vm13678_vm13, %v13674_v13, %v13708_v19 }
0x55d5   :  { %16089 = vtanh.f32 %v13710_v35 }
0x55df   :  { %v16088_v22 = vpop.eup %16087 }
0x55e0   :  { %v13715_v42 = vmul.f32 %v16088_v22, %v13675_v18 }
0x55e2   :  { %v16090_v10 = vpop.eup %16089  ;;  %v13717_v14 = vadd.f32 %v17257_v25, %v13715_v42 }
0x55e3   :  { %v13714_v9 = vmul.f32 %v16090_v10, %v13674_v13 }
0x55e4   :  { %15709 = vmatpush3.msra.mxu1 %v13717_v14 }
0x55e5   :  { %15710 = vmatprep.subr.mxu1 %v16142_v6  ;;  %v13716_v49 = vadd.f32 %v13714_v9, %v17261_v27 }
0x55e7   :  { %15711 = vmatpush3.msra.mxu1 %v13716_v49 }
0x55e8   :  { %15713 = vmatmul.mubr.msk.f32.vlgmr.msra.gmra.mxu1 %vm478_vm3, %v13718_v30 }
0x56a8   :  { %v13794_v61 = vpop.f32.mrf.mxu1 }
0x56a9   :  { %v13795_v57 = vadd.f32 %v13794_v61, %v13723_v32 }
0x56aa   :  { %v15714_v58 = vpop.f32.mrf.mxu1 }
0x56ab   :  { %14174 = vst.msk [vmem:[%s17389_s2 + $0x8] sm:$0xff] %vm1399_vm9, %v13795_v57 }
0x56ac   :  { %13804 = vsyncpa [#allocation3], 1 }
0x56ad   :  { %13805 = vsyncpa [#allocation5], 1 }

</bundles_post_ra>
